<compile_context>
chip_gen: v7x
topology: tpu7x:2x2x1
jax: 0.10.0
libtpu: 0.0.40
codegen_flags: <defaults>
</compile_context>

<pallas_src>
import math
import functools

import jax
import jax.numpy as jnp
from jax.experimental import pallas as pl
from jax.experimental.pallas import tpu as pltpu


def attention_kernel(x_ref, wqkv_ref, wproj_ref, bias_ref, o_ref, *,
                     num_heads, scale):
    """One grid step processes bt batch elements (bt = lane dim of every tile).

    x_ref    : (N, C, bt)   x transposed; channels in sublanes, batch in lanes.
    wqkv_ref : (3C, C)      qkv weight, transposed + per-part column permute so
                            row f = part*C + d*H + h  (d-major, h-minor).
    wproj_ref: (C, C)       proj weight, transposed; contraction col = d*H + h.
    bias_ref : (C, 1)       proj bias (broadcast along lanes).
    o_ref    : (N, C, bt)   output, transposed like x (lane-dense stores).
    """
    N, C, bt = x_ref.shape
    H = num_heads
    hd = C // H

    w_qkv = wqkv_ref[...]                      # resident across grid steps
    w_proj = wproj_ref[...]
    bias = bias_ref[...].astype(jnp.float32)   # (C, 1)

    # ---- qkv projection (transposed orientation, one MXU matmul per n) ----
    # qkv_n[part*C + d*H + h, b] = (q|k|v)[b, n, h, d]; the row order makes each
    # aligned 8-sublane group exactly one (H, bt) head tile, so the reshapes
    # below are pure vreg re-indexing (no head-split transpose, no lane slice).
    q_parts, k_parts, v_parts = [], [], []
    for n in range(N):
        qkv_n = jnp.dot(w_qkv, x_ref[n],
                        preferred_element_type=jnp.float32)      # (3C, bt) f32
        q_parts.append(qkv_n[0 * C:1 * C].reshape(hd, H, bt))
        k_parts.append(qkv_n[1 * C:2 * C].reshape(hd, H, bt))
        v_parts.append(qkv_n[2 * C:3 * C].reshape(hd, H, bt))
    q_t = jnp.stack(q_parts, axis=0) * scale     # (N, hd, H, bt) f32 (scale in f32)
    k_t = jnp.stack(k_parts, axis=0)             # (N, hd, H, bt) f32
    v_t = jnp.stack(v_parts, axis=0)             # (N, hd, H, bt) f32

    # ---- attention core: fully lane-dense f32 VPU/EUP work ----
    # scores[n, m, h, b] = sum_d q_t[n,d,h,b] * k_t[m,d,h,b]; every operand of
    # every multiply is a whole (H, bt) tile (no sublane broadcasts, no MXU).
    # TODO(synk): for real ViT shapes (N~197+, hd=64, C=768) switch to an MXU
    # flash (kv-tiled online-softmax) path; this lane-major core targets the
    # tiny-head regime (hd<=8, N<=~32) of this module's defaults.
    scores = None
    for d in range(hd):
        term = q_t[:, d][:, None] * k_t[:, d][None]              # (N, M, H, bt)
        scores = term if scores is None else scores + term

    m_max = jnp.max(scores, axis=1, keepdims=True)               # (N, 1, H, bt)
    p = jnp.exp(scores - m_max)                                  # EUP
    denom = jnp.sum(p, axis=1, keepdims=True)                    # (N, 1, H, bt)
    inv = pl.reciprocal(denom, approx=True)                      # EUP vrcp
    inv = inv * (2.0 - denom * inv)                              # Newton step -> ~exact f32
    attn = p * inv                                               # (N, M, H, bt)
    # attn_drop: ratio 0.0 -> identity

    # ctx[n, d, h, b] = sum_m attn[n,m,h,b] * v_t[m,d,h,b]
    ctx = None
    for m in range(N):
        term = attn[:, m][:, None] * v_t[m][None]                # (N, hd, H, bt)
        ctx = term if ctx is None else ctx + term

    # ---- output projection + bias (transposed orientation, lane-dense store) ----
    mm_dtype = w_proj.dtype
    for n in range(N):
        ctx_n = ctx[n].reshape(C, bt).astype(mm_dtype)           # aligned head merge
        out_n = jnp.dot(w_proj, ctx_n,
                        preferred_element_type=jnp.float32) + bias
        # proj_drop: ratio 0.0 -> identity
        o_ref[n] = out_n.astype(o_ref.dtype)                     # (C, bt>=128) vst


def _num_tensorcores_per_chip():
    """Heuristic: v7x has 2 TensorCores per chip; v5e/v6e have 1."""
    try:
        kind = jax.devices()[0].device_kind.lower()
    except Exception:
        return 1
    return 2 if "v7" in kind else 1


def _block_vmem_bytes(bt, N, C, H, itemsize):
    """Rough per-grid-step VMEM estimate (double-buffered blocks + f32 core)."""
    io = 2 * 2 * N * C * bt * itemsize          # x + out blocks, double-buffered
    qkv = 2 * N * 3 * C * bt * 4                # f32 qkv accumulators (+ views)
    sm = 2 * N * N * H * bt * 4                 # scores + exp/attn
    ctx = N * C * bt * 4
    return io + qkv + sm + ctx


def _pick_block_b(B, N, C, H, itemsize, *, num_cores, vmem_budget_bytes=20 << 20):
    """Pick the batch block bt (the lane dimension of every kernel tile).

    bt must divide B and be a multiple of 128 (full-lane tiles + the (8,128)
    BlockSpec rule) unless bt == B.  Prefer the largest bt whose grid length
    still covers every TensorCore (grid_len == 1 on v5e/v6e, >= 2 on v7x)
    subject to a conservative VMEM budget (v7x: 64 MiB physical VMEM).
    """
    cands = sorted(d for d in range(1, B + 1)
                   if B % d == 0 and (d % 128 == 0 or d == B))
    fitting = [d for d in cands
               if _block_vmem_bytes(d, N, C, H, itemsize) <= vmem_budget_bytes]
    if not fitting:
        fitting = [cands[0]]
    pref = [d for d in fitting if (B // d) >= num_cores]
    return max(pref) if pref else max(fitting)


def attention_pallas(x, w_qkv, w_proj, b_proj, *, num_heads, block_b=None):
    """Forward pass of the `Attention` module.

    x      : (B, N, C)
    w_qkv  : (C, 3C)  so qkv = x @ w_qkv  (qkv_bias=False, the module default)
    w_proj : (C, C)   so out = ctx @ w_proj + b_proj
    b_proj : (C,)
    """
    B, N, C = x.shape
    H = num_heads
    assert C % H == 0, "dim must be divisible by num_heads"
    hd = C // H
    scale = hd ** (-0.5)

    # --- layout plumbing (XLA, outside the kernel) ---
    # x_t[n, c, b] = x[b, n, c]: channels in sublanes, batch in lanes.
    # TODO(synk): in a full network the surrounding layers would produce /
    # consume this (N, C, B) layout directly instead of transposing here.
    x_t = jnp.transpose(x, (1, 2, 0))

    # qkv weight: transpose to (features, C) and permute each part's feature
    # order from (h, d) to (d, h) so head h of a fixed d lands in sublane h.
    w4 = w_qkv.reshape(C, 3, H, hd)                              # [c, part, h, d]
    wqkv_t = jnp.transpose(w4, (1, 3, 2, 0)).reshape(3 * C, C)   # row = part*C + d*H + h

    # proj weight: transpose to (c_out, features) with the same (d, h) order on
    # the contraction axis, matching the kernel's merged-context layout.
    wp4 = w_proj.reshape(H, hd, C)                               # [h, d, c_out]
    wproj_t = jnp.transpose(wp4, (2, 1, 0)).reshape(C, C)        # col = d*H + h

    bias = b_proj.reshape(C, 1)

    itemsize = jnp.dtype(x.dtype).itemsize
    num_cores = _num_tensorcores_per_chip()
    bt = block_b if block_b is not None else _pick_block_b(
        B, N, C, H, itemsize, num_cores=num_cores)
    assert B % bt == 0, "block_b must divide the batch"
    grid_len = B // bt

    kernel = functools.partial(attention_kernel, num_heads=H, scale=scale)

    out_t = pl.pallas_call(
        kernel,
        out_shape=jax.ShapeDtypeStruct((N, C, B), x.dtype),
        grid_spec=pltpu.PrefetchScalarGridSpec(
            num_scalar_prefetch=0,
            grid=(grid_len,),
            in_specs=[
                pl.BlockSpec((N, C, bt), lambda g: (0, 0, g)),
                pl.BlockSpec((3 * C, C), lambda g: (0, 0)),      # resident weights
                pl.BlockSpec((C, C), lambda g: (0, 0)),
                pl.BlockSpec((C, 1), lambda g: (0, 0)),
            ],
            out_specs=pl.BlockSpec((N, C, bt), lambda g: (0, 0, g)),
        ),
        compiler_params=pltpu.CompilerParams(
            dimension_semantics=("parallel",),
            vmem_limit_bytes=32 * 1024 * 1024,
        ),
    )(x_t, wqkv_t, wproj_t, bias)

    return jnp.transpose(out_t, (2, 0, 1))                       # (B, N, C)


def attention_reference(x, w_qkv, w_proj, b_proj, *, num_heads):
    """Plain-JAX (f32, highest matmul precision) reference of the PyTorch forward."""
    pH = jax.lax.Precision.HIGHEST
    x = x.astype(jnp.float32)
    w_qkv = w_qkv.astype(jnp.float32)
    w_proj = w_proj.astype(jnp.float32)
    b_proj = b_proj.astype(jnp.float32)
    B, N, C = x.shape
    H = num_heads
    hd = C // H
    scale = hd ** (-0.5)
    qkv = jnp.einsum('bnc,cf->bnf', x, w_qkv, precision=pH)
    qkv = qkv.reshape(B, N, 3, H, hd).transpose(2, 0, 3, 1, 4)
    q, k, v = qkv[0], qkv[1], qkv[2]                             # (B,H,N,hd)
    attn = jnp.einsum('bhnd,bhmd->bhnm', q, k, precision=pH) * scale
    attn = jax.nn.softmax(attn, axis=-1)
    out = jnp.einsum('bhnm,bhmd->bhnd', attn, v, precision=pH)
    out = out.transpose(0, 2, 1, 3).reshape(B, N, C)
    return jnp.einsum('bnc,cd->bnd', out, w_proj, precision=pH) + b_proj


if __name__ == "__main__":
    # Shapes consistent with the module defaults: dim C=32, num_heads=8, seq N=8.
    # Batch 256 so the lane dimension of every tile is full (bt = 128 or 256)
    # and the grid can split across both v7x TensorCores.
    B, N, C = 256, 8, 32
    num_heads = 8

    key = jax.random.PRNGKey(0)
    kx, kq, kp, kb = jax.random.split(key, 4)
    x = jax.random.normal(kx, (B, N, C), dtype=jnp.float32)
    w_qkv = jax.random.normal(kq, (C, 3 * C), dtype=jnp.float32) * (1.0 / math.sqrt(C))
    w_proj = jax.random.normal(kp, (C, C), dtype=jnp.float32) * (1.0 / math.sqrt(C))
    b_proj = jax.random.normal(kb, (C,), dtype=jnp.float32) * 0.01

    fwd = jax.jit(functools.partial(attention_pallas, num_heads=num_heads))

    # ---- f32 run: tight correctness gate (Newton-corrected softmax recip) ----
    out = jax.block_until_ready(fwd(x, w_qkv, w_proj, b_proj))
    ref = attention_reference(x, w_qkv, w_proj, b_proj, num_heads=num_heads)
    assert out.shape == (B, N, C)
    assert jnp.allclose(out, ref, atol=5e-3, rtol=5e-3), "f32 mismatch vs reference"

    # ---- bf16 run: recommended on v5e as well as v6e/v7x (bf16-native MXUs);
    # attention-core math stays f32, only the projections see bf16 inputs.
    xb, wqb, wpb, bpb = [a.astype(jnp.bfloat16) for a in (x, w_qkv, w_proj, b_proj)]
    out_bf16 = jax.block_until_ready(fwd(xb, wqb, wpb, bpb))
    ref_bf16 = attention_reference(xb, wqb, wpb, bpb, num_heads=num_heads)
    assert out_bf16.shape == (B, N, C)
    assert jnp.allclose(out_bf16.astype(jnp.float32), ref_bf16, atol=0.2, rtol=0.1), \
        "bf16 mismatch vs reference"

    print("KERNEL_OK")
</pallas_src>

<mosaic_0001>
module attributes {stable_mosaic.version = 11 : i64} {
  func.func @attention_kernel(%arg0: i32, %arg1: memref<8x32x256xf32, #tpu.memory_space<vmem>>, %arg2: memref<96x32xf32, #tpu.memory_space<vmem>>, %arg3: memref<32x32xf32, #tpu.memory_space<vmem>>, %arg4: memref<32x1xf32, #tpu.memory_space<vmem>>, %arg5: memref<8x32x256xf32, #tpu.memory_space<vmem>>) attributes {dimension_semantics = [#tpu.dimension_semantics<parallel>], iteration_bounds = array<i64: 1>, scalar_prefetch = 0 : i64, scratch_operands = 0 : i64, tpu.core_type = #tpu.core_type<tc>, window_params = [{transform_indices = @transform_0, window_bounds = array<i64: 8, 32, 256>}, {pipeline_mode = #tpu.pipeline_mode<synchronous>, transform_indices = @transform_1, window_bounds = array<i64: 96, 32>}, {pipeline_mode = #tpu.pipeline_mode<synchronous>, transform_indices = @transform_2, window_bounds = array<i64: 32, 32>}, {pipeline_mode = #tpu.pipeline_mode<synchronous>, transform_indices = @transform_3, window_bounds = array<i64: 32, 1>}, {transform_indices = @transform_4, window_bounds = array<i64: 8, 32, 256>}]} {
    %c0 = arith.constant 0 : index
    %c0_0 = arith.constant 0 : index
    %0 = vector.load %arg2[%c0, %c0_0] : memref<96x32xf32, #tpu.memory_space<vmem>>, vector<96x32xf32>
    %c0_1 = arith.constant 0 : index
    %c0_2 = arith.constant 0 : index
    %1 = vector.load %arg3[%c0_1, %c0_2] : memref<32x32xf32, #tpu.memory_space<vmem>>, vector<32x32xf32>
    %c0_3 = arith.constant 0 : index
    %c0_4 = arith.constant 0 : index
    %2 = vector.load %arg4[%c0_3, %c0_4] : memref<32x1xf32, #tpu.memory_space<vmem>>, vector<32x1xf32>
    %c0_5 = arith.constant 0 : index
    %c0_6 = arith.constant 0 : index
    %c0_7 = arith.constant 0 : index
    %3 = vector.load %arg1[%c0_5, %c0_6, %c0_7] : memref<8x32x256xf32, #tpu.memory_space<vmem>>, vector<1x32x256xf32>
    %4 = vector.shape_cast %3 : vector<1x32x256xf32> to vector<32x256xf32>
    %cst = arith.constant dense<0.000000e+00> : vector<96x256xf32>
    %5 = tpu.matmul %0, %4, %cst {dimension_numbers = #tpu.dot_dimension_numbers<[1], [0], [0], [1], [0, 0, 1, 1], [], []>} : vector<96x32xf32>, vector<32x256xf32>, vector<96x256xf32> -> vector<96x256xf32>
    %6 = vector.extract_strided_slice %5 {offsets = [0, 0], sizes = [32, 256], strides = [1, 1]} : vector<96x256xf32> to vector<32x256xf32>
    %7 = vector.shape_cast %6 : vector<32x256xf32> to vector<4x8x256xf32>
    %8 = vector.extract_strided_slice %5 {offsets = [32, 0], sizes = [32, 256], strides = [1, 1]} : vector<96x256xf32> to vector<32x256xf32>
    %9 = vector.shape_cast %8 : vector<32x256xf32> to vector<4x8x256xf32>
    %10 = vector.extract_strided_slice %5 {offsets = [64, 0], sizes = [32, 256], strides = [1, 1]} : vector<96x256xf32> to vector<32x256xf32>
    %11 = vector.shape_cast %10 : vector<32x256xf32> to vector<4x8x256xf32>
    %c1 = arith.constant 1 : index
    %c0_8 = arith.constant 0 : index
    %c0_9 = arith.constant 0 : index
    %12 = vector.load %arg1[%c1, %c0_8, %c0_9] : memref<8x32x256xf32, #tpu.memory_space<vmem>>, vector<1x32x256xf32>
    %13 = vector.shape_cast %12 : vector<1x32x256xf32> to vector<32x256xf32>
    %cst_10 = arith.constant dense<0.000000e+00> : vector<96x256xf32>
    %14 = tpu.matmul %0, %13, %cst_10 {dimension_numbers = #tpu.dot_dimension_numbers<[1], [0], [0], [1], [0, 0, 1, 1], [], []>} : vector<96x32xf32>, vector<32x256xf32>, vector<96x256xf32> -> vector<96x256xf32>
    %15 = vector.extract_strided_slice %14 {offsets = [0, 0], sizes = [32, 256], strides = [1, 1]} : vector<96x256xf32> to vector<32x256xf32>
    %16 = vector.shape_cast %15 : vector<32x256xf32> to vector<4x8x256xf32>
    %17 = vector.extract_strided_slice %14 {offsets = [32, 0], sizes = [32, 256], strides = [1, 1]} : vector<96x256xf32> to vector<32x256xf32>
    %18 = vector.shape_cast %17 : vector<32x256xf32> to vector<4x8x256xf32>
    %19 = vector.extract_strided_slice %14 {offsets = [64, 0], sizes = [32, 256], strides = [1, 1]} : vector<96x256xf32> to vector<32x256xf32>
    %20 = vector.shape_cast %19 : vector<32x256xf32> to vector<4x8x256xf32>
    %c2 = arith.constant 2 : index
    %c0_11 = arith.constant 0 : index
    %c0_12 = arith.constant 0 : index
    %21 = vector.load %arg1[%c2, %c0_11, %c0_12] : memref<8x32x256xf32, #tpu.memory_space<vmem>>, vector<1x32x256xf32>
    %22 = vector.shape_cast %21 : vector<1x32x256xf32> to vector<32x256xf32>
    %cst_13 = arith.constant dense<0.000000e+00> : vector<96x256xf32>
    %23 = tpu.matmul %0, %22, %cst_13 {dimension_numbers = #tpu.dot_dimension_numbers<[1], [0], [0], [1], [0, 0, 1, 1], [], []>} : vector<96x32xf32>, vector<32x256xf32>, vector<96x256xf32> -> vector<96x256xf32>
    %24 = vector.extract_strided_slice %23 {offsets = [0, 0], sizes = [32, 256], strides = [1, 1]} : vector<96x256xf32> to vector<32x256xf32>
    %25 = vector.shape_cast %24 : vector<32x256xf32> to vector<4x8x256xf32>
    %26 = vector.extract_strided_slice %23 {offsets = [32, 0], sizes = [32, 256], strides = [1, 1]} : vector<96x256xf32> to vector<32x256xf32>
    %27 = vector.shape_cast %26 : vector<32x256xf32> to vector<4x8x256xf32>
    %28 = vector.extract_strided_slice %23 {offsets = [64, 0], sizes = [32, 256], strides = [1, 1]} : vector<96x256xf32> to vector<32x256xf32>
    %29 = vector.shape_cast %28 : vector<32x256xf32> to vector<4x8x256xf32>
    %c3 = arith.constant 3 : index
    %c0_14 = arith.constant 0 : index
    %c0_15 = arith.constant 0 : index
    %30 = vector.load %arg1[%c3, %c0_14, %c0_15] : memref<8x32x256xf32, #tpu.memory_space<vmem>>, vector<1x32x256xf32>
    %31 = vector.shape_cast %30 : vector<1x32x256xf32> to vector<32x256xf32>
    %cst_16 = arith.constant dense<0.000000e+00> : vector<96x256xf32>
    %32 = tpu.matmul %0, %31, %cst_16 {dimension_numbers = #tpu.dot_dimension_numbers<[1], [0], [0], [1], [0, 0, 1, 1], [], []>} : vector<96x32xf32>, vector<32x256xf32>, vector<96x256xf32> -> vector<96x256xf32>
    %33 = vector.extract_strided_slice %32 {offsets = [0, 0], sizes = [32, 256], strides = [1, 1]} : vector<96x256xf32> to vector<32x256xf32>
    %34 = vector.shape_cast %33 : vector<32x256xf32> to vector<4x8x256xf32>
    %35 = vector.extract_strided_slice %32 {offsets = [32, 0], sizes = [32, 256], strides = [1, 1]} : vector<96x256xf32> to vector<32x256xf32>
    %36 = vector.shape_cast %35 : vector<32x256xf32> to vector<4x8x256xf32>
    %37 = vector.extract_strided_slice %32 {offsets = [64, 0], sizes = [32, 256], strides = [1, 1]} : vector<96x256xf32> to vector<32x256xf32>
    %38 = vector.shape_cast %37 : vector<32x256xf32> to vector<4x8x256xf32>
    %c4 = arith.constant 4 : index
    %c0_17 = arith.constant 0 : index
    %c0_18 = arith.constant 0 : index
    %39 = vector.load %arg1[%c4, %c0_17, %c0_18] : memref<8x32x256xf32, #tpu.memory_space<vmem>>, vector<1x32x256xf32>
    %40 = vector.shape_cast %39 : vector<1x32x256xf32> to vector<32x256xf32>
    %cst_19 = arith.constant dense<0.000000e+00> : vector<96x256xf32>
    %41 = tpu.matmul %0, %40, %cst_19 {dimension_numbers = #tpu.dot_dimension_numbers<[1], [0], [0], [1], [0, 0, 1, 1], [], []>} : vector<96x32xf32>, vector<32x256xf32>, vector<96x256xf32> -> vector<96x256xf32>
    %42 = vector.extract_strided_slice %41 {offsets = [0, 0], sizes = [32, 256], strides = [1, 1]} : vector<96x256xf32> to vector<32x256xf32>
    %43 = vector.shape_cast %42 : vector<32x256xf32> to vector<4x8x256xf32>
    %44 = vector.extract_strided_slice %41 {offsets = [32, 0], sizes = [32, 256], strides = [1, 1]} : vector<96x256xf32> to vector<32x256xf32>
    %45 = vector.shape_cast %44 : vector<32x256xf32> to vector<4x8x256xf32>
    %46 = vector.extract_strided_slice %41 {offsets = [64, 0], sizes = [32, 256], strides = [1, 1]} : vector<96x256xf32> to vector<32x256xf32>
    %47 = vector.shape_cast %46 : vector<32x256xf32> to vector<4x8x256xf32>
    %c5 = arith.constant 5 : index
    %c0_20 = arith.constant 0 : index
    %c0_21 = arith.constant 0 : index
    %48 = vector.load %arg1[%c5, %c0_20, %c0_21] : memref<8x32x256xf32, #tpu.memory_space<vmem>>, vector<1x32x256xf32>
    %49 = vector.shape_cast %48 : vector<1x32x256xf32> to vector<32x256xf32>
    %cst_22 = arith.constant dense<0.000000e+00> : vector<96x256xf32>
    %50 = tpu.matmul %0, %49, %cst_22 {dimension_numbers = #tpu.dot_dimension_numbers<[1], [0], [0], [1], [0, 0, 1, 1], [], []>} : vector<96x32xf32>, vector<32x256xf32>, vector<96x256xf32> -> vector<96x256xf32>
    %51 = vector.extract_strided_slice %50 {offsets = [0, 0], sizes = [32, 256], strides = [1, 1]} : vector<96x256xf32> to vector<32x256xf32>
    %52 = vector.shape_cast %51 : vector<32x256xf32> to vector<4x8x256xf32>
    %53 = vector.extract_strided_slice %50 {offsets = [32, 0], sizes = [32, 256], strides = [1, 1]} : vector<96x256xf32> to vector<32x256xf32>
    %54 = vector.shape_cast %53 : vector<32x256xf32> to vector<4x8x256xf32>
    %55 = vector.extract_strided_slice %50 {offsets = [64, 0], sizes = [32, 256], strides = [1, 1]} : vector<96x256xf32> to vector<32x256xf32>
    %56 = vector.shape_cast %55 : vector<32x256xf32> to vector<4x8x256xf32>
    %c6 = arith.constant 6 : index
    %c0_23 = arith.constant 0 : index
    %c0_24 = arith.constant 0 : index
    %57 = vector.load %arg1[%c6, %c0_23, %c0_24] : memref<8x32x256xf32, #tpu.memory_space<vmem>>, vector<1x32x256xf32>
    %58 = vector.shape_cast %57 : vector<1x32x256xf32> to vector<32x256xf32>
    %cst_25 = arith.constant dense<0.000000e+00> : vector<96x256xf32>
    %59 = tpu.matmul %0, %58, %cst_25 {dimension_numbers = #tpu.dot_dimension_numbers<[1], [0], [0], [1], [0, 0, 1, 1], [], []>} : vector<96x32xf32>, vector<32x256xf32>, vector<96x256xf32> -> vector<96x256xf32>
    %60 = vector.extract_strided_slice %59 {offsets = [0, 0], sizes = [32, 256], strides = [1, 1]} : vector<96x256xf32> to vector<32x256xf32>
    %61 = vector.shape_cast %60 : vector<32x256xf32> to vector<4x8x256xf32>
    %62 = vector.extract_strided_slice %59 {offsets = [32, 0], sizes = [32, 256], strides = [1, 1]} : vector<96x256xf32> to vector<32x256xf32>
    %63 = vector.shape_cast %62 : vector<32x256xf32> to vector<4x8x256xf32>
    %64 = vector.extract_strided_slice %59 {offsets = [64, 0], sizes = [32, 256], strides = [1, 1]} : vector<96x256xf32> to vector<32x256xf32>
    %65 = vector.shape_cast %64 : vector<32x256xf32> to vector<4x8x256xf32>
    %c7 = arith.constant 7 : index
    %c0_26 = arith.constant 0 : index
    %c0_27 = arith.constant 0 : index
    %66 = vector.load %arg1[%c7, %c0_26, %c0_27] : memref<8x32x256xf32, #tpu.memory_space<vmem>>, vector<1x32x256xf32>
    %67 = vector.shape_cast %66 : vector<1x32x256xf32> to vector<32x256xf32>
    %cst_28 = arith.constant dense<0.000000e+00> : vector<96x256xf32>
    %68 = tpu.matmul %0, %67, %cst_28 {dimension_numbers = #tpu.dot_dimension_numbers<[1], [0], [0], [1], [0, 0, 1, 1], [], []>} : vector<96x32xf32>, vector<32x256xf32>, vector<96x256xf32> -> vector<96x256xf32>
    %69 = vector.extract_strided_slice %68 {offsets = [0, 0], sizes = [32, 256], strides = [1, 1]} : vector<96x256xf32> to vector<32x256xf32>
    %70 = vector.shape_cast %69 : vector<32x256xf32> to vector<4x8x256xf32>
    %71 = vector.extract_strided_slice %68 {offsets = [32, 0], sizes = [32, 256], strides = [1, 1]} : vector<96x256xf32> to vector<32x256xf32>
    %72 = vector.shape_cast %71 : vector<32x256xf32> to vector<4x8x256xf32>
    %73 = vector.extract_strided_slice %68 {offsets = [64, 0], sizes = [32, 256], strides = [1, 1]} : vector<96x256xf32> to vector<32x256xf32>
    %74 = vector.shape_cast %73 : vector<32x256xf32> to vector<4x8x256xf32>
    %75 = vector.shape_cast %7 : vector<4x8x256xf32> to vector<1x4x8x256xf32>
    %76 = vector.shape_cast %16 : vector<4x8x256xf32> to vector<1x4x8x256xf32>
    %77 = vector.shape_cast %25 : vector<4x8x256xf32> to vector<1x4x8x256xf32>
    %78 = vector.shape_cast %34 : vector<4x8x256xf32> to vector<1x4x8x256xf32>
    %79 = vector.shape_cast %43 : vector<4x8x256xf32> to vector<1x4x8x256xf32>
    %80 = vector.shape_cast %52 : vector<4x8x256xf32> to vector<1x4x8x256xf32>
    %81 = vector.shape_cast %61 : vector<4x8x256xf32> to vector<1x4x8x256xf32>
    %82 = vector.shape_cast %70 : vector<4x8x256xf32> to vector<1x4x8x256xf32>
    %83 = tpu.concatenate %75, %76, %77, %78, %79, %80, %81, %82 in 0 : vector<1x4x8x256xf32>, vector<1x4x8x256xf32>, vector<1x4x8x256xf32>, vector<1x4x8x256xf32>, vector<1x4x8x256xf32>, vector<1x4x8x256xf32>, vector<1x4x8x256xf32>, vector<1x4x8x256xf32> -> vector<8x4x8x256xf32>
    %cst_29 = arith.constant 5.000000e-01 : f32
    %84 = vector.broadcast %cst_29 : f32 to vector<8x4x8x256xf32>
    %85 = arith.mulf %83, %84 : vector<8x4x8x256xf32>
    %86 = vector.shape_cast %9 : vector<4x8x256xf32> to vector<1x4x8x256xf32>
    %87 = vector.shape_cast %18 : vector<4x8x256xf32> to vector<1x4x8x256xf32>
    %88 = vector.shape_cast %27 : vector<4x8x256xf32> to vector<1x4x8x256xf32>
    %89 = vector.shape_cast %36 : vector<4x8x256xf32> to vector<1x4x8x256xf32>
    %90 = vector.shape_cast %45 : vector<4x8x256xf32> to vector<1x4x8x256xf32>
    %91 = vector.shape_cast %54 : vector<4x8x256xf32> to vector<1x4x8x256xf32>
    %92 = vector.shape_cast %63 : vector<4x8x256xf32> to vector<1x4x8x256xf32>
    %93 = vector.shape_cast %72 : vector<4x8x256xf32> to vector<1x4x8x256xf32>
    %94 = tpu.concatenate %86, %87, %88, %89, %90, %91, %92, %93 in 0 : vector<1x4x8x256xf32>, vector<1x4x8x256xf32>, vector<1x4x8x256xf32>, vector<1x4x8x256xf32>, vector<1x4x8x256xf32>, vector<1x4x8x256xf32>, vector<1x4x8x256xf32>, vector<1x4x8x256xf32> -> vector<8x4x8x256xf32>
    %95 = vector.shape_cast %11 : vector<4x8x256xf32> to vector<1x4x8x256xf32>
    %96 = vector.shape_cast %20 : vector<4x8x256xf32> to vector<1x4x8x256xf32>
    %97 = vector.shape_cast %29 : vector<4x8x256xf32> to vector<1x4x8x256xf32>
    %98 = vector.shape_cast %38 : vector<4x8x256xf32> to vector<1x4x8x256xf32>
    %99 = vector.shape_cast %47 : vector<4x8x256xf32> to vector<1x4x8x256xf32>
    %100 = vector.shape_cast %56 : vector<4x8x256xf32> to vector<1x4x8x256xf32>
    %101 = vector.shape_cast %65 : vector<4x8x256xf32> to vector<1x4x8x256xf32>
    %102 = vector.shape_cast %74 : vector<4x8x256xf32> to vector<1x4x8x256xf32>
    %103 = tpu.concatenate %95, %96, %97, %98, %99, %100, %101, %102 in 0 : vector<1x4x8x256xf32>, vector<1x4x8x256xf32>, vector<1x4x8x256xf32>, vector<1x4x8x256xf32>, vector<1x4x8x256xf32>, vector<1x4x8x256xf32>, vector<1x4x8x256xf32>, vector<1x4x8x256xf32> -> vector<8x4x8x256xf32>
    %104 = vector.extract_strided_slice %85 {offsets = [0, 0, 0, 0], sizes = [8, 1, 8, 256], strides = [1, 1, 1, 1]} : vector<8x4x8x256xf32> to vector<8x1x8x256xf32>
    %105 = vector.shape_cast %104 : vector<8x1x8x256xf32> to vector<8x8x256xf32>
    %106 = vector.shape_cast %105 : vector<8x8x256xf32> to vector<8x1x8x256xf32>
    %107 = vector.extract_strided_slice %94 {offsets = [0, 0, 0, 0], sizes = [8, 1, 8, 256], strides = [1, 1, 1, 1]} : vector<8x4x8x256xf32> to vector<8x1x8x256xf32>
    %108 = vector.shape_cast %107 : vector<8x1x8x256xf32> to vector<8x8x256xf32>
    %109 = vector.shape_cast %108 : vector<8x8x256xf32> to vector<1x8x8x256xf32>
    %110 = vector.broadcast %106 : vector<8x1x8x256xf32> to vector<8x8x8x256xf32>
    %111 = vector.broadcast %109 : vector<1x8x8x256xf32> to vector<8x8x8x256xf32>
    %112 = arith.mulf %110, %111 : vector<8x8x8x256xf32>
    %113 = vector.extract_strided_slice %85 {offsets = [0, 1, 0, 0], sizes = [8, 1, 8, 256], strides = [1, 1, 1, 1]} : vector<8x4x8x256xf32> to vector<8x1x8x256xf32>
    %114 = vector.shape_cast %113 : vector<8x1x8x256xf32> to vector<8x8x256xf32>
    %115 = vector.shape_cast %114 : vector<8x8x256xf32> to vector<8x1x8x256xf32>
    %116 = vector.extract_strided_slice %94 {offsets = [0, 1, 0, 0], sizes = [8, 1, 8, 256], strides = [1, 1, 1, 1]} : vector<8x4x8x256xf32> to vector<8x1x8x256xf32>
    %117 = vector.shape_cast %116 : vector<8x1x8x256xf32> to vector<8x8x256xf32>
    %118 = vector.shape_cast %117 : vector<8x8x256xf32> to vector<1x8x8x256xf32>
    %119 = vector.broadcast %115 : vector<8x1x8x256xf32> to vector<8x8x8x256xf32>
    %120 = vector.broadcast %118 : vector<1x8x8x256xf32> to vector<8x8x8x256xf32>
    %121 = arith.mulf %119, %120 : vector<8x8x8x256xf32>
    %122 = arith.addf %112, %121 : vector<8x8x8x256xf32>
    %123 = vector.extract_strided_slice %85 {offsets = [0, 2, 0, 0], sizes = [8, 1, 8, 256], strides = [1, 1, 1, 1]} : vector<8x4x8x256xf32> to vector<8x1x8x256xf32>
    %124 = vector.shape_cast %123 : vector<8x1x8x256xf32> to vector<8x8x256xf32>
    %125 = vector.shape_cast %124 : vector<8x8x256xf32> to vector<8x1x8x256xf32>
    %126 = vector.extract_strided_slice %94 {offsets = [0, 2, 0, 0], sizes = [8, 1, 8, 256], strides = [1, 1, 1, 1]} : vector<8x4x8x256xf32> to vector<8x1x8x256xf32>
    %127 = vector.shape_cast %126 : vector<8x1x8x256xf32> to vector<8x8x256xf32>
    %128 = vector.shape_cast %127 : vector<8x8x256xf32> to vector<1x8x8x256xf32>
    %129 = vector.broadcast %125 : vector<8x1x8x256xf32> to vector<8x8x8x256xf32>
    %130 = vector.broadcast %128 : vector<1x8x8x256xf32> to vector<8x8x8x256xf32>
    %131 = arith.mulf %129, %130 : vector<8x8x8x256xf32>
    %132 = arith.addf %122, %131 : vector<8x8x8x256xf32>
    %133 = vector.extract_strided_slice %85 {offsets = [0, 3, 0, 0], sizes = [8, 1, 8, 256], strides = [1, 1, 1, 1]} : vector<8x4x8x256xf32> to vector<8x1x8x256xf32>
    %134 = vector.shape_cast %133 : vector<8x1x8x256xf32> to vector<8x8x256xf32>
    %135 = vector.shape_cast %134 : vector<8x8x256xf32> to vector<8x1x8x256xf32>
    %136 = vector.extract_strided_slice %94 {offsets = [0, 3, 0, 0], sizes = [8, 1, 8, 256], strides = [1, 1, 1, 1]} : vector<8x4x8x256xf32> to vector<8x1x8x256xf32>
    %137 = vector.shape_cast %136 : vector<8x1x8x256xf32> to vector<8x8x256xf32>
    %138 = vector.shape_cast %137 : vector<8x8x256xf32> to vector<1x8x8x256xf32>
    %139 = vector.broadcast %135 : vector<8x1x8x256xf32> to vector<8x8x8x256xf32>
    %140 = vector.broadcast %138 : vector<1x8x8x256xf32> to vector<8x8x8x256xf32>
    %141 = arith.mulf %139, %140 : vector<8x8x8x256xf32>
    %142 = arith.addf %132, %141 : vector<8x8x8x256xf32>
    %cst_30 = arith.constant dense<0xFF800000> : vector<8x8x256xf32>
    %143 = vector.multi_reduction <maximumf>, %142, %cst_30 [1] : vector<8x8x8x256xf32> to vector<8x8x256xf32>
    %144 = vector.shape_cast %143 : vector<8x8x256xf32> to vector<8x1x8x256xf32>
    %145 = vector.broadcast %144 : vector<8x1x8x256xf32> to vector<8x8x8x256xf32>
    %146 = arith.subf %142, %145 : vector<8x8x8x256xf32>
    %147 = math.exp %146 : vector<8x8x8x256xf32>
    %cst_31 = arith.constant dense<0.000000e+00> : vector<8x8x256xf32>
    %148 = vector.multi_reduction <add>, %147, %cst_31 [1] : vector<8x8x8x256xf32> to vector<8x8x256xf32>
    %149 = vector.shape_cast %148 : vector<8x8x256xf32> to vector<8x1x8x256xf32>
    %150 = tpu.reciprocal %149 {approx = true} : vector<8x1x8x256xf32> -> vector<8x1x8x256xf32>
    %151 = arith.mulf %149, %150 : vector<8x1x8x256xf32>
    %cst_32 = arith.constant 2.000000e+00 : f32
    %152 = vector.broadcast %cst_32 : f32 to vector<8x1x8x256xf32>
    %153 = arith.subf %152, %151 : vector<8x1x8x256xf32>
    %154 = arith.mulf %150, %153 : vector<8x1x8x256xf32>
    %155 = vector.broadcast %154 : vector<8x1x8x256xf32> to vector<8x8x8x256xf32>
    %156 = arith.mulf %147, %155 : vector<8x8x8x256xf32>
    %157 = vector.extract_strided_slice %156 {offsets = [0, 0, 0, 0], sizes = [8, 1, 8, 256], strides = [1, 1, 1, 1]} : vector<8x8x8x256xf32> to vector<8x1x8x256xf32>
    %158 = vector.shape_cast %157 : vector<8x1x8x256xf32> to vector<8x8x256xf32>
    %159 = vector.shape_cast %158 : vector<8x8x256xf32> to vector<8x1x8x256xf32>
    %160 = vector.extract_strided_slice %103 {offsets = [0, 0, 0, 0], sizes = [1, 4, 8, 256], strides = [1, 1, 1, 1]} : vector<8x4x8x256xf32> to vector<1x4x8x256xf32>
    %161 = vector.shape_cast %160 : vector<1x4x8x256xf32> to vector<4x8x256xf32>
    %162 = vector.shape_cast %161 : vector<4x8x256xf32> to vector<1x4x8x256xf32>
    %163 = vector.broadcast %159 : vector<8x1x8x256xf32> to vector<8x4x8x256xf32>
    %164 = vector.broadcast %162 : vector<1x4x8x256xf32> to vector<8x4x8x256xf32>
    %165 = arith.mulf %163, %164 : vector<8x4x8x256xf32>
    %166 = vector.extract_strided_slice %156 {offsets = [0, 1, 0, 0], sizes = [8, 1, 8, 256], strides = [1, 1, 1, 1]} : vector<8x8x8x256xf32> to vector<8x1x8x256xf32>
    %167 = vector.shape_cast %166 : vector<8x1x8x256xf32> to vector<8x8x256xf32>
    %168 = vector.shape_cast %167 : vector<8x8x256xf32> to vector<8x1x8x256xf32>
    %169 = vector.extract_strided_slice %103 {offsets = [1, 0, 0, 0], sizes = [1, 4, 8, 256], strides = [1, 1, 1, 1]} : vector<8x4x8x256xf32> to vector<1x4x8x256xf32>
    %170 = vector.shape_cast %169 : vector<1x4x8x256xf32> to vector<4x8x256xf32>
    %171 = vector.shape_cast %170 : vector<4x8x256xf32> to vector<1x4x8x256xf32>
    %172 = vector.broadcast %168 : vector<8x1x8x256xf32> to vector<8x4x8x256xf32>
    %173 = vector.broadcast %171 : vector<1x4x8x256xf32> to vector<8x4x8x256xf32>
    %174 = arith.mulf %172, %173 : vector<8x4x8x256xf32>
    %175 = arith.addf %165, %174 : vector<8x4x8x256xf32>
    %176 = vector.extract_strided_slice %156 {offsets = [0, 2, 0, 0], sizes = [8, 1, 8, 256], strides = [1, 1, 1, 1]} : vector<8x8x8x256xf32> to vector<8x1x8x256xf32>
    %177 = vector.shape_cast %176 : vector<8x1x8x256xf32> to vector<8x8x256xf32>
    %178 = vector.shape_cast %177 : vector<8x8x256xf32> to vector<8x1x8x256xf32>
    %179 = vector.extract_strided_slice %103 {offsets = [2, 0, 0, 0], sizes = [1, 4, 8, 256], strides = [1, 1, 1, 1]} : vector<8x4x8x256xf32> to vector<1x4x8x256xf32>
    %180 = vector.shape_cast %179 : vector<1x4x8x256xf32> to vector<4x8x256xf32>
    %181 = vector.shape_cast %180 : vector<4x8x256xf32> to vector<1x4x8x256xf32>
    %182 = vector.broadcast %178 : vector<8x1x8x256xf32> to vector<8x4x8x256xf32>
    %183 = vector.broadcast %181 : vector<1x4x8x256xf32> to vector<8x4x8x256xf32>
    %184 = arith.mulf %182, %183 : vector<8x4x8x256xf32>
    %185 = arith.addf %175, %184 : vector<8x4x8x256xf32>
    %186 = vector.extract_strided_slice %156 {offsets = [0, 3, 0, 0], sizes = [8, 1, 8, 256], strides = [1, 1, 1, 1]} : vector<8x8x8x256xf32> to vector<8x1x8x256xf32>
    %187 = vector.shape_cast %186 : vector<8x1x8x256xf32> to vector<8x8x256xf32>
    %188 = vector.shape_cast %187 : vector<8x8x256xf32> to vector<8x1x8x256xf32>
    %189 = vector.extract_strided_slice %103 {offsets = [3, 0, 0, 0], sizes = [1, 4, 8, 256], strides = [1, 1, 1, 1]} : vector<8x4x8x256xf32> to vector<1x4x8x256xf32>
    %190 = vector.shape_cast %189 : vector<1x4x8x256xf32> to vector<4x8x256xf32>
    %191 = vector.shape_cast %190 : vector<4x8x256xf32> to vector<1x4x8x256xf32>
    %192 = vector.broadcast %188 : vector<8x1x8x256xf32> to vector<8x4x8x256xf32>
    %193 = vector.broadcast %191 : vector<1x4x8x256xf32> to vector<8x4x8x256xf32>
    %194 = arith.mulf %192, %193 : vector<8x4x8x256xf32>
    %195 = arith.addf %185, %194 : vector<8x4x8x256xf32>
    %196 = vector.extract_strided_slice %156 {offsets = [0, 4, 0, 0], sizes = [8, 1, 8, 256], strides = [1, 1, 1, 1]} : vector<8x8x8x256xf32> to vector<8x1x8x256xf32>
    %197 = vector.shape_cast %196 : vector<8x1x8x256xf32> to vector<8x8x256xf32>
    %198 = vector.shape_cast %197 : vector<8x8x256xf32> to vector<8x1x8x256xf32>
    %199 = vector.extract_strided_slice %103 {offsets = [4, 0, 0, 0], sizes = [1, 4, 8, 256], strides = [1, 1, 1, 1]} : vector<8x4x8x256xf32> to vector<1x4x8x256xf32>
    %200 = vector.shape_cast %199 : vector<1x4x8x256xf32> to vector<4x8x256xf32>
    %201 = vector.shape_cast %200 : vector<4x8x256xf32> to vector<1x4x8x256xf32>
    %202 = vector.broadcast %198 : vector<8x1x8x256xf32> to vector<8x4x8x256xf32>
    %203 = vector.broadcast %201 : vector<1x4x8x256xf32> to vector<8x4x8x256xf32>
    %204 = arith.mulf %202, %203 : vector<8x4x8x256xf32>
    %205 = arith.addf %195, %204 : vector<8x4x8x256xf32>
    %206 = vector.extract_strided_slice %156 {offsets = [0, 5, 0, 0], sizes = [8, 1, 8, 256], strides = [1, 1, 1, 1]} : vector<8x8x8x256xf32> to vector<8x1x8x256xf32>
    %207 = vector.shape_cast %206 : vector<8x1x8x256xf32> to vector<8x8x256xf32>
    %208 = vector.shape_cast %207 : vector<8x8x256xf32> to vector<8x1x8x256xf32>
    %209 = vector.extract_strided_slice %103 {offsets = [5, 0, 0, 0], sizes = [1, 4, 8, 256], strides = [1, 1, 1, 1]} : vector<8x4x8x256xf32> to vector<1x4x8x256xf32>
    %210 = vector.shape_cast %209 : vector<1x4x8x256xf32> to vector<4x8x256xf32>
    %211 = vector.shape_cast %210 : vector<4x8x256xf32> to vector<1x4x8x256xf32>
    %212 = vector.broadcast %208 : vector<8x1x8x256xf32> to vector<8x4x8x256xf32>
    %213 = vector.broadcast %211 : vector<1x4x8x256xf32> to vector<8x4x8x256xf32>
    %214 = arith.mulf %212, %213 : vector<8x4x8x256xf32>
    %215 = arith.addf %205, %214 : vector<8x4x8x256xf32>
    %216 = vector.extract_strided_slice %156 {offsets = [0, 6, 0, 0], sizes = [8, 1, 8, 256], strides = [1, 1, 1, 1]} : vector<8x8x8x256xf32> to vector<8x1x8x256xf32>
    %217 = vector.shape_cast %216 : vector<8x1x8x256xf32> to vector<8x8x256xf32>
    %218 = vector.shape_cast %217 : vector<8x8x256xf32> to vector<8x1x8x256xf32>
    %219 = vector.extract_strided_slice %103 {offsets = [6, 0, 0, 0], sizes = [1, 4, 8, 256], strides = [1, 1, 1, 1]} : vector<8x4x8x256xf32> to vector<1x4x8x256xf32>
    %220 = vector.shape_cast %219 : vector<1x4x8x256xf32> to vector<4x8x256xf32>
    %221 = vector.shape_cast %220 : vector<4x8x256xf32> to vector<1x4x8x256xf32>
    %222 = vector.broadcast %218 : vector<8x1x8x256xf32> to vector<8x4x8x256xf32>
    %223 = vector.broadcast %221 : vector<1x4x8x256xf32> to vector<8x4x8x256xf32>
    %224 = arith.mulf %222, %223 : vector<8x4x8x256xf32>
    %225 = arith.addf %215, %224 : vector<8x4x8x256xf32>
    %226 = vector.extract_strided_slice %156 {offsets = [0, 7, 0, 0], sizes = [8, 1, 8, 256], strides = [1, 1, 1, 1]} : vector<8x8x8x256xf32> to vector<8x1x8x256xf32>
    %227 = vector.shape_cast %226 : vector<8x1x8x256xf32> to vector<8x8x256xf32>
    %228 = vector.shape_cast %227 : vector<8x8x256xf32> to vector<8x1x8x256xf32>
    %229 = vector.extract_strided_slice %103 {offsets = [7, 0, 0, 0], sizes = [1, 4, 8, 256], strides = [1, 1, 1, 1]} : vector<8x4x8x256xf32> to vector<1x4x8x256xf32>
    %230 = vector.shape_cast %229 : vector<1x4x8x256xf32> to vector<4x8x256xf32>
    %231 = vector.shape_cast %230 : vector<4x8x256xf32> to vector<1x4x8x256xf32>
    %232 = vector.broadcast %228 : vector<8x1x8x256xf32> to vector<8x4x8x256xf32>
    %233 = vector.broadcast %231 : vector<1x4x8x256xf32> to vector<8x4x8x256xf32>
    %234 = arith.mulf %232, %233 : vector<8x4x8x256xf32>
    %235 = arith.addf %225, %234 : vector<8x4x8x256xf32>
    %236 = vector.extract_strided_slice %235 {offsets = [0, 0, 0, 0], sizes = [1, 4, 8, 256], strides = [1, 1, 1, 1]} : vector<8x4x8x256xf32> to vector<1x4x8x256xf32>
    %237 = vector.shape_cast %236 : vector<1x4x8x256xf32> to vector<4x8x256xf32>
    %238 = vector.shape_cast %237 : vector<4x8x256xf32> to vector<32x256xf32>
    %cst_33 = arith.constant dense<0.000000e+00> : vector<32x256xf32>
    %239 = tpu.matmul %1, %238, %cst_33 {dimension_numbers = #tpu.dot_dimension_numbers<[1], [0], [0], [1], [0, 0, 1, 1], [], []>} : vector<32x32xf32>, vector<32x256xf32>, vector<32x256xf32> -> vector<32x256xf32>
    %240 = vector.broadcast %2 : vector<32x1xf32> to vector<32x256xf32>
    %241 = arith.addf %239, %240 : vector<32x256xf32>
    %c0_34 = arith.constant 0 : index
    %c0_35 = arith.constant 0 : index
    %c0_36 = arith.constant 0 : index
    %242 = vector.load %arg5[%c0_34, %c0_35, %c0_36] : memref<8x32x256xf32, #tpu.memory_space<vmem>>, vector<1x32x256xf32>
    %243 = vector.shape_cast %242 : vector<1x32x256xf32> to vector<32x256xf32>
    %244 = vector.shape_cast %241 : vector<32x256xf32> to vector<1x32x256xf32>
    tpu.vector_store %arg5[%c0_34, %c0_35, %c0_36], %244 {strides = array<i32>} : memref<8x32x256xf32, #tpu.memory_space<vmem>>, vector<1x32x256xf32>,
    %245 = vector.extract_strided_slice %235 {offsets = [1, 0, 0, 0], sizes = [1, 4, 8, 256], strides = [1, 1, 1, 1]} : vector<8x4x8x256xf32> to vector<1x4x8x256xf32>
    %246 = vector.shape_cast %245 : vector<1x4x8x256xf32> to vector<4x8x256xf32>
    %247 = vector.shape_cast %246 : vector<4x8x256xf32> to vector<32x256xf32>
    %cst_37 = arith.constant dense<0.000000e+00> : vector<32x256xf32>
    %248 = tpu.matmul %1, %247, %cst_37 {dimension_numbers = #tpu.dot_dimension_numbers<[1], [0], [0], [1], [0, 0, 1, 1], [], []>} : vector<32x32xf32>, vector<32x256xf32>, vector<32x256xf32> -> vector<32x256xf32>
    %249 = vector.broadcast %2 : vector<32x1xf32> to vector<32x256xf32>
    %250 = arith.addf %248, %249 : vector<32x256xf32>
    %c1_38 = arith.constant 1 : index
    %c0_39 = arith.constant 0 : index
    %c0_40 = arith.constant 0 : index
    %251 = vector.load %arg5[%c1_38, %c0_39, %c0_40] : memref<8x32x256xf32, #tpu.memory_space<vmem>>, vector<1x32x256xf32>
    %252 = vector.shape_cast %251 : vector<1x32x256xf32> to vector<32x256xf32>
    %253 = vector.shape_cast %250 : vector<32x256xf32> to vector<1x32x256xf32>
    tpu.vector_store %arg5[%c1_38, %c0_39, %c0_40], %253 {strides = array<i32>} : memref<8x32x256xf32, #tpu.memory_space<vmem>>, vector<1x32x256xf32>,
    %254 = vector.extract_strided_slice %235 {offsets = [2, 0, 0, 0], sizes = [1, 4, 8, 256], strides = [1, 1, 1, 1]} : vector<8x4x8x256xf32> to vector<1x4x8x256xf32>
    %255 = vector.shape_cast %254 : vector<1x4x8x256xf32> to vector<4x8x256xf32>
    %256 = vector.shape_cast %255 : vector<4x8x256xf32> to vector<32x256xf32>
    %cst_41 = arith.constant dense<0.000000e+00> : vector<32x256xf32>
    %257 = tpu.matmul %1, %256, %cst_41 {dimension_numbers = #tpu.dot_dimension_numbers<[1], [0], [0], [1], [0, 0, 1, 1], [], []>} : vector<32x32xf32>, vector<32x256xf32>, vector<32x256xf32> -> vector<32x256xf32>
    %258 = vector.broadcast %2 : vector<32x1xf32> to vector<32x256xf32>
    %259 = arith.addf %257, %258 : vector<32x256xf32>
    %c2_42 = arith.constant 2 : index
    %c0_43 = arith.constant 0 : index
    %c0_44 = arith.constant 0 : index
    %260 = vector.load %arg5[%c2_42, %c0_43, %c0_44] : memref<8x32x256xf32, #tpu.memory_space<vmem>>, vector<1x32x256xf32>
    %261 = vector.shape_cast %260 : vector<1x32x256xf32> to vector<32x256xf32>
    %262 = vector.shape_cast %259 : vector<32x256xf32> to vector<1x32x256xf32>
    tpu.vector_store %arg5[%c2_42, %c0_43, %c0_44], %262 {strides = array<i32>} : memref<8x32x256xf32, #tpu.memory_space<vmem>>, vector<1x32x256xf32>,
    %263 = vector.extract_strided_slice %235 {offsets = [3, 0, 0, 0], sizes = [1, 4, 8, 256], strides = [1, 1, 1, 1]} : vector<8x4x8x256xf32> to vector<1x4x8x256xf32>
    %264 = vector.shape_cast %263 : vector<1x4x8x256xf32> to vector<4x8x256xf32>
    %265 = vector.shape_cast %264 : vector<4x8x256xf32> to vector<32x256xf32>
    %cst_45 = arith.constant dense<0.000000e+00> : vector<32x256xf32>
    %266 = tpu.matmul %1, %265, %cst_45 {dimension_numbers = #tpu.dot_dimension_numbers<[1], [0], [0], [1], [0, 0, 1, 1], [], []>} : vector<32x32xf32>, vector<32x256xf32>, vector<32x256xf32> -> vector<32x256xf32>
    %267 = vector.broadcast %2 : vector<32x1xf32> to vector<32x256xf32>
    %268 = arith.addf %266, %267 : vector<32x256xf32>
    %c3_46 = arith.constant 3 : index
    %c0_47 = arith.constant 0 : index
    %c0_48 = arith.constant 0 : index
    %269 = vector.load %arg5[%c3_46, %c0_47, %c0_48] : memref<8x32x256xf32, #tpu.memory_space<vmem>>, vector<1x32x256xf32>
    %270 = vector.shape_cast %269 : vector<1x32x256xf32> to vector<32x256xf32>
    %271 = vector.shape_cast %268 : vector<32x256xf32> to vector<1x32x256xf32>
    tpu.vector_store %arg5[%c3_46, %c0_47, %c0_48], %271 {strides = array<i32>} : memref<8x32x256xf32, #tpu.memory_space<vmem>>, vector<1x32x256xf32>,
    %272 = vector.extract_strided_slice %235 {offsets = [4, 0, 0, 0], sizes = [1, 4, 8, 256], strides = [1, 1, 1, 1]} : vector<8x4x8x256xf32> to vector<1x4x8x256xf32>
    %273 = vector.shape_cast %272 : vector<1x4x8x256xf32> to vector<4x8x256xf32>
    %274 = vector.shape_cast %273 : vector<4x8x256xf32> to vector<32x256xf32>
    %cst_49 = arith.constant dense<0.000000e+00> : vector<32x256xf32>
    %275 = tpu.matmul %1, %274, %cst_49 {dimension_numbers = #tpu.dot_dimension_numbers<[1], [0], [0], [1], [0, 0, 1, 1], [], []>} : vector<32x32xf32>, vector<32x256xf32>, vector<32x256xf32> -> vector<32x256xf32>
    %276 = vector.broadcast %2 : vector<32x1xf32> to vector<32x256xf32>
    %277 = arith.addf %275, %276 : vector<32x256xf32>
    %c4_50 = arith.constant 4 : index
    %c0_51 = arith.constant 0 : index
    %c0_52 = arith.constant 0 : index
    %278 = vector.load %arg5[%c4_50, %c0_51, %c0_52] : memref<8x32x256xf32, #tpu.memory_space<vmem>>, vector<1x32x256xf32>
    %279 = vector.shape_cast %278 : vector<1x32x256xf32> to vector<32x256xf32>
    %280 = vector.shape_cast %277 : vector<32x256xf32> to vector<1x32x256xf32>
    tpu.vector_store %arg5[%c4_50, %c0_51, %c0_52], %280 {strides = array<i32>} : memref<8x32x256xf32, #tpu.memory_space<vmem>>, vector<1x32x256xf32>,
    %281 = vector.extract_strided_slice %235 {offsets = [5, 0, 0, 0], sizes = [1, 4, 8, 256], strides = [1, 1, 1, 1]} : vector<8x4x8x256xf32> to vector<1x4x8x256xf32>
    %282 = vector.shape_cast %281 : vector<1x4x8x256xf32> to vector<4x8x256xf32>
    %283 = vector.shape_cast %282 : vector<4x8x256xf32> to vector<32x256xf32>
    %cst_53 = arith.constant dense<0.000000e+00> : vector<32x256xf32>
    %284 = tpu.matmul %1, %283, %cst_53 {dimension_numbers = #tpu.dot_dimension_numbers<[1], [0], [0], [1], [0, 0, 1, 1], [], []>} : vector<32x32xf32>, vector<32x256xf32>, vector<32x256xf32> -> vector<32x256xf32>
    %285 = vector.broadcast %2 : vector<32x1xf32> to vector<32x256xf32>
    %286 = arith.addf %284, %285 : vector<32x256xf32>
    %c5_54 = arith.constant 5 : index
    %c0_55 = arith.constant 0 : index
    %c0_56 = arith.constant 0 : index
    %287 = vector.load %arg5[%c5_54, %c0_55, %c0_56] : memref<8x32x256xf32, #tpu.memory_space<vmem>>, vector<1x32x256xf32>
    %288 = vector.shape_cast %287 : vector<1x32x256xf32> to vector<32x256xf32>
    %289 = vector.shape_cast %286 : vector<32x256xf32> to vector<1x32x256xf32>
    tpu.vector_store %arg5[%c5_54, %c0_55, %c0_56], %289 {strides = array<i32>} : memref<8x32x256xf32, #tpu.memory_space<vmem>>, vector<1x32x256xf32>,
    %290 = vector.extract_strided_slice %235 {offsets = [6, 0, 0, 0], sizes = [1, 4, 8, 256], strides = [1, 1, 1, 1]} : vector<8x4x8x256xf32> to vector<1x4x8x256xf32>
    %291 = vector.shape_cast %290 : vector<1x4x8x256xf32> to vector<4x8x256xf32>
    %292 = vector.shape_cast %291 : vector<4x8x256xf32> to vector<32x256xf32>
    %cst_57 = arith.constant dense<0.000000e+00> : vector<32x256xf32>
    %293 = tpu.matmul %1, %292, %cst_57 {dimension_numbers = #tpu.dot_dimension_numbers<[1], [0], [0], [1], [0, 0, 1, 1], [], []>} : vector<32x32xf32>, vector<32x256xf32>, vector<32x256xf32> -> vector<32x256xf32>
    %294 = vector.broadcast %2 : vector<32x1xf32> to vector<32x256xf32>
    %295 = arith.addf %293, %294 : vector<32x256xf32>
    %c6_58 = arith.constant 6 : index
    %c0_59 = arith.constant 0 : index
    %c0_60 = arith.constant 0 : index
    %296 = vector.load %arg5[%c6_58, %c0_59, %c0_60] : memref<8x32x256xf32, #tpu.memory_space<vmem>>, vector<1x32x256xf32>
    %297 = vector.shape_cast %296 : vector<1x32x256xf32> to vector<32x256xf32>
    %298 = vector.shape_cast %295 : vector<32x256xf32> to vector<1x32x256xf32>
    tpu.vector_store %arg5[%c6_58, %c0_59, %c0_60], %298 {strides = array<i32>} : memref<8x32x256xf32, #tpu.memory_space<vmem>>, vector<1x32x256xf32>,
    %299 = vector.extract_strided_slice %235 {offsets = [7, 0, 0, 0], sizes = [1, 4, 8, 256], strides = [1, 1, 1, 1]} : vector<8x4x8x256xf32> to vector<1x4x8x256xf32>
    %300 = vector.shape_cast %299 : vector<1x4x8x256xf32> to vector<4x8x256xf32>
    %301 = vector.shape_cast %300 : vector<4x8x256xf32> to vector<32x256xf32>
    %cst_61 = arith.constant dense<0.000000e+00> : vector<32x256xf32>
    %302 = tpu.matmul %1, %301, %cst_61 {dimension_numbers = #tpu.dot_dimension_numbers<[1], [0], [0], [1], [0, 0, 1, 1], [], []>} : vector<32x32xf32>, vector<32x256xf32>, vector<32x256xf32> -> vector<32x256xf32>
    %303 = vector.broadcast %2 : vector<32x1xf32> to vector<32x256xf32>
    %304 = arith.addf %302, %303 : vector<32x256xf32>
    %c7_62 = arith.constant 7 : index
    %c0_63 = arith.constant 0 : index
    %c0_64 = arith.constant 0 : index
    %305 = vector.load %arg5[%c7_62, %c0_63, %c0_64] : memref<8x32x256xf32, #tpu.memory_space<vmem>>, vector<1x32x256xf32>
    %306 = vector.shape_cast %305 : vector<1x32x256xf32> to vector<32x256xf32>
    %307 = vector.shape_cast %304 : vector<32x256xf32> to vector<1x32x256xf32>
    tpu.vector_store %arg5[%c7_62, %c0_63, %c0_64], %307 {strides = array<i32>} : memref<8x32x256xf32, #tpu.memory_space<vmem>>, vector<1x32x256xf32>,
    return
  }
  func.func @transform_0(%arg0: i32) -> (i32, i32, i32) {
    %c0_i32 = arith.constant 0 : i32
    %c0_i32_0 = arith.constant 0 : i32
    %c0_i32_1 = arith.constant 0 : i32
    return %c0_i32, %c0_i32_0, %arg0 : i32, i32, i32
  }
  func.func @transform_1(%arg0: i32) -> (i32, i32) {
    %c0_i32 = arith.constant 0 : i32
    %c0_i32_0 = arith.constant 0 : i32
    %c0_i32_1 = arith.constant 0 : i32
    return %c0_i32, %c0_i32_0 : i32, i32
  }
  func.func @transform_2(%arg0: i32) -> (i32, i32) {
    %c0_i32 = arith.constant 0 : i32
    %c0_i32_0 = arith.constant 0 : i32
    %c0_i32_1 = arith.constant 0 : i32
    return %c0_i32, %c0_i32_0 : i32, i32
  }
  func.func @transform_3(%arg0: i32) -> (i32, i32) {
    %c0_i32 = arith.constant 0 : i32
    %c0_i32_0 = arith.constant 0 : i32
    %c0_i32_1 = arith.constant 0 : i32
    return %c0_i32, %c0_i32_0 : i32, i32
  }
  func.func @transform_4(%arg0: i32) -> (i32, i32, i32) {
    %c0_i32 = arith.constant 0 : i32
    %c0_i32_0 = arith.constant 0 : i32
    %c0_i32_1 = arith.constant 0 : i32
    return %c0_i32, %c0_i32_0, %arg0 : i32, i32, i32
  }
}

</mosaic_0001>

<bundles_post_ra>
// kernel: attention_pallas.1
= control target key start
LH: loop header
LB: loop body
LE: loop exit
PB: predicated region body
PF: predicated region fallthrough
CT: control target
= control target key end

     0   :  { %9 = vsyncpa [#allocation3], 0  ;;  %s10875_s0 = inlined_call_operand.hbm [shape: f32[8,32,256], index: 0, kind: input, shape index: {}]   ;;  %s10876_s1 = inlined_call_operand.vmem [shape: f32[96,32], index: 1, kind: input, shape index: {}]   ;;  %s10877_s2 = inlined_call_operand.vmem [shape: f32[32,32], index: 2, kind: input, shape index: {}]   ;;  %s10878_s3 = inlined_call_operand.vmem [shape: f32[32,1], index: 3, kind: input, shape index: {}]   ;;  %s10879_s4 = inlined_call_operand.hbm [shape: f32[8,32,256], index: 4, kind: output, shape index: {}]  }
   0x1   :  { %10 = vsyncpa [#allocation4], 0  ;;  %s5412_s15 = smov [#allocation2]   ;;  %s5364_s19 = scalar_lea.hbm %s10875_s0, 8192 }
   0x2   :  { %s16_s16 = sshll.u32 %s5412_s15, 4  ;;  %p5365_p0 = scmp.ne.s32.totalorder %s10875_s0, %s5364_s19  ;;  %s17_s16 = int_to_ptr.vmem [resolvable:$true] %s16_s16 }
   0x3   :  { %p5368_p1 = scmp.lt.u32.totalorder %s5364_s19, %s10875_s0 }
   0x5   :  { %p5370_p2 = pnand %p5368_p1, %p5365_p0 }
   0x7   :  { %5373 = shalt.err (!%p5370_p2)
}
   0x8   :  { %s5374_s24 = scalar_lea.vmem %s17_s16, 8192  ;;  %p5379_p4 = scmp.lt.s32.totalorder %s17_s16, %s17_s16 }
   0x9   :  { %p5375_p3 = scmp.ne.s32.totalorder %s17_s16, %s5374_s24  ;;  %p5380_p5 = scmp.lt.s32.totalorder %s5374_s24, %s5374_s24 }
   0xb   :  { %p5381_p6 = por %p5380_p5, %p5379_p4 }
   0xd   :  { %p5382_p7 = pnand %p5381_p6, %p5375_p3 }
   0xf   :  { %5385 = shalt.err (!%p5382_p7)
}
  0x10   :  { %s5413_s25 = smov 256   ;;  %s5414_s26 = smov 16  }
  0x11   :  { %22 = dma.hbm_to_vmem [thread:$0]  %s10875_s0, 8192, %s17_s16, [#allocation3], %s5413_s25, %s5413_s25, %s5414_s26  }
  0x12   :  { %5408 = dma.done.wait [#allocation3], 8192  }
  0x13   :  { %5409 = vsyncadd [#allocation3], 4294959104  ;;  %v10880_v0 = vmov 0.0   ;;  %v53_v1 = vld [vmem:[#allocation2 + $0x8] sm:$0xff]  ;;  %v55_v2 = vld [vmem:[#allocation2 + $0x18] sm:$0xff]  ;;  %vm60_vm0 = vcmask 261120  }
  0x14   :  { %161 = vmatprep.mubr.f32.mxu0 %v10880_v0  ;;  %307 = vmatprep.mubr.f32.mxu1 %v10880_v0  ;;  %v236_v3 = vld [vmem:[#allocation2 + $0x48] sm:$0xff]  ;;  %v4936_v4 = vpack.c.bf16 %v55_v2, %v53_v1  ;;  %v238_v5 = vld [vmem:[#allocation2 + $0x58] sm:$0xff]  ;;  %v52_v6 = vld [vmem:[#allocation2] sm:$0xff] }
  0x15   :  { %v54_v7 = vld [vmem:[#allocation2 + $0x10] sm:$0xff]  ;;  %v4944_v8 = vpack.c.bf16 %v238_v5, %v236_v3  ;;  %v235_v10 = vld [vmem:[#allocation2 + $0x40] sm:$0xff]  ;;  %v57_v12 = vld [vmem:[#allocation2 + $0x28] sm:$0xff] }
  0x16   :  { %v4938_v9 = vpack.c.bf16 %v54_v7, %v52_v6  ;;  %v237_v11 = vld [vmem:[#allocation2 + $0x50] sm:$0xff]  ;;  %4937 = vmatprep.subr.bf16.mxu0 %v4936_v4  ;;  %v59_v14 = vld [vmem:[#allocation2 + $0x38] sm:$0xff]  ;;  %v240_v15 = vld [vmem:[#allocation2 + $0x68] sm:$0xff] }
  0x17   :  { %v4946_v13 = vpack.c.bf16 %v237_v11, %v235_v10  ;;  %v242_v16 = vld [vmem:[#allocation2 + $0x78] sm:$0xff]  ;;  %4945 = vmatprep.subr.bf16.mxu1 %v4944_v8  ;;  %v4940_v17 = vpack.c.bf16 %v59_v14, %v57_v12  ;;  %v56_v19 = vld [vmem:[#allocation2 + $0x20] sm:$0xff]  ;;  %v58_v20 = vld [vmem:[#allocation2 + $0x30] sm:$0xff] }
  0x18   :  { %4939 = vmatpush1.bf16.msra.mxu0 %v4938_v9  ;;  %v4948_v18 = vpack.c.bf16 %v242_v16, %v240_v15  ;;  %v239_v21 = vld [vmem:[#allocation2 + $0x60] sm:$0xff]  ;;  %v4942_v22 = vpack.c.bf16 %v58_v20, %v56_v19  ;;  %v241_v23 = vld [vmem:[#allocation2 + $0x70] sm:$0xff]  ;;  %v382_v26 = vld [vmem:[#allocation2 + $0x88] sm:$0xff] }
  0x19   :  { %4947 = vmatpush1.bf16.msra.mxu1 %v4946_v13  ;;  %4941 = vmatprep.subr.bf16.mxu0 %v4940_v17  ;;  %v4950_v24 = vpack.c.bf16 %v241_v23, %v239_v21  ;;  %v5463_v25 = vld [vmem:[%s10876_s1] sm:$0xff]  ;;  %v384_v27 = vld [vmem:[#allocation2 + $0x98] sm:$0xff]  ;;  %v528_v28 = vld [vmem:[#allocation2 + $0xc8] sm:$0xff] }
  0x1a   :  { %4949 = vmatprep.subr.bf16.mxu1 %v4948_v18  ;;  %v4952_v29 = vpack.c.bf16 %v384_v27, %v382_v26  ;;  %v530_v30 = vld [vmem:[#allocation2 + $0xd8] sm:$0xff]  ;;  %v381_v31 = vld [vmem:[#allocation2 + $0x80] sm:$0xff]  ;;  %v383_v32 = vld [vmem:[#allocation2 + $0x90] sm:$0xff] }
  0x1b   :  { %v5470_v33 = vld [vmem:[%s10876_s1 + $0x8] sm:$0xff]  ;;  %v4960_v34 = vpack.c.bf16 %v530_v30, %v528_v28  ;;  %v4954_v35 = vpack.c.bf16 %v383_v32, %v381_v31  ;;  %v527_v36 = vld [vmem:[#allocation2 + $0xc0] sm:$0xff]  ;;  %v529_v37 = vld [vmem:[#allocation2 + $0xd0] sm:$0xff] }
  0x1c   :  { %4943 = vmatpush1.bf16.msra.mxu0 %v4942_v22  ;;  %v4962_v38 = vpack.c.bf16 %v529_v37, %v527_v36  ;;  %v386_v39 = vld [vmem:[#allocation2 + $0xa8] sm:$0xff]  ;;  %v388_v40 = vld [vmem:[#allocation2 + $0xb8] sm:$0xff]  ;;  %v385_v44 = vld [vmem:[#allocation2 + $0xa0] sm:$0xff] }
  0x1d   :  { %4951 = vmatpush1.bf16.msra.mxu1 %v4950_v24  ;;  %v532_v41 = vld [vmem:[#allocation2 + $0xe8] sm:$0xff]  ;;  %4953 = vmatprep.subr.bf16.mxu0 %v4952_v29  ;;  %v4956_v42 = vpack.c.bf16 %v388_v40, %v386_v39  ;;  %v534_v43 = vld [vmem:[#allocation2 + $0xf8] sm:$0xff]  ;;  %v387_v45 = vld [vmem:[#allocation2 + $0xb0] sm:$0xff] }
  0x1e   :  { %4961 = vmatprep.subr.bf16.mxu1 %v4960_v34  ;;  %v4964_v46 = vpack.c.bf16 %v534_v43, %v532_v41  ;;  %v4958_v47 = vpack.c.bf16 %v387_v45, %v385_v44  ;;  %v531_v48 = vld [vmem:[#allocation2 + $0xe0] sm:$0xff]  ;;  %v533_v49 = vld [vmem:[#allocation2 + $0xf0] sm:$0xff]  ;;  %v674_v50 = vld [vmem:[#allocation2 + $0x108] sm:$0xff] }
  0x1f   :  { %4808 = vmatmul.mubr.msk.f32.vlgmr.msra.gmra.mrb[0].mxu0 %vm60_vm0, %v5463_v25  ;;  %v4966_v51 = vpack.c.bf16 %v533_v49, %v531_v48  ;;  %v676_v52 = vld [vmem:[#allocation2 + $0x118] sm:$0xff]  ;;  %v820_v53 = vld [vmem:[#allocation2 + $0x148] sm:$0xff]  ;;  %v5484_v55 = vld [vmem:[%s10876_s1 + $0x10] sm:$0xff] }
  0x20   :  { %4820 = vmatmul.mubr.msk.f32.vlgmr.msra.gmra.mrb[0].mxu1 %vm60_vm0, %v5463_v25  ;;  %167 = vmatprep.mubr.f32.mxu0 %v10880_v0  ;;  %v822_v54 = vld [vmem:[#allocation2 + $0x158] sm:$0xff]  ;;  %v4968_v56 = vpack.c.bf16 %v676_v52, %v674_v50  ;;  %v5506_v59 = vld [vmem:[%s10876_s1 + $0x20] sm:$0xff]  ;;  %v5517_v60 = vld [vmem:[%s10876_s1 + $0x28] sm:$0xff] }
  0x21   :  { %313 = vmatprep.mubr.f32.mxu1 %v10880_v0  ;;  %4955 = vmatpush1.bf16.msra.mxu0 %v4954_v35  ;;  %v4976_v57 = vpack.c.bf16 %v822_v54, %v820_v53  ;;  %v5495_v58 = vld [vmem:[%s10876_s1 + $0x18] sm:$0xff]  ;;  %v5528_v61 = vld [vmem:[%s10876_s1 + $0x30] sm:$0xff]  ;;  %v5550_v63 = vld [vmem:[%s10876_s1 + $0x40] sm:$0xff] }
  0x22   :  { %4963 = vmatpush1.bf16.msra.mxu1 %v4962_v38  ;;  %4957 = vmatprep.subr.bf16.mxu0 %v4956_v42  ;;  %v5539_v62 = vld [vmem:[%s10876_s1 + $0x38] sm:$0xff]  ;;  %v5561_v1 = vld [vmem:[%s10876_s1 + $0x48] sm:$0xff]  ;;  %v5572_v2 = vld [vmem:[%s10876_s1 + $0x50] sm:$0xff] }
  0x23   :  { %4809 = vmatmul.mubr.msk.f32.gmra.mrb[2].mxu0 %vm60_vm0, %v5470_v33  ;;  %4965 = vmatprep.subr.bf16.mxu1 %v4964_v46  ;;  %v5583_v3 = vld [vmem:[%s10876_s1 + $0x58] sm:$0xff]  ;;  %v673_v4 = vld [vmem:[#allocation2 + $0x100] sm:$0xff]  ;;  %v675_v5 = vld [vmem:[#allocation2 + $0x110] sm:$0xff] }
  0x24   :  { %4821 = vmatmul.mubr.msk.f32.gmra.mrb[2].mxu1 %vm60_vm0, %v5470_v33  ;;  %173 = vmatprep.mubr.f32.mxu0 %v10880_v0  ;;  %v819_v6 = vld [vmem:[#allocation2 + $0x140] sm:$0xff]  ;;  %v821_v7 = vld [vmem:[#allocation2 + $0x150] sm:$0xff]  ;;  %v678_v8 = vld [vmem:[#allocation2 + $0x128] sm:$0xff]  ;;  %v4970_v12 = vpack.c.bf16 %v675_v5, %v673_v4 }
  0x25   :  { %319 = vmatprep.mubr.f32.mxu1 %v10880_v0  ;;  %4959 = vmatpush1.bf16.msra.mxu0 %v4958_v47  ;;  %v680_v9 = vld [vmem:[#allocation2 + $0x138] sm:$0xff]  ;;  %v824_v10 = vld [vmem:[#allocation2 + $0x168] sm:$0xff]  ;;  %v4978_v13 = vpack.c.bf16 %v821_v7, %v819_v6  ;;  %v677_v15 = vld [vmem:[#allocation2 + $0x120] sm:$0xff] }
  0x26   :  { %4967 = vmatpush1.bf16.msra.mxu1 %v4966_v51  ;;  %4969 = vmatprep.subr.bf16.mxu0 %v4968_v56  ;;  %v826_v11 = vld [vmem:[#allocation2 + $0x178] sm:$0xff]  ;;  %v4972_v14 = vpack.c.bf16 %v680_v9, %v678_v8  ;;  %v679_v16 = vld [vmem:[#allocation2 + $0x130] sm:$0xff]  ;;  %v823_v17 = vld [vmem:[#allocation2 + $0x160] sm:$0xff] }
  0x27   :  { %4810 = vmatmul.mubr.msk.f32.gmra.mrb[4].mxu0 %vm60_vm0, %v5484_v55  ;;  %4977 = vmatprep.subr.bf16.mxu1 %v4976_v57  ;;  %v4980_v18 = vpack.c.bf16 %v826_v11, %v824_v10  ;;  %v825_v19 = vld [vmem:[#allocation2 + $0x170] sm:$0xff]  ;;  %v966_v20 = vld [vmem:[#allocation2 + $0x188] sm:$0xff]  ;;  %v968_v21 = vld [vmem:[#allocation2 + $0x198] sm:$0xff]  ;;  %v4974_v24 = vpack.c.bf16 %v679_v16, %v677_v15 }
  0x28   :  { %4822 = vmatmul.mubr.msk.f32.gmra.mrb[4].mxu1 %vm60_vm0, %v5484_v55  ;;  %179 = vmatprep.mubr.f32.mxu0 %v10880_v0  ;;  %v1112_v22 = vld [vmem:[#allocation2 + $0x1c8] sm:$0xff]  ;;  %v1114_v23 = vld [vmem:[#allocation2 + $0x1d8] sm:$0xff]  ;;  %v4982_v26 = vpack.c.bf16 %v825_v19, %v823_v17  ;;  %v4984_v27 = vpack.c.bf16 %v968_v21, %v966_v20  ;;  %v965_v29 = vld [vmem:[#allocation2 + $0x180] sm:$0xff] }
  0x29   :  { %325 = vmatprep.mubr.f32.mxu1 %v10880_v0  ;;  %v4992_v28 = vpack.c.bf16 %v1114_v23, %v1112_v22  ;;  %v967_v30 = vld [vmem:[#allocation2 + $0x190] sm:$0xff]  ;;  %v1111_v31 = vld [vmem:[#allocation2 + $0x1c0] sm:$0xff]  ;;  %v970_v34 = vld [vmem:[#allocation2 + $0x1a8] sm:$0xff] }
  0x2a   :  { %v1113_v32 = vld [vmem:[#allocation2 + $0x1d0] sm:$0xff]  ;;  %v972_v35 = vld [vmem:[#allocation2 + $0x1b8] sm:$0xff]  ;;  %v1116_v36 = vld [vmem:[#allocation2 + $0x1e8] sm:$0xff]  ;;  %v4986_v38 = vpack.c.bf16 %v967_v30, %v965_v29 }
  0x2b   :  { %4811 = vmatmul.mubr.msk.f32.gmra.mrb[6].mxu0 %vm60_vm0, %v5495_v58  ;;  %v1118_v37 = vld [vmem:[#allocation2 + $0x1f8] sm:$0xff]  ;;  %v4994_v39 = vpack.c.bf16 %v1113_v32, %v1111_v31  ;;  %v4988_v40 = vpack.c.bf16 %v972_v35, %v970_v34  ;;  %v969_v41 = vld [vmem:[#allocation2 + $0x1a0] sm:$0xff]  ;;  %v971_v42 = vld [vmem:[#allocation2 + $0x1b0] sm:$0xff] }
  0x2c   :  { %4823 = vmatmul.mubr.msk.f32.gmra.mrb[6].mxu1 %vm60_vm0, %v5495_v58  ;;  %185 = vmatprep.mubr.f32.mxu0 %v10880_v0  ;;  %v4996_v43 = vpack.c.bf16 %v1118_v37, %v1116_v36  ;;  %v1115_v44 = vld [vmem:[#allocation2 + $0x1e0] sm:$0xff]  ;;  %v1117_v45 = vld [vmem:[#allocation2 + $0x1f0] sm:$0xff]  ;;  %v4990_v46 = vpack.c.bf16 %v971_v42, %v969_v41 }
  0x2d   :  { %331 = vmatprep.mubr.f32.mxu1 %v10880_v0  ;;  %v4998_v47 = vpack.c.bf16 %v1117_v45, %v1115_v44 }
  0x2f   :  { %4812 = vmatmul.mubr.msk.f32.gmra.mrb[8].mxu0 %vm60_vm0, %v5506_v59 }
  0x30   :  { %4824 = vmatmul.mubr.msk.f32.gmra.mrb[8].mxu1 %vm60_vm0, %v5506_v59  ;;  %191 = vmatprep.mubr.f32.mxu0 %v10880_v0 }
  0x31   :  { %337 = vmatprep.mubr.f32.mxu1 %v10880_v0 }
  0x33   :  { %4813 = vmatmul.mubr.msk.f32.gmra.mrb[10].mxu0 %vm60_vm0, %v5517_v60 }
  0x34   :  { %4825 = vmatmul.mubr.msk.f32.gmra.mrb[10].mxu1 %vm60_vm0, %v5517_v60  ;;  %197 = vmatprep.mubr.f32.mxu0 %v10880_v0 }
  0x35   :  { %343 = vmatprep.mubr.f32.mxu1 %v10880_v0 }
  0x37   :  { %4814 = vmatmul.mubr.msk.f32.gmra.mrb[12].mxu0 %vm60_vm0, %v5528_v61 }
  0x38   :  { %4826 = vmatmul.mubr.msk.f32.gmra.mrb[12].mxu1 %vm60_vm0, %v5528_v61  ;;  %203 = vmatprep.mubr.f32.mxu0 %v10880_v0 }
  0x39   :  { %349 = vmatprep.mubr.f32.mxu1 %v10880_v0 }
  0x3b   :  { %4815 = vmatmul.mubr.msk.f32.gmra.mrb[14].mxu0 %vm60_vm0, %v5539_v62 }
  0x3c   :  { %4827 = vmatmul.mubr.msk.f32.gmra.mrb[14].mxu1 %vm60_vm0, %v5539_v62  ;;  %209 = vmatprep.mubr.f32.mxu0 %v10880_v0 }
  0x3d   :  { %355 = vmatprep.mubr.f32.mxu1 %v10880_v0 }
  0x3f   :  { %4816 = vmatmul.mubr.msk.f32.gmra.mrb[16].mxu0 %vm60_vm0, %v5550_v63 }
  0x40   :  { %4828 = vmatmul.mubr.msk.f32.gmra.mrb[16].mxu1 %vm60_vm0, %v5550_v63  ;;  %215 = vmatprep.mubr.f32.mxu0 %v10880_v0 }
  0x41   :  { %361 = vmatprep.mubr.f32.mxu1 %v10880_v0 }
  0x43   :  { %4817 = vmatmul.mubr.msk.f32.gmra.mrb[18].mxu0 %vm60_vm0, %v5561_v1 }
  0x44   :  { %4829 = vmatmul.mubr.msk.f32.gmra.mrb[18].mxu1 %vm60_vm0, %v5561_v1  ;;  %221 = vmatprep.mubr.f32.mxu0 %v10880_v0 }
  0x45   :  { %367 = vmatprep.mubr.f32.mxu1 %v10880_v0 }
  0x47   :  { %4818 = vmatmul.mubr.msk.f32.gmra.mrb[20].mxu0 %vm60_vm0, %v5572_v2 }
  0x48   :  { %4830 = vmatmul.mubr.msk.f32.gmra.mrb[20].mxu1 %vm60_vm0, %v5572_v2  ;;  %227 = vmatprep.mubr.f32.mxu0 %v10880_v0 }
  0x49   :  { %373 = vmatprep.mubr.f32.mxu1 %v10880_v0 }
  0x4b   :  { %4819 = vmatmul.mubr.msk.f32.gmra.mrb[22].mxu0 %vm60_vm0, %v5583_v3 }
  0x4c   :  { %4831 = vmatmul.mubr.msk.f32.gmra.mrb[22].mxu1 %vm60_vm0, %v5583_v3  ;;  %453 = vmatprep.mubr.f32.mxu0 %v10880_v0 }
  0x4d   :  { %599 = vmatprep.mubr.f32.mxu1 %v10880_v0 }
  0x4f   :  { %4832 = vmatmul.mubr.msk.f32.vlgmr.msra.gmra.mrb[24].mxu0 %vm60_vm0, %v5463_v25 }
  0x50   :  { %4844 = vmatmul.mubr.msk.f32.vlgmr.msra.gmra.mrb[24].mxu1 %vm60_vm0, %v5463_v25  ;;  %459 = vmatprep.mubr.f32.mxu0 %v10880_v0 }
  0x51   :  { %605 = vmatprep.mubr.f32.mxu1 %v10880_v0  ;;  %4971 = vmatpush1.bf16.msra.mxu0 %v4970_v12 }
  0x52   :  { %4979 = vmatpush1.bf16.msra.mxu1 %v4978_v13  ;;  %4973 = vmatprep.subr.bf16.mxu0 %v4972_v14 }
  0x53   :  { %4833 = vmatmul.mubr.msk.f32.gmra.mrb[26].mxu0 %vm60_vm0, %v5470_v33  ;;  %4981 = vmatprep.subr.bf16.mxu1 %v4980_v18 }
  0x54   :  { %4845 = vmatmul.mubr.msk.f32.gmra.mrb[26].mxu1 %vm60_vm0, %v5470_v33  ;;  %465 = vmatprep.mubr.f32.mxu0 %v10880_v0 }
  0x55   :  { %611 = vmatprep.mubr.f32.mxu1 %v10880_v0  ;;  %4975 = vmatpush1.bf16.msra.mxu0 %v4974_v24 }
  0x56   :  { %4983 = vmatpush1.bf16.msra.mxu1 %v4982_v26  ;;  %4985 = vmatprep.subr.bf16.mxu0 %v4984_v27 }
  0x57   :  { %4834 = vmatmul.mubr.msk.f32.gmra.mrb[28].mxu0 %vm60_vm0, %v5484_v55  ;;  %4993 = vmatprep.subr.bf16.mxu1 %v4992_v28 }
  0x58   :  { %4846 = vmatmul.mubr.msk.f32.gmra.mrb[28].mxu1 %vm60_vm0, %v5484_v55  ;;  %471 = vmatprep.mubr.f32.mxu0 %v10880_v0 }
  0x59   :  { %617 = vmatprep.mubr.f32.mxu1 %v10880_v0 }
  0x5b   :  { %4835 = vmatmul.mubr.msk.f32.gmra.mrb[30].mxu0 %vm60_vm0, %v5495_v58 }
  0x5c   :  { %4847 = vmatmul.mubr.msk.f32.gmra.mrb[30].mxu1 %vm60_vm0, %v5495_v58  ;;  %477 = vmatprep.mubr.f32.mxu0 %v10880_v0 }
  0x5d   :  { %623 = vmatprep.mubr.f32.mxu1 %v10880_v0 }
  0x5f   :  { %4836 = vmatmul.mubr.msk.f32.gmra.mrb[32].mxu0 %vm60_vm0, %v5506_v59 }
  0x60   :  { %4848 = vmatmul.mubr.msk.f32.gmra.mrb[32].mxu1 %vm60_vm0, %v5506_v59  ;;  %483 = vmatprep.mubr.f32.mxu0 %v10880_v0 }
  0x61   :  { %629 = vmatprep.mubr.f32.mxu1 %v10880_v0 }
  0x63   :  { %4837 = vmatmul.mubr.msk.f32.gmra.mrb[34].mxu0 %vm60_vm0, %v5517_v60 }
  0x64   :  { %4849 = vmatmul.mubr.msk.f32.gmra.mrb[34].mxu1 %vm60_vm0, %v5517_v60  ;;  %489 = vmatprep.mubr.f32.mxu0 %v10880_v0 }
  0x65   :  { %635 = vmatprep.mubr.f32.mxu1 %v10880_v0 }
  0x67   :  { %4838 = vmatmul.mubr.msk.f32.gmra.mrb[36].mxu0 %vm60_vm0, %v5528_v61 }
  0x68   :  { %4850 = vmatmul.mubr.msk.f32.gmra.mrb[36].mxu1 %vm60_vm0, %v5528_v61  ;;  %495 = vmatprep.mubr.f32.mxu0 %v10880_v0 }
  0x69   :  { %641 = vmatprep.mubr.f32.mxu1 %v10880_v0 }
  0x6b   :  { %4839 = vmatmul.mubr.msk.f32.gmra.mrb[38].mxu0 %vm60_vm0, %v5539_v62 }
  0x6c   :  { %4851 = vmatmul.mubr.msk.f32.gmra.mrb[38].mxu1 %vm60_vm0, %v5539_v62  ;;  %501 = vmatprep.mubr.f32.mxu0 %v10880_v0 }
  0x6d   :  { %647 = vmatprep.mubr.f32.mxu1 %v10880_v0 }
  0x6f   :  { %4840 = vmatmul.mubr.msk.f32.gmra.mrb[40].mxu0 %vm60_vm0, %v5550_v63 }
  0x70   :  { %4852 = vmatmul.mubr.msk.f32.gmra.mrb[40].mxu1 %vm60_vm0, %v5550_v63  ;;  %507 = vmatprep.mubr.f32.mxu0 %v10880_v0 }
  0x71   :  { %653 = vmatprep.mubr.f32.mxu1 %v10880_v0 }
  0x73   :  { %4841 = vmatmul.mubr.msk.f32.gmra.mrb[42].mxu0 %vm60_vm0, %v5561_v1 }
  0x74   :  { %4853 = vmatmul.mubr.msk.f32.gmra.mrb[42].mxu1 %vm60_vm0, %v5561_v1  ;;  %513 = vmatprep.mubr.f32.mxu0 %v10880_v0 }
  0x75   :  { %659 = vmatprep.mubr.f32.mxu1 %v10880_v0 }
  0x77   :  { %4842 = vmatmul.mubr.msk.f32.gmra.mrb[44].mxu0 %vm60_vm0, %v5572_v2 }
  0x78   :  { %4854 = vmatmul.mubr.msk.f32.gmra.mrb[44].mxu1 %vm60_vm0, %v5572_v2  ;;  %519 = vmatprep.mubr.f32.mxu0 %v10880_v0 }
  0x79   :  { %665 = vmatprep.mubr.f32.mxu1 %v10880_v0 }
  0x7b   :  { %4843 = vmatmul.mubr.msk.f32.gmra.mrb[46].mxu0 %vm60_vm0, %v5583_v3 }
  0x7c   :  { %4855 = vmatmul.mubr.msk.f32.gmra.mrb[46].mxu1 %vm60_vm0, %v5583_v3  ;;  %745 = vmatprep.mubr.f32.mxu0 %v10880_v0 }
  0x7d   :  { %891 = vmatprep.mubr.f32.mxu1 %v10880_v0 }
  0x7f   :  { %4856 = vmatmul.mubr.msk.f32.vlgmr.msra.gmra.mrb[48].mxu0 %vm60_vm0, %v5463_v25 }
  0x80   :  { %4868 = vmatmul.mubr.msk.f32.vlgmr.msra.gmra.mrb[48].mxu1 %vm60_vm0, %v5463_v25  ;;  %751 = vmatprep.mubr.f32.mxu0 %v10880_v0 }
  0x81   :  { %897 = vmatprep.mubr.f32.mxu1 %v10880_v0  ;;  %4987 = vmatpush1.bf16.msra.mxu0 %v4986_v38 }
  0x82   :  { %4995 = vmatpush1.bf16.msra.mxu1 %v4994_v39  ;;  %4989 = vmatprep.subr.bf16.mxu0 %v4988_v40 }
  0x83   :  { %4857 = vmatmul.mubr.msk.f32.gmra.mrb[50].mxu0 %vm60_vm0, %v5470_v33  ;;  %4997 = vmatprep.subr.bf16.mxu1 %v4996_v43 }
  0x84   :  { %4869 = vmatmul.mubr.msk.f32.gmra.mrb[50].mxu1 %vm60_vm0, %v5470_v33  ;;  %757 = vmatprep.mubr.f32.mxu0 %v10880_v0 }
  0x85   :  { %903 = vmatprep.mubr.f32.mxu1 %v10880_v0  ;;  %4991 = vmatpush1.bf16.msra.mxu0 %v4990_v46 }
  0x86   :  { %4999 = vmatpush1.bf16.msra.mxu1 %v4998_v47 }
  0x87   :  { %4858 = vmatmul.mubr.msk.f32.gmra.mrb[52].mxu0 %vm60_vm0, %v5484_v55 }
  0x88   :  { %4870 = vmatmul.mubr.msk.f32.gmra.mrb[52].mxu1 %vm60_vm0, %v5484_v55  ;;  %763 = vmatprep.mubr.f32.mxu0 %v10880_v0 }
  0x89   :  { %909 = vmatprep.mubr.f32.mxu1 %v10880_v0 }
  0x8b   :  { %4859 = vmatmul.mubr.msk.f32.gmra.mrb[54].mxu0 %vm60_vm0, %v5495_v58 }
  0x8c   :  { %4871 = vmatmul.mubr.msk.f32.gmra.mrb[54].mxu1 %vm60_vm0, %v5495_v58  ;;  %769 = vmatprep.mubr.f32.mxu0 %v10880_v0 }
  0x8d   :  { %915 = vmatprep.mubr.f32.mxu1 %v10880_v0 }
  0x8f   :  { %4860 = vmatmul.mubr.msk.f32.gmra.mrb[56].mxu0 %vm60_vm0, %v5506_v59 }
  0x90   :  { %4872 = vmatmul.mubr.msk.f32.gmra.mrb[56].mxu1 %vm60_vm0, %v5506_v59  ;;  %775 = vmatprep.mubr.f32.mxu0 %v10880_v0 }
  0x91   :  { %921 = vmatprep.mubr.f32.mxu1 %v10880_v0 }
  0x93   :  { %4861 = vmatmul.mubr.msk.f32.gmra.mrb[58].mxu0 %vm60_vm0, %v5517_v60 }
  0x94   :  { %4873 = vmatmul.mubr.msk.f32.gmra.mrb[58].mxu1 %vm60_vm0, %v5517_v60  ;;  %781 = vmatprep.mubr.f32.mxu0 %v10880_v0 }
  0x95   :  { %927 = vmatprep.mubr.f32.mxu1 %v10880_v0 }
  0x97   :  { %4862 = vmatmul.mubr.msk.f32.gmra.mrb[60].mxu0 %vm60_vm0, %v5528_v61 }
  0x98   :  { %4874 = vmatmul.mubr.msk.f32.gmra.mrb[60].mxu1 %vm60_vm0, %v5528_v61  ;;  %787 = vmatprep.mubr.f32.mxu0 %v10880_v0 }
  0x99   :  { %933 = vmatprep.mubr.f32.mxu1 %v10880_v0 }
  0x9b   :  { %4863 = vmatmul.mubr.msk.f32.gmra.mrb[62].mxu0 %vm60_vm0, %v5539_v62 }
  0x9c   :  { %4875 = vmatmul.mubr.msk.f32.gmra.mrb[62].mxu1 %vm60_vm0, %v5539_v62  ;;  %793 = vmatprep.mubr.f32.mxu0 %v10880_v0 }
  0x9d   :  { %939 = vmatprep.mubr.f32.mxu1 %v10880_v0 }
  0x9f   :  { %4864 = vmatmul.mubr.msk.f32.gmra.mrb[64].mxu0 %vm60_vm0, %v5550_v63 }
  0xa0   :  { %4876 = vmatmul.mubr.msk.f32.gmra.mrb[64].mxu1 %vm60_vm0, %v5550_v63  ;;  %799 = vmatprep.mubr.f32.mxu0 %v10880_v0 }
  0xa1   :  { %945 = vmatprep.mubr.f32.mxu1 %v10880_v0 }
  0xa3   :  { %4865 = vmatmul.mubr.msk.f32.gmra.mrb[66].mxu0 %vm60_vm0, %v5561_v1 }
  0xa4   :  { %4877 = vmatmul.mubr.msk.f32.gmra.mrb[66].mxu1 %vm60_vm0, %v5561_v1  ;;  %805 = vmatprep.mubr.f32.mxu0 %v10880_v0 }
  0xa5   :  { %951 = vmatprep.mubr.f32.mxu1 %v10880_v0 }
  0xa7   :  { %4866 = vmatmul.mubr.msk.f32.gmra.mrb[68].mxu0 %vm60_vm0, %v5572_v2 }
  0xa8   :  { %4878 = vmatmul.mubr.msk.f32.gmra.mrb[68].mxu1 %vm60_vm0, %v5572_v2  ;;  %811 = vmatprep.mubr.f32.mxu0 %v10880_v0 }
  0xa9   :  { %957 = vmatprep.mubr.f32.mxu1 %v10880_v0 }
  0xab   :  { %4867 = vmatmul.mubr.msk.f32.gmra.mrb[70].mxu0 %vm60_vm0, %v5583_v3 }
  0xac   :  { %4879 = vmatmul.mubr.msk.f32.gmra.mrb[70].mxu1 %vm60_vm0, %v5583_v3  ;;  %1037 = vmatprep.mubr.f32.mxu0 %v10880_v0 }
  0xad   :  { %1183 = vmatprep.mubr.f32.mxu1 %v10880_v0 }
  0xaf   :  { %4880 = vmatmul.mubr.msk.f32.vlgmr.msra.gmra.mrb[72].mxu0 %vm60_vm0, %v5463_v25 }
  0xb0   :  { %4892 = vmatmul.mubr.msk.f32.vlgmr.msra.gmra.mrb[72].mxu1 %vm60_vm0, %v5463_v25  ;;  %1043 = vmatprep.mubr.f32.mxu0 %v10880_v0 }
  0xb1   :  { %1189 = vmatprep.mubr.f32.mxu1 %v10880_v0 }
  0xb3   :  { %4881 = vmatmul.mubr.msk.f32.gmra.mrb[74].mxu0 %vm60_vm0, %v5470_v33 }
  0xb4   :  { %4893 = vmatmul.mubr.msk.f32.gmra.mrb[74].mxu1 %vm60_vm0, %v5470_v33  ;;  %1049 = vmatprep.mubr.f32.mxu0 %v10880_v0 }
  0xb5   :  { %1195 = vmatprep.mubr.f32.mxu1 %v10880_v0 }
  0xb7   :  { %4882 = vmatmul.mubr.msk.f32.gmra.mrb[76].mxu0 %vm60_vm0, %v5484_v55 }
  0xb8   :  { %4894 = vmatmul.mubr.msk.f32.gmra.mrb[76].mxu1 %vm60_vm0, %v5484_v55  ;;  %1055 = vmatprep.mubr.f32.mxu0 %v10880_v0 }
  0xb9   :  { %1201 = vmatprep.mubr.f32.mxu1 %v10880_v0 }
  0xbb   :  { %4883 = vmatmul.mubr.msk.f32.gmra.mrb[78].mxu0 %vm60_vm0, %v5495_v58 }
  0xbc   :  { %4895 = vmatmul.mubr.msk.f32.gmra.mrb[78].mxu1 %vm60_vm0, %v5495_v58  ;;  %1061 = vmatprep.mubr.f32.mxu0 %v10880_v0 }
  0xbd   :  { %1207 = vmatprep.mubr.f32.mxu1 %v10880_v0 }
  0xbf   :  { %4884 = vmatmul.mubr.msk.f32.gmra.mrb[80].mxu0 %vm60_vm0, %v5506_v59 }
  0xc0   :  { %4896 = vmatmul.mubr.msk.f32.gmra.mrb[80].mxu1 %vm60_vm0, %v5506_v59  ;;  %1067 = vmatprep.mubr.f32.mxu0 %v10880_v0 }
  0xc1   :  { %1213 = vmatprep.mubr.f32.mxu1 %v10880_v0 }
  0xc3   :  { %4885 = vmatmul.mubr.msk.f32.gmra.mrb[82].mxu0 %vm60_vm0, %v5517_v60 }
  0xc4   :  { %4897 = vmatmul.mubr.msk.f32.gmra.mrb[82].mxu1 %vm60_vm0, %v5517_v60  ;;  %1073 = vmatprep.mubr.f32.mxu0 %v10880_v0 }
  0xc5   :  { %1219 = vmatprep.mubr.f32.mxu1 %v10880_v0 }
  0xc7   :  { %4886 = vmatmul.mubr.msk.f32.gmra.mrb[84].mxu0 %vm60_vm0, %v5528_v61 }
  0xc8   :  { %4898 = vmatmul.mubr.msk.f32.gmra.mrb[84].mxu1 %vm60_vm0, %v5528_v61  ;;  %1079 = vmatprep.mubr.f32.mxu0 %v10880_v0 }
  0xc9   :  { %1225 = vmatprep.mubr.f32.mxu1 %v10880_v0 }
  0xcb   :  { %4887 = vmatmul.mubr.msk.f32.gmra.mrb[86].mxu0 %vm60_vm0, %v5539_v62 }
  0xcc   :  { %4899 = vmatmul.mubr.msk.f32.gmra.mrb[86].mxu1 %vm60_vm0, %v5539_v62  ;;  %1085 = vmatprep.mubr.f32.mxu0 %v10880_v0 }
  0xcd   :  { %1231 = vmatprep.mubr.f32.mxu1 %v10880_v0 }
  0xcf   :  { %4888 = vmatmul.mubr.msk.f32.gmra.mrb[88].mxu0 %vm60_vm0, %v5550_v63 }
  0xd0   :  { %4900 = vmatmul.mubr.msk.f32.gmra.mrb[88].mxu1 %vm60_vm0, %v5550_v63  ;;  %1091 = vmatprep.mubr.f32.mxu0 %v10880_v0 }
  0xd1   :  { %1237 = vmatprep.mubr.f32.mxu1 %v10880_v0 }
  0xd3   :  { %4889 = vmatmul.mubr.msk.f32.gmra.mrb[90].mxu0 %vm60_vm0, %v5561_v1 }
  0xd4   :  { %4901 = vmatmul.mubr.msk.f32.gmra.mrb[90].mxu1 %vm60_vm0, %v5561_v1  ;;  %1097 = vmatprep.mubr.f32.mxu0 %v10880_v0 }
  0xd5   :  { %1243 = vmatprep.mubr.f32.mxu1 %v10880_v0 }
  0xd7   :  { %4890 = vmatmul.mubr.msk.f32.gmra.mrb[92].mxu0 %vm60_vm0, %v5572_v2 }
  0xd8   :  { %4902 = vmatmul.mubr.msk.f32.gmra.mrb[92].mxu1 %vm60_vm0, %v5572_v2  ;;  %1103 = vmatprep.mubr.f32.mxu0 %v10880_v0 }
  0xd9   :  { %1249 = vmatprep.mubr.f32.mxu1 %v10880_v0 }
  0xdb   :  { %4891 = vmatmul.mubr.msk.f32.gmra.mrb[94].mxu0 %vm60_vm0, %v5583_v3 }
  0xdc   :  { %4903 = vmatmul.mubr.msk.f32.gmra.mrb[94].mxu1 %vm60_vm0, %v5583_v3  ;;  %4072 = vmatprep.mubr.f32.mxu0 %v10880_v0 }
  0xdd   :  { %4169 = vmatprep.mubr.f32.mxu1 %v10880_v0 }
  0xf2   :  { %v163_v25 = vpop.f32.mrb[0].mxu0 }
  0xf3   :  { %v165_v33 = vpop.f32.mrb[1].mxu0  ;;  %v309_v48 = vpop.f32.mrb[0].mxu1  ;;  %v5808_v62 = vmul.f32 0.5, %v163_v25 }
  0xf4   :  { %v311_v49 = vpop.f32.mrb[1].mxu1  ;;  %v5810_v63 = vmul.f32 0.5, %v309_v48  ;;  %v5812_v1 = vmul.f32 0.5, %v165_v33 }
  0xf5   :  { %11837 = vst [vmem:[#allocation8_spill] sm:$0xff] %v5808_v62  ;;  %v5814_v2 = vmul.f32 0.5, %v311_v49 }
  0xf6   :  { %v169_v50 = vpop.f32.mrb[2].mxu0  ;;  %11838 = vst [vmem:[#allocation9_spill] sm:$0xff] %v5810_v63  ;;  %11839 = vst [vmem:[#allocation10_spill] sm:$0xff] %v5812_v1 }
  0xf7   :  { %v171_v51 = vpop.f32.mrb[3].mxu0  ;;  %v315_v52 = vpop.f32.mrb[2].mxu1  ;;  %11840 = vst [vmem:[#allocation11_spill] sm:$0xff] %v5814_v2  ;;  %v5816_v3 = vmul.f32 0.5, %v169_v50 }
  0xf8   :  { %v317_v53 = vpop.f32.mrb[3].mxu1  ;;  %v5818_v4 = vmul.f32 0.5, %v171_v51  ;;  %v5822_v6 = vmul.f32 0.5, %v315_v52 }
  0xf9   :  { %11841 = vst [vmem:[#allocation12_spill] sm:$0xff] %v5816_v3  ;;  %v5824_v7 = vmul.f32 0.5, %v317_v53 }
  0xfa   :  { %v175_v54 = vpop.f32.mrb[4].mxu0  ;;  %11842 = vst [vmem:[#allocation13_spill] sm:$0xff] %v5818_v4  ;;  %11844 = vst [vmem:[#allocation15_spill] sm:$0xff] %v5822_v6 }
  0xfb   :  { %v177_v55 = vpop.f32.mrb[5].mxu0  ;;  %v321_v56 = vpop.f32.mrb[4].mxu1  ;;  %11845 = vst [vmem:[#allocation16_spill] sm:$0xff] %v5824_v7  ;;  %v5844_v17 = vmul.f32 0.5, %v175_v54 }
  0xfc   :  { %v323_v57 = vpop.f32.mrb[5].mxu1  ;;  %v5846_v18 = vmul.f32 0.5, %v177_v55  ;;  %v5852_v21 = vmul.f32 0.5, %v321_v56 }
  0xfd   :  { %11849 = vst [vmem:[#allocation20_spill] sm:$0xff] %v5844_v17  ;;  %v5854_v22 = vmul.f32 0.5, %v323_v57 }
  0xfe   :  { %v181_v58 = vpop.f32.mrb[6].mxu0  ;;  %11850 = vst [vmem:[#allocation21_spill] sm:$0xff] %v5846_v18  ;;  %11851 = vst [vmem:[#allocation22_spill] sm:$0xff] %v5852_v21 }
  0xff   :  { %v183_v59 = vpop.f32.mrb[7].mxu0  ;;  %v327_v60 = vpop.f32.mrb[6].mxu1  ;;  %11852 = vst [vmem:[#allocation23_spill] sm:$0xff] %v5854_v22  ;;  %v5856_v23 = vmul.f32 0.5, %v181_v58 }
 0x100   :  { %v329_v61 = vpop.f32.mrb[7].mxu1  ;;  %v5858_v24 = vmul.f32 0.5, %v183_v59  ;;  %v5862_v27 = vmul.f32 0.5, %v327_v60 }
 0x101   :  { %11853 = vst [vmem:[#allocation24_spill] sm:$0xff] %v5856_v23  ;;  %v5864_v28 = vmul.f32 0.5, %v329_v61 }
 0x102   :  { %v5820_v5 = vpop.f32.mrb[8].mxu0  ;;  %11854 = vst [vmem:[#allocation25_spill] sm:$0xff] %v5858_v24  ;;  %11856 = vst [vmem:[#allocation27_spill] sm:$0xff] %v5862_v27 }
 0x103   :  { %11843 = vst [vmem:[#allocation14_spill] sm:$0xff] %v5820_v5  ;;  %v1320_v8 = vmul.f32 %v5808_v62, %v5820_v5  ;;  %v1336_v9 = vmul.f32 %v5810_v63, %v5820_v5  ;;  %v5830_v10 = vpop.f32.mrb[8].mxu1  ;;  %v5832_v11 = vpop.f32.mrb[9].mxu0  ;;  %11857 = vst [vmem:[#allocation28_spill] sm:$0xff] %v5864_v28 }
 0x104   :  { %11846 = vst [vmem:[#allocation17_spill] sm:$0xff] %v5830_v10  ;;  %11847 = vst [vmem:[#allocation18_spill] sm:$0xff] %v5832_v11  ;;  %v1322_v12 = vmul.f32 %v5808_v62, %v5830_v10  ;;  %v1338_v13 = vmul.f32 %v5810_v63, %v5830_v10  ;;  %v1321_v14 = vmul.f32 %v5812_v1, %v5832_v11  ;;  %v5842_v16 = vpop.f32.mrb[9].mxu1 }
 0x105   :  { %v1337_v15 = vmul.f32 %v5814_v2, %v5832_v11  ;;  %11848 = vst [vmem:[#allocation19_spill] sm:$0xff] %v5842_v16  ;;  %v1323_v19 = vmul.f32 %v5812_v1, %v5842_v16  ;;  %v1339_v20 = vmul.f32 %v5814_v2, %v5842_v16 }
 0x106   :  { %v5860_v26 = vpop.f32.mrb[10].mxu0 }
 0x107   :  { %11855 = vst [vmem:[#allocation26_spill] sm:$0xff] %v5860_v26  ;;  %v1448_v29 = vmul.f32 %v5816_v3, %v5860_v26  ;;  %v1464_v30 = vmul.f32 %v5822_v6, %v5860_v26  ;;  %v5870_v31 = vpop.f32.mrb[10].mxu1  ;;  %v5872_v32 = vpop.f32.mrb[11].mxu0 }
 0x108   :  { %11858 = vst [vmem:[#allocation29_spill] sm:$0xff] %v5870_v31  ;;  %11859 = vst [vmem:[#allocation30_spill] sm:$0xff] %v5872_v32  ;;  %v1450_v34 = vmul.f32 %v5816_v3, %v5870_v31  ;;  %v1466_v35 = vmul.f32 %v5822_v6, %v5870_v31  ;;  %v1449_v36 = vmul.f32 %v5818_v4, %v5872_v32  ;;  %v5882_v38 = vpop.f32.mrb[11].mxu1 }
 0x109   :  { %v1465_v37 = vmul.f32 %v5824_v7, %v5872_v32  ;;  %11860 = vst [vmem:[#allocation31_spill] sm:$0xff] %v5882_v38  ;;  %v1576_v39 = vadd.f32 %v1448_v29, %v1320_v8  ;;  %v1592_v40 = vadd.f32 %v1464_v30, %v1336_v9  ;;  %v1451_v41 = vmul.f32 %v5818_v4, %v5882_v38 }
 0x10a   :  { %v1467_v42 = vmul.f32 %v5824_v7, %v5882_v38  ;;  %v1578_v43 = vadd.f32 %v1450_v34, %v1322_v12  ;;  %v1594_v44 = vadd.f32 %v1466_v35, %v1338_v13  ;;  %v1577_v45 = vadd.f32 %v1449_v36, %v1321_v14  ;;  %v5888_v47 = vpop.f32.mrb[12].mxu0 }
 0x10b   :  { %v1593_v46 = vadd.f32 %v1465_v37, %v1337_v15  ;;  %11861 = vst [vmem:[#allocation32_spill] sm:$0xff] %v5888_v47  ;;  %v1579_v25 = vadd.f32 %v1451_v41, %v1323_v19  ;;  %v1704_v48 = vmul.f32 %v5844_v17, %v5888_v47  ;;  %v1720_v49 = vmul.f32 %v5852_v21, %v5888_v47  ;;  %v5894_v50 = vpop.f32.mrb[12].mxu1  ;;  %v5896_v51 = vpop.f32.mrb[13].mxu0 }
 0x10c   :  { %v1595_v33 = vadd.f32 %v1467_v42, %v1339_v20  ;;  %11862 = vst [vmem:[#allocation33_spill] sm:$0xff] %v5894_v50  ;;  %11863 = vst [vmem:[#allocation34_spill] sm:$0xff] %v5896_v51  ;;  %v1706_v52 = vmul.f32 %v5844_v17, %v5894_v50  ;;  %v1722_v53 = vmul.f32 %v5852_v21, %v5894_v50  ;;  %v5906_v56 = vpop.f32.mrb[13].mxu1 }
 0x10d   :  { %v1705_v54 = vmul.f32 %v5846_v18, %v5896_v51  ;;  %v1721_v55 = vmul.f32 %v5854_v22, %v5896_v51  ;;  %11864 = vst [vmem:[#allocation35_spill] sm:$0xff] %v5906_v56  ;;  %v1832_v57 = vadd.f32 %v1704_v48, %v1576_v39  ;;  %v1848_v58 = vadd.f32 %v1720_v49, %v1592_v40 }
 0x10e   :  { %v1707_v59 = vmul.f32 %v5846_v18, %v5906_v56  ;;  %v1723_v60 = vmul.f32 %v5854_v22, %v5906_v56  ;;  %v1834_v61 = vadd.f32 %v1706_v52, %v1578_v43  ;;  %v1850_v8 = vadd.f32 %v1722_v53, %v1594_v44  ;;  %v5912_v13 = vpop.f32.mrb[14].mxu0 }
 0x10f   :  { %v1833_v9 = vadd.f32 %v1705_v54, %v1577_v45  ;;  %v1849_v12 = vadd.f32 %v1721_v55, %v1593_v46  ;;  %11865 = vst [vmem:[#allocation36_spill] sm:$0xff] %v5912_v13  ;;  %v1960_v19 = vmul.f32 %v5856_v23, %v5912_v13  ;;  %v1976_v20 = vmul.f32 %v5862_v27, %v5912_v13  ;;  %v5918_v29 = vpop.f32.mrb[14].mxu1  ;;  %v5920_v30 = vpop.f32.mrb[15].mxu0 }
 0x110   :  { %v1835_v14 = vadd.f32 %v1707_v59, %v1579_v25  ;;  %v1851_v15 = vadd.f32 %v1723_v60, %v1595_v33  ;;  %11866 = vst [vmem:[#allocation37_spill] sm:$0xff] %v5918_v29  ;;  %11867 = vst [vmem:[#allocation38_spill] sm:$0xff] %v5920_v30  ;;  %v1962_v34 = vmul.f32 %v5856_v23, %v5918_v29  ;;  %v5930_v39 = vpop.f32.mrb[15].mxu1 }
 0x111   :  { %v1978_v35 = vmul.f32 %v5862_v27, %v5918_v29  ;;  %v1961_v36 = vmul.f32 %v5858_v24, %v5920_v30  ;;  %v1977_v37 = vmul.f32 %v5864_v28, %v5920_v30  ;;  %11868 = vst [vmem:[#allocation39_spill] sm:$0xff] %v5930_v39  ;;  %v5932_v40 = vadd.f32 %v1960_v19, %v1832_v57 }
 0x112   :  { %v5934_v41 = vadd.f32 %v1976_v20, %v1848_v58  ;;  %v1963_v42 = vmul.f32 %v5858_v24, %v5930_v39  ;;  %v1979_v43 = vmul.f32 %v5864_v28, %v5930_v39  ;;  %v5940_v44 = vadd.f32 %v1962_v34, %v1834_v61  ;;  %v5948_v33 = vpop.f32.mrb[16].mxu0 }
 0x113   :  { %11869 = vst [vmem:[#allocation40_spill] sm:$0xff] %v5932_v40  ;;  %v5942_v45 = vadd.f32 %v1978_v35, %v1850_v8  ;;  %v5944_v46 = vadd.f32 %v1961_v36, %v1833_v9  ;;  %v5946_v25 = vadd.f32 %v1977_v37, %v1849_v12  ;;  %11875 = vst [vmem:[#allocation46_spill] sm:$0xff] %v5948_v33  ;;  %v5954_v52 = vpop.f32.mrb[17].mxu0  ;;  %v5956_v53 = vpop.f32.mrb[16].mxu1 }
 0x114   :  { %11870 = vst [vmem:[#allocation41_spill] sm:$0xff] %v5934_v41  ;;  %11871 = vst [vmem:[#allocation42_spill] sm:$0xff] %v5940_v44  ;;  %v5950_v48 = vadd.f32 %v1963_v42, %v1835_v14  ;;  %v5952_v49 = vadd.f32 %v1979_v43, %v1851_v15  ;;  %v5962_v57 = vpop.f32.mrb[17].mxu1 }
 0x115   :  { %11872 = vst [vmem:[#allocation43_spill] sm:$0xff] %v5942_v45  ;;  %11873 = vst [vmem:[#allocation44_spill] sm:$0xff] %v5944_v46 }
 0x116   :  { %11874 = vst [vmem:[#allocation45_spill] sm:$0xff] %v5946_v25  ;;  %11876 = vst [vmem:[#allocation47_spill] sm:$0xff] %v5950_v48  ;;  %v5968_v60 = vpop.f32.mrb[18].mxu0 }
 0x117   :  { %11877 = vst [vmem:[#allocation48_spill] sm:$0xff] %v5952_v49  ;;  %11878 = vst [vmem:[#allocation49_spill] sm:$0xff] %v5954_v52  ;;  %v5970_v61 = vpop.f32.mrb[19].mxu0  ;;  %v5972_v8 = vpop.f32.mrb[18].mxu1 }
 0x118   :  { %11879 = vst [vmem:[#allocation50_spill] sm:$0xff] %v5956_v53  ;;  %11880 = vst [vmem:[#allocation51_spill] sm:$0xff] %v5962_v57  ;;  %v5974_v9 = vpop.f32.mrb[19].mxu1 }
 0x119   :  { %11881 = vst [vmem:[#allocation52_spill] sm:$0xff] %v5968_v60  ;;  %11882 = vst [vmem:[#allocation53_spill] sm:$0xff] %v5970_v61 }
 0x11a   :  { %11883 = vst [vmem:[#allocation54_spill] sm:$0xff] %v5972_v8  ;;  %11884 = vst [vmem:[#allocation55_spill] sm:$0xff] %v5974_v9  ;;  %v5976_v12 = vpop.f32.mrb[20].mxu0 }
 0x11b   :  { %11885 = vst [vmem:[#allocation56_spill] sm:$0xff] %v5976_v12  ;;  %v5978_v14 = vpop.f32.mrb[21].mxu0  ;;  %v5980_v15 = vpop.f32.mrb[20].mxu1 }
 0x11c   :  { %11886 = vst [vmem:[#allocation57_spill] sm:$0xff] %v5978_v14  ;;  %11887 = vst [vmem:[#allocation58_spill] sm:$0xff] %v5980_v15  ;;  %v5982_v19 = vpop.f32.mrb[21].mxu1 }
 0x11d   :  { %11888 = vst [vmem:[#allocation59_spill] sm:$0xff] %v5982_v19 }
 0x11e   :  { %v5984_v20 = vpop.f32.mrb[22].mxu0 }
 0x11f   :  { %11889 = vst [vmem:[#allocation60_spill] sm:$0xff] %v5984_v20  ;;  %v5986_v34 = vpop.f32.mrb[23].mxu0  ;;  %v5988_v35 = vpop.f32.mrb[22].mxu1 }
 0x120   :  { %11890 = vst [vmem:[#allocation61_spill] sm:$0xff] %v5986_v34  ;;  %11891 = vst [vmem:[#allocation62_spill] sm:$0xff] %v5988_v35  ;;  %v5990_v36 = vpop.f32.mrb[23].mxu1 }
 0x121   :  { %11892 = vst [vmem:[#allocation63_spill] sm:$0xff] %v5990_v36 }
 0x122   :  { %v455_v37 = vpop.f32.mrb[24].mxu0 }
 0x123   :  { %v5992_v42 = vmul.f32 0.5, %v455_v37  ;;  %v601_v43 = vpop.f32.mrb[24].mxu1  ;;  %v457_v0 = vpop.f32.mrb[25].mxu0 }
 0x124   :  { %v5994_v59 = vmul.f32 0.5, %v601_v43  ;;  %v5996_v58 = vmul.f32 0.5, %v457_v0  ;;  %v603_v55 = vpop.f32.mrb[25].mxu1 }
 0x125   :  { %11893 = vst [vmem:[#allocation64_spill] sm:$0xff] %v5992_v42  ;;  %v1352_v54 = vmul.f32 %v5992_v42, %v5820_v5  ;;  %v1354_v15 = vmul.f32 %v5992_v42, %v5830_v10  ;;  %v6002_v20 = vmul.f32 0.5, %v603_v55 }
 0x126   :  { %11894 = vst [vmem:[#allocation65_spill] sm:$0xff] %v5994_v59  ;;  %11895 = vst [vmem:[#allocation66_spill] sm:$0xff] %v5996_v58  ;;  %v1368_v35 = vmul.f32 %v5994_v59, %v5820_v5  ;;  %v1370_v37 = vmul.f32 %v5994_v59, %v5830_v10  ;;  %v1353_v43 = vmul.f32 %v5996_v58, %v5832_v11  ;;  %v461_v12 = vpop.f32.mrb[26].mxu0 }
 0x127   :  { %11896 = vst [vmem:[#allocation67_spill] sm:$0xff] %v6002_v20  ;;  %v1355_v0 = vmul.f32 %v5996_v58, %v5842_v16  ;;  %v1369_v8 = vmul.f32 %v6002_v20, %v5832_v11  ;;  %v1371_v55 = vmul.f32 %v6002_v20, %v5842_v16  ;;  %v6016_v53 = vmul.f32 0.5, %v461_v12  ;;  %v607_v60 = vpop.f32.mrb[26].mxu1  ;;  %v463_v33 = vpop.f32.mrb[27].mxu0 }
 0x128   :  { %v6018_v36 = vmul.f32 0.5, %v607_v60  ;;  %v6020_v19 = vmul.f32 0.5, %v463_v33  ;;  %v609_v34 = vpop.f32.mrb[27].mxu1 }
 0x129   :  { %11897 = vst [vmem:[#allocation68_spill] sm:$0xff] %v6016_v53  ;;  %v1480_v14 = vmul.f32 %v6016_v53, %v5860_v26  ;;  %v1482_v9 = vmul.f32 %v6016_v53, %v5870_v31  ;;  %v6026_v57 = vmul.f32 0.5, %v609_v34 }
 0x12a   :  { %11898 = vst [vmem:[#allocation69_spill] sm:$0xff] %v6018_v36  ;;  %11899 = vst [vmem:[#allocation70_spill] sm:$0xff] %v6020_v19  ;;  %v1496_v61 = vmul.f32 %v6018_v36, %v5860_v26  ;;  %v1498_v12 = vmul.f32 %v6018_v36, %v5870_v31  ;;  %v1481_v60 = vmul.f32 %v6020_v19, %v5872_v32  ;;  %v467_v52 = vpop.f32.mrb[28].mxu0 }
 0x12b   :  { %11900 = vst [vmem:[#allocation71_spill] sm:$0xff] %v6026_v57  ;;  %v1483_v33 = vmul.f32 %v6020_v19, %v5882_v38  ;;  %v1497_v16 = vmul.f32 %v6026_v57, %v5872_v32  ;;  %v1499_v34 = vmul.f32 %v6026_v57, %v5882_v38  ;;  %v6040_v11 = vmul.f32 0.5, %v467_v52  ;;  %v613_v10 = vpop.f32.mrb[28].mxu1  ;;  %v469_v26 = vpop.f32.mrb[29].mxu0 }
 0x12c   :  { %v1608_v5 = vadd.f32 %v1480_v14, %v1352_v54  ;;  %v6042_v49 = vmul.f32 0.5, %v613_v10  ;;  %v6044_v31 = vmul.f32 0.5, %v469_v26  ;;  %v615_v25 = vpop.f32.mrb[29].mxu1  ;;  %v1610_v48 = vadd.f32 %v1482_v9, %v1354_v15 }
 0x12d   :  { %11901 = vst [vmem:[#allocation72_spill] sm:$0xff] %v6040_v11  ;;  %v1624_v46 = vadd.f32 %v1496_v61, %v1368_v35  ;;  %v6046_v39 = vmul.f32 0.5, %v615_v25  ;;  %v1626_v30 = vadd.f32 %v1498_v12, %v1370_v37  ;;  %v1736_v32 = vmul.f32 %v6040_v11, %v5888_v47 }
 0x12e   :  { %11902 = vst [vmem:[#allocation73_spill] sm:$0xff] %v6042_v49  ;;  %11903 = vst [vmem:[#allocation74_spill] sm:$0xff] %v6044_v31  ;;  %v1738_v52 = vmul.f32 %v6040_v11, %v5894_v50  ;;  %v473_v38 = vpop.f32.mrb[30].mxu0  ;;  %v1752_v54 = vmul.f32 %v6042_v49, %v5888_v47  ;;  %v1754_v10 = vmul.f32 %v6042_v49, %v5894_v50 }
 0x12f   :  { %11904 = vst [vmem:[#allocation75_spill] sm:$0xff] %v6046_v39  ;;  %v6056_v26 = vadd.f32 %v1481_v60, %v1353_v43  ;;  %v6058_v9 = vadd.f32 %v1483_v33, %v1355_v0  ;;  %v6060_v25 = vmul.f32 0.5, %v473_v38  ;;  %v619_v61 = vpop.f32.mrb[30].mxu1  ;;  %v475_v14 = vpop.f32.mrb[31].mxu0  ;;  %v6062_v15 = vadd.f32 %v1736_v32, %v1608_v5 }
 0x130   :  { %v6064_v35 = vadd.f32 %v1738_v52, %v1610_v48  ;;  %v6066_v37 = vadd.f32 %v1497_v16, %v1369_v8  ;;  %v6068_v12 = vmul.f32 0.5, %v619_v61  ;;  %v6070_v47 = vmul.f32 0.5, %v475_v14  ;;  %v621_v28 = vpop.f32.mrb[31].mxu1 }
 0x131   :  { %11905 = vst [vmem:[#allocation76_spill] sm:$0xff] %v6056_v26  ;;  %11906 = vst [vmem:[#allocation77_spill] sm:$0xff] %v6058_v9  ;;  %v6072_v50 = vadd.f32 %v1752_v54, %v1624_v46  ;;  %v6074_v43 = vadd.f32 %v1754_v10, %v1626_v30  ;;  %v6076_v0 = vmul.f32 0.5, %v621_v28  ;;  %v6080_v38 = vmul.f32 %v6060_v25, %v5912_v13 }
 0x132   :  { %11907 = vst [vmem:[#allocation78_spill] sm:$0xff] %v6060_v25  ;;  %11908 = vst [vmem:[#allocation79_spill] sm:$0xff] %v6066_v37  ;;  %v6084_v5 = vmul.f32 %v6060_v25, %v5918_v29  ;;  %v6086_v16 = vadd.f32 %v1499_v34, %v1371_v55  ;;  %v6088_v32 = vpop.f32.mrb[32].mxu0  ;;  %v6092_v46 = vmul.f32 %v6068_v12, %v5912_v13 }
 0x133   :  { %11909 = vst [vmem:[#allocation80_spill] sm:$0xff] %v6068_v12  ;;  %11910 = vst [vmem:[#allocation81_spill] sm:$0xff] %v6070_v47  ;;  %v6096_v28 = vmul.f32 %v6068_v12, %v5918_v29  ;;  %v6100_v30 = vmul.f32 %v6044_v31, %v5896_v51  ;;  %v6104_v48 = vmul.f32 %v6044_v31, %v5906_v56  ;;  %v6114_v34 = vpop.f32.mrb[32].mxu1  ;;  %v6116_v52 = vpop.f32.mrb[33].mxu0 }
 0x134   :  { %11911 = vst [vmem:[#allocation82_spill] sm:$0xff] %v6076_v0  ;;  %11912 = vst [vmem:[#allocation83_spill] sm:$0xff] %v6086_v16  ;;  %v1324_v8 = vmul.f32 %v5808_v62, %v6088_v32  ;;  %v1340_v55 = vmul.f32 %v5810_v63, %v6088_v32  ;;  %v1356_v60 = vmul.f32 %v5992_v42, %v6088_v32  ;;  %v6126_v29 = vpop.f32.mrb[33].mxu1 }
 0x135   :  { %11913 = vst [vmem:[#allocation84_spill] sm:$0xff] %v6088_v32  ;;  %11914 = vst [vmem:[#allocation85_spill] sm:$0xff] %v6100_v30  ;;  %v1372_v33 = vmul.f32 %v5994_v59, %v6088_v32  ;;  %v1326_v54 = vmul.f32 %v5808_v62, %v6114_v34  ;;  %v1342_v10 = vmul.f32 %v5810_v63, %v6114_v34 }
 0x136   :  { %11915 = vst [vmem:[#allocation86_spill] sm:$0xff] %v6104_v48  ;;  %11916 = vst [vmem:[#allocation87_spill] sm:$0xff] %v6114_v34  ;;  %v1358_v61 = vmul.f32 %v5992_v42, %v6114_v34  ;;  %v1374_v14 = vmul.f32 %v5994_v59, %v6114_v34  ;;  %v1325_v13 = vmul.f32 %v5812_v1, %v6116_v52  ;;  %v6144_v47 = vpop.f32.mrb[34].mxu0 }
 0x137   :  { %11917 = vst [vmem:[#allocation88_spill] sm:$0xff] %v6116_v52  ;;  %11918 = vst [vmem:[#allocation89_spill] sm:$0xff] %v6126_v29  ;;  %v1341_v32 = vmul.f32 %v5814_v2, %v6116_v52  ;;  %v1357_v62 = vmul.f32 %v5996_v58, %v6116_v52  ;;  %v1373_v63 = vmul.f32 %v6002_v20, %v6116_v52  ;;  %v6154_v16 = vpop.f32.mrb[34].mxu1 }
 0x138   :  { %v1327_v42 = vmul.f32 %v5812_v1, %v6126_v29  ;;  %v1343_v59 = vmul.f32 %v5814_v2, %v6126_v29  ;;  %v1359_v34 = vmul.f32 %v5996_v58, %v6126_v29  ;;  %v1375_v0 = vmul.f32 %v6002_v20, %v6126_v29  ;;  %11919 = vst [vmem:[#allocation90_spill] sm:$0xff] %v6144_v47  ;;  %v6156_v58 = vpop.f32.mrb[35].mxu0  ;;  %v6166_v9 = vpop.f32.mrb[35].mxu1 }
 0x139   :  { %v1452_v24 = vmul.f32 %v5816_v3, %v6144_v47  ;;  %v1468_v52 = vmul.f32 %v5822_v6, %v6144_v47  ;;  %v1484_v1 = vmul.f32 %v6016_v53, %v6144_v47  ;;  %v1500_v2 = vmul.f32 %v6018_v36, %v6144_v47  ;;  %11920 = vst [vmem:[#allocation91_spill] sm:$0xff] %v6154_v16 }
 0x13a   :  { %11921 = vst [vmem:[#allocation92_spill] sm:$0xff] %v6156_v58  ;;  %v1454_v20 = vmul.f32 %v5816_v3, %v6154_v16  ;;  %v1470_v29 = vmul.f32 %v5822_v6, %v6154_v16  ;;  %v1486_v37 = vmul.f32 %v6016_v53, %v6154_v16  ;;  %v1502_v48 = vmul.f32 %v6018_v36, %v6154_v16  ;;  %v6168_v3 = vpop.f32.mrb[36].mxu0 }
 0x13b   :  { %11922 = vst [vmem:[#allocation93_spill] sm:$0xff] %v6166_v9  ;;  %v1580_v30 = vadd.f32 %v1452_v24, %v1324_v8  ;;  %v1596_v47 = vadd.f32 %v1468_v52, %v1340_v55  ;;  %v1612_v26 = vadd.f32 %v1484_v1, %v1356_v60  ;;  %v1628_v56 = vadd.f32 %v1500_v2, %v1372_v33  ;;  %v6178_v1 = vpop.f32.mrb[36].mxu1  ;;  %v6180_v2 = vpop.f32.mrb[37].mxu0 }
 0x13c   :  { %v1582_v51 = vadd.f32 %v1454_v20, %v1326_v54  ;;  %v1598_v45 = vadd.f32 %v1470_v29, %v1342_v10  ;;  %v1614_v41 = vadd.f32 %v1486_v37, %v1358_v61  ;;  %v1630_v44 = vadd.f32 %v1502_v48, %v1374_v14  ;;  %11923 = vst [vmem:[#allocation94_spill] sm:$0xff] %v6168_v3  ;;  %v6190_v8 = vpop.f32.mrb[37].mxu1 }
 0x13d   :  { %v1453_v6 = vmul.f32 %v5818_v4, %v6156_v58  ;;  %v1469_v53 = vmul.f32 %v5824_v7, %v6156_v58  ;;  %v1485_v36 = vmul.f32 %v6020_v19, %v6156_v58  ;;  %v1501_v24 = vmul.f32 %v6026_v57, %v6156_v58  ;;  %11924 = vst [vmem:[#allocation95_spill] sm:$0xff] %v6178_v1 }
 0x13e   :  { %11925 = vst [vmem:[#allocation96_spill] sm:$0xff] %v6180_v2  ;;  %v1455_v29 = vmul.f32 %v5818_v4, %v6166_v9  ;;  %v1471_v20 = vmul.f32 %v5824_v7, %v6166_v9  ;;  %v1487_v37 = vmul.f32 %v6020_v19, %v6166_v9  ;;  %v1503_v48 = vmul.f32 %v6026_v57, %v6166_v9  ;;  %v6192_v4 = vpop.f32.mrb[38].mxu0 }
 0x13f   :  { %11926 = vst [vmem:[#allocation97_spill] sm:$0xff] %v6190_v8  ;;  %v1581_v55 = vadd.f32 %v1453_v6, %v1325_v13  ;;  %v1597_v60 = vadd.f32 %v1469_v53, %v1341_v32  ;;  %v1613_v33 = vadd.f32 %v1485_v36, %v1357_v62  ;;  %v1629_v52 = vadd.f32 %v1501_v24, %v1373_v63  ;;  %v6202_v62 = vpop.f32.mrb[38].mxu1  ;;  %v6204_v63 = vpop.f32.mrb[39].mxu0 }
 0x140   :  { %v1583_v54 = vadd.f32 %v1455_v29, %v1327_v42  ;;  %v1599_v10 = vadd.f32 %v1471_v20, %v1343_v59  ;;  %v1615_v61 = vadd.f32 %v1487_v37, %v1359_v34  ;;  %v1631_v14 = vadd.f32 %v1503_v48, %v1375_v0  ;;  %11927 = vst [vmem:[#allocation98_spill] sm:$0xff] %v6192_v4  ;;  %v6214_v42 = vpop.f32.mrb[39].mxu1 }
 0x141   :  { %v1708_v7 = vmul.f32 %v5844_v17, %v6168_v3  ;;  %v1724_v19 = vmul.f32 %v5852_v21, %v6168_v3  ;;  %v1740_v57 = vmul.f32 %v6040_v11, %v6168_v3  ;;  %v1756_v6 = vmul.f32 %v6042_v49, %v6168_v3  ;;  %11928 = vst [vmem:[#allocation99_spill] sm:$0xff] %v6202_v62 }
 0x142   :  { %11929 = vst [vmem:[#allocation100_spill] sm:$0xff] %v6204_v63  ;;  %v1710_v13 = vmul.f32 %v5844_v17, %v6178_v1  ;;  %v1726_v53 = vmul.f32 %v5852_v21, %v6178_v1  ;;  %v1742_v59 = vmul.f32 %v6040_v11, %v6178_v1  ;;  %v1758_v36 = vmul.f32 %v6042_v49, %v6178_v1  ;;  %v6216_v17 = vpop.f32.mrb[40].mxu0 }
 0x143   :  { %11930 = vst [vmem:[#allocation101_spill] sm:$0xff] %v6214_v42  ;;  %v1836_v0 = vadd.f32 %v1708_v7, %v1580_v30  ;;  %v1852_v32 = vadd.f32 %v1724_v19, %v1596_v47  ;;  %v1868_v34 = vadd.f32 %v1740_v57, %v1612_v26  ;;  %v1884_v24 = vadd.f32 %v1756_v6, %v1628_v56  ;;  %v6226_v47 = vpop.f32.mrb[41].mxu0 }
 0x144   :  { %v1838_v29 = vadd.f32 %v1710_v13, %v1582_v51  ;;  %v1854_v20 = vadd.f32 %v1726_v53, %v1598_v45  ;;  %v1870_v37 = vadd.f32 %v1742_v59, %v1614_v41  ;;  %v1886_v48 = vadd.f32 %v1758_v36, %v1630_v44  ;;  %11931 = vst [vmem:[#allocation102_spill] sm:$0xff] %v6216_v17  ;;  %v6228_v51 = vpop.f32.mrb[40].mxu1 }
 0x145   :  { %v1709_v21 = vmul.f32 %v5846_v18, %v6180_v2  ;;  %v1725_v11 = vmul.f32 %v5854_v22, %v6180_v2  ;;  %v1741_v1 = vmul.f32 %v6044_v31, %v6180_v2  ;;  %v1757_v7 = vmul.f32 %v6046_v39, %v6180_v2  ;;  %11932 = vst [vmem:[#allocation103_spill] sm:$0xff] %v6226_v47  ;;  %v6238_v57 = vpop.f32.mrb[41].mxu1 }
 0x146   :  { %11933 = vst [vmem:[#allocation104_spill] sm:$0xff] %v6228_v51  ;;  %v1711_v56 = vmul.f32 %v5846_v18, %v6190_v8  ;;  %v1727_v41 = vmul.f32 %v5854_v22, %v6190_v8  ;;  %v1743_v44 = vmul.f32 %v6044_v31, %v6190_v8  ;;  %v1759_v45 = vmul.f32 %v6046_v39, %v6190_v8  ;;  %v6256_v51 = vpop.f32.mrb[42].mxu0  ;;  %v12031_v8 = vld [vmem:[#allocation29_spill] sm:$0xff] }
 0x147   :  { %11934 = vst [vmem:[#allocation105_spill] sm:$0xff] %v6238_v57  ;;  %v6240_v19 = vadd.f32 %v1709_v21, %v1581_v55  ;;  %v6242_v26 = vadd.f32 %v1725_v11, %v1597_v60  ;;  %v6244_v30 = vadd.f32 %v1741_v1, %v1613_v33  ;;  %v6246_v6 = vadd.f32 %v1757_v7, %v1629_v52  ;;  %v6266_v60 = vpop.f32.mrb[43].mxu0  ;;  %v6268_v33 = vpop.f32.mrb[42].mxu1 }
 0x148   :  { %v6248_v13 = vadd.f32 %v1711_v56, %v1583_v54  ;;  %v6250_v53 = vadd.f32 %v1727_v41, %v1599_v10  ;;  %v6252_v59 = vadd.f32 %v1743_v44, %v1615_v61  ;;  %v6254_v36 = vadd.f32 %v1759_v45, %v1631_v14  ;;  %11935 = vst [vmem:[#allocation106_spill] sm:$0xff] %v6256_v51  ;;  %v6286_v14 = vpop.f32.mrb[43].mxu1 }
 0x149   :  { %v1964_v21 = vmul.f32 %v5856_v23, %v6192_v4  ;;  %v1980_v11 = vmul.f32 %v5862_v27, %v6192_v4  ;;  %v1996_v1 = vmul.f32 %v6060_v25, %v6192_v4  ;;  %v2012_v55 = vmul.f32 %v6068_v12, %v6192_v4  ;;  %11936 = vst [vmem:[#allocation107_spill] sm:$0xff] %v6266_v60  ;;  %v11971_v60 = vld [vmem:[#allocation79_spill] sm:$0xff] }
 0x14a   :  { %11937 = vst [vmem:[#allocation108_spill] sm:$0xff] %v6268_v33  ;;  %v6272_v52 = vadd.f32 %v6080_v38, %v6062_v15  ;;  %v6276_v54 = vadd.f32 %v6084_v5, %v6064_v35  ;;  %v6280_v10 = vadd.f32 %v6092_v46, %v6072_v50  ;;  %v6284_v61 = vadd.f32 %v6096_v28, %v6074_v43  ;;  %v6304_v46 = vpop.f32.mrb[44].mxu0  ;;  %v11948_v28 = vld [vmem:[#allocation42_spill] sm:$0xff] }
 0x14b   :  { %11942 = vst [vmem:[#allocation113_spill] sm:$0xff] %v6286_v14  ;;  %v6288_v7 = vadd.f32 %v1964_v21, %v1836_v0  ;;  %v6290_v56 = vadd.f32 %v1980_v11, %v1852_v32  ;;  %v6292_v15 = vadd.f32 %v1996_v1, %v1868_v34  ;;  %v6294_v38 = vadd.f32 %v2012_v55, %v1884_v24  ;;  %v11951_v34 = vld [vmem:[#allocation41_spill] sm:$0xff]  ;;  %v11952_v24 = vld [vmem:[#allocation43_spill] sm:$0xff]  ;;  %v6322_v11 = vpop.f32.mrb[45].mxu0  ;;  %v6324_v1 = vpop.f32.mrb[44].mxu1  ;;  %v11964_v14 = vld [vmem:[#allocation34_spill] sm:$0xff] }
 0x14c   :  { %11938 = vst [vmem:[#allocation109_spill] sm:$0xff] %v6272_v52  ;;  %11939 = vst [vmem:[#allocation110_spill] sm:$0xff] %v6276_v54  ;;  %v2244_v35 = vmax.f32 %v6272_v52, %v6276_v54  ;;  %v2258_v50 = vmax.f32 %v6280_v10, %v6284_v61  ;;  %v1966_v43 = vmul.f32 %v5856_v23, %v6202_v62  ;;  %v6336_v33 = vpop.f32.mrb[45].mxu1 }
 0x14d   :  { %11940 = vst [vmem:[#allocation111_spill] sm:$0xff] %v6280_v10  ;;  %11941 = vst [vmem:[#allocation112_spill] sm:$0xff] %v6284_v61  ;;  %v1982_v5 = vmul.f32 %v5862_v27, %v6202_v62  ;;  %v11949_v0 = vmax.f32 %v5932_v40, %v11948_v28  ;;  %v11953_v41 = vmax.f32 %v11951_v34, %v11952_v24  ;;  %v11978_v10 = vld [vmem:[#allocation81_spill] sm:$0xff]  ;;  %v12097_v27 = vld [vmem:[#allocation10_spill] sm:$0xff] }
 0x14e   :  { %11943 = vst [vmem:[#allocation114_spill] sm:$0xff] %v6288_v7  ;;  %11944 = vst [vmem:[#allocation115_spill] sm:$0xff] %v6290_v56  ;;  %v1998_v45 = vmul.f32 %v6060_v25, %v6202_v62  ;;  %v2014_v21 = vmul.f32 %v6068_v12, %v6202_v62  ;;  %v6327_v55 = vmax.f32 %v2244_v35, %v6292_v15 }
 0x14f   :  { %11945 = vst [vmem:[#allocation116_spill] sm:$0xff] %v6292_v15  ;;  %11946 = vst [vmem:[#allocation117_spill] sm:$0xff] %v6294_v38  ;;  %v6310_v32 = vmax.f32 %v11949_v0, %v6288_v7  ;;  %v6316_v44 = vmax.f32 %v11953_v41, %v6290_v56  ;;  %v6330_v0 = vmax.f32 %v2258_v50, %v6294_v38  ;;  %v11972_v50 = vld [vmem:[#allocation83_spill] sm:$0xff] }
 0x150   :  { %11947 = vst [vmem:[#allocation118_spill] sm:$0xff] %v6304_v46  ;;  %11955 = vst [vmem:[#allocation121_spill] sm:$0xff] %v6322_v11  ;;  %v6332_v46 = vadd.f32 %v1966_v43, %v1838_v29  ;;  %v6334_v41 = vadd.f32 %v1982_v5, %v1854_v20  ;;  %v6338_v51 = vadd.f32 %v1998_v45, %v1870_v37  ;;  %v11966_v20 = vld [vmem:[#allocation76_spill] sm:$0xff]  ;;  %v11967_v43 = vld [vmem:[#allocation85_spill] sm:$0xff]  ;;  %v6364_v29 = vpop.f32.mrb[46].mxu1 }
 0x151   :  { %11950 = vst [vmem:[#allocation119_spill] sm:$0xff] %v6310_v32  ;;  %11954 = vst [vmem:[#allocation120_spill] sm:$0xff] %v6316_v44  ;;  %v6340_v17 = vadd.f32 %v2014_v21, %v1886_v48  ;;  %v1753_v11 = vmul.f32 %v6046_v39, %v11964_v14  ;;  %v1865_v5 = vadd.f32 %v11967_v43, %v11966_v20  ;;  %v11969_v37 = vld [vmem:[#allocation86_spill] sm:$0xff]  ;;  %v6354_v48 = vpop.f32.mrb[46].mxu0  ;;  %v11975_v20 = vld [vmem:[#allocation25_spill] sm:$0xff]  ;;  %v6374_v54 = vpop.f32.mrb[47].mxu1 }
 0x152   :  { %11956 = vst [vmem:[#allocation122_spill] sm:$0xff] %v6324_v1  ;;  %11957 = vst [vmem:[#allocation123_spill] sm:$0xff] %v6327_v55  ;;  %v11965_v1 = vld [vmem:[#allocation35_spill] sm:$0xff]  ;;  %v6362_v61 = vpop.f32.mrb[47].mxu0  ;;  %v1965_v43 = vmul.f32 %v11975_v20, %v6204_v63  ;;  %v12039_v44 = vld [vmem:[#allocation30_spill] sm:$0xff] }
 0x153   :  { %11958 = vst [vmem:[#allocation124_spill] sm:$0xff] %v6330_v0  ;;  %11959 = vst [vmem:[#allocation125_spill] sm:$0xff] %v6332_v46  ;;  %v1755_v35 = vmul.f32 %v6046_v39, %v11965_v1  ;;  %v1881_v47 = vadd.f32 %v1753_v11, %v11971_v60  ;;  %v11979_v15 = vld [vmem:[#allocation39_spill] sm:$0xff]  ;;  %v1997_v60 = vmul.f32 %v11978_v10, %v6204_v63  ;;  %v11981_v11 = vld [vmem:[#allocation82_spill] sm:$0xff]  ;;  %v747_v24 = vpop.f32.mrb[48].mxu0 }
 0x154   :  { %11960 = vst [vmem:[#allocation126_spill] sm:$0xff] %v6334_v41  ;;  %11961 = vst [vmem:[#allocation127_spill] sm:$0xff] %v6336_v33  ;;  %v11968_v33 = vld [vmem:[#allocation77_spill] sm:$0xff]  ;;  %v1995_v57 = vmul.f32 %v11978_v10, %v11979_v15 }
 0x155   :  { %11962 = vst [vmem:[#allocation128_spill] sm:$0xff] %v6338_v51  ;;  %11963 = vst [vmem:[#allocation129_spill] sm:$0xff] %v6340_v17  ;;  %v1867_v45 = vadd.f32 %v11969_v37, %v11968_v33  ;;  %v1883_v38 = vadd.f32 %v1755_v35, %v11972_v50  ;;  %v11976_v33 = vld [vmem:[#allocation28_spill] sm:$0xff]  ;;  %v2011_v50 = vmul.f32 %v11981_v11, %v11979_v15 }
 0x156   :  { %11970 = vst [vmem:[#allocation76_spill] sm:$0xff] %v6354_v48  ;;  %11973 = vst [vmem:[#allocation85_spill] sm:$0xff] %v6362_v61  ;;  %v1981_v37 = vmul.f32 %v11976_v33, %v6204_v63  ;;  %v11977_v48 = vld [vmem:[#allocation38_spill] sm:$0xff]  ;;  %v6385_v61 = vadd.f32 %v1965_v43, %v6240_v19  ;;  %v6395_v34 = vadd.f32 %v1997_v60, %v6244_v30  ;;  %v893_v19 = vpop.f32.mrb[48].mxu1  ;;  %v749_v43 = vpop.f32.mrb[49].mxu0 }
 0x157   :  { %11974 = vst [vmem:[#allocation77_spill] sm:$0xff] %v6364_v29  ;;  %v1993_v21 = vmul.f32 %v11978_v10, %v11977_v48  ;;  %11980 = vst [vmem:[#allocation86_spill] sm:$0xff] %v6374_v54  ;;  %v2009_v35 = vmul.f32 %v11981_v11, %v11977_v48  ;;  %v2013_v29 = vmul.f32 %v11981_v11, %v6204_v63  ;;  %v12026_v63 = vld [vmem:[#allocation89_spill] sm:$0xff] }
 0x158   :  { %11982 = vst [vmem:[#allocation79_spill] sm:$0xff] %v6385_v61  ;;  %v6388_v52 = vadd.f32 %v1981_v37, %v6242_v26  ;;  %v6392_v54 = vadd.f32 %v1995_v57, %v1867_v45  ;;  %11986 = vst [vmem:[#allocation132_spill] sm:$0xff] %v6395_v34  ;;  %v6399_v28 = vadd.f32 %v2011_v50, %v1883_v38  ;;  %v11990_v26 = vld [vmem:[#allocation44_spill] sm:$0xff]  ;;  %v11991_v37 = vld [vmem:[#allocation47_spill] sm:$0xff]  ;;  %v895_v38 = vpop.f32.mrb[49].mxu1 }
 0x159   :  { %v6390_v56 = vadd.f32 %v1993_v21, %v1865_v5  ;;  %v6397_v7 = vadd.f32 %v2009_v35, %v1881_v47  ;;  %v6402_v40 = vadd.f32 %v2013_v29, %v6246_v6  ;;  %v11992_v5 = vmax.f32 %v11990_v26, %v11991_v37  ;;  %v11994_v57 = vld [vmem:[#allocation45_spill] sm:$0xff]  ;;  %v11995_v45 = vld [vmem:[#allocation48_spill] sm:$0xff] }
 0x15a   :  { %11983 = vst [vmem:[#allocation83_spill] sm:$0xff] %v6388_v52  ;;  %11985 = vst [vmem:[#allocation131_spill] sm:$0xff] %v6392_v54  ;;  %v11996_v30 = vmax.f32 %v11994_v57, %v11995_v45  ;;  %v1967_v6 = vmul.f32 %v11975_v20, %v6214_v42  ;;  %v1983_v35 = vmul.f32 %v11976_v33, %v6214_v42  ;;  %v12030_v33 = vld [vmem:[#allocation26_spill] sm:$0xff] }
 0x15b   :  { %11984 = vst [vmem:[#allocation130_spill] sm:$0xff] %v6390_v56  ;;  %11987 = vst [vmem:[#allocation133_spill] sm:$0xff] %v6397_v7  ;;  %v6408_v21 = vmax.f32 %v11992_v5, %v6385_v61  ;;  %v2251_v47 = vmax.f32 %v6390_v56, %v6392_v54  ;;  %v2265_v29 = vmax.f32 %v6397_v7, %v6399_v28  ;;  %v6434_v56 = vmul.f32 0.5, %v747_v24  ;;  %v12007_v61 = vld [vmem:[#allocation17_spill] sm:$0xff] }
 0x15c   :  { %11988 = vst [vmem:[#allocation134_spill] sm:$0xff] %v6399_v28  ;;  %11989 = vst [vmem:[#allocation135_spill] sm:$0xff] %v6402_v40  ;;  %v6414_v60 = vmax.f32 %v11996_v30, %v6388_v52  ;;  %v1999_v50 = vmul.f32 %v11978_v10, %v6214_v42  ;;  %v2015_v5 = vmul.f32 %v11981_v11, %v6214_v42  ;;  %v6436_v52 = vmul.f32 0.5, %v893_v19  ;;  %v753_v28 = vpop.f32.mrb[50].mxu0  ;;  %v12006_v19 = vld [vmem:[#allocation14_spill] sm:$0xff]  ;;  %v12024_v42 = vld [vmem:[#allocation88_spill] sm:$0xff] }
 0x15d   :  { %11993 = vst [vmem:[#allocation136_spill] sm:$0xff] %v6408_v21  ;;  %v6429_v30 = vmax.f32 %v2251_v47, %v6395_v34  ;;  %v6432_v54 = vadd.f32 %v1967_v6, %v6248_v13  ;;  %12000 = vst [vmem:[#allocation140_spill] sm:$0xff] %v6434_v56  ;;  %v6439_v7 = vmax.f32 %v2265_v29, %v6402_v40  ;;  %v899_v34 = vpop.f32.mrb[50].mxu1  ;;  %v755_v13 = vpop.f32.mrb[51].mxu0  ;;  %v12008_v40 = vld [vmem:[#allocation84_spill] sm:$0xff]  ;;  %v12022_v21 = vld [vmem:[#allocation18_spill] sm:$0xff] }
 0x15e   :  { %11997 = vst [vmem:[#allocation137_spill] sm:$0xff] %v6414_v60  ;;  %12001 = vst [vmem:[#allocation141_spill] sm:$0xff] %v6436_v52  ;;  %v6442_v45 = vadd.f32 %v1983_v35, %v6250_v53  ;;  %v6445_v57 = vadd.f32 %v1999_v50, %v6252_v59  ;;  %v6448_v47 = vadd.f32 %v2015_v5, %v6254_v36  ;;  %v901_v59 = vpop.f32.mrb[51].mxu1  ;;  %v12010_v5 = vld [vmem:[#allocation87_spill] sm:$0xff]  ;;  %v759_v36 = vpop.f32.mrb[52].mxu0  ;;  %v6482_v50 = vmul.f32 0.5, %v749_v43 }
 0x15f   :  { %11998 = vst [vmem:[#allocation138_spill] sm:$0xff] %v6429_v30  ;;  %11999 = vst [vmem:[#allocation139_spill] sm:$0xff] %v6432_v54  ;;  %v1384_v6 = vmul.f32 %v6434_v56, %v12006_v19  ;;  %v1386_v29 = vmul.f32 %v6434_v56, %v12007_v61  ;;  %v6458_v53 = vmul.f32 %v6434_v56, %v12008_v40  ;;  %v761_v30 = vpop.f32.mrb[53].mxu0 }
 0x160   :  { %12002 = vst [vmem:[#allocation142_spill] sm:$0xff] %v6439_v7  ;;  %12003 = vst [vmem:[#allocation143_spill] sm:$0xff] %v6442_v45  ;;  %v6468_v24 = vmul.f32 %v6434_v56, %v12010_v5  ;;  %v1400_v37 = vmul.f32 %v6436_v52, %v12006_v19  ;;  %v1402_v26 = vmul.f32 %v6436_v52, %v12007_v61  ;;  %v6486_v7 = vmul.f32 0.5, %v753_v28  ;;  %v905_v19 = vpop.f32.mrb[52].mxu1  ;;  %v765_v10 = vpop.f32.mrb[54].mxu0 }
 0x161   :  { %12004 = vst [vmem:[#allocation144_spill] sm:$0xff] %v6445_v57  ;;  %12005 = vst [vmem:[#allocation145_spill] sm:$0xff] %v6448_v47  ;;  %v6476_v54 = vmul.f32 %v6436_v52, %v12008_v40  ;;  %v6480_v35 = vmul.f32 %v6436_v52, %v12010_v5  ;;  %v6484_v47 = vmul.f32 0.5, %v895_v38  ;;  %v6488_v57 = vmul.f32 0.5, %v899_v34  ;;  %v907_v5 = vpop.f32.mrb[53].mxu1  ;;  %v12023_v38 = vld [vmem:[#allocation19_spill] sm:$0xff] }
 0x162   :  { %12009 = vst [vmem:[#allocation146_spill] sm:$0xff] %v6458_v53  ;;  %12011 = vst [vmem:[#allocation147_spill] sm:$0xff] %v6468_v24  ;;  %v6490_v61 = vmul.f32 0.5, %v755_v13  ;;  %v6492_v45 = vmul.f32 0.5, %v901_v59  ;;  %v6494_v40 = vmul.f32 0.5, %v759_v36  ;;  %v6496_v60 = vmul.f32 0.5, %v905_v19 }
 0x163   :  { %12012 = vst [vmem:[#allocation148_spill] sm:$0xff] %v6476_v54  ;;  %12013 = vst [vmem:[#allocation149_spill] sm:$0xff] %v6480_v35  ;;  %v1385_v43 = vmul.f32 %v6482_v50, %v12022_v21  ;;  %v1387_v28 = vmul.f32 %v6482_v50, %v12023_v38  ;;  %v6504_v34 = vmul.f32 %v6482_v50, %v12024_v42 }
 0x164   :  { %12014 = vst [vmem:[#allocation150_spill] sm:$0xff] %v6482_v50  ;;  %12015 = vst [vmem:[#allocation151_spill] sm:$0xff] %v6484_v47  ;;  %v6508_v13 = vmul.f32 %v6482_v50, %v12026_v63  ;;  %v1401_v59 = vmul.f32 %v6484_v47, %v12022_v21  ;;  %v1403_v19 = vmul.f32 %v6484_v47, %v12023_v38 }
 0x165   :  { %12016 = vst [vmem:[#allocation152_spill] sm:$0xff] %v6486_v7  ;;  %12017 = vst [vmem:[#allocation153_spill] sm:$0xff] %v6488_v57  ;;  %v6516_v36 = vmul.f32 %v6484_v47, %v12024_v42  ;;  %v6520_v11 = vmul.f32 %v6484_v47, %v12026_v63  ;;  %v1512_v20 = vmul.f32 %v6486_v7, %v12030_v33  ;;  %v911_v42 = vpop.f32.mrb[54].mxu1 }
 0x166   :  { %12018 = vst [vmem:[#allocation154_spill] sm:$0xff] %v6490_v61  ;;  %12019 = vst [vmem:[#allocation155_spill] sm:$0xff] %v6492_v45  ;;  %v6532_v38 = vmul.f32 %v6486_v7, %v6154_v16  ;;  %v1528_v63 = vmul.f32 %v6488_v57, %v12030_v33  ;;  %v6544_v0 = vmul.f32 %v6488_v57, %v6154_v16  ;;  %v913_v51 = vpop.f32.mrb[55].mxu1  ;;  %v12040_v33 = vld [vmem:[#allocation31_spill] sm:$0xff] }
 0x167   :  { %12020 = vst [vmem:[#allocation156_spill] sm:$0xff] %v6494_v40  ;;  %12021 = vst [vmem:[#allocation157_spill] sm:$0xff] %v6496_v60  ;;  %v6546_v55 = vadd.f32 %v1512_v20, %v1384_v6  ;;  %v1513_v46 = vmul.f32 %v6490_v61, %v12039_v44  ;;  %v1515_v32 = vmul.f32 %v6490_v61, %v12040_v33 }
 0x168   :  { %12025 = vst [vmem:[#allocation158_spill] sm:$0xff] %v6504_v34  ;;  %12027 = vst [vmem:[#allocation159_spill] sm:$0xff] %v6508_v13  ;;  %v1514_v13 = vmul.f32 %v6486_v7, %v12031_v8  ;;  %v12032_v34 = vld [vmem:[#allocation90_spill] sm:$0xff]  ;;  %v6564_v20 = vmul.f32 %v6490_v61, %v6166_v9  ;;  %v6582_v16 = vmul.f32 %v6492_v45, %v6156_v58 }
 0x169   :  { %12028 = vst [vmem:[#allocation160_spill] sm:$0xff] %v6516_v36  ;;  %12029 = vst [vmem:[#allocation161_spill] sm:$0xff] %v6520_v11  ;;  %v6528_v21 = vmul.f32 %v6486_v7, %v12032_v34  ;;  %v767_v36 = vpop.f32.mrb[55].mxu0  ;;  %v1530_v11 = vmul.f32 %v6488_v57, %v12031_v8  ;;  %v6540_v17 = vmul.f32 %v6488_v57, %v12032_v34 }
 0x16a   :  { %12034 = vst [vmem:[#allocation163_spill] sm:$0xff] %v6532_v38  ;;  %12036 = vst [vmem:[#allocation165_spill] sm:$0xff] %v6544_v0  ;;  %v6548_v41 = vadd.f32 %v1514_v13, %v1386_v29  ;;  %v6554_v8 = vadd.f32 %v1528_v63, %v1400_v37  ;;  %v6560_v34 = vmul.f32 %v6490_v61, %v6156_v58  ;;  %v6566_v6 = vpop.f32.mrb[56].mxu0 }
 0x16b   :  { %12033 = vst [vmem:[#allocation162_spill] sm:$0xff] %v6528_v21  ;;  %12035 = vst [vmem:[#allocation164_spill] sm:$0xff] %v6540_v17  ;;  %v6556_v62 = vadd.f32 %v1530_v11, %v1402_v26  ;;  %v6568_v29 = vadd.f32 %v1513_v46, %v1385_v43  ;;  %v6570_v13 = vadd.f32 %v1515_v32, %v1387_v28  ;;  %v6576_v26 = vpop.f32.mrb[56].mxu1  ;;  %v6578_v37 = vpop.f32.mrb[57].mxu0  ;;  %v12052_v32 = vld [vmem:[#allocation32_spill] sm:$0xff]  ;;  %v12054_v28 = vld [vmem:[#allocation33_spill] sm:$0xff] }
 0x16c   :  { %12037 = vst [vmem:[#allocation166_spill] sm:$0xff] %v6546_v55  ;;  %12038 = vst [vmem:[#allocation167_spill] sm:$0xff] %v6548_v41  ;;  %v1529_v63 = vmul.f32 %v6492_v45, %v12039_v44  ;;  %v1531_v11 = vmul.f32 %v6492_v45, %v12040_v33  ;;  %v6586_v46 = vmul.f32 %v6492_v45, %v6166_v9  ;;  %v6596_v33 = vpop.f32.mrb[57].mxu1 }
 0x16d   :  { %12041 = vst [vmem:[#allocation168_spill] sm:$0xff] %v6554_v8  ;;  %12042 = vst [vmem:[#allocation169_spill] sm:$0xff] %v6556_v62  ;;  %v6590_v43 = vmul.f32 %v6494_v40, %v12052_v32  ;;  %v6594_v44 = vmul.f32 %v6494_v40, %v12054_v28  ;;  %v6604_v58 = vmul.f32 %v6494_v40, %v6168_v3  ;;  %v12101_v62 = vld [vmem:[#allocation67_spill] sm:$0xff] }
 0x16e   :  { %12043 = vst [vmem:[#allocation170_spill] sm:$0xff] %v6560_v34  ;;  %12044 = vst [vmem:[#allocation171_spill] sm:$0xff] %v6564_v20  ;;  %v6608_v9 = vmul.f32 %v6496_v60, %v12052_v32  ;;  %v6628_v32 = vmul.f32 0.5, %v767_v36  ;;  %v12081_v34 = vld [vmem:[#allocation37_spill] sm:$0xff]  ;;  %v1394_v25 = vmul.f32 %v6434_v56, %v6576_v26  ;;  %v1329_v23 = vmul.f32 %v12097_v27, %v6578_v37 }
 0x16f   :  { %12045 = vst [vmem:[#allocation172_spill] sm:$0xff] %v6566_v6  ;;  %12046 = vst [vmem:[#allocation173_spill] sm:$0xff] %v6568_v29  ;;  %v6600_v29 = vadd.f32 %v1531_v11, %v1403_v19  ;;  %v6620_v19 = vmul.f32 0.5, %v907_v5  ;;  %v6624_v11 = vmul.f32 0.5, %v765_v10  ;;  %v1331_v8 = vmul.f32 %v12097_v27, %v6596_v33  ;;  %v12105_v27 = vld [vmem:[#allocation12_spill] sm:$0xff] }
 0x170   :  { %12047 = vst [vmem:[#allocation174_spill] sm:$0xff] %v6570_v13  ;;  %12048 = vst [vmem:[#allocation175_spill] sm:$0xff] %v6576_v26  ;;  %v6598_v13 = vadd.f32 %v1529_v63, %v1401_v59  ;;  %v6618_v59 = vmul.f32 0.5, %v761_v30  ;;  %v6622_v63 = vpop.f32.mrb[58].mxu0 }
 0x171   :  { %12049 = vst [vmem:[#allocation176_spill] sm:$0xff] %v6578_v37  ;;  %12050 = vst [vmem:[#allocation177_spill] sm:$0xff] %v6582_v16  ;;  %v6616_v16 = vmul.f32 %v6496_v60, %v6168_v3  ;;  %v6634_v20 = vpop.f32.mrb[59].mxu0  ;;  %v6656_v36 = vmul.f32 %v6620_v19, %v11965_v1  ;;  %v6660_v3 = vmul.f32 %v6620_v19, %v6180_v2 }
 0x172   :  { %12051 = vst [vmem:[#allocation178_spill] sm:$0xff] %v6586_v46  ;;  %12053 = vst [vmem:[#allocation179_spill] sm:$0xff] %v6590_v43  ;;  %v6612_v46 = vmul.f32 %v6496_v60, %v12054_v28  ;;  %v6632_v28 = vpop.f32.mrb[58].mxu1  ;;  %v6638_v30 = vmul.f32 %v6618_v59, %v11964_v14  ;;  %v6642_v5 = vmul.f32 %v6618_v59, %v11965_v1 }
 0x173   :  { %12055 = vst [vmem:[#allocation180_spill] sm:$0xff] %v6594_v44  ;;  %12056 = vst [vmem:[#allocation181_spill] sm:$0xff] %v6596_v33  ;;  %v6652_v10 = vpop.f32.mrb[59].mxu1  ;;  %v6754_v44 = vmul.f32 %v12101_v62, %v6596_v33  ;;  %v1458_v17 = vmul.f32 %v12105_v27, %v6632_v28 }
 0x174   :  { %12057 = vst [vmem:[#allocation182_spill] sm:$0xff] %v6598_v13  ;;  %12058 = vst [vmem:[#allocation183_spill] sm:$0xff] %v6600_v29  ;;  %v6626_v29 = vmul.f32 0.5, %v911_v42  ;;  %v6630_v13 = vmul.f32 0.5, %v913_v51  ;;  %v6646_v42 = vmul.f32 %v6618_v59, %v6180_v2  ;;  %v6650_v51 = vmul.f32 %v6620_v19, %v11964_v14 }
 0x175   :  { %12059 = vst [vmem:[#allocation184_spill] sm:$0xff] %v6604_v58  ;;  %12060 = vst [vmem:[#allocation185_spill] sm:$0xff] %v6608_v9  ;;  %v6680_v2 = vmul.f32 %v6628_v32, %v11977_v48 }
 0x176   :  { %12061 = vst [vmem:[#allocation186_spill] sm:$0xff] %v6612_v46  ;;  %12062 = vst [vmem:[#allocation187_spill] sm:$0xff] %v6616_v16  ;;  %v6676_v1 = vmul.f32 %v6626_v29, %v12081_v34 }
 0x177   :  { %12063 = vst [vmem:[#allocation188_spill] sm:$0xff] %v6618_v59  ;;  %12064 = vst [vmem:[#allocation189_spill] sm:$0xff] %v6620_v19 }
 0x178   :  { %12065 = vst [vmem:[#allocation190_spill] sm:$0xff] %v6622_v63  ;;  %12066 = vst [vmem:[#allocation191_spill] sm:$0xff] %v6624_v11 }
 0x179   :  { %12067 = vst [vmem:[#allocation192_spill] sm:$0xff] %v6626_v29  ;;  %12068 = vst [vmem:[#allocation193_spill] sm:$0xff] %v6628_v32 }
 0x17a   :  { %12069 = vst [vmem:[#allocation194_spill] sm:$0xff] %v6630_v13  ;;  %12070 = vst [vmem:[#allocation195_spill] sm:$0xff] %v6632_v28 }
 0x17b   :  { %12071 = vst [vmem:[#allocation196_spill] sm:$0xff] %v6634_v20  ;;  %12072 = vst [vmem:[#allocation197_spill] sm:$0xff] %v6638_v30  ;;  %v12079_v30 = vld [vmem:[#allocation36_spill] sm:$0xff] }
 0x17c   :  { %12073 = vst [vmem:[#allocation198_spill] sm:$0xff] %v6642_v5  ;;  %12074 = vst [vmem:[#allocation199_spill] sm:$0xff] %v6646_v42  ;;  %v6664_v5 = vmul.f32 %v6624_v11, %v12079_v30  ;;  %v6668_v42 = vmul.f32 %v6624_v11, %v12081_v34  ;;  %v6672_v14 = vmul.f32 %v6626_v29, %v12079_v30  ;;  %v12090_v34 = vld [vmem:[#allocation8_spill] sm:$0xff] }
 0x17d   :  { %12075 = vst [vmem:[#allocation200_spill] sm:$0xff] %v6650_v51  ;;  %12076 = vst [vmem:[#allocation201_spill] sm:$0xff] %v6652_v10  ;;  %v6690_v51 = vmul.f32 %v6630_v13, %v11977_v48  ;;  %v6694_v30 = vmul.f32 %v6630_v13, %v11979_v15  ;;  %v12095_v48 = vld [vmem:[#allocation65_spill] sm:$0xff]  ;;  %v1330_v29 = vmul.f32 %v12090_v34, %v6576_v26 }
 0x17e   :  { %12077 = vst [vmem:[#allocation202_spill] sm:$0xff] %v6656_v36  ;;  %12078 = vst [vmem:[#allocation203_spill] sm:$0xff] %v6660_v3  ;;  %v6684_v3 = vmul.f32 %v6628_v32, %v11979_v15  ;;  %v6686_v36 = vpop.f32.mrb[60].mxu0  ;;  %v1392_v15 = vmul.f32 %v6434_v56, %v6566_v6  ;;  %v1378_v12 = vmul.f32 %v12095_v48, %v6576_v26 }
 0x17f   :  { %12080 = vst [vmem:[#allocation204_spill] sm:$0xff] %v6664_v5  ;;  %12082 = vst [vmem:[#allocation205_spill] sm:$0xff] %v6668_v42  ;;  %v6700_v42 = vpop.f32.mrb[60].mxu1  ;;  %v6702_v32 = vpop.f32.mrb[61].mxu0  ;;  %v1393_v56 = vmul.f32 %v6482_v50, %v6578_v37 }
 0x180   :  { %12083 = vst [vmem:[#allocation206_spill] sm:$0xff] %v6672_v14  ;;  %12084 = vst [vmem:[#allocation207_spill] sm:$0xff] %v6676_v1  ;;  %v1328_v1 = vmul.f32 %v12090_v34, %v6566_v6  ;;  %v12091_v14 = vld [vmem:[#allocation9_spill] sm:$0xff]  ;;  %v6712_v13 = vpop.f32.mrb[61].mxu1  ;;  %v12098_v34 = vld [vmem:[#allocation11_spill] sm:$0xff]  ;;  %v6730_v46 = vpop.f32.mrb[62].mxu0 }
 0x181   :  { %12085 = vst [vmem:[#allocation208_spill] sm:$0xff] %v6680_v2  ;;  %12086 = vst [vmem:[#allocation209_spill] sm:$0xff] %v6684_v3  ;;  %v1344_v2 = vmul.f32 %v12091_v14, %v6566_v6  ;;  %v12094_v3 = vld [vmem:[#allocation64_spill] sm:$0xff]  ;;  %v1346_v11 = vmul.f32 %v12091_v14, %v6576_v26  ;;  %v1345_v16 = vmul.f32 %v12098_v34, %v6578_v37  ;;  %v12100_v14 = vld [vmem:[#allocation66_spill] sm:$0xff]  ;;  %v6742_v9 = vpop.f32.mrb[63].mxu0 }
 0x182   :  { %12087 = vst [vmem:[#allocation210_spill] sm:$0xff] %v6686_v36  ;;  %12088 = vst [vmem:[#allocation211_spill] sm:$0xff] %v6690_v51  ;;  %v1360_v5 = vmul.f32 %v12094_v3, %v6566_v6  ;;  %v1376_v51 = vmul.f32 %v12095_v48, %v6566_v6  ;;  %v1362_v4 = vmul.f32 %v12094_v3, %v6576_v26  ;;  %v6774_v35 = vpop.f32.mrb[64].mxu0 }
 0x183   :  { %12089 = vst [vmem:[#allocation212_spill] sm:$0xff] %v6694_v30  ;;  %12092 = vst [vmem:[#allocation213_spill] sm:$0xff] %v6700_v42  ;;  %v1408_v30 = vmul.f32 %v6436_v52, %v6566_v6  ;;  %v1410_v6 = vmul.f32 %v6436_v52, %v6576_v26  ;;  %v1361_v3 = vmul.f32 %v12100_v14, %v6578_v37  ;;  %v6740_v26 = vpop.f32.mrb[62].mxu1  ;;  %v6780_v38 = vpop.f32.mrb[65].mxu0 }
 0x184   :  { %12093 = vst [vmem:[#allocation214_spill] sm:$0xff] %v6702_v32  ;;  %12096 = vst [vmem:[#allocation215_spill] sm:$0xff] %v6712_v13  ;;  %v1377_v48 = vmul.f32 %v12101_v62, %v6578_v37  ;;  %v1409_v52 = vmul.f32 %v6484_v47, %v6578_v37  ;;  %v6750_v58 = vmul.f32 %v12100_v14, %v6596_v33  ;;  %v6756_v41 = vpop.f32.mrb[63].mxu1  ;;  %v12107_v14 = vld [vmem:[#allocation68_spill] sm:$0xff]  ;;  %v12108_v62 = vld [vmem:[#allocation69_spill] sm:$0xff] }
 0x185   :  { %12099 = vst [vmem:[#allocation216_spill] sm:$0xff] %v6730_v46  ;;  %12102 = vst [vmem:[#allocation217_spill] sm:$0xff] %v6740_v26  ;;  %v1347_v46 = vmul.f32 %v12098_v34, %v6596_v33  ;;  %v1395_v37 = vmul.f32 %v6482_v50, %v6596_v33  ;;  %v1456_v26 = vmul.f32 %v12105_v27, %v6622_v63  ;;  %v12106_v34 = vld [vmem:[#allocation15_spill] sm:$0xff]  ;;  %v6782_v24 = vpop.f32.mrb[64].mxu1  ;;  %v12158_v27 = vld [vmem:[#allocation169_spill] sm:$0xff] }
 0x186   :  { %12103 = vst [vmem:[#allocation218_spill] sm:$0xff] %v6742_v9  ;;  %12104 = vst [vmem:[#allocation219_spill] sm:$0xff] %v6756_v41  ;;  %v1411_v9 = vmul.f32 %v6484_v47, %v6596_v33  ;;  %v1472_v43 = vmul.f32 %v12106_v34, %v6622_v63  ;;  %v1488_v55 = vmul.f32 %v12107_v14, %v6622_v63  ;;  %v6784_v59 = vpop.f32.mrb[65].mxu1 }
 0x187   :  { %v1504_v0 = vmul.f32 %v12108_v62, %v6622_v63  ;;  %v1520_v41 = vmul.f32 %v6486_v7, %v6622_v63  ;;  %v1536_v50 = vmul.f32 %v6488_v57, %v6622_v63  ;;  %12109 = vst [vmem:[#allocation220_spill] sm:$0xff] %v6774_v35  ;;  %v1584_v47 = vadd.f32 %v1456_v26, %v1328_v1 }
 0x188   :  { %v1600_v33 = vadd.f32 %v1472_v43, %v1344_v2  ;;  %v1474_v54 = vmul.f32 %v12106_v34, %v6632_v28  ;;  %12110 = vst [vmem:[#allocation221_spill] sm:$0xff] %v6780_v38  ;;  %12111 = vst [vmem:[#allocation222_spill] sm:$0xff] %v6782_v24  ;;  %v1616_v21 = vadd.f32 %v1488_v55, %v1360_v5  ;;  %v12113_v55 = vld [vmem:[#allocation13_spill] sm:$0xff] }
 0x189   :  { %v1632_v53 = vadd.f32 %v1504_v0, %v1376_v51  ;;  %v1648_v13 = vadd.f32 %v1520_v41, %v1392_v15  ;;  %v1664_v19 = vadd.f32 %v1536_v50, %v1408_v30  ;;  %12112 = vst [vmem:[#allocation223_spill] sm:$0xff] %v6784_v59  ;;  %v1490_v1 = vmul.f32 %v12107_v14, %v6632_v28  ;;  %v12114_v0 = vld [vmem:[#allocation16_spill] sm:$0xff]  ;;  %v6798_v50 = vpop.f32.mrb[66].mxu0 }
 0x18a   :  { %v1506_v2 = vmul.f32 %v12108_v62, %v6632_v28  ;;  %v1522_v26 = vmul.f32 %v6486_v7, %v6632_v28  ;;  %v1538_v43 = vmul.f32 %v6488_v57, %v6632_v28  ;;  %v1586_v35 = vadd.f32 %v1458_v17, %v1330_v29  ;;  %12115 = vst [vmem:[#allocation224_spill] sm:$0xff] %v6798_v50  ;;  %v6800_v38 = vpop.f32.mrb[67].mxu0  ;;  %v6802_v7 = vpop.f32.mrb[66].mxu1  ;;  %v12118_v57 = vld [vmem:[#allocation70_spill] sm:$0xff] }
 0x18b   :  { %v1602_v24 = vadd.f32 %v1474_v54, %v1346_v11  ;;  %v1457_v15 = vmul.f32 %v12113_v55, %v6634_v20  ;;  %v1473_v41 = vmul.f32 %v12114_v0, %v6634_v20  ;;  %v1618_v30 = vadd.f32 %v1490_v1, %v1362_v4  ;;  %12116 = vst [vmem:[#allocation225_spill] sm:$0xff] %v6800_v38  ;;  %v12119_v54 = vld [vmem:[#allocation71_spill] sm:$0xff]  ;;  %v6812_v4 = vpop.f32.mrb[67].mxu1  ;;  %v6818_v38 = vpop.f32.mrb[68].mxu0 }
 0x18c   :  { %v1634_v5 = vadd.f32 %v1506_v2, %v1378_v12  ;;  %v1650_v51 = vadd.f32 %v1522_v26, %v1394_v25  ;;  %v1666_v59 = vadd.f32 %v1538_v43, %v1410_v6  ;;  %12117 = vst [vmem:[#allocation226_spill] sm:$0xff] %v6802_v7  ;;  %v1489_v17 = vmul.f32 %v12118_v57, %v6634_v20 }
 0x18d   :  { %v1505_v29 = vmul.f32 %v12119_v54, %v6634_v20  ;;  %v1521_v11 = vmul.f32 %v6490_v61, %v6634_v20  ;;  %v1537_v50 = vmul.f32 %v6492_v45, %v6634_v20  ;;  %12120 = vst [vmem:[#allocation227_spill] sm:$0xff] %v6812_v4  ;;  %v1585_v25 = vadd.f32 %v1457_v15, %v1329_v23  ;;  %v6828_v15 = vpop.f32.mrb[69].mxu0  ;;  %v12168_v20 = vld [vmem:[#allocation191_spill] sm:$0xff] }
 0x18e   :  { %v1601_v12 = vadd.f32 %v1473_v41, %v1345_v16  ;;  %v1459_v6 = vmul.f32 %v12113_v55, %v6652_v10  ;;  %v1475_v1 = vmul.f32 %v12114_v0, %v6652_v10  ;;  %v1617_v2 = vadd.f32 %v1489_v17, %v1361_v3  ;;  %12121 = vst [vmem:[#allocation228_spill] sm:$0xff] %v6818_v38  ;;  %v6830_v3 = vpop.f32.mrb[68].mxu1  ;;  %v12146_v55 = vld [vmem:[#allocation165_spill] sm:$0xff] }
 0x18f   :  { %v1633_v26 = vadd.f32 %v1505_v29, %v1377_v48  ;;  %v1649_v43 = vadd.f32 %v1521_v11, %v1393_v56  ;;  %v1665_v7 = vadd.f32 %v1537_v50, %v1409_v52  ;;  %v1491_v62 = vmul.f32 %v12118_v57, %v6652_v10  ;;  %12122 = vst [vmem:[#allocation229_spill] sm:$0xff] %v6828_v15  ;;  %v12124_v48 = vld [vmem:[#allocation20_spill] sm:$0xff]  ;;  %v12125_v50 = vld [vmem:[#allocation22_spill] sm:$0xff]  ;;  %v6836_v29 = vpop.f32.mrb[69].mxu1 }
 0x190   :  { %v1507_v4 = vmul.f32 %v12119_v54, %v6652_v10  ;;  %v1523_v23 = vmul.f32 %v6490_v61, %v6652_v10  ;;  %v1539_v16 = vmul.f32 %v6492_v45, %v6652_v10  ;;  %12123 = vst [vmem:[#allocation230_spill] sm:$0xff] %v6830_v3  ;;  %v1587_v56 = vadd.f32 %v1459_v6, %v1331_v8  ;;  %v12127_v15 = vld [vmem:[#allocation72_spill] sm:$0xff] }
 0x191   :  { %v1603_v52 = vadd.f32 %v1475_v1, %v1347_v46  ;;  %v1712_v41 = vmul.f32 %v12124_v48, %v6686_v36  ;;  %v1728_v17 = vmul.f32 %v12125_v50, %v6686_v36  ;;  %12126 = vst [vmem:[#allocation231_spill] sm:$0xff] %v6836_v29  ;;  %v1619_v11 = vadd.f32 %v1491_v62, %v6750_v58  ;;  %v6848_v1 = vpop.f32.mrb[70].mxu0  ;;  %v12132_v29 = vld [vmem:[#allocation188_spill] sm:$0xff] }
 0x192   :  { %v1635_v38 = vadd.f32 %v1507_v4, %v6754_v44  ;;  %v1651_v61 = vadd.f32 %v1523_v23, %v1395_v37  ;;  %v1667_v45 = vadd.f32 %v1539_v16, %v1411_v9  ;;  %v1744_v54 = vmul.f32 %v12127_v15, %v6686_v36  ;;  %12128 = vst [vmem:[#allocation232_spill] sm:$0xff] %v6848_v1  ;;  %v6858_v44 = vpop.f32.mrb[71].mxu0  ;;  %v6860_v37 = vpop.f32.mrb[70].mxu1 }
 0x193   :  { %v1760_v8 = vmul.f32 %v6042_v49, %v6686_v36  ;;  %v1776_v46 = vmul.f32 %v6494_v40, %v6686_v36  ;;  %v1792_v6 = vmul.f32 %v6496_v60, %v6686_v36  ;;  %v6850_v3 = vadd.f32 %v1712_v41, %v1584_v47  ;;  %12129 = vst [vmem:[#allocation233_spill] sm:$0xff] %v6858_v44  ;;  %v12160_v36 = vld [vmem:[#allocation187_spill] sm:$0xff] }
 0x194   :  { %v6852_v58 = vadd.f32 %v1728_v17, %v1600_v33  ;;  %v1714_v9 = vmul.f32 %v12124_v48, %v6700_v42  ;;  %v1730_v62 = vmul.f32 %v12125_v50, %v6700_v42  ;;  %12130 = vst [vmem:[#allocation234_spill] sm:$0xff] %v6860_v37  ;;  %v6862_v4 = vadd.f32 %v1744_v54, %v1616_v21  ;;  %v6870_v33 = vpop.f32.mrb[71].mxu1 }
 0x195   :  { %v6864_v23 = vadd.f32 %v1760_v8, %v1632_v53  ;;  %v6866_v16 = vadd.f32 %v1776_v46, %v1648_v13  ;;  %v6868_v47 = vadd.f32 %v1792_v6, %v1664_v19  ;;  %12131 = vst [vmem:[#allocation235_spill] sm:$0xff] %v6870_v33  ;;  %v1746_v41 = vmul.f32 %v12127_v15, %v6700_v42  ;;  %v6888_v8 = vpop.f32.mrb[72].mxu0 }
 0x196   :  { %v1762_v17 = vmul.f32 %v6042_v49, %v6700_v42  ;;  %v1778_v1 = vmul.f32 %v6494_v40, %v6700_v42  ;;  %v1794_v21 = vmul.f32 %v6496_v60, %v6700_v42  ;;  %v6880_v53 = vadd.f32 %v1714_v9, %v1586_v35  ;;  %v6898_v35 = vpop.f32.mrb[72].mxu1 }
 0x197   :  { %v6882_v13 = vadd.f32 %v1730_v62, %v1602_v24  ;;  %v1713_v19 = vmul.f32 %v5846_v18, %v6702_v32  ;;  %v1729_v54 = vmul.f32 %v5854_v22, %v6702_v32  ;;  %v6890_v46 = vadd.f32 %v1746_v41, %v1618_v30  ;;  %v6900_v24 = vpop.f32.mrb[73].mxu0 }
 0x198   :  { %v6892_v6 = vadd.f32 %v1762_v17, %v1634_v5  ;;  %v6894_v37 = vadd.f32 %v1778_v1, %v1650_v51  ;;  %v6896_v33 = vadd.f32 %v1794_v21, %v1666_v59  ;;  %v1745_v9 = vmul.f32 %v6044_v31, %v6702_v32  ;;  %v12133_v5 = vld [vmem:[#allocation189_spill] sm:$0xff]  ;;  %v6910_v51 = vpop.f32.mrb[73].mxu1  ;;  %v12134_v17 = vld [vmem:[#allocation215_spill] sm:$0xff]  ;;  %v6928_v48 = vpop.f32.mrb[74].mxu0 }
 0x199   :  { %v1761_v62 = vmul.f32 %v6046_v39, %v6702_v32  ;;  %v1777_v30 = vmul.f32 %v12132_v29, %v6702_v32  ;;  %v1793_v41 = vmul.f32 %v12133_v5, %v6702_v32  ;;  %v6912_v59 = vadd.f32 %v1713_v19, %v1585_v25  ;;  %12135 = vst [vmem:[#allocation236_spill] sm:$0xff] %v6928_v48 }
 0x19a   :  { %v6914_v1 = vadd.f32 %v1729_v54, %v1601_v12  ;;  %v1715_v21 = vmul.f32 %v5846_v18, %v12134_v17  ;;  %v1731_v44 = vmul.f32 %v5854_v22, %v12134_v17  ;;  %v6920_v42 = vadd.f32 %v1745_v9, %v1617_v2  ;;  %v12138_v9 = vld [vmem:[#allocation146_spill] sm:$0xff] }
 0x19b   :  { %v6922_v49 = vadd.f32 %v1761_v62, %v1633_v26  ;;  %v6924_v15 = vadd.f32 %v1777_v30, %v1649_v43  ;;  %v6926_v50 = vadd.f32 %v1793_v41, %v1665_v7  ;;  %v1747_v25 = vmul.f32 %v6044_v31, %v12134_v17  ;;  %v6938_v26 = vpop.f32.mrb[74].mxu1  ;;  %v6940_v43 = vpop.f32.mrb[75].mxu0  ;;  %v12139_v62 = vld [vmem:[#allocation162_spill] sm:$0xff]  ;;  %v12140_v41 = vld [vmem:[#allocation147_spill] sm:$0xff] }
 0x19c   :  { %v1763_v12 = vmul.f32 %v6046_v39, %v12134_v17  ;;  %v1779_v19 = vmul.f32 %v12132_v29, %v12134_v17  ;;  %v1795_v2 = vmul.f32 %v12133_v5, %v12134_v17  ;;  %12136 = vst [vmem:[#allocation237_spill] sm:$0xff] %v6938_v26  ;;  %12137 = vst [vmem:[#allocation238_spill] sm:$0xff] %v6940_v43  ;;  %v12141_v31 = vld [vmem:[#allocation163_spill] sm:$0xff]  ;;  %v6950_v22 = vpop.f32.mrb[75].mxu1 }
 0x19d   :  { %v6942_v7 = vadd.f32 %v1715_v21, %v1587_v56  ;;  %v6944_v54 = vadd.f32 %v1731_v44, %v1603_v52  ;;  %v1644_v30 = vadd.f32 %v12139_v62, %v12138_v9  ;;  %v1646_v39 = vadd.f32 %v12141_v31, %v12140_v41  ;;  %12142 = vst [vmem:[#allocation146_spill] sm:$0xff] %v6950_v22  ;;  %v12143_v56 = vld [vmem:[#allocation148_spill] sm:$0xff]  ;;  %v12145_v44 = vld [vmem:[#allocation149_spill] sm:$0xff]  ;;  %v12147_v9 = vld [vmem:[#allocation95_spill] sm:$0xff] }
 0x19e   :  { %v6952_v18 = vadd.f32 %v1747_v25, %v1619_v11  ;;  %v6954_v57 = vadd.f32 %v1763_v12, %v1635_v38  ;;  %v6956_v17 = vadd.f32 %v1779_v19, %v1651_v61  ;;  %v6958_v0 = vadd.f32 %v1795_v2, %v1667_v45  ;;  %v12144_v21 = vld [vmem:[#allocation164_spill] sm:$0xff]  ;;  %v6968_v11 = vpop.f32.mrb[76].mxu0  ;;  %v12149_v38 = vld [vmem:[#allocation166_spill] sm:$0xff]  ;;  %v12150_v25 = vld [vmem:[#allocation179_spill] sm:$0xff] }
 0x19f   :  { %v1660_v52 = vadd.f32 %v12144_v21, %v12143_v56  ;;  %v1662_v14 = vadd.f32 %v12146_v55, %v12145_v44  ;;  %v1774_v62 = vmul.f32 %v6494_v40, %v12147_v9  ;;  %v1790_v31 = vmul.f32 %v6496_v60, %v12147_v9  ;;  %12148 = vst [vmem:[#allocation162_spill] sm:$0xff] %v6968_v11  ;;  %v12151_v12 = vld [vmem:[#allocation167_spill] sm:$0xff]  ;;  %v12152_v45 = vld [vmem:[#allocation180_spill] sm:$0xff]  ;;  %v12155_v21 = vld [vmem:[#allocation185_spill] sm:$0xff]  ;;  %v6977_v55 = vpop.f32.mrb[76].mxu1  ;;  %v6979_v44 = vpop.f32.mrb[77].mxu0 }
 0x1a0   :  { %v1896_v61 = vadd.f32 %v12150_v25, %v12149_v38  ;;  %v1898_v19 = vadd.f32 %v12152_v45, %v12151_v12  ;;  %v12153_v2 = vld [vmem:[#allocation184_spill] sm:$0xff]  ;;  %12156 = vst [vmem:[#allocation147_spill] sm:$0xff] %v6977_v55  ;;  %12157 = vst [vmem:[#allocation163_spill] sm:$0xff] %v6979_v44  ;;  %v12159_v60 = vld [vmem:[#allocation186_spill] sm:$0xff]  ;;  %v6984_v38 = vpop.f32.mrb[77].mxu1 }
 0x1a1   :  { %v1900_v41 = vadd.f32 %v12153_v2, %v1644_v30  ;;  %v12154_v56 = vld [vmem:[#allocation168_spill] sm:$0xff]  ;;  %v1902_v40 = vadd.f32 %v1774_v62, %v1646_v39  ;;  %v1914_v32 = vadd.f32 %v12159_v60, %v12158_v27  ;;  %v1916_v9 = vadd.f32 %v12160_v36, %v1660_v52  ;;  %12161 = vst [vmem:[#allocation148_spill] sm:$0xff] %v6984_v38  ;;  %v12164_v30 = vld [vmem:[#allocation27_spill] sm:$0xff]  ;;  %v12167_v62 = vld [vmem:[#allocation98_spill] sm:$0xff]  ;;  %v7002_v38 = vpop.f32.mrb[78].mxu0  ;;  %v7014_v22 = vpop.f32.mrb[78].mxu1 }
 0x1a2   :  { %v1912_v34 = vadd.f32 %v12155_v21, %v12154_v56  ;;  %v1918_v10 = vadd.f32 %v1790_v31, %v1662_v14  ;;  %v12162_v25 = vld [vmem:[#allocation216_spill] sm:$0xff]  ;;  %v12165_v56 = vld [vmem:[#allocation78_spill] sm:$0xff]  ;;  %v2028_v27 = vmul.f32 %v12168_v20, %v12167_v62  ;;  %v12169_v60 = vld [vmem:[#allocation99_spill] sm:$0xff]  ;;  %12171 = vst [vmem:[#allocation164_spill] sm:$0xff] %v7002_v38  ;;  %v7016_v43 = vpop.f32.mrb[79].mxu0 }
 0x1a3   :  { %v12163_v12 = vld [vmem:[#allocation24_spill] sm:$0xff]  ;;  %v1984_v2 = vmul.f32 %v12164_v30, %v12162_v25  ;;  %v2000_v21 = vmul.f32 %v12165_v56, %v12162_v25  ;;  %v2030_v14 = vmul.f32 %v12168_v20, %v12169_v60  ;;  %v2032_v36 = vmul.f32 %v12168_v20, %v12162_v25 }
 0x1a4   :  { %v1968_v45 = vmul.f32 %v12163_v12, %v12162_v25  ;;  %v12166_v44 = vld [vmem:[#allocation80_spill] sm:$0xff] }
 0x1a5   :  { %v2016_v39 = vmul.f32 %v12166_v44, %v12162_v25  ;;  %v12170_v52 = vld [vmem:[#allocation192_spill] sm:$0xff]  ;;  %v7012_v11 = vadd.f32 %v1984_v2, %v6852_v58  ;;  %v7032_v58 = vadd.f32 %v2028_v27, %v1900_v41  ;;  %v7037_v2 = vadd.f32 %v2032_v36, %v6866_v16  ;;  %v7052_v41 = vpop.f32.mrb[80].mxu0 }
 0x1a6   :  { %v2044_v31 = vmul.f32 %v12170_v52, %v12167_v62  ;;  %v2046_v28 = vmul.f32 %v12170_v52, %v12169_v60  ;;  %v2048_v63 = vmul.f32 %v12170_v52, %v12162_v25  ;;  %v7009_v55 = vadd.f32 %v1968_v45, %v6850_v3  ;;  %v12176_v60 = vld [vmem:[#allocation204_spill] sm:$0xff]  ;;  %v12178_v25 = vld [vmem:[#allocation205_spill] sm:$0xff]  ;;  %v7030_v3 = vpop.f32.mrb[79].mxu1 }
 0x1a7   :  { %12173 = vst [vmem:[#allocation165_spill] sm:$0xff] %v7012_v11  ;;  %v7019_v62 = vadd.f32 %v2000_v21, %v6862_v4  ;;  %v7022_v38 = vadd.f32 %v2016_v39, %v6864_v23  ;;  %v7025_v26 = vadd.f32 %v12176_v60, %v1896_v61  ;;  %v7028_v48 = vadd.f32 %v12178_v25, %v1898_v19  ;;  %v12183_v4 = vld [vmem:[#allocation206_spill] sm:$0xff]  ;;  %v12185_v23 = vld [vmem:[#allocation207_spill] sm:$0xff]  ;;  %v12191_v25 = vld [vmem:[#allocation125_spill] sm:$0xff] }
 0x1a8   :  { %12172 = vst [vmem:[#allocation149_spill] sm:$0xff] %v7009_v55  ;;  %12180 = vst [vmem:[#allocation184_spill] sm:$0xff] %v7032_v58  ;;  %v7034_v45 = vadd.f32 %v2030_v14, %v1902_v40  ;;  %v7040_v21 = vadd.f32 %v12183_v4, %v1912_v34  ;;  %v7043_v39 = vadd.f32 %v12185_v23, %v1914_v32  ;;  %v12190_v40 = vld [vmem:[#allocation119_spill] sm:$0xff]  ;;  %v12194_v34 = vld [vmem:[#allocation120_spill] sm:$0xff] }
 0x1a9   :  { %12174 = vst [vmem:[#allocation166_spill] sm:$0xff] %v7019_v62  ;;  %12175 = vst [vmem:[#allocation179_spill] sm:$0xff] %v7022_v38  ;;  %v7045_v61 = vadd.f32 %v2044_v31, %v1916_v9  ;;  %v7047_v60 = vadd.f32 %v2046_v28, %v1918_v10  ;;  %v7050_v19 = vadd.f32 %v2048_v63, %v6868_v47  ;;  %v12195_v14 = vld [vmem:[#allocation126_spill] sm:$0xff]  ;;  %v12198_v28 = vld [vmem:[#allocation123_spill] sm:$0xff] }
 0x1aa   :  { %12177 = vst [vmem:[#allocation167_spill] sm:$0xff] %v7025_v26  ;;  %12179 = vst [vmem:[#allocation180_spill] sm:$0xff] %v7028_v48  ;;  %v12192_v16 = vmax.f32 %v12190_v40, %v12191_v25  ;;  %v12196_v32 = vmax.f32 %v12194_v34, %v12195_v14  ;;  %v12199_v10 = vld [vmem:[#allocation128_spill] sm:$0xff]  ;;  %v12203_v31 = vld [vmem:[#allocation129_spill] sm:$0xff]  ;;  %v7078_v40 = vpop.f32.mrb[80].mxu1  ;;  %v2272_v34 = vmax.f32 %v7025_v26, %v7028_v48 }
 0x1ab   :  { %12181 = vst [vmem:[#allocation168_spill] sm:$0xff] %v7034_v45  ;;  %12182 = vst [vmem:[#allocation185_spill] sm:$0xff] %v7037_v2  ;;  %v12200_v9 = vmax.f32 %v12198_v28, %v12199_v10  ;;  %v12202_v47 = vld [vmem:[#allocation124_spill] sm:$0xff] }
 0x1ac   :  { %12184 = vst [vmem:[#allocation169_spill] sm:$0xff] %v7040_v21  ;;  %12186 = vst [vmem:[#allocation186_spill] sm:$0xff] %v7043_v39  ;;  %v7058_v27 = vmax.f32 %v12192_v16, %v7009_v55  ;;  %v7064_v36 = vmax.f32 %v12196_v32, %v7012_v11  ;;  %v12204_v4 = vmax.f32 %v12202_v47, %v12203_v31  ;;  %v7080_v16 = vpop.f32.mrb[81].mxu0  ;;  %v12206_v11 = vld [vmem:[#allocation217_spill] sm:$0xff] }
 0x1ad   :  { %12187 = vst [vmem:[#allocation187_spill] sm:$0xff] %v7045_v61  ;;  %12188 = vst [vmem:[#allocation204_spill] sm:$0xff] %v7047_v60  ;;  %v7070_v63 = vmax.f32 %v12200_v9, %v7019_v62  ;;  %v2286_v32 = vmax.f32 %v7040_v21, %v7043_v39  ;;  %v1970_v28 = vmul.f32 %v12163_v12, %v12206_v11  ;;  %v7090_v62 = vpop.f32.mrb[81].mxu1  ;;  %v7108_v10 = vpop.f32.mrb[82].mxu0 }
 0x1ae   :  { %12189 = vst [vmem:[#allocation205_spill] sm:$0xff] %v7050_v19  ;;  %12193 = vst [vmem:[#allocation206_spill] sm:$0xff] %v7058_v27  ;;  %v7076_v23 = vmax.f32 %v12204_v4, %v7022_v38  ;;  %v1986_v9 = vmul.f32 %v12164_v30, %v12206_v11  ;;  %v2002_v47 = vmul.f32 %v12165_v56, %v12206_v11  ;;  %v12239_v56 = vld [vmem:[#allocation25_spill] sm:$0xff] }
 0x1af   :  { %12197 = vst [vmem:[#allocation207_spill] sm:$0xff] %v7064_v36  ;;  %12201 = vst [vmem:[#allocation119_spill] sm:$0xff] %v7070_v63  ;;  %v2018_v4 = vmul.f32 %v12166_v44, %v12206_v11  ;;  %v2034_v48 = vmul.f32 %v12168_v20, %v12206_v11  ;;  %v2050_v39 = vmul.f32 %v12170_v52, %v12206_v11  ;;  %v12233_v36 = vld [vmem:[#allocation200_spill] sm:$0xff]  ;;  %v12237_v11 = vld [vmem:[#allocation203_spill] sm:$0xff] }
 0x1b0   :  { %12205 = vst [vmem:[#allocation120_spill] sm:$0xff] %v7076_v23  ;;  %v2273_v21 = vmax.f32 %v2272_v34, %v7032_v58  ;;  %v2287_v26 = vmax.f32 %v2286_v32, %v7045_v61  ;;  %v7103_v38 = vadd.f32 %v1970_v28, %v6880_v53  ;;  %v7106_v31 = vadd.f32 %v1986_v9, %v6882_v13  ;;  %v7122_v32 = vpop.f32.mrb[82].mxu1  ;;  %v7124_v53 = vpop.f32.mrb[83].mxu0  ;;  %v12220_v61 = vld [vmem:[#allocation177_spill] sm:$0xff]  ;;  %v12238_v44 = vld [vmem:[#allocation218_spill] sm:$0xff] }
 0x1b1   :  { %v7111_v14 = vadd.f32 %v2002_v47, %v6890_v46  ;;  %v7114_v55 = vadd.f32 %v2018_v4, %v6892_v6  ;;  %v7117_v25 = vadd.f32 %v2034_v48, %v6894_v37  ;;  %v7120_v34 = vadd.f32 %v2050_v39, %v6896_v33  ;;  %v7132_v9 = vpop.f32.mrb[83].mxu1  ;;  %v12213_v33 = vld [vmem:[#allocation158_spill] sm:$0xff]  ;;  %v12216_v4 = vld [vmem:[#allocation171_spill] sm:$0xff]  ;;  %v12219_v6 = vld [vmem:[#allocation160_spill] sm:$0xff]  ;;  %v7152_v63 = vpop.f32.mrb[84].mxu0 }
 0x1b2   :  { %12207 = vst [vmem:[#allocation123_spill] sm:$0xff] %v7103_v38  ;;  %12208 = vst [vmem:[#allocation124_spill] sm:$0xff] %v7106_v31  ;;  %v2274_v13 = vmax.f32 %v2273_v21, %v7034_v45  ;;  %v2288_v28 = vmax.f32 %v2287_v26, %v7047_v60  ;;  %v12214_v39 = vld [vmem:[#allocation170_spill] sm:$0xff]  ;;  %v12215_v21 = vld [vmem:[#allocation159_spill] sm:$0xff]  ;;  %v1661_v45 = vadd.f32 %v12220_v61, %v12219_v6  ;;  %v7164_v61 = vpop.f32.mrb[85].mxu0 }
 0x1b3   :  { %12209 = vst [vmem:[#allocation239_spill] sm:$0xff] %v7111_v14  ;;  %12210 = vst [vmem:[#allocation240_spill] sm:$0xff] %v7114_v55  ;;  %v1645_v47 = vadd.f32 %v12214_v39, %v12213_v33  ;;  %v1647_v26 = vadd.f32 %v12216_v4, %v12215_v21  ;;  %v12221_v58 = vld [vmem:[#allocation161_spill] sm:$0xff]  ;;  %v12222_v48 = vld [vmem:[#allocation178_spill] sm:$0xff]  ;;  %v7162_v55 = vpop.f32.mrb[84].mxu1 }
 0x1b4   :  { %12211 = vst [vmem:[#allocation241_spill] sm:$0xff] %v7117_v25  ;;  %12212 = vst [vmem:[#allocation242_spill] sm:$0xff] %v7120_v34  ;;  %v7143_v60 = vmax.f32 %v2274_v13, %v7037_v2  ;;  %v7146_v46 = vmax.f32 %v2288_v28, %v7050_v19  ;;  %v1663_v14 = vadd.f32 %v12222_v48, %v12221_v58  ;;  %v12224_v37 = vld [vmem:[#allocation97_spill] sm:$0xff]  ;;  %v12227_v2 = vld [vmem:[#allocation174_spill] sm:$0xff]  ;;  %v7173_v27 = vpop.f32.mrb[85].mxu1  ;;  %v7186_v34 = vpop.f32.mrb[86].mxu0 }
 0x1b5   :  { %12223 = vst [vmem:[#allocation159_spill] sm:$0xff] %v7152_v63  ;;  %v1775_v33 = vmul.f32 %v12132_v29, %v12224_v37  ;;  %v1791_v39 = vmul.f32 %v12133_v5, %v12224_v37  ;;  %v12225_v21 = vld [vmem:[#allocation173_spill] sm:$0xff]  ;;  %v12228_v28 = vld [vmem:[#allocation198_spill] sm:$0xff]  ;;  %12229 = vst [vmem:[#allocation171_spill] sm:$0xff] %v7162_v55  ;;  %v1917_v52 = vadd.f32 %v12237_v11, %v1661_v45 }
 0x1b6   :  { %12217 = vst [vmem:[#allocation158_spill] sm:$0xff] %v7143_v60  ;;  %12218 = vst [vmem:[#allocation170_spill] sm:$0xff] %v7146_v46  ;;  %v12226_v13 = vld [vmem:[#allocation197_spill] sm:$0xff]  ;;  %v1899_v19 = vadd.f32 %v12228_v28, %v12227_v2  ;;  %v12231_v48 = vld [vmem:[#allocation199_spill] sm:$0xff]  ;;  %v1969_v58 = vmul.f32 %v12239_v56, %v12238_v44  ;;  %v7196_v46 = vpop.f32.mrb[86].mxu1  ;;  %v7198_v60 = vpop.f32.mrb[87].mxu0 }
 0x1b7   :  { %v1897_v4 = vadd.f32 %v12226_v13, %v12225_v21  ;;  %12230 = vst [vmem:[#allocation160_spill] sm:$0xff] %v7164_v61  ;;  %v1901_v23 = vadd.f32 %v12231_v48, %v1645_v47  ;;  %v12232_v31 = vld [vmem:[#allocation182_spill] sm:$0xff]  ;;  %12234 = vst [vmem:[#allocation177_spill] sm:$0xff] %v7173_v27  ;;  %v1903_v21 = vadd.f32 %v1775_v33, %v1647_v26  ;;  %v12235_v13 = vld [vmem:[#allocation183_spill] sm:$0xff] }
 0x1b8   :  { %v1913_v38 = vadd.f32 %v12233_v36, %v12232_v31  ;;  %v12236_v2 = vld [vmem:[#allocation202_spill] sm:$0xff]  ;;  %v1919_v20 = vadd.f32 %v1791_v39, %v1663_v14  ;;  %v12240_v25 = vld [vmem:[#allocation28_spill] sm:$0xff]  ;;  %v12241_v47 = vld [vmem:[#allocation81_spill] sm:$0xff]  ;;  %12243 = vst [vmem:[#allocation161_spill] sm:$0xff] %v7186_v34  ;;  %v7205_v34 = vadd.f32 %v1969_v58, %v6912_v59 }
 0x1b9   :  { %v1915_v28 = vadd.f32 %v12236_v2, %v12235_v13  ;;  %v1985_v6 = vmul.f32 %v12240_v25, %v12238_v44  ;;  %v2001_v48 = vmul.f32 %v12241_v47, %v12238_v44  ;;  %v12242_v36 = vld [vmem:[#allocation82_spill] sm:$0xff]  ;;  %v12244_v26 = vld [vmem:[#allocation100_spill] sm:$0xff]  ;;  %v12245_v33 = vld [vmem:[#allocation193_spill] sm:$0xff]  ;;  %12248 = vst [vmem:[#allocation178_spill] sm:$0xff] %v7196_v46 }
 0x1ba   :  { %v2017_v31 = vmul.f32 %v12242_v36, %v12238_v44  ;;  %v2029_v13 = vmul.f32 %v12245_v33, %v12244_v26  ;;  %v12246_v2 = vld [vmem:[#allocation101_spill] sm:$0xff]  ;;  %v2033_v45 = vmul.f32 %v12245_v33, %v12238_v44  ;;  %v12247_v14 = vld [vmem:[#allocation194_spill] sm:$0xff]  ;;  %12249 = vst [vmem:[#allocation97_spill] sm:$0xff] %v7198_v60  ;;  %12250 = vst [vmem:[#allocation173_spill] sm:$0xff] %v7205_v34 }
 0x1bb   :  { %v2031_v11 = vmul.f32 %v12245_v33, %v12246_v2  ;;  %v2045_v39 = vmul.f32 %v12247_v14, %v12244_v26  ;;  %v2047_v30 = vmul.f32 %v12247_v14, %v12246_v2  ;;  %v2049_v12 = vmul.f32 %v12247_v14, %v12238_v44  ;;  %v12254_v46 = vld [vmem:[#allocation208_spill] sm:$0xff]  ;;  %v12256_v61 = vld [vmem:[#allocation209_spill] sm:$0xff] }
 0x1bc   :  { %v7208_v27 = vadd.f32 %v1985_v6, %v6914_v1  ;;  %v7211_v5 = vadd.f32 %v2001_v48, %v6920_v42  ;;  %v7214_v29 = vadd.f32 %v2017_v31, %v6922_v49  ;;  %v7217_v60 = vadd.f32 %v12254_v46, %v1897_v4  ;;  %v12261_v1 = vld [vmem:[#allocation211_spill] sm:$0xff]  ;;  %v12263_v42 = vld [vmem:[#allocation212_spill] sm:$0xff] }
 0x1bd   :  { %v7220_v55 = vadd.f32 %v12256_v61, %v1899_v19  ;;  %v7222_v63 = vadd.f32 %v2029_v13, %v1901_v23  ;;  %v7224_v44 = vadd.f32 %v2031_v11, %v1903_v21  ;;  %v7227_v59 = vadd.f32 %v2033_v45, %v6924_v15  ;;  %v12268_v23 = vld [vmem:[#allocation136_spill] sm:$0xff]  ;;  %v12269_v4 = vld [vmem:[#allocation139_spill] sm:$0xff]  ;;  %v12272_v15 = vld [vmem:[#allocation137_spill] sm:$0xff]  ;;  %v7266_v45 = vpop.f32.mrb[87].mxu1 }
 0x1be   :  { %12251 = vst [vmem:[#allocation197_spill] sm:$0xff] %v7208_v27  ;;  %12252 = vst [vmem:[#allocation174_spill] sm:$0xff] %v7211_v5  ;;  %v7230_v58 = vadd.f32 %v12261_v1, %v1913_v38  ;;  %v7233_v6 = vadd.f32 %v12263_v42, %v1915_v28  ;;  %v7235_v49 = vadd.f32 %v2045_v39, %v1917_v52  ;;  %v12273_v38 = vld [vmem:[#allocation143_spill] sm:$0xff]  ;;  %v12276_v52 = vld [vmem:[#allocation138_spill] sm:$0xff] }
 0x1bf   :  { %12253 = vst [vmem:[#allocation198_spill] sm:$0xff] %v7214_v29  ;;  %12255 = vst [vmem:[#allocation199_spill] sm:$0xff] %v7217_v60  ;;  %v7237_v46 = vadd.f32 %v2047_v30, %v1919_v20  ;;  %v7240_v19 = vadd.f32 %v2049_v12, %v6926_v50  ;;  %v12270_v61 = vmax.f32 %v12268_v23, %v12269_v4  ;;  %v12277_v28 = vld [vmem:[#allocation144_spill] sm:$0xff]  ;;  %v12280_v50 = vld [vmem:[#allocation142_spill] sm:$0xff] }
 0x1c0   :  { %12257 = vst [vmem:[#allocation182_spill] sm:$0xff] %v7220_v55  ;;  %12258 = vst [vmem:[#allocation200_spill] sm:$0xff] %v7222_v63  ;;  %v12274_v48 = vmax.f32 %v12272_v15, %v12273_v38  ;;  %v12278_v20 = vmax.f32 %v12276_v52, %v12277_v28  ;;  %v12281_v12 = vld [vmem:[#allocation145_spill] sm:$0xff]  ;;  %v2279_v39 = vmax.f32 %v7217_v60, %v7220_v55  ;;  %v12285_v42 = vld [vmem:[#allocation219_spill] sm:$0xff] }
 0x1c1   :  { %12259 = vst [vmem:[#allocation183_spill] sm:$0xff] %v7224_v44  ;;  %12260 = vst [vmem:[#allocation202_spill] sm:$0xff] %v7227_v59  ;;  %v7246_v21 = vmax.f32 %v12270_v61, %v7205_v34  ;;  %v12282_v13 = vmax.f32 %v12280_v50, %v12281_v12  ;;  %v2293_v1 = vmax.f32 %v7230_v58, %v7233_v6  ;;  %v12312_v38 = vld [vmem:[#allocation176_spill] sm:$0xff]  ;;  %v12314_v34 = vld [vmem:[#allocation181_spill] sm:$0xff] }
 0x1c2   :  { %12262 = vst [vmem:[#allocation203_spill] sm:$0xff] %v7230_v58  ;;  %12264 = vst [vmem:[#allocation100_spill] sm:$0xff] %v7233_v6  ;;  %v7252_v31 = vmax.f32 %v12274_v48, %v7208_v27  ;;  %v7258_v30 = vmax.f32 %v12278_v20, %v7211_v5  ;;  %v1971_v23 = vmul.f32 %v12239_v56, %v12285_v42  ;;  %v12307_v5 = vld [vmem:[#allocation19_spill] sm:$0xff]  ;;  %v12311_v27 = vld [vmem:[#allocation89_spill] sm:$0xff] }
 0x1c3   :  { %12265 = vst [vmem:[#allocation101_spill] sm:$0xff] %v7235_v49  ;;  %12266 = vst [vmem:[#allocation208_spill] sm:$0xff] %v7237_v46  ;;  %v7264_v11 = vmax.f32 %v12282_v13, %v7214_v29  ;;  %v1987_v61 = vmul.f32 %v12240_v25, %v12285_v42  ;;  %v2003_v15 = vmul.f32 %v12241_v47, %v12285_v42 }
 0x1c4   :  { %12267 = vst [vmem:[#allocation209_spill] sm:$0xff] %v7240_v19  ;;  %12271 = vst [vmem:[#allocation211_spill] sm:$0xff] %v7246_v21  ;;  %v2019_v48 = vmul.f32 %v12242_v36, %v12285_v42  ;;  %v2035_v52 = vmul.f32 %v12245_v33, %v12285_v42  ;;  %v2051_v20 = vmul.f32 %v12247_v14, %v12285_v42  ;;  %v12333_v21 = vld [vmem:[#allocation26_spill] sm:$0xff]  ;;  %v12336_v14 = vld [vmem:[#allocation91_spill] sm:$0xff] }
 0x1c5   :  { %12275 = vst [vmem:[#allocation212_spill] sm:$0xff] %v7252_v31  ;;  %12279 = vst [vmem:[#allocation136_spill] sm:$0xff] %v7258_v30  ;;  %v2280_v50 = vmax.f32 %v2279_v39, %v7222_v63  ;;  %v2294_v13 = vmax.f32 %v2293_v1, %v7235_v49  ;;  %v7287_v6 = vadd.f32 %v1971_v23, %v6942_v7  ;;  %v7315_v1 = vmul.f32 0.5, %v6888_v8  ;;  %v12295_v8 = vld [vmem:[#allocation17_spill] sm:$0xff]  ;;  %v7360_v49 = vpop.f32.mrb[88].mxu0  ;;  %v12306_v63 = vld [vmem:[#allocation18_spill] sm:$0xff] }
 0x1c6   :  { %12283 = vst [vmem:[#allocation137_spill] sm:$0xff] %v7264_v11  ;;  %12284 = vst [vmem:[#allocation138_spill] sm:$0xff] %v7266_v45  ;;  %v7290_v58 = vadd.f32 %v1987_v61, %v6944_v54  ;;  %v7293_v55 = vadd.f32 %v2003_v15, %v6952_v18  ;;  %v7296_v60 = vadd.f32 %v2019_v48, %v6954_v57  ;;  %v7327_v15 = vmul.f32 0.5, %v6900_v24  ;;  %v12300_v18 = vld [vmem:[#allocation175_spill] sm:$0xff]  ;;  %v7376_v28 = vpop.f32.mrb[89].mxu0  ;;  %v12323_v11 = vld [vmem:[#allocation237_spill] sm:$0xff] }
 0x1c7   :  { %12286 = vst [vmem:[#allocation142_spill] sm:$0xff] %v7287_v6  ;;  %v7299_v29 = vadd.f32 %v2035_v52, %v6956_v17  ;;  %v7302_v12 = vadd.f32 %v2051_v20, %v6958_v0  ;;  %v2281_v39 = vmax.f32 %v2280_v50, %v7224_v44  ;;  %v2295_v7 = vmax.f32 %v2294_v13, %v7237_v46  ;;  %v12294_v52 = vld [vmem:[#allocation14_spill] sm:$0xff]  ;;  %v7392_v45 = vpop.f32.mrb[90].mxu0 }
 0x1c8   :  { %12287 = vst [vmem:[#allocation243_spill] sm:$0xff] %v7290_v58  ;;  %12288 = vst [vmem:[#allocation244_spill] sm:$0xff] %v7293_v55  ;;  %v7318_v0 = vmul.f32 0.5, %v6898_v35  ;;  %v7330_v48 = vmul.f32 0.5, %v6910_v51  ;;  %v1416_v20 = vmul.f32 %v7315_v1, %v12294_v52  ;;  %v1418_v50 = vmul.f32 %v7315_v1, %v12295_v8  ;;  %v12296_v35 = vld [vmem:[#allocation84_spill] sm:$0xff]  ;;  %v12327_v30 = vld [vmem:[#allocation146_spill] sm:$0xff] }
 0x1c9   :  { %12289 = vst [vmem:[#allocation245_spill] sm:$0xff] %v7296_v60  ;;  %12290 = vst [vmem:[#allocation246_spill] sm:$0xff] %v7299_v29  ;;  %v7321_v23 = vmax.f32 %v2281_v39, %v7227_v59  ;;  %v7324_v61 = vmax.f32 %v2295_v7, %v7240_v19  ;;  %v1420_v13 = vmul.f32 %v7315_v1, %v12296_v35  ;;  %v12297_v39 = vld [vmem:[#allocation87_spill] sm:$0xff]  ;;  %v12298_v51 = vld [vmem:[#allocation172_spill] sm:$0xff]  ;;  %v7362_v59 = vpop.f32.mrb[88].mxu1 }
 0x1ca   :  { %12291 = vst [vmem:[#allocation247_spill] sm:$0xff] %v7302_v12  ;;  %v1422_v17 = vmul.f32 %v7315_v1, %v12297_v39  ;;  %v7346_v57 = vmul.f32 %v7315_v1, %v12298_v51  ;;  %v7350_v54 = vmul.f32 %v7315_v1, %v12300_v18  ;;  %v1432_v19 = vmul.f32 %v7318_v0, %v12294_v52  ;;  %v12328_v58 = vld [vmem:[#allocation162_spill] sm:$0xff] }
 0x1cb   :  { %12292 = vst [vmem:[#allocation248_spill] sm:$0xff] %v7321_v23  ;;  %12293 = vst [vmem:[#allocation249_spill] sm:$0xff] %v7324_v61  ;;  %v1434_v46 = vmul.f32 %v7318_v0, %v12295_v8  ;;  %v1436_v7 = vmul.f32 %v7318_v0, %v12296_v35  ;;  %v1438_v24 = vmul.f32 %v7318_v0, %v12297_v39  ;;  %v7378_v39 = vpop.f32.mrb[89].mxu1  ;;  %v7404_v23 = vpop.f32.mrb[91].mxu0  ;;  %v7433_v31 = vmul.f32 0.5, %v12328_v58  ;;  %v12335_v42 = vld [vmem:[#allocation90_spill] sm:$0xff] }
 0x1cc   :  { %12299 = vst [vmem:[#allocation14_spill] sm:$0xff] %v7346_v57  ;;  %12301 = vst [vmem:[#allocation17_spill] sm:$0xff] %v7350_v54  ;;  %v7366_v44 = vmul.f32 %v7318_v0, %v12298_v51  ;;  %v7370_v52 = vmul.f32 %v7318_v0, %v12300_v18  ;;  %v1417_v8 = vmul.f32 %v7327_v15, %v12306_v63  ;;  %v7394_v12 = vpop.f32.mrb[90].mxu1  ;;  %v7422_v55 = vpop.f32.mrb[92].mxu0  ;;  %v12339_v36 = vld [vmem:[#allocation190_spill] sm:$0xff] }
 0x1cd   :  { %12302 = vst [vmem:[#allocation84_spill] sm:$0xff] %v7360_v49  ;;  %12303 = vst [vmem:[#allocation87_spill] sm:$0xff] %v7362_v59  ;;  %v1419_v35 = vmul.f32 %v7327_v15, %v12307_v5  ;;  %v12310_v49 = vld [vmem:[#allocation88_spill] sm:$0xff]  ;;  %v1423_v51 = vmul.f32 %v7327_v15, %v12311_v27  ;;  %v7386_v18 = vmul.f32 %v7327_v15, %v12312_v38  ;;  %v7406_v60 = vpop.f32.mrb[91].mxu1 }
 0x1ce   :  { %12304 = vst [vmem:[#allocation172_spill] sm:$0xff] %v7366_v44  ;;  %12305 = vst [vmem:[#allocation175_spill] sm:$0xff] %v7370_v52  ;;  %v1421_v59 = vmul.f32 %v7327_v15, %v12310_v49  ;;  %v7390_v4 = vmul.f32 %v7327_v15, %v12314_v34  ;;  %v1437_v61 = vmul.f32 %v7330_v48, %v12310_v49  ;;  %v7420_v49 = vmul.f32 0.5, %v12323_v11 }
 0x1cf   :  { %12308 = vst [vmem:[#allocation18_spill] sm:$0xff] %v7376_v28  ;;  %12309 = vst [vmem:[#allocation19_spill] sm:$0xff] %v7378_v39  ;;  %v1433_v39 = vmul.f32 %v7330_v48, %v12306_v63  ;;  %v1435_v28 = vmul.f32 %v7330_v48, %v12307_v5  ;;  %v1439_v29 = vmul.f32 %v7330_v48, %v12311_v27  ;;  %v7424_v27 = vpop.f32.mrb[92].mxu1 }
 0x1d0   :  { %12313 = vst [vmem:[#allocation88_spill] sm:$0xff] %v7386_v18  ;;  %12315 = vst [vmem:[#allocation89_spill] sm:$0xff] %v7390_v4  ;;  %v7414_v63 = vmul.f32 %v7330_v48, %v12314_v34  ;;  %v12329_v34 = vld [vmem:[#allocation147_spill] sm:$0xff]  ;;  %v7440_v11 = vpop.f32.mrb[93].mxu1  ;;  %v1560_v25 = vmul.f32 %v7420_v49, %v12333_v21  ;;  %v1564_v52 = vmul.f32 %v7420_v49, %v12335_v42 }
 0x1d1   :  { %12316 = vst [vmem:[#allocation176_spill] sm:$0xff] %v7392_v45  ;;  %12317 = vst [vmem:[#allocation181_spill] sm:$0xff] %v7394_v12  ;;  %v7410_v45 = vmul.f32 %v7330_v48, %v12312_v38  ;;  %v12322_v12 = vld [vmem:[#allocation236_spill] sm:$0xff]  ;;  %v7430_v38 = vmul.f32 0.5, %v12327_v30  ;;  %v7436_v6 = vmul.f32 0.5, %v12329_v34  ;;  %v7452_v34 = vpop.f32.mrb[94].mxu1  ;;  %v1566_v44 = vmul.f32 %v7420_v49, %v12336_v14 }
 0x1d2   :  { %12318 = vst [vmem:[#allocation250_spill] sm:$0xff] %v7404_v23  ;;  %12319 = vst [vmem:[#allocation251_spill] sm:$0xff] %v7406_v60  ;;  %v7417_v5 = vmul.f32 0.5, %v12322_v12  ;;  %v12326_v23 = vld [vmem:[#allocation238_spill] sm:$0xff]  ;;  %v7438_v12 = vpop.f32.mrb[93].mxu0 }
 0x1d3   :  { %12320 = vst [vmem:[#allocation252_spill] sm:$0xff] %v7410_v45  ;;  %12321 = vst [vmem:[#allocation253_spill] sm:$0xff] %v7414_v63  ;;  %v7427_v60 = vmul.f32 0.5, %v12326_v23  ;;  %v7450_v33 = vpop.f32.mrb[94].mxu0  ;;  %v7468_v45 = vpop.f32.mrb[95].mxu1 }
 0x1d4   :  { %12324 = vst [vmem:[#allocation236_spill] sm:$0xff] %v7422_v55  ;;  %12325 = vst [vmem:[#allocation237_spill] sm:$0xff] %v7424_v27  ;;  %v1544_v55 = vmul.f32 %v7417_v5, %v12333_v21  ;;  %v12334_v27 = vld [vmem:[#allocation29_spill] sm:$0xff]  ;;  %v1548_v30 = vmul.f32 %v7417_v5, %v12335_v42  ;;  %v1550_v58 = vmul.f32 %v7417_v5, %v12336_v14  ;;  %v7466_v63 = vpop.f32.mrb[95].mxu0  ;;  %v12351_v14 = vld [vmem:[#allocation92_spill] sm:$0xff] }
 0x1d5   :  { %12330 = vst [vmem:[#allocation238_spill] sm:$0xff] %v7436_v6  ;;  %12331 = vst [vmem:[#allocation146_spill] sm:$0xff] %v7438_v12  ;;  %v1546_v23 = vmul.f32 %v7417_v5, %v12334_v27  ;;  %v7456_v12 = vmul.f32 %v7417_v5, %v12339_v36  ;;  %v1562_v56 = vmul.f32 %v7420_v49, %v12334_v27 }
 0x1d6   :  { %12332 = vst [vmem:[#allocation162_spill] sm:$0xff] %v7440_v11  ;;  %12337 = vst [vmem:[#allocation147_spill] sm:$0xff] %v7450_v33  ;;  %v12341_v11 = vld [vmem:[#allocation195_spill] sm:$0xff]  ;;  %v1672_v33 = vadd.f32 %v1544_v55, %v1416_v20  ;;  %v1676_v4 = vadd.f32 %v1548_v30, %v1420_v13  ;;  %v7470_v18 = vadd.f32 %v1550_v58, %v1422_v17  ;;  %v12348_v20 = vld [vmem:[#allocation30_spill] sm:$0xff] }
 0x1d7   :  { %12338 = vst [vmem:[#allocation26_spill] sm:$0xff] %v7452_v34  ;;  %12340 = vst [vmem:[#allocation29_spill] sm:$0xff] %v7456_v12  ;;  %v7460_v47 = vmul.f32 %v7417_v5, %v12341_v11  ;;  %v1674_v34 = vadd.f32 %v1546_v23, %v1418_v50  ;;  %v7478_v21 = vmul.f32 %v7420_v49, %v12339_v36  ;;  %v12349_v50 = vld [vmem:[#allocation31_spill] sm:$0xff]  ;;  %v12352_v36 = vld [vmem:[#allocation93_spill] sm:$0xff] }
 0x1d8   :  { %12343 = vst [vmem:[#allocation91_spill] sm:$0xff] %v7466_v63  ;;  %12344 = vst [vmem:[#allocation190_spill] sm:$0xff] %v7468_v45  ;;  %v7482_v27 = vmul.f32 %v7420_v49, %v12341_v11  ;;  %v1688_v45 = vadd.f32 %v1560_v25, %v1432_v19  ;;  %v1690_v55 = vadd.f32 %v1562_v56, %v1434_v46  ;;  %v12353_v63 = vld [vmem:[#allocation196_spill] sm:$0xff]  ;;  %v12355_v56 = vld [vmem:[#allocation201_spill] sm:$0xff] }
 0x1d9   :  { %12342 = vst [vmem:[#allocation90_spill] sm:$0xff] %v7460_v47  ;;  %12345 = vst [vmem:[#allocation195_spill] sm:$0xff] %v7470_v18  ;;  %v1545_v17 = vmul.f32 %v7427_v60, %v12348_v20  ;;  %v1547_v13 = vmul.f32 %v7427_v60, %v12349_v50  ;;  %v1692_v42 = vadd.f32 %v1564_v52, %v1436_v7 }
 0x1da   :  { %12346 = vst [vmem:[#allocation254_spill] sm:$0xff] %v7478_v21  ;;  %12347 = vst [vmem:[#allocation255_spill] sm:$0xff] %v7482_v27  ;;  %v7488_v23 = vadd.f32 %v1566_v44, %v1438_v24  ;;  %v1549_v30 = vmul.f32 %v7427_v60, %v12351_v14  ;;  %v1551_v58 = vmul.f32 %v7427_v60, %v12352_v36 }
 0x1db   :  { %v7496_v11 = vmul.f32 %v7427_v60, %v12353_v63  ;;  %v7500_v25 = vmul.f32 %v7427_v60, %v12355_v56  ;;  %v1673_v46 = vadd.f32 %v1545_v17, %v1417_v8  ;;  %v1675_v19 = vadd.f32 %v1547_v13, %v1419_v35  ;;  %v12361_v17 = vld [vmem:[#allocation33_spill] sm:$0xff] }
 0x1dc   :  { %12350 = vst [vmem:[#allocation30_spill] sm:$0xff] %v7488_v23  ;;  %v1677_v18 = vadd.f32 %v1549_v30, %v1421_v59  ;;  %v7502_v7 = vadd.f32 %v1551_v58, %v1423_v51  ;;  %v1561_v44 = vmul.f32 %v7430_v38, %v12348_v20  ;;  %v1563_v24 = vmul.f32 %v7430_v38, %v12349_v50  ;;  %v12360_v51 = vld [vmem:[#allocation32_spill] sm:$0xff]  ;;  %v12363_v30 = vld [vmem:[#allocation94_spill] sm:$0xff] }
 0x1dd   :  { %12354 = vst [vmem:[#allocation31_spill] sm:$0xff] %v7496_v11  ;;  %12356 = vst [vmem:[#allocation92_spill] sm:$0xff] %v7500_v25  ;;  %v1565_v52 = vmul.f32 %v7430_v38, %v12351_v14  ;;  %v1567_v11 = vmul.f32 %v7430_v38, %v12352_v36  ;;  %v7514_v25 = vmul.f32 %v7430_v38, %v12353_v63  ;;  %v12364_v63 = vld [vmem:[#allocation95_spill] sm:$0xff]  ;;  %v12429_v23 = vld [vmem:[#allocation152_spill] sm:$0xff] }
 0x1de   :  { %12357 = vst [vmem:[#allocation93_spill] sm:$0xff] %v7502_v7  ;;  %v7518_v59 = vmul.f32 %v7430_v38, %v12355_v56  ;;  %v1689_v8 = vadd.f32 %v1561_v44, %v1433_v39  ;;  %v1691_v35 = vadd.f32 %v1563_v24, %v1435_v28  ;;  %v1800_v20 = vmul.f32 %v7433_v31, %v12360_v51  ;;  %v12366_v56 = vld [vmem:[#allocation210_spill] sm:$0xff] }
 0x1df   :  { %12358 = vst [vmem:[#allocation196_spill] sm:$0xff] %v7514_v25  ;;  %v1802_v50 = vmul.f32 %v7433_v31, %v12361_v17  ;;  %v1693_v13 = vadd.f32 %v1565_v52, %v1437_v61  ;;  %v7524_v14 = vadd.f32 %v1567_v11, %v1439_v29  ;;  %v1804_v36 = vmul.f32 %v7433_v31, %v12363_v30 }
 0x1e0   :  { %12359 = vst [vmem:[#allocation201_spill] sm:$0xff] %v7518_v59  ;;  %v7530_v58 = vmul.f32 %v7433_v31, %v12364_v63  ;;  %v7534_v39 = vmul.f32 %v7433_v31, %v12366_v56  ;;  %v1928_v28 = vadd.f32 %v1800_v20, %v1672_v33  ;;  %v1816_v24 = vmul.f32 %v7436_v6, %v12360_v51  ;;  %v12380_v59 = vld [vmem:[#allocation35_spill] sm:$0xff] }
 0x1e1   :  { %12362 = vst [vmem:[#allocation32_spill] sm:$0xff] %v7524_v14  ;;  %v1930_v44 = vadd.f32 %v1802_v50, %v1674_v34  ;;  %v7538_v7 = vadd.f32 %v1804_v36, %v1676_v4  ;;  %v1818_v29 = vmul.f32 %v7436_v6, %v12361_v17  ;;  %v1820_v61 = vmul.f32 %v7436_v6, %v12363_v30  ;;  %v12371_v34 = vld [vmem:[#allocation163_spill] sm:$0xff]  ;;  %v12373_v4 = vld [vmem:[#allocation148_spill] sm:$0xff]  ;;  %v12379_v14 = vld [vmem:[#allocation34_spill] sm:$0xff] }
 0x1e2   :  { %12365 = vst [vmem:[#allocation33_spill] sm:$0xff] %v7530_v58  ;;  %12367 = vst [vmem:[#allocation94_spill] sm:$0xff] %v7534_v39  ;;  %v7546_v11 = vmul.f32 %v7436_v6, %v12364_v63  ;;  %v7550_v52 = vmul.f32 %v7436_v6, %v12366_v56  ;;  %v1944_v33 = vadd.f32 %v1816_v24, %v1688_v45  ;;  %v7553_v20 = vmul.f32 0.5, %v12371_v34  ;;  %v12376_v36 = vld [vmem:[#allocation164_spill] sm:$0xff]  ;;  %v12430_v39 = vld [vmem:[#allocation153_spill] sm:$0xff] }
 0x1e3   :  { %12368 = vst [vmem:[#allocation95_spill] sm:$0xff] %v7538_v7  ;;  %v7556_v51 = vmul.f32 0.5, %v12373_v4  ;;  %v1946_v50 = vadd.f32 %v1818_v29, %v1690_v55  ;;  %v7558_v17 = vadd.f32 %v1820_v61, %v1692_v42  ;;  %v7561_v30 = vmul.f32 0.5, %v12376_v36  ;;  %v12381_v24 = vld [vmem:[#allocation96_spill] sm:$0xff]  ;;  %v12383_v42 = vld [vmem:[#allocation214_spill] sm:$0xff] }
 0x1e4   :  { %12369 = vst [vmem:[#allocation210_spill] sm:$0xff] %v7546_v11  ;;  %12370 = vst [vmem:[#allocation256_spill] sm:$0xff] %v7550_v52  ;;  %v7564_v63 = vmul.f32 0.5, %v7014_v22  ;;  %v1801_v56 = vmul.f32 %v7553_v20, %v12379_v14  ;;  %v1803_v45 = vmul.f32 %v7553_v20, %v12380_v59  ;;  %v1805_v34 = vmul.f32 %v7553_v20, %v12381_v24 }
 0x1e5   :  { %12372 = vst [vmem:[#allocation163_spill] sm:$0xff] %v7553_v20  ;;  %12374 = vst [vmem:[#allocation148_spill] sm:$0xff] %v7556_v51  ;;  %v7574_v55 = vmul.f32 %v7553_v20, %v12224_v37  ;;  %v7578_v29 = vmul.f32 %v7553_v20, %v12383_v42  ;;  %v1817_v22 = vmul.f32 %v7556_v51, %v12379_v14 }
 0x1e6   :  { %12375 = vst [vmem:[#allocation257_spill] sm:$0xff] %v7558_v17  ;;  %12377 = vst [vmem:[#allocation164_spill] sm:$0xff] %v7561_v30  ;;  %v1819_v61 = vmul.f32 %v7556_v51, %v12380_v59  ;;  %v1821_v4 = vmul.f32 %v7556_v51, %v12381_v24  ;;  %v1929_v36 = vadd.f32 %v1801_v56, %v1673_v46  ;;  %v12389_v59 = vld [vmem:[#allocation36_spill] sm:$0xff]  ;;  %v12390_v24 = vld [vmem:[#allocation37_spill] sm:$0xff] }
 0x1e7   :  { %12378 = vst [vmem:[#allocation258_spill] sm:$0xff] %v7564_v63  ;;  %12382 = vst [vmem:[#allocation34_spill] sm:$0xff] %v7574_v55  ;;  %v1931_v25 = vadd.f32 %v1803_v45, %v1675_v19  ;;  %v7586_v17 = vadd.f32 %v1805_v34, %v1677_v18  ;;  %v7590_v55 = vmul.f32 %v7556_v51, %v12224_v37  ;;  %v12391_v18 = vld [vmem:[#allocation98_spill] sm:$0xff]  ;;  %v12393_v37 = vld [vmem:[#allocation99_spill] sm:$0xff] }
 0x1e8   :  { %12384 = vst [vmem:[#allocation35_spill] sm:$0xff] %v7578_v29  ;;  %v7594_v29 = vmul.f32 %v7556_v51, %v12383_v42  ;;  %v1945_v7 = vadd.f32 %v1817_v22, %v1689_v8  ;;  %v1947_v14 = vadd.f32 %v1819_v61, %v1691_v35  ;;  %v7596_v52 = vadd.f32 %v1821_v4, %v1693_v13 }
 0x1e9   :  { %12385 = vst [vmem:[#allocation96_spill] sm:$0xff] %v7586_v17  ;;  %12386 = vst [vmem:[#allocation214_spill] sm:$0xff] %v7590_v55  ;;  %v2056_v11 = vmul.f32 %v7561_v30, %v12389_v59  ;;  %v2058_v46 = vmul.f32 %v7561_v30, %v12390_v24  ;;  %v7604_v19 = vmul.f32 %v7561_v30, %v12391_v18  ;;  %v7627_v22 = vmul.f32 0.5, %v7016_v43 }
 0x1ea   :  { %12387 = vst [vmem:[#allocation259_spill] sm:$0xff] %v7594_v29  ;;  %12388 = vst [vmem:[#allocation260_spill] sm:$0xff] %v7596_v52  ;;  %v7608_v56 = vmul.f32 %v7561_v30, %v12393_v37  ;;  %v2072_v8 = vmul.f32 %v7564_v63, %v12389_v59  ;;  %v2074_v35 = vmul.f32 %v7564_v63, %v12390_v24  ;;  %v7630_v61 = vmul.f32 0.5, %v7030_v3  ;;  %v12403_v24 = vld [vmem:[#allocation8_spill] sm:$0xff] }
 0x1eb   :  { %12392 = vst [vmem:[#allocation36_spill] sm:$0xff] %v7604_v19  ;;  %v7616_v13 = vmul.f32 %v7564_v63, %v12391_v18  ;;  %v7620_v45 = vmul.f32 %v7564_v63, %v12393_v37  ;;  %v7622_v34 = vadd.f32 %v2056_v11, %v1928_v28  ;;  %v7624_v42 = vadd.f32 %v2058_v46, %v1930_v44  ;;  %v12404_v37 = vld [vmem:[#allocation9_spill] sm:$0xff]  ;;  %v12405_v28 = vld [vmem:[#allocation38_spill] sm:$0xff]  ;;  %v12406_v11 = vld [vmem:[#allocation39_spill] sm:$0xff] }
 0x1ec   :  { %12394 = vst [vmem:[#allocation37_spill] sm:$0xff] %v7608_v56  ;;  %12399 = vst [vmem:[#allocation263_spill] sm:$0xff] %v7627_v22  ;;  %v7632_v4 = vadd.f32 %v2072_v8, %v1944_v33  ;;  %v7634_v59 = vadd.f32 %v2074_v35, %v1946_v50  ;;  %v1332_v18 = vmul.f32 %v12403_v24, %v7052_v41  ;;  %v12426_v56 = vld [vmem:[#allocation15_spill] sm:$0xff] }
 0x1ed   :  { %12395 = vst [vmem:[#allocation98_spill] sm:$0xff] %v7616_v13  ;;  %12396 = vst [vmem:[#allocation99_spill] sm:$0xff] %v7620_v45  ;;  %v1348_v52 = vmul.f32 %v12404_v37, %v7052_v41  ;;  %v2057_v44 = vmul.f32 %v7627_v22, %v12405_v28  ;;  %v2059_v43 = vmul.f32 %v7627_v22, %v12406_v11 }
 0x1ee   :  { %12397 = vst [vmem:[#allocation261_spill] sm:$0xff] %v7622_v34  ;;  %12398 = vst [vmem:[#allocation262_spill] sm:$0xff] %v7624_v42  ;;  %v7646_v3 = vmul.f32 %v7627_v22, %v12244_v26  ;;  %v7650_v33 = vmul.f32 %v7627_v22, %v12246_v2  ;;  %v2073_v50 = vmul.f32 %v7630_v61, %v12405_v28  ;;  %v12414_v28 = vld [vmem:[#allocation65_spill] sm:$0xff] }
 0x1ef   :  { %12400 = vst [vmem:[#allocation264_spill] sm:$0xff] %v7630_v61  ;;  %12401 = vst [vmem:[#allocation265_spill] sm:$0xff] %v7632_v4  ;;  %v2075_v46 = vmul.f32 %v7630_v61, %v12406_v11  ;;  %v7658_v8 = vmul.f32 %v7630_v61, %v12244_v26  ;;  %v7662_v35 = vmul.f32 %v7630_v61, %v12246_v2  ;;  %v12417_v26 = vld [vmem:[#allocation140_spill] sm:$0xff]  ;;  %v12418_v2 = vld [vmem:[#allocation141_spill] sm:$0xff] }
 0x1f0   :  { %12402 = vst [vmem:[#allocation266_spill] sm:$0xff] %v7634_v59  ;;  %12407 = vst [vmem:[#allocation8_spill] sm:$0xff] %v7646_v3  ;;  %v7664_v17 = vadd.f32 %v2057_v44, %v1929_v36  ;;  %v7666_v3 = vadd.f32 %v2059_v43, %v1931_v25  ;;  %v1380_v29 = vmul.f32 %v12414_v28, %v7052_v41 }
 0x1f1   :  { %12408 = vst [vmem:[#allocation9_spill] sm:$0xff] %v7650_v33  ;;  %12409 = vst [vmem:[#allocation38_spill] sm:$0xff] %v7658_v8  ;;  %v12413_v33 = vld [vmem:[#allocation64_spill] sm:$0xff]  ;;  %v7672_v55 = vadd.f32 %v2073_v50, %v1945_v7  ;;  %v7674_v11 = vadd.f32 %v2075_v46, %v1947_v14  ;;  %v1396_v8 = vmul.f32 %v12417_v26, %v7052_v41 }
 0x1f2   :  { %12410 = vst [vmem:[#allocation39_spill] sm:$0xff] %v7662_v35  ;;  %12411 = vst [vmem:[#allocation267_spill] sm:$0xff] %v7664_v17  ;;  %v1364_v22 = vmul.f32 %v12413_v33, %v7052_v41  ;;  %v1412_v35 = vmul.f32 %v12418_v2, %v7052_v41  ;;  %v1428_v25 = vmul.f32 %v7315_v1, %v7052_v41 }
 0x1f3   :  { %12412 = vst [vmem:[#allocation268_spill] sm:$0xff] %v7666_v3  ;;  %12415 = vst [vmem:[#allocation64_spill] sm:$0xff] %v7672_v55  ;;  %v1444_v36 = vmul.f32 %v7318_v0, %v7052_v41  ;;  %v1334_v44 = vmul.f32 %v12403_v24, %v7078_v40  ;;  %v1350_v7 = vmul.f32 %v12404_v37, %v7078_v40  ;;  %v12419_v37 = vld [vmem:[#allocation10_spill] sm:$0xff] }
 0x1f4   :  { %12416 = vst [vmem:[#allocation65_spill] sm:$0xff] %v7674_v11  ;;  %v1366_v14 = vmul.f32 %v12413_v33, %v7078_v40  ;;  %v1382_v43 = vmul.f32 %v12414_v28, %v7078_v40  ;;  %v1398_v50 = vmul.f32 %v12417_v26, %v7078_v40  ;;  %v1414_v46 = vmul.f32 %v12418_v2, %v7078_v40  ;;  %v12420_v33 = vld [vmem:[#allocation11_spill] sm:$0xff]  ;;  %v12421_v28 = vld [vmem:[#allocation66_spill] sm:$0xff] }
 0x1f5   :  { %v1430_v41 = vmul.f32 %v7315_v1, %v7078_v40  ;;  %v1446_v24 = vmul.f32 %v7318_v0, %v7078_v40  ;;  %v1333_v55 = vmul.f32 %v12419_v37, %v7080_v16  ;;  %v1349_v11 = vmul.f32 %v12420_v33, %v7080_v16  ;;  %v12422_v26 = vld [vmem:[#allocation67_spill] sm:$0xff]  ;;  %v12423_v2 = vld [vmem:[#allocation150_spill] sm:$0xff] }
 0x1f6   :  { %v1365_v17 = vmul.f32 %v12421_v28, %v7080_v16  ;;  %v1381_v3 = vmul.f32 %v12422_v26, %v7080_v16  ;;  %v1397_v61 = vmul.f32 %v12423_v2, %v7080_v16  ;;  %v12424_v1 = vld [vmem:[#allocation151_spill] sm:$0xff]  ;;  %v1429_v40 = vmul.f32 %v7327_v15, %v7080_v16 }
 0x1f7   :  { %v1413_v4 = vmul.f32 %v12424_v1, %v7080_v16  ;;  %v1445_v0 = vmul.f32 %v7330_v48, %v7080_v16  ;;  %v7718_v59 = vmul.f32 %v12419_v37, %v7090_v62  ;;  %v7722_v34 = vmul.f32 %v12420_v33, %v7090_v62 }
 0x1f8   :  { %v7726_v42 = vmul.f32 %v12421_v28, %v7090_v62  ;;  %v7730_v45 = vmul.f32 %v12422_v26, %v7090_v62  ;;  %v7734_v13 = vmul.f32 %v12423_v2, %v7090_v62  ;;  %v7738_v16 = vmul.f32 %v12424_v1, %v7090_v62  ;;  %v12425_v28 = vld [vmem:[#allocation12_spill] sm:$0xff]  ;;  %v12428_v1 = vld [vmem:[#allocation69_spill] sm:$0xff] }
 0x1f9   :  { %v7742_v37 = vmul.f32 %v7327_v15, %v7090_v62  ;;  %v7746_v33 = vmul.f32 %v7330_v48, %v7090_v62  ;;  %v1460_v26 = vmul.f32 %v12425_v28, %v7108_v10  ;;  %v1476_v19 = vmul.f32 %v12426_v56, %v7108_v10  ;;  %v12427_v2 = vld [vmem:[#allocation68_spill] sm:$0xff] }
 0x1fa   :  { %v1492_v63 = vmul.f32 %v12427_v2, %v7108_v10  ;;  %v1508_v30 = vmul.f32 %v12428_v1, %v7108_v10  ;;  %v1524_v15 = vmul.f32 %v12429_v23, %v7108_v10  ;;  %v1540_v58 = vmul.f32 %v12430_v39, %v7108_v10 }
 0x1fb   :  { %v1556_v62 = vmul.f32 %v7417_v5, %v7108_v10  ;;  %v1572_v48 = vmul.f32 %v7420_v49, %v7108_v10  ;;  %v7764_v27 = vadd.f32 %v1460_v26, %v1332_v18  ;;  %v7766_v21 = vadd.f32 %v1476_v19, %v1348_v52 }
 0x1fc   :  { %v7768_v47 = vadd.f32 %v1492_v63, %v1364_v22  ;;  %v7770_v54 = vadd.f32 %v1508_v30, %v1380_v29  ;;  %v7772_v12 = vadd.f32 %v1524_v15, %v1396_v8  ;;  %v7774_v57 = vadd.f32 %v1540_v58, %v1412_v35 }
 0x1fd   :  { %v7776_v51 = vadd.f32 %v1556_v62, %v1428_v25  ;;  %v7778_v20 = vadd.f32 %v1572_v48, %v1444_v36  ;;  %v1462_v6 = vmul.f32 %v12425_v28, %v7122_v32  ;;  %v1478_v10 = vmul.f32 %v12426_v56, %v7122_v32 }
 0x1fe   :  { %v1494_v52 = vmul.f32 %v12427_v2, %v7122_v32  ;;  %v1510_v30 = vmul.f32 %v12428_v1, %v7122_v32  ;;  %v1526_v58 = vmul.f32 %v12429_v23, %v7122_v32  ;;  %v1542_v63 = vmul.f32 %v12430_v39, %v7122_v32 }
 0x1ff   :  { %v1558_v29 = vmul.f32 %v7417_v5, %v7122_v32  ;;  %v1574_v19 = vmul.f32 %v7420_v49, %v7122_v32  ;;  %v7796_v22 = vadd.f32 %v1462_v6, %v1334_v44  ;;  %v7798_v56 = vadd.f32 %v1478_v10, %v1350_v7  ;;  %v12431_v5 = vld [vmem:[#allocation13_spill] sm:$0xff]  ;;  %v12432_v32 = vld [vmem:[#allocation16_spill] sm:$0xff]  ;;  %v12433_v49 = vld [vmem:[#allocation70_spill] sm:$0xff] }
 0x200   :  { %v7800_v18 = vadd.f32 %v1494_v52, %v1366_v14  ;;  %v7802_v8 = vadd.f32 %v1510_v30, %v1382_v43  ;;  %v7804_v35 = vadd.f32 %v1526_v58, %v1398_v50  ;;  %v7806_v23 = vadd.f32 %v1542_v63, %v1414_v46  ;;  %v12434_v7 = vld [vmem:[#allocation71_spill] sm:$0xff]  ;;  %v12435_v43 = vld [vmem:[#allocation154_spill] sm:$0xff] }
 0x201   :  { %v7808_v25 = vadd.f32 %v1558_v29, %v1430_v41  ;;  %v7810_v39 = vadd.f32 %v1574_v19, %v1446_v24  ;;  %v1461_v36 = vmul.f32 %v12431_v5, %v7124_v53  ;;  %v1477_v6 = vmul.f32 %v12432_v32, %v7124_v53  ;;  %v12436_v46 = vld [vmem:[#allocation155_spill] sm:$0xff] }
 0x202   :  { %v1493_v44 = vmul.f32 %v12433_v49, %v7124_v53  ;;  %v1509_v14 = vmul.f32 %v12434_v7, %v7124_v53  ;;  %v1525_v50 = vmul.f32 %v12435_v43, %v7124_v53  ;;  %v1541_v41 = vmul.f32 %v12436_v46, %v7124_v53 }
 0x203   :  { %v1557_v24 = vmul.f32 %v7427_v60, %v7124_v53  ;;  %v1573_v28 = vmul.f32 %v7430_v38, %v7124_v53  ;;  %v7828_v26 = vadd.f32 %v1461_v36, %v1333_v55  ;;  %v7830_v2 = vadd.f32 %v1477_v6, %v1349_v11 }
 0x204   :  { %v7832_v1 = vadd.f32 %v1493_v44, %v1365_v17  ;;  %v7834_v15 = vadd.f32 %v1509_v14, %v1381_v3  ;;  %v7836_v62 = vadd.f32 %v1525_v50, %v1397_v61  ;;  %v7838_v48 = vadd.f32 %v1541_v41, %v1413_v4  ;;  %v12444_v44 = vld [vmem:[#allocation238_spill] sm:$0xff] }
 0x205   :  { %v7840_v10 = vadd.f32 %v1557_v24, %v1429_v40  ;;  %v7842_v52 = vadd.f32 %v1573_v28, %v1445_v0  ;;  %v1463_v30 = vmul.f32 %v12431_v5, %v7132_v9  ;;  %v1479_v53 = vmul.f32 %v12432_v32, %v7132_v9 }
 0x206   :  { %v1495_v17 = vmul.f32 %v12433_v49, %v7132_v9  ;;  %v1511_v55 = vmul.f32 %v12434_v7, %v7132_v9  ;;  %v1527_v61 = vmul.f32 %v12435_v43, %v7132_v9  ;;  %v1543_v4 = vmul.f32 %v12436_v46, %v7132_v9 }
 0x207   :  { %v1559_v3 = vmul.f32 %v7427_v60, %v7132_v9  ;;  %v1575_v11 = vmul.f32 %v7430_v38, %v7132_v9  ;;  %v7861_v40 = vadd.f32 %v1463_v30, %v7718_v59  ;;  %v7864_v0 = vadd.f32 %v1479_v53, %v7722_v34  ;;  %v12437_v34 = vld [vmem:[#allocation159_spill] sm:$0xff]  ;;  %v12438_v59 = vld [vmem:[#allocation20_spill] sm:$0xff] }
 0x208   :  { %v7867_v58 = vadd.f32 %v1495_v17, %v7726_v42  ;;  %v7870_v63 = vadd.f32 %v1511_v55, %v7730_v45  ;;  %v7873_v29 = vadd.f32 %v1527_v61, %v7734_v13  ;;  %v7876_v60 = vadd.f32 %v1543_v4, %v7738_v16  ;;  %v12439_v42 = vld [vmem:[#allocation22_spill] sm:$0xff]  ;;  %v12440_v45 = vld [vmem:[#allocation72_spill] sm:$0xff]  ;;  %v12441_v13 = vld [vmem:[#allocation73_spill] sm:$0xff] }
 0x209   :  { %v7879_v9 = vadd.f32 %v1559_v3, %v7742_v37  ;;  %v7882_v38 = vadd.f32 %v1575_v11, %v7746_v33  ;;  %v1716_v19 = vmul.f32 %v12438_v59, %v12437_v34  ;;  %v1732_v5 = vmul.f32 %v12439_v42, %v12437_v34  ;;  %v12442_v16 = vld [vmem:[#allocation156_spill] sm:$0xff]  ;;  %v12443_v37 = vld [vmem:[#allocation157_spill] sm:$0xff] }
 0x20a   :  { %v1748_v36 = vmul.f32 %v12440_v45, %v12437_v34  ;;  %v1764_v32 = vmul.f32 %v12441_v13, %v12437_v34  ;;  %v1780_v6 = vmul.f32 %v12442_v16, %v12437_v34  ;;  %v1796_v49 = vmul.f32 %v12443_v37, %v12437_v34 }
 0x20b   :  { %v1812_v33 = vmul.f32 %v7433_v31, %v12437_v34  ;;  %v1828_v7 = vmul.f32 %v12444_v44, %v12437_v34  ;;  %v7901_v14 = vadd.f32 %v1716_v19, %v7764_v27  ;;  %v7904_v43 = vadd.f32 %v1732_v5, %v7766_v21  ;;  %v12445_v21 = vld [vmem:[#allocation171_spill] sm:$0xff] }
 0x20c   :  { %v7907_v50 = vadd.f32 %v1748_v36, %v7768_v47  ;;  %v7910_v46 = vadd.f32 %v1764_v32, %v7770_v54  ;;  %v7913_v41 = vadd.f32 %v1780_v6, %v7772_v12  ;;  %v7916_v24 = vadd.f32 %v1796_v49, %v7774_v57 }
 0x20d   :  { %v7919_v28 = vadd.f32 %v1812_v33, %v7776_v51  ;;  %v7922_v27 = vadd.f32 %v1828_v7, %v7778_v20  ;;  %v1718_v30 = vmul.f32 %v12438_v59, %v12445_v21  ;;  %v1734_v47 = vmul.f32 %v12439_v42, %v12445_v21  ;;  %v12447_v59 = vld [vmem:[#allocation21_spill] sm:$0xff] }
 0x20e   :  { %v1750_v54 = vmul.f32 %v12440_v45, %v12445_v21  ;;  %v1766_v12 = vmul.f32 %v12441_v13, %v12445_v21  ;;  %v1782_v57 = vmul.f32 %v12442_v16, %v12445_v21  ;;  %v1798_v51 = vmul.f32 %v12443_v37, %v12445_v21  ;;  %v12454_v16 = vld [vmem:[#allocation148_spill] sm:$0xff] }
 0x20f   :  { %v1814_v20 = vmul.f32 %v7433_v31, %v12445_v21  ;;  %v1830_v53 = vmul.f32 %v12444_v44, %v12445_v21  ;;  %v7941_v17 = vadd.f32 %v1718_v30, %v7796_v22  ;;  %v7944_v55 = vadd.f32 %v1734_v47, %v7798_v56  ;;  %v12446_v56 = vld [vmem:[#allocation160_spill] sm:$0xff] }
 0x210   :  { %v7947_v61 = vadd.f32 %v1750_v54, %v7800_v18  ;;  %v7950_v4 = vadd.f32 %v1766_v12, %v7802_v8  ;;  %v7953_v3 = vadd.f32 %v1782_v57, %v7804_v35  ;;  %v7956_v11 = vadd.f32 %v1798_v51, %v7806_v23  ;;  %v12448_v18 = vld [vmem:[#allocation23_spill] sm:$0xff]  ;;  %v12449_v8 = vld [vmem:[#allocation74_spill] sm:$0xff]  ;;  %v12451_v23 = vld [vmem:[#allocation188_spill] sm:$0xff] }
 0x211   :  { %v7959_v34 = vadd.f32 %v1814_v20, %v7808_v25  ;;  %v7962_v22 = vadd.f32 %v1830_v53, %v7810_v39  ;;  %v1717_v19 = vmul.f32 %v12447_v59, %v12446_v56  ;;  %v1733_v42 = vmul.f32 %v12448_v18, %v12446_v56  ;;  %v12450_v35 = vld [vmem:[#allocation75_spill] sm:$0xff]  ;;  %v12452_v25 = vld [vmem:[#allocation189_spill] sm:$0xff] }
 0x212   :  { %v1749_v5 = vmul.f32 %v12449_v8, %v12446_v56  ;;  %v1765_v45 = vmul.f32 %v12450_v35, %v12446_v56  ;;  %v1781_v36 = vmul.f32 %v12451_v23, %v12446_v56  ;;  %v1797_v13 = vmul.f32 %v12452_v25, %v12446_v56  ;;  %v12453_v39 = vld [vmem:[#allocation163_spill] sm:$0xff] }
 0x213   :  { %v1813_v32 = vmul.f32 %v12453_v39, %v12446_v56  ;;  %v1829_v6 = vmul.f32 %v12454_v16, %v12446_v56  ;;  %v7981_v37 = vadd.f32 %v1717_v19, %v7828_v26  ;;  %v7984_v49 = vadd.f32 %v1733_v42, %v7830_v2  ;;  %v12455_v2 = vld [vmem:[#allocation177_spill] sm:$0xff] }
 0x214   :  { %v7987_v33 = vadd.f32 %v1749_v5, %v7832_v1  ;;  %v7990_v7 = vadd.f32 %v1765_v45, %v7834_v15  ;;  %v7993_v21 = vadd.f32 %v1781_v36, %v7836_v62  ;;  %v7996_v30 = vadd.f32 %v1797_v13, %v7838_v48  ;;  %v12471_v13 = vld [vmem:[#allocation33_spill] sm:$0xff] }
 0x215   :  { %v7999_v47 = vadd.f32 %v1813_v32, %v7840_v10  ;;  %v8002_v26 = vadd.f32 %v1829_v6, %v7842_v52  ;;  %v1719_v54 = vmul.f32 %v12447_v59, %v12455_v2  ;;  %v1735_v1 = vmul.f32 %v12448_v18, %v12455_v2  ;;  %v12462_v18 = vld [vmem:[#allocation29_spill] sm:$0xff]  ;;  %v12472_v6 = vld [vmem:[#allocation94_spill] sm:$0xff] }
 0x216   :  { %v1751_v15 = vmul.f32 %v12449_v8, %v12455_v2  ;;  %v1767_v62 = vmul.f32 %v12450_v35, %v12455_v2  ;;  %v1783_v48 = vmul.f32 %v12451_v23, %v12455_v2  ;;  %v1799_v10 = vmul.f32 %v12452_v25, %v12455_v2  ;;  %v12464_v8 = vld [vmem:[#allocation90_spill] sm:$0xff]  ;;  %v12468_v23 = vld [vmem:[#allocation255_spill] sm:$0xff] }
 0x217   :  { %v1815_v52 = vmul.f32 %v12453_v39, %v12455_v2  ;;  %v1831_v12 = vmul.f32 %v12454_v16, %v12455_v2  ;;  %v8021_v57 = vadd.f32 %v1719_v54, %v7861_v40  ;;  %v8024_v51 = vadd.f32 %v1735_v1, %v7864_v0  ;;  %v12461_v0 = vld [vmem:[#allocation14_spill] sm:$0xff] }
 0x218   :  { %v8027_v20 = vadd.f32 %v1751_v15, %v7867_v58  ;;  %v8030_v53 = vadd.f32 %v1767_v62, %v7870_v63  ;;  %v8033_v56 = vadd.f32 %v1783_v48, %v7873_v29  ;;  %v8036_v59 = vadd.f32 %v1799_v10, %v7876_v60  ;;  %v12463_v58 = vld [vmem:[#allocation17_spill] sm:$0xff]  ;;  %v12465_v63 = vld [vmem:[#allocation172_spill] sm:$0xff]  ;;  %v12466_v35 = vld [vmem:[#allocation254_spill] sm:$0xff] }
 0x219   :  { %v8039_v19 = vadd.f32 %v1815_v52, %v7879_v9  ;;  %v8042_v40 = vadd.f32 %v1831_v12, %v7882_v38  ;;  %v1680_v42 = vadd.f32 %v12462_v18, %v12461_v0  ;;  %v1682_v5 = vadd.f32 %v12464_v8, %v12463_v58  ;;  %v12467_v29 = vld [vmem:[#allocation175_spill] sm:$0xff]  ;;  %v12469_v60 = vld [vmem:[#allocation213_spill] sm:$0xff]  ;;  %v12473_v54 = vld [vmem:[#allocation30_spill] sm:$0xff] }
 0x21a   :  { %12456 = vst [vmem:[#allocation140_spill] sm:$0xff] %v8030_v53  ;;  %12457 = vst [vmem:[#allocation141_spill] sm:$0xff] %v8033_v56  ;;  %v1696_v45 = vadd.f32 %v12466_v35, %v12465_v63  ;;  %v1698_v36 = vadd.f32 %v12468_v23, %v12467_v29  ;;  %v1810_v25 = vmul.f32 %v7433_v31, %v12469_v60  ;;  %v12470_v38 = vld [vmem:[#allocation195_spill] sm:$0xff]  ;;  %v12474_v1 = vld [vmem:[#allocation210_spill] sm:$0xff] }
 0x21b   :  { %12458 = vst [vmem:[#allocation10_spill] sm:$0xff] %v8036_v59  ;;  %12459 = vst [vmem:[#allocation11_spill] sm:$0xff] %v8039_v19  ;;  %v1826_v9 = vmul.f32 %v12444_v44, %v12469_v60  ;;  %v1934_v32 = vadd.f32 %v12471_v13, %v12470_v38  ;;  %v1936_v2 = vadd.f32 %v12472_v6, %v1680_v42  ;;  %v12475_v62 = vld [vmem:[#allocation161_spill] sm:$0xff]  ;;  %v12476_v48 = vld [vmem:[#allocation24_spill] sm:$0xff] }
 0x21c   :  { %12460 = vst [vmem:[#allocation66_spill] sm:$0xff] %v8042_v40  ;;  %v1950_v15 = vadd.f32 %v12474_v1, %v12473_v54  ;;  %v1972_v10 = vmul.f32 %v12476_v48, %v12475_v62  ;;  %v1938_v52 = vadd.f32 %v1810_v25, %v1682_v5  ;;  %v12477_v12 = vld [vmem:[#allocation256_spill] sm:$0xff]  ;;  %v12478_v31 = vld [vmem:[#allocation27_spill] sm:$0xff]  ;;  %v12479_v44 = vld [vmem:[#allocation78_spill] sm:$0xff] }
 0x21d   :  { %v1952_v0 = vadd.f32 %v12477_v12, %v1696_v45  ;;  %v1954_v18 = vadd.f32 %v1826_v9, %v1698_v36  ;;  %v1988_v58 = vmul.f32 %v12478_v31, %v12475_v62  ;;  %v2004_v8 = vmul.f32 %v12479_v44, %v12475_v62  ;;  %v12480_v63 = vld [vmem:[#allocation80_spill] sm:$0xff]  ;;  %v12481_v42 = vld [vmem:[#allocation191_spill] sm:$0xff]  ;;  %v12485_v45 = vld [vmem:[#allocation217_spill] sm:$0xff] }
 0x21e   :  { %v2020_v35 = vmul.f32 %v12480_v63, %v12475_v62  ;;  %v2036_v29 = vmul.f32 %v12481_v42, %v12475_v62  ;;  %v12482_v23 = vld [vmem:[#allocation192_spill] sm:$0xff]  ;;  %v12486_v13 = vld [vmem:[#allocation258_spill] sm:$0xff]  ;;  %v8087_v12 = vadd.f32 %v1972_v10, %v7901_v14  ;;  %v12493_v56 = vld [vmem:[#allocation95_spill] sm:$0xff] }
 0x21f   :  { %v2052_v60 = vmul.f32 %v12482_v23, %v12475_v62  ;;  %v12483_v38 = vld [vmem:[#allocation216_spill] sm:$0xff]  ;;  %v2082_v54 = vmul.f32 %v12486_v13, %v12485_v45  ;;  %v2084_v1 = vmul.f32 %v12486_v13, %v12475_v62  ;;  %v8090_v40 = vadd.f32 %v1988_v58, %v7904_v43  ;;  %v12496_v14 = vld [vmem:[#allocation37_spill] sm:$0xff] }
 0x220   :  { %v12484_v5 = vld [vmem:[#allocation164_spill] sm:$0xff]  ;;  %v2080_v6 = vmul.f32 %v12486_v13, %v12483_v38  ;;  %12487 = vst [vmem:[#allocation67_spill] sm:$0xff] %v8087_v12  ;;  %v8093_v19 = vadd.f32 %v2004_v8, %v7907_v50  ;;  %v8096_v59 = vadd.f32 %v2020_v35, %v7910_v46  ;;  %v8109_v10 = vadd.f32 %v12496_v14, %v1934_v32  ;;  %v12501_v58 = vld [vmem:[#allocation257_spill] sm:$0xff]  ;;  %v12516_v14 = vld [vmem:[#allocation239_spill] sm:$0xff] }
 0x221   :  { %v2064_v25 = vmul.f32 %v12484_v5, %v12483_v38  ;;  %v2066_v36 = vmul.f32 %v12484_v5, %v12485_v45  ;;  %v2068_v9 = vmul.f32 %v12484_v5, %v12475_v62  ;;  %12488 = vst [vmem:[#allocation150_spill] sm:$0xff] %v8090_v40  ;;  %v8099_v38 = vadd.f32 %v2036_v29, %v7913_v41  ;;  %v12494_v62 = vld [vmem:[#allocation36_spill] sm:$0xff]  ;;  %v12502_v41 = vld [vmem:[#allocation98_spill] sm:$0xff] }
 0x222   :  { %12489 = vst [vmem:[#allocation151_spill] sm:$0xff] %v8093_v19  ;;  %12490 = vst [vmem:[#allocation12_spill] sm:$0xff] %v8096_v59  ;;  %v8102_v45 = vadd.f32 %v2052_v60, %v7916_v24  ;;  %v8106_v53 = vadd.f32 %v12494_v62, %v12493_v56  ;;  %v8120_v8 = vadd.f32 %v12502_v41, %v12501_v58  ;;  %v12504_v24 = vld [vmem:[#allocation99_spill] sm:$0xff]  ;;  %v12521_v58 = vld [vmem:[#allocation158_spill] sm:$0xff] }
 0x223   :  { %12491 = vst [vmem:[#allocation15_spill] sm:$0xff] %v8099_v38  ;;  %12497 = vst [vmem:[#allocation152_spill] sm:$0xff] %v8109_v10  ;;  %v8111_v43 = vadd.f32 %v2064_v25, %v1936_v2  ;;  %v8113_v50 = vadd.f32 %v2066_v36, %v1938_v52  ;;  %v8116_v46 = vadd.f32 %v2068_v9, %v7919_v28  ;;  %v12509_v2 = vld [vmem:[#allocation206_spill] sm:$0xff]  ;;  %v12510_v52 = vld [vmem:[#allocation123_spill] sm:$0xff] }
 0x224   :  { %12492 = vst [vmem:[#allocation68_spill] sm:$0xff] %v8102_v45  ;;  %12495 = vst [vmem:[#allocation69_spill] sm:$0xff] %v8106_v53  ;;  %v8123_v35 = vadd.f32 %v12504_v24, %v1950_v15  ;;  %v8125_v29 = vadd.f32 %v2080_v6, %v1952_v0  ;;  %v8127_v56 = vadd.f32 %v2082_v54, %v1954_v18  ;;  %v12512_v25 = vld [vmem:[#allocation207_spill] sm:$0xff]  ;;  %v12513_v36 = vld [vmem:[#allocation124_spill] sm:$0xff] }
 0x225   :  { %12498 = vst [vmem:[#allocation153_spill] sm:$0xff] %v8111_v43  ;;  %12499 = vst [vmem:[#allocation13_spill] sm:$0xff] %v8113_v50  ;;  %v8130_v32 = vadd.f32 %v2084_v1, %v7922_v27  ;;  %v12511_v60 = vmax.f32 %v12509_v2, %v12510_v52  ;;  %v12514_v9 = vmax.f32 %v12512_v25, %v12513_v36  ;;  %v12515_v15 = vld [vmem:[#allocation119_spill] sm:$0xff]  ;;  %v12518_v18 = vld [vmem:[#allocation120_spill] sm:$0xff] }
 0x226   :  { %12500 = vst [vmem:[#allocation16_spill] sm:$0xff] %v8116_v46  ;;  %12503 = vst [vmem:[#allocation70_spill] sm:$0xff] %v8120_v8  ;;  %v12517_v0 = vmax.f32 %v12515_v15, %v12516_v14  ;;  %v12519_v54 = vld [vmem:[#allocation240_spill] sm:$0xff]  ;;  %v12522_v41 = vld [vmem:[#allocation241_spill] sm:$0xff] }
 0x227   :  { %12505 = vst [vmem:[#allocation71_spill] sm:$0xff] %v8123_v35  ;;  %12506 = vst [vmem:[#allocation154_spill] sm:$0xff] %v8125_v29  ;;  %v2221_v28 = vmax.f32 %v12511_v60, %v8087_v12  ;;  %v2235_v62 = vmax.f32 %v12514_v9, %v8090_v40  ;;  %v12520_v27 = vmax.f32 %v12518_v18, %v12519_v54  ;;  %v12524_v60 = vld [vmem:[#allocation170_spill] sm:$0xff]  ;;  %v12528_v36 = vld [vmem:[#allocation261_spill] sm:$0xff] }
 0x228   :  { %12507 = vst [vmem:[#allocation155_spill] sm:$0xff] %v8127_v56  ;;  %12508 = vst [vmem:[#allocation159_spill] sm:$0xff] %v8130_v32  ;;  %v2249_v6 = vmax.f32 %v12517_v0, %v8093_v19  ;;  %v12523_v24 = vmax.f32 %v12521_v58, %v12522_v41  ;;  %v12525_v12 = vld [vmem:[#allocation242_spill] sm:$0xff]  ;;  %v12530_v0 = vld [vmem:[#allocation265_spill] sm:$0xff] }
 0x229   :  { %v2263_v1 = vmax.f32 %v12520_v27, %v8096_v59  ;;  %v12526_v25 = vmax.f32 %v12524_v60, %v12525_v12  ;;  %v12527_v40 = vld [vmem:[#allocation262_spill] sm:$0xff]  ;;  %v12607_v12 = vld [vmem:[#allocation64_spill] sm:$0xff] }
 0x22a   :  { %v2277_v2 = vmax.f32 %v12523_v24, %v8099_v38  ;;  %v2300_v52 = vmax.f32 %v12528_v36, %v12527_v40  ;;  %v12529_v15 = vld [vmem:[#allocation266_spill] sm:$0xff] }
 0x22b   :  { %v2291_v9 = vmax.f32 %v12526_v25, %v8102_v45  ;;  %v2314_v19 = vmax.f32 %v12530_v0, %v12529_v15  ;;  %v12531_v14 = vld [vmem:[#allocation178_spill] sm:$0xff]  ;;  %v12606_v45 = vld [vmem:[#allocation65_spill] sm:$0xff] }
 0x22c   :  { %v1974_v18 = vmul.f32 %v12476_v48, %v12531_v14  ;;  %v1990_v27 = vmul.f32 %v12478_v31, %v12531_v14  ;;  %v2006_v58 = vmul.f32 %v12479_v44, %v12531_v14  ;;  %v2022_v24 = vmul.f32 %v12480_v63, %v12531_v14  ;;  %v12615_v41 = vld [vmem:[#allocation66_spill] sm:$0xff] }
 0x22d   :  { %v2038_v60 = vmul.f32 %v12481_v42, %v12531_v14  ;;  %v2054_v25 = vmul.f32 %v12482_v23, %v12531_v14  ;;  %v2301_v15 = vmax.f32 %v2300_v52, %v8106_v53  ;;  %v2315_v0 = vmax.f32 %v2314_v19, %v8120_v8 }
 0x22e   :  { %v2070_v48 = vmul.f32 %v12484_v5, %v12531_v14  ;;  %v2086_v31 = vmul.f32 %v12486_v13, %v12531_v14  ;;  %v2102_v44 = vadd.f32 %v1974_v18, %v7941_v17  ;;  %v2118_v63 = vadd.f32 %v1990_v27, %v7944_v55 }
 0x22f   :  { %v2134_v40 = vadd.f32 %v2006_v58, %v7947_v61  ;;  %v2150_v42 = vadd.f32 %v2022_v24, %v7950_v4  ;;  %v2302_v23 = vmax.f32 %v2301_v15, %v8109_v10  ;;  %v2316_v52 = vmax.f32 %v2315_v0, %v8123_v35 }
 0x230   :  { %v2166_v19 = vadd.f32 %v2038_v60, %v7953_v3  ;;  %v2182_v8 = vadd.f32 %v2054_v25, %v7956_v11  ;;  %v8187_v5 = vadd.f32 %v2070_v48, %v7959_v34  ;;  %v8190_v13 = vadd.f32 %v2086_v31, %v7962_v22  ;;  %v12537_v25 = vld [vmem:[#allocation88_spill] sm:$0xff]  ;;  %v12538_v48 = vld [vmem:[#allocation31_spill] sm:$0xff] }
 0x231   :  { %v8192_v17 = vmax.f32 %v2221_v28, %v2102_v44  ;;  %v8194_v55 = vmax.f32 %v2235_v62, %v2118_v63  ;;  %v2303_v61 = vmax.f32 %v2302_v23, %v8111_v43  ;;  %v2317_v4 = vmax.f32 %v2316_v52, %v8125_v29 }
 0x232   :  { %12532 = vst [vmem:[#allocation20_spill] sm:$0xff] %v8187_v5  ;;  %12533 = vst [vmem:[#allocation22_spill] sm:$0xff] %v8190_v13  ;;  %v8198_v14 = vmax.f32 %v2249_v6, %v2134_v40  ;;  %v8200_v15 = vmax.f32 %v2263_v1, %v2150_v42  ;;  %v8202_v3 = vmax.f32 %v2277_v2, %v2166_v19 }
 0x233   :  { %v8204_v11 = vmax.f32 %v2291_v9, %v2182_v8  ;;  %v2342_v34 = vsub.f32 %v2102_v44, %v8192_v17  ;;  %v2358_v22 = vsub.f32 %v2118_v63, %v8194_v55  ;;  %v2304_v28 = vmax.f32 %v2303_v61, %v8113_v50  ;;  %v12544_v61 = vld [vmem:[#allocation196_spill] sm:$0xff] }
 0x234   :  { %12534 = vst [vmem:[#allocation72_spill] sm:$0xff] %v8200_v15  ;;  %12535 = vst [vmem:[#allocation73_spill] sm:$0xff] %v8202_v3  ;;  %v2318_v62 = vmax.f32 %v2317_v4, %v8127_v56  ;;  %v2374_v0 = vsub.f32 %v2134_v40, %v8198_v14  ;;  %v2390_v18 = vsub.f32 %v2150_v42, %v8200_v15  ;;  %v12542_v42 = vld [vmem:[#allocation92_spill] sm:$0xff] }
 0x235   :  { %12536 = vst [vmem:[#allocation156_spill] sm:$0xff] %v8204_v11  ;;  %v2406_v6 = vsub.f32 %v2166_v19, %v8202_v3  ;;  %v2422_v1 = vsub.f32 %v2182_v8, %v8204_v11  ;;  %v2484_v2 = vmul.f32 1.442695, %v2342_v34  ;;  %v2305_v9 = vmax.f32 %v2304_v28, %v8116_v46  ;;  %v12541_v8 = vld [vmem:[#allocation89_spill] sm:$0xff]  ;;  %v12543_v19 = vld [vmem:[#allocation252_spill] sm:$0xff] }
 0x236   :  { %v2319_v27 = vmax.f32 %v2318_v62, %v8130_v32  ;;  %v2516_v58 = vmul.f32 1.442695, %v2358_v22  ;;  %v2548_v24 = vmul.f32 1.442695, %v2374_v0  ;;  %v2580_v60 = vmul.f32 1.442695, %v2390_v18 }
 0x237   :  { %5072 = vpow2.f32 %v2484_v2  ;;  %v1681_v31 = vadd.f32 %v12538_v48, %v12537_v25  ;;  %v8219_v40 = vmax.f32 %v2305_v9, %v8187_v5  ;;  %v2612_v63 = vmul.f32 1.442695, %v2406_v6  ;;  %v12545_v34 = vld [vmem:[#allocation253_spill] sm:$0xff]  ;;  %v12547_v62 = vld [vmem:[#allocation215_spill] sm:$0xff]  ;;  %v12549_v9 = vld [vmem:[#allocation34_spill] sm:$0xff] }
 0x238   :  { %v8222_v44 = vmax.f32 %v2319_v27, %v8190_v13  ;;  %v1683_v23 = vadd.f32 %v12542_v42, %v12541_v8  ;;  %v2644_v52 = vmul.f32 1.442695, %v2422_v1  ;;  %v1697_v4 = vadd.f32 %v12544_v61, %v12543_v19  ;;  %v12546_v22 = vld [vmem:[#allocation201_spill] sm:$0xff]  ;;  %v12550_v25 = vld [vmem:[#allocation35_spill] sm:$0xff]  ;;  %v12551_v42 = vld [vmem:[#allocation32_spill] sm:$0xff] }
 0x239   :  { %12539 = vst [vmem:[#allocation157_spill] sm:$0xff] %v8219_v40  ;;  %v1699_v28 = vadd.f32 %v12546_v22, %v12545_v34  ;;  %v1811_v0 = vmul.f32 %v12453_v39, %v12547_v62  ;;  %5074 = vpow2.f32 %v2516_v58  ;;  %v1827_v6 = vmul.f32 %v12454_v16, %v12547_v62  ;;  %v12548_v1 = vld [vmem:[#allocation93_spill] sm:$0xff]  ;;  %v12552_v39 = vld [vmem:[#allocation214_spill] sm:$0xff]  ;;  %v12553_v61 = vld [vmem:[#allocation259_spill] sm:$0xff] }
 0x23a   :  { %12540 = vst [vmem:[#allocation238_spill] sm:$0xff] %v8222_v44  ;;  %5076 = vpow2.f32 %v2548_v24  ;;  %v1935_v27 = vadd.f32 %v12549_v9, %v12548_v1  ;;  %v1937_v48 = vadd.f32 %v12550_v25, %v1681_v31  ;;  %v1951_v19 = vadd.f32 %v12552_v39, %v12551_v42  ;;  %v12554_v18 = vld [vmem:[#allocation97_spill] sm:$0xff]  ;;  %v12556_v13 = vld [vmem:[#allocation28_spill] sm:$0xff]  ;;  %v12558_v31 = vld [vmem:[#allocation82_spill] sm:$0xff] }
 0x23b   :  { %v1939_v8 = vadd.f32 %v1811_v0, %v1683_v23  ;;  %5078 = vpow2.f32 %v2580_v60  ;;  %v1953_v34 = vadd.f32 %v12553_v61, %v1697_v4  ;;  %v1955_v22 = vadd.f32 %v1827_v6, %v1699_v28  ;;  %v12555_v2 = vld [vmem:[#allocation25_spill] sm:$0xff]  ;;  %v12560_v4 = vld [vmem:[#allocation194_spill] sm:$0xff]  ;;  %v12562_v1 = vld [vmem:[#allocation263_spill] sm:$0xff] }
 0x23c   :  { %v1973_v58 = vmul.f32 %v12555_v2, %v12554_v18  ;;  %v1989_v16 = vmul.f32 %v12556_v13, %v12554_v18  ;;  %5080 = vpow2.f32 %v2612_v63  ;;  %v12557_v24 = vld [vmem:[#allocation81_spill] sm:$0xff]  ;;  %v2021_v23 = vmul.f32 %v12558_v31, %v12554_v18  ;;  %v12561_v6 = vld [vmem:[#allocation218_spill] sm:$0xff]  ;;  %v12563_v25 = vld [vmem:[#allocation219_spill] sm:$0xff] }
 0x23d   :  { %v2005_v62 = vmul.f32 %v12557_v24, %v12554_v18  ;;  %v12559_v60 = vld [vmem:[#allocation193_spill] sm:$0xff]  ;;  %5082 = vpow2.f32 %v2644_v52  ;;  %v2053_v28 = vmul.f32 %v12560_v4, %v12554_v18  ;;  %v2065_v9 = vmul.f32 %v12562_v1, %v12561_v6  ;;  %v12564_v39 = vld [vmem:[#allocation264_spill] sm:$0xff] }
 0x23e   :  { %v2037_v0 = vmul.f32 %v12559_v60, %v12554_v18  ;;  %v2067_v42 = vmul.f32 %v12562_v1, %v12563_v25  ;;  %v2069_v63 = vmul.f32 %v12562_v1, %v12554_v18  ;;  %v2081_v61 = vmul.f32 %v12564_v39, %v12561_v6  ;;  %v12569_v46 = vld [vmem:[#allocation8_spill] sm:$0xff] }
 0x23f   :  { %v2083_v5 = vmul.f32 %v12564_v39, %v12563_v25  ;;  %v2085_v52 = vmul.f32 %v12564_v39, %v12554_v18  ;;  %v8271_v56 = vadd.f32 %v1973_v58, %v7981_v37  ;;  %v8274_v29 = vadd.f32 %v1989_v16, %v7984_v49  ;;  %v12568_v18 = vld [vmem:[#allocation96_spill] sm:$0xff]  ;;  %v12571_v37 = vld [vmem:[#allocation9_spill] sm:$0xff] }
 0x240   :  { %v8277_v35 = vadd.f32 %v2005_v62, %v7987_v33  ;;  %v8280_v44 = vadd.f32 %v2021_v23, %v7990_v7  ;;  %v8283_v6 = vadd.f32 %v2037_v0, %v7993_v21  ;;  %v8286_v25 = vadd.f32 %v2053_v28, %v7996_v30  ;;  %v12576_v16 = vld [vmem:[#allocation260_spill] sm:$0xff]  ;;  %v12577_v21 = vld [vmem:[#allocation38_spill] sm:$0xff]  ;;  %v12579_v23 = vld [vmem:[#allocation39_spill] sm:$0xff] }
 0x241   :  { %v8268_v32 = vpop.eup %5072  ;;  %v8290_v50 = vadd.f32 %v12569_v46, %v12568_v18  ;;  %v8293_v58 = vadd.f32 %v12571_v37, %v1935_v27  ;;  %v8295_v49 = vadd.f32 %v2065_v9, %v1937_v48  ;;  %v8297_v33 = vadd.f32 %v2067_v42, %v1939_v8  ;;  %v12586_v28 = vld [vmem:[#allocation142_spill] sm:$0xff]  ;;  %v12589_v18 = vld [vmem:[#allocation243_spill] sm:$0xff]  ;;  %v12604_v40 = vld [vmem:[#allocation268_spill] sm:$0xff] }
 0x242   :  { %12565 = vst [vmem:[#allocation171_spill] sm:$0xff] %v8268_v32  ;;  %12566 = vst [vmem:[#allocation160_spill] sm:$0xff] %v8283_v6  ;;  %v8300_v7 = vadd.f32 %v2069_v63, %v7999_v47  ;;  %v8304_v62 = vadd.f32 %v12577_v21, %v12576_v16  ;;  %v8309_v0 = vadd.f32 %v12579_v23, %v1951_v19  ;;  %v12585_v47 = vld [vmem:[#allocation211_spill] sm:$0xff]  ;;  %v12588_v63 = vld [vmem:[#allocation212_spill] sm:$0xff] }
 0x243   :  { %12567 = vst [vmem:[#allocation21_spill] sm:$0xff] %v8286_v25  ;;  %12570 = vst [vmem:[#allocation23_spill] sm:$0xff] %v8290_v50  ;;  %v8306_v30 = vpop.eup %5074  ;;  %v8311_v46 = vadd.f32 %v2081_v61, %v1953_v34  ;;  %v8313_v27 = vadd.f32 %v2083_v5, %v1955_v22  ;;  %v8316_v48 = vadd.f32 %v2085_v52, %v8002_v26  ;;  %v12591_v34 = vld [vmem:[#allocation136_spill] sm:$0xff]  ;;  %v12594_v26 = vld [vmem:[#allocation137_spill] sm:$0xff] }
 0x244   :  { %12572 = vst [vmem:[#allocation74_spill] sm:$0xff] %v8293_v58  ;;  %12573 = vst [vmem:[#allocation75_spill] sm:$0xff] %v8295_v49  ;;  %v8318_v8 = vpop.eup %5076  ;;  %v12587_v9 = vmax.f32 %v12585_v47, %v12586_v28  ;;  %v12590_v37 = vmax.f32 %v12588_v63, %v12589_v18  ;;  %v12592_v61 = vld [vmem:[#allocation244_spill] sm:$0xff]  ;;  %v12595_v52 = vld [vmem:[#allocation245_spill] sm:$0xff] }
 0x245   :  { %12574 = vst [vmem:[#allocation188_spill] sm:$0xff] %v8297_v33  ;;  %12575 = vst [vmem:[#allocation189_spill] sm:$0xff] %v8300_v7  ;;  %v12593_v5 = vmax.f32 %v12591_v34, %v12592_v61  ;;  %v12596_v16 = vmax.f32 %v12594_v26, %v12595_v52  ;;  %v8336_v23 = vpop.eup %5078  ;;  %v12598_v47 = vld [vmem:[#allocation248_spill] sm:$0xff]  ;;  %v12601_v63 = vld [vmem:[#allocation249_spill] sm:$0xff] }
 0x246   :  { %12578 = vst [vmem:[#allocation163_spill] sm:$0xff] %v8304_v62  ;;  %12580 = vst [vmem:[#allocation148_spill] sm:$0xff] %v8309_v0  ;;  %v2228_v42 = vmax.f32 %v12587_v9, %v8271_v56  ;;  %v2242_v19 = vmax.f32 %v12590_v37, %v8274_v29  ;;  %v12599_v9 = vld [vmem:[#allocation246_spill] sm:$0xff]  ;;  %v12602_v37 = vld [vmem:[#allocation247_spill] sm:$0xff] }
 0x247   :  { %12581 = vst [vmem:[#allocation177_spill] sm:$0xff] %v8311_v46  ;;  %12582 = vst [vmem:[#allocation14_spill] sm:$0xff] %v8313_v27  ;;  %v2256_v22 = vmax.f32 %v12593_v5, %v8277_v35  ;;  %v2270_v21 = vmax.f32 %v12596_v16, %v8280_v44  ;;  %v12600_v43 = vmax.f32 %v12598_v47, %v12599_v9  ;;  %v12605_v34 = vld [vmem:[#allocation267_spill] sm:$0xff]  ;;  %v12608_v26 = vld [vmem:[#allocation138_spill] sm:$0xff] }
 0x248   :  { %12583 = vst [vmem:[#allocation29_spill] sm:$0xff] %v8316_v48  ;;  %12584 = vst [vmem:[#allocation17_spill] sm:$0xff] %v8318_v8  ;;  %v12603_v53 = vmax.f32 %v12601_v63, %v12602_v37  ;;  %v2307_v5 = vmax.f32 %v12605_v34, %v12604_v40  ;;  %v2321_v8 = vmax.f32 %v12607_v12, %v12606_v45  ;;  %v8358_v63 = vpop.eup %5080  ;;  %v12613_v34 = vld [vmem:[#allocation10_spill] sm:$0xff] }
 0x249   :  { %12597 = vst [vmem:[#allocation90_spill] sm:$0xff] %v8336_v23  ;;  %v2284_v10 = vmax.f32 %v12600_v43, %v8283_v6  ;;  %v1975_v16 = vmul.f32 %v12555_v2, %v12608_v26  ;;  %v1991_v23 = vmul.f32 %v12556_v13, %v12608_v26  ;;  %v2007_v43 = vmul.f32 %v12557_v24, %v12608_v26  ;;  %v8366_v12 = vpop.eup %5082 }
 0x24a   :  { %v2298_v36 = vmax.f32 %v12603_v53, %v8286_v25  ;;  %v2023_v47 = vmul.f32 %v12558_v31, %v12608_v26  ;;  %12609 = vst [vmem:[#allocation172_spill] sm:$0xff] %v8358_v63  ;;  %v2308_v53 = vmax.f32 %v2307_v5, %v8290_v50  ;;  %v2322_v40 = vmax.f32 %v2321_v8, %v8304_v62  ;;  %v12611_v62 = vld [vmem:[#allocation140_spill] sm:$0xff]  ;;  %v12612_v50 = vld [vmem:[#allocation141_spill] sm:$0xff] }
 0x24b   :  { %v2039_v45 = vmul.f32 %v12559_v60, %v12608_v26  ;;  %v2055_v2 = vmul.f32 %v12560_v4, %v12608_v26  ;;  %12610 = vst [vmem:[#allocation254_spill] sm:$0xff] %v8366_v12  ;;  %v2071_v13 = vmul.f32 %v12562_v1, %v12608_v26  ;;  %v2087_v24 = vmul.f32 %v12564_v39, %v12608_v26  ;;  %v12614_v1 = vld [vmem:[#allocation11_spill] sm:$0xff] }
 0x24c   :  { %v2103_v31 = vadd.f32 %v1975_v16, %v8021_v57  ;;  %v2119_v5 = vadd.f32 %v1991_v23, %v8024_v51  ;;  %v2309_v8 = vmax.f32 %v2308_v53, %v8293_v58  ;;  %v2323_v63 = vmax.f32 %v2322_v40, %v8309_v0 }
 0x24d   :  { %v2135_v60 = vadd.f32 %v2007_v43, %v8027_v20  ;;  %v2151_v4 = vadd.f32 %v2023_v47, %v12611_v62  ;;  %v2167_v12 = vadd.f32 %v2039_v45, %v12612_v50  ;;  %v2183_v11 = vadd.f32 %v2055_v2, %v12613_v34 }
 0x24e   :  { %v2199_v38 = vadd.f32 %v2071_v13, %v12614_v1  ;;  %v2215_v39 = vadd.f32 %v2087_v24, %v12615_v41  ;;  %v2310_v57 = vmax.f32 %v2309_v8, %v8295_v49  ;;  %v2324_v51 = vmax.f32 %v2323_v63, %v8311_v46  ;;  %v12618_v13 = vld [vmem:[#allocation44_spill] sm:$0xff]  ;;  %v12623_v1 = vld [vmem:[#allocation139_spill] sm:$0xff] }
 0x24f   :  { %v2229_v23 = vmax.f32 %v2228_v42, %v2103_v31  ;;  %v8384_v26 = vmax.f32 %v2242_v19, %v2119_v5  ;;  %v8386_v40 = vmax.f32 %v2256_v22, %v2135_v60  ;;  %v8388_v20 = vmax.f32 %v2270_v21, %v2151_v4 }
 0x250   :  { %v8390_v62 = vmax.f32 %v2284_v10, %v2167_v12  ;;  %v8392_v45 = vmax.f32 %v2298_v36, %v2183_v11  ;;  %v2311_v50 = vmax.f32 %v2310_v57, %v8297_v33  ;;  %v2325_v34 = vmax.f32 %v2324_v51, %v8313_v27 }
 0x251   :  { %v2343_v41 = vsub.f32 %v2103_v31, %v2229_v23  ;;  %v2359_v16 = vsub.f32 %v2119_v5, %v8384_v26  ;;  %v2375_v43 = vsub.f32 %v2135_v60, %v8386_v40  ;;  %v2391_v42 = vsub.f32 %v2151_v4, %v8388_v20  ;;  %v12622_v60 = vld [vmem:[#allocation79_spill] sm:$0xff] }
 0x252   :  { %12616 = vst [vmem:[#allocation175_spill] sm:$0xff] %v8390_v62  ;;  %12617 = vst [vmem:[#allocation255_spill] sm:$0xff] %v8392_v45  ;;  %v2407_v19 = vsub.f32 %v2167_v12, %v8390_v62  ;;  %v2423_v22 = vsub.f32 %v2183_v11, %v8392_v45  ;;  %v2312_v10 = vmax.f32 %v2311_v50, %v8300_v7  ;;  %v12621_v12 = vld [vmem:[#allocation47_spill] sm:$0xff]  ;;  %v12723_v62 = vld [vmem:[#allocation225_spill] sm:$0xff] }
 0x253   :  { %v2326_v36 = vmax.f32 %v2325_v34, %v8316_v48  ;;  %v2486_v21 = vmul.f32 1.442695, %v2343_v41  ;;  %v2518_v47 = vmul.f32 1.442695, %v2359_v16  ;;  %v2550_v63 = vmul.f32 1.442695, %v2375_v43 }
 0x254   :  { %v2582_v53 = vmul.f32 1.442695, %v2391_v42  ;;  %v2614_v2 = vmul.f32 1.442695, %v2407_v19  ;;  %v2329_v24 = vsub.f32 %v12618_v13, %v2229_v23  ;;  %v8404_v31 = vmax.f32 %v2312_v10, %v2199_v38  ;;  %v12624_v34 = vld [vmem:[#allocation173_spill] sm:$0xff] }
 0x255   :  { %v8406_v5 = vmax.f32 %v2326_v36, %v2215_v39  ;;  %5084 = vpow2.f32 %v2486_v21  ;;  %v2646_v8 = vmul.f32 1.442695, %v2423_v22  ;;  %v2331_v11 = vsub.f32 %v12621_v12, %v2229_v23  ;;  %v12629_v13 = vld [vmem:[#allocation197_spill] sm:$0xff] }
 0x256   :  { %12619 = vst [vmem:[#allocation213_spill] sm:$0xff] %v8404_v31  ;;  %5086 = vpow2.f32 %v2518_v47  ;;  %v2333_v4 = vsub.f32 %v12622_v60, %v2229_v23  ;;  %v2335_v57 = vsub.f32 %v12623_v1, %v2229_v23  ;;  %v2439_v51 = vsub.f32 %v2199_v38, %v8404_v31 }
 0x257   :  { %12620 = vst [vmem:[#allocation195_spill] sm:$0xff] %v8406_v5  ;;  %v2455_v50 = vsub.f32 %v2215_v39, %v8406_v5  ;;  %5088 = vpow2.f32 %v2550_v63  ;;  %v2337_v41 = vsub.f32 %v12624_v34, %v2229_v23  ;;  %v2339_v16 = vsub.f32 %v12586_v28, %v2229_v23  ;;  %v12625_v39 = vld [vmem:[#allocation45_spill] sm:$0xff]  ;;  %v12626_v63 = vld [vmem:[#allocation48_spill] sm:$0xff]  ;;  %v12627_v28 = vld [vmem:[#allocation83_spill] sm:$0xff] }
 0x258   :  { %5090 = vpow2.f32 %v2582_v53  ;;  %v2341_v43 = vsub.f32 %v8271_v56, %v2229_v23  ;;  %v2678_v42 = vmul.f32 1.442695, %v2439_v51  ;;  %v2458_v22 = vmul.f32 1.442695, %v2329_v24  ;;  %v12628_v23 = vld [vmem:[#allocation143_spill] sm:$0xff] }
 0x259   :  { %5092 = vpow2.f32 %v2614_v2  ;;  %v2710_v19 = vmul.f32 1.442695, %v2455_v50  ;;  %v2462_v10 = vmul.f32 1.442695, %v2331_v11  ;;  %v2466_v36 = vmul.f32 1.442695, %v2333_v4 }
 0x25a   :  { %5094 = vpow2.f32 %v2646_v8  ;;  %v2470_v21 = vmul.f32 1.442695, %v2335_v57  ;;  %v2474_v38 = vmul.f32 1.442695, %v2337_v41  ;;  %v2345_v47 = vsub.f32 %v12625_v39, %v8384_v26  ;;  %v12630_v50 = vld [vmem:[#allocation40_spill] sm:$0xff]  ;;  %v12631_v41 = vld [vmem:[#allocation42_spill] sm:$0xff] }
 0x25b   :  { %5096 = vpow2.f32 %v2678_v42  ;;  %v2347_v53 = vsub.f32 %v12626_v63, %v8384_v26  ;;  %v2349_v56 = vsub.f32 %v12627_v28, %v8384_v26  ;;  %v2351_v2 = vsub.f32 %v12628_v23, %v8384_v26 }
 0x25c   :  { %5098 = vpow2.f32 %v2710_v19  ;;  %v2353_v24 = vsub.f32 %v12629_v13, %v8384_v26  ;;  %v2355_v8 = vsub.f32 %v12589_v18, %v8384_v26  ;;  %v2357_v12 = vsub.f32 %v8274_v29, %v8384_v26  ;;  %v12633_v29 = vld [vmem:[#allocation114_spill] sm:$0xff]  ;;  %v12635_v19 = vld [vmem:[#allocation149_spill] sm:$0xff] }
 0x25d   :  { %5100 = vpow2.f32 %v2458_v22  ;;  %v2478_v11 = vmul.f32 1.442695, %v2339_v16  ;;  %v2482_v4 = vmul.f32 1.442695, %v2341_v43  ;;  %v2490_v1 = vmul.f32 1.442695, %v2345_v47 }
 0x25e   :  { %5102 = vpow2.f32 %v2462_v10  ;;  %v2494_v51 = vmul.f32 1.442695, %v2347_v53  ;;  %v2328_v34 = vsub.f32 %v12630_v50, %v8192_v17  ;;  %v2330_v18 = vsub.f32 %v12631_v41, %v8192_v17  ;;  %v12634_v16 = vld [vmem:[#allocation125_spill] sm:$0xff]  ;;  %v12638_v47 = vld [vmem:[#allocation67_spill] sm:$0xff] }
 0x25f   :  { %v8430_v60 = vpop.eup %5084  ;;  %5104 = vpow2.f32 %v2466_v36  ;;  %v2332_v26 = vsub.f32 %v12633_v29, %v8192_v17  ;;  %v2334_v43 = vsub.f32 %v12634_v16, %v8192_v17  ;;  %v2336_v22 = vsub.f32 %v12635_v19, %v8192_v17 }
 0x260   :  { %v8432_v57 = vpop.eup %5086  ;;  %5106 = vpow2.f32 %v2470_v21  ;;  %v2498_v36 = vmul.f32 1.442695, %v2349_v56  ;;  %v12637_v21 = vld [vmem:[#allocation123_spill] sm:$0xff]  ;;  %v2340_v63 = vsub.f32 %v12638_v47, %v8192_v17  ;;  %v2502_v53 = vmul.f32 1.442695, %v2351_v2  ;;  %v12642_v56 = vld [vmem:[#allocation41_spill] sm:$0xff] }
 0x261   :  { %v8438_v42 = vpop.eup %5088  ;;  %5108 = vpow2.f32 %v2474_v38  ;;  %v2338_v39 = vsub.f32 %v12637_v21, %v8192_v17  ;;  %v2506_v28 = vmul.f32 1.442695, %v2353_v24  ;;  %v2510_v23 = vmul.f32 1.442695, %v2355_v8  ;;  %v12643_v17 = vld [vmem:[#allocation43_spill] sm:$0xff]  ;;  %v12646_v8 = vld [vmem:[#allocation126_spill] sm:$0xff] }
 0x262   :  { %12632 = vst [vmem:[#allocation33_spill] sm:$0xff] %v8438_v42  ;;  %v8446_v10 = vpop.eup %5090  ;;  %5110 = vpow2.f32 %v2478_v11  ;;  %v2514_v50 = vmul.f32 1.442695, %v2357_v12  ;;  %v2456_v41 = vmul.f32 1.442695, %v2328_v34  ;;  %v2344_v16 = vsub.f32 %v12642_v56, %v8194_v55 }
 0x263   :  { %12636 = vst [vmem:[#allocation94_spill] sm:$0xff] %v8446_v10  ;;  %v8452_v38 = vpop.eup %5092  ;;  %5112 = vpow2.f32 %v2482_v4  ;;  %v2460_v29 = vmul.f32 1.442695, %v2330_v18  ;;  %v2346_v19 = vsub.f32 %v12643_v17, %v8194_v55  ;;  %v12644_v4 = vld [vmem:[#allocation115_spill] sm:$0xff]  ;;  %v2350_v12 = vsub.f32 %v12646_v8, %v8194_v55  ;;  %v12649_v17 = vld [vmem:[#allocation150_spill] sm:$0xff] }
 0x264   :  { %12639 = vst [vmem:[#allocation30_spill] sm:$0xff] %v8452_v38  ;;  %v8454_v13 = vpop.eup %5094  ;;  %5114 = vpow2.f32 %v2490_v1  ;;  %v2348_v2 = vsub.f32 %v12644_v4, %v8194_v55  ;;  %v12647_v1 = vld [vmem:[#allocation165_spill] sm:$0xff]  ;;  %v2464_v47 = vmul.f32 1.442695, %v2332_v26  ;;  %v2468_v56 = vmul.f32 1.442695, %v2334_v43 }
 0x265   :  { %12640 = vst [vmem:[#allocation210_spill] sm:$0xff] %v8454_v13  ;;  %v8456_v11 = vpop.eup %5096  ;;  %5116 = vpow2.f32 %v2494_v51  ;;  %v2352_v34 = vsub.f32 %v12647_v1, %v8194_v55  ;;  %v12648_v51 = vld [vmem:[#allocation124_spill] sm:$0xff]  ;;  %v2356_v4 = vsub.f32 %v12649_v17, %v8194_v55  ;;  %v2480_v8 = vmul.f32 1.442695, %v2340_v63  ;;  %v12650_v26 = vld [vmem:[#allocation130_spill] sm:$0xff]  ;;  %v12651_v43 = vld [vmem:[#allocation131_spill] sm:$0xff] }
 0x266   :  { %12641 = vst [vmem:[#allocation161_spill] sm:$0xff] %v8456_v11  ;;  %v8464_v24 = vpop.eup %5098  ;;  %5118 = vpow2.f32 %v2498_v36  ;;  %v2354_v18 = vsub.f32 %v12648_v51, %v8194_v55  ;;  %v2472_v36 = vmul.f32 1.442695, %v2336_v22  ;;  %v2488_v51 = vmul.f32 1.442695, %v2344_v16  ;;  %v12652_v22 = vld [vmem:[#allocation132_spill] sm:$0xff] }
 0x267   :  { %12645 = vst [vmem:[#allocation24_spill] sm:$0xff] %v8464_v24  ;;  %v8472_v21 = vpop.eup %5100  ;;  %5120 = vpow2.f32 %v2502_v53  ;;  %v2476_v24 = vmul.f32 1.442695, %v2338_v39  ;;  %v2492_v48 = vmul.f32 1.442695, %v2346_v19  ;;  %v2361_v55 = vsub.f32 %v12650_v26, %v8386_v40  ;;  %v12654_v19 = vld [vmem:[#allocation174_spill] sm:$0xff] }
 0x268   :  { %v8476_v11 = vpop.eup %5102  ;;  %5122 = vpow2.f32 %v2506_v28  ;;  %v2363_v28 = vsub.f32 %v12651_v43, %v8386_v40  ;;  %v2365_v39 = vsub.f32 %v12652_v22, %v8386_v40  ;;  %v2496_v26 = vmul.f32 1.442695, %v2348_v2 }
 0x269   :  { %v8478_v13 = vpop.eup %5104  ;;  %v2719_v1 = vadd.f32 %v8476_v11, %v8472_v21  ;;  %5124 = vpow2.f32 %v2510_v23  ;;  %v12653_v23 = vld [vmem:[#allocation144_spill] sm:$0xff]  ;;  %v2371_v43 = vsub.f32 %v12592_v61, %v8386_v40  ;;  %v2373_v22 = vsub.f32 %v8277_v35, %v8386_v40  ;;  %v12655_v35 = vld [vmem:[#allocation133_spill] sm:$0xff] }
 0x26a   :  { %v8482_v53 = vpop.eup %5106  ;;  %5126 = vpow2.f32 %v2514_v50  ;;  %v2367_v16 = vsub.f32 %v12653_v23, %v8386_v40  ;;  %v2369_v50 = vsub.f32 %v12654_v19, %v8386_v40  ;;  %v2504_v23 = vmul.f32 1.442695, %v2352_v34  ;;  %v12656_v34 = vld [vmem:[#allocation134_spill] sm:$0xff] }
 0x26b   :  { %v8490_v63 = vpop.eup %5108  ;;  %v2720_v17 = vadd.f32 %v8478_v13, %v2719_v1  ;;  %5128 = vpow2.f32 %v2456_v41  ;;  %v2500_v1 = vmul.f32 1.442695, %v2350_v12  ;;  %v2508_v19 = vmul.f32 1.442695, %v2354_v18 }
 0x26c   :  { %v8497_v27 = vpop.eup %5110  ;;  %5130 = vpow2.f32 %v2460_v29  ;;  %v2512_v5 = vmul.f32 1.442695, %v2356_v4  ;;  %v2522_v29 = vmul.f32 1.442695, %v2361_v55  ;;  %v2526_v38 = vmul.f32 1.442695, %v2363_v28 }
 0x26d   :  { %v8503_v46 = vpop.eup %5112  ;;  %v2721_v41 = vadd.f32 %v8482_v53, %v2720_v17  ;;  %5132 = vpow2.f32 %v2464_v47  ;;  %v2377_v40 = vsub.f32 %v12655_v35, %v8388_v20  ;;  %v2379_v18 = vsub.f32 %v12656_v34, %v8388_v20  ;;  %v12657_v47 = vld [vmem:[#allocation135_spill] sm:$0xff]  ;;  %v12658_v55 = vld [vmem:[#allocation145_spill] sm:$0xff]  ;;  %v12659_v17 = vld [vmem:[#allocation198_spill] sm:$0xff] }
 0x26e   :  { %v8506_v0 = vpop.eup %5114  ;;  %5134 = vpow2.f32 %v2468_v56  ;;  %v2381_v56 = vsub.f32 %v12657_v47, %v8388_v20  ;;  %v2383_v28 = vsub.f32 %v12658_v55, %v8388_v20  ;;  %v2387_v34 = vsub.f32 %v12595_v52, %v8388_v20 }
 0x26f   :  { %v8508_v2 = vpop.eup %5116  ;;  %v2722_v61 = vadd.f32 %v8490_v63, %v2721_v41  ;;  %5136 = vpow2.f32 %v2472_v36  ;;  %v2385_v41 = vsub.f32 %v12659_v17, %v8388_v20  ;;  %v2389_v47 = vsub.f32 %v8280_v44, %v8388_v20 }
 0x270   :  { %v8513_v7 = vpop.eup %5118  ;;  %v2733_v12 = vadd.f32 %v8508_v2, %v8506_v0  ;;  %5138 = vpow2.f32 %v2476_v24  ;;  %v2534_v55 = vmul.f32 1.442695, %v2367_v16  ;;  %v2546_v44 = vmul.f32 1.442695, %v2373_v22  ;;  %v12660_v16 = vld [vmem:[#allocation109_spill] sm:$0xff]  ;;  %v12662_v22 = vld [vmem:[#allocation110_spill] sm:$0xff] }
 0x271   :  { %v8521_v4 = vpop.eup %5120  ;;  %v2723_v36 = vadd.f32 %v8497_v27, %v2722_v61  ;;  %5140 = vpow2.f32 %v2480_v8  ;;  %v2530_v61 = vmul.f32 1.442695, %v2365_v39  ;;  %v8546_v20 = vmul.f32 1.442695, %v2377_v40  ;;  %v12663_v40 = vld [vmem:[#allocation116_spill] sm:$0xff] }
 0x272   :  { %v8528_v35 = vpop.eup %5122  ;;  %v2734_v24 = vadd.f32 %v8513_v7, %v2733_v12  ;;  %5142 = vpow2.f32 %v2488_v51  ;;  %v2538_v12 = vmul.f32 1.442695, %v2369_v50  ;;  %v2542_v51 = vmul.f32 1.442695, %v2371_v43 }
 0x273   :  { %v8535_v33 = vpop.eup %5124  ;;  %v2724_v8 = vadd.f32 %v8503_v46, %v2723_v36  ;;  %5144 = vpow2.f32 %v2492_v48  ;;  %v8551_v39 = vmul.f32 1.442695, %v2379_v18  ;;  %v2360_v50 = vsub.f32 %v12660_v16, %v8198_v14  ;;  %v12665_v18 = vld [vmem:[#allocation128_spill] sm:$0xff]  ;;  %v12666_v16 = vld [vmem:[#allocation166_spill] sm:$0xff] }
 0x274   :  { %v8538_v49 = vpop.eup %5126  ;;  %v2735_v17 = vadd.f32 %v8521_v4, %v2734_v24  ;;  %5146 = vpow2.f32 %v2496_v26  ;;  %v2364_v24 = vsub.f32 %v12663_v40, %v8198_v14  ;;  %v2368_v31 = vsub.f32 %v12666_v16, %v8198_v14  ;;  %v12669_v40 = vld [vmem:[#allocation151_spill] sm:$0xff] }
 0x275   :  { %v8541_v58 = vpop.eup %5128  ;;  %v8544_v52 = vadd.f32 %v8430_v60, %v2724_v8  ;;  %5148 = vpow2.f32 %v2500_v1  ;;  %v2362_v1 = vsub.f32 %v12662_v22, %v8198_v14  ;;  %v12668_v22 = vld [vmem:[#allocation239_spill] sm:$0xff]  ;;  %v2372_v37 = vsub.f32 %v12669_v40, %v8198_v14 }
 0x276   :  { %v8548_v36 = vpop.eup %5130  ;;  %v2736_v48 = vadd.f32 %v8528_v35, %v2735_v17  ;;  %5150 = vpow2.f32 %v2504_v23  ;;  %v2366_v17 = vsub.f32 %v12665_v18, %v8198_v14  ;;  %v2370_v25 = vsub.f32 %v12668_v22, %v8198_v14 }
 0x277   :  { %v8555_v26 = vpop.eup %5132  ;;  %5152 = vrcp.f32 %v8544_v52  ;;  %v2712_v43 = vadd.f32 %v8548_v36, %v8541_v58  ;;  %v2566_v18 = vmul.f32 1.442695, %v2383_v28  ;;  %v8591_v14 = vmul.f32 1.442695, %v2389_v47  ;;  %v12680_v47 = vld [vmem:[#allocation112_spill] sm:$0xff] }
 0x278   :  { %12661 = vst [vmem:[#allocation256_spill] sm:$0xff] %v8555_v26  ;;  %v8564_v8 = vpop.eup %5134  ;;  %v2737_v23 = vadd.f32 %v8535_v33, %v2736_v48  ;;  %5154 = vpow2.f32 %v2508_v19  ;;  %v2562_v48 = vmul.f32 1.442695, %v2381_v56 }
 0x279   :  { %12664 = vst [vmem:[#allocation27_spill] sm:$0xff] %v8564_v8  ;;  %v8571_v3 = vpop.eup %5136  ;;  %v2713_v10 = vadd.f32 %v8555_v26, %v2712_v43  ;;  %5156 = vpow2.f32 %v2512_v5  ;;  %v2570_v43 = vmul.f32 1.442695, %v2385_v41  ;;  %v8584_v5 = vmul.f32 1.442695, %v2387_v34  ;;  %12674 = vst [vmem:[#allocation164_spill] sm:$0xff] %v8591_v14 }
 0x27a   :  { %12667 = vst [vmem:[#allocation78_spill] sm:$0xff] %v8571_v3  ;;  %v8578_v45 = vpop.eup %5138  ;;  %v2738_v19 = vadd.f32 %v8538_v49, %v2737_v23  ;;  %5158 = vpow2.f32 %v2522_v29  ;;  %v8593_v23 = vmul.f32 1.442695, %v2360_v50  ;;  %v12725_v14 = vld [vmem:[#allocation223_spill] sm:$0xff] }
 0x27b   :  { %12670 = vst [vmem:[#allocation80_spill] sm:$0xff] %v8578_v45  ;;  %v8581_v42 = vpop.eup %5140  ;;  %v2714_v16 = vadd.f32 %v8564_v8, %v2713_v10  ;;  %5160 = vpow2.f32 %v2526_v38  ;;  %12672 = vst [vmem:[#allocation192_spill] sm:$0xff] %v8584_v5  ;;  %v8598_v10 = vmul.f32 1.442695, %v2362_v1  ;;  %v12678_v38 = vld [vmem:[#allocation111_spill] sm:$0xff]  ;;  %v12719_v1 = vld [vmem:[#allocation105_spill] sm:$0xff] }
 0x27c   :  { %12671 = vst [vmem:[#allocation191_spill] sm:$0xff] %v8581_v42  ;;  %v8586_v6 = vpop.eup %5142  ;;  %v8589_v22 = vadd.f32 %v8432_v57, %v2738_v19  ;;  %5162 = vpow2.f32 %v2530_v61  ;;  %12675 = vst [vmem:[#allocation217_spill] sm:$0xff] %v8593_v23  ;;  %v2376_v28 = vsub.f32 %v12678_v38, %v8200_v15  ;;  %v2378_v61 = vsub.f32 %v12680_v47, %v8200_v15 }
 0x27d   :  { %12673 = vst [vmem:[#allocation216_spill] sm:$0xff] %v8586_v6  ;;  %v8595_v29 = vpop.eup %5144  ;;  %v2715_v56 = vadd.f32 %v8571_v3, %v2714_v16  ;;  %5164 = vpow2.f32 %v2534_v55  ;;  %12677 = vst [vmem:[#allocation95_spill] sm:$0xff] %v8598_v10  ;;  %v8628_v16 = vmul.f32 1.442695, %v2366_v17 }
 0x27e   :  { %12676 = vst [vmem:[#allocation258_spill] sm:$0xff] %v8595_v29  ;;  %v8602_v41 = vpop.eup %5146  ;;  %5166 = vrcp.f32 %v8589_v22  ;;  %v2726_v34 = vadd.f32 %v8595_v29, %v8586_v6 }
 0x27f   :  { %12679 = vst [vmem:[#allocation36_spill] sm:$0xff] %v8602_v41  ;;  %v8611_v19 = vpop.eup %5148  ;;  %v2716_v55 = vadd.f32 %v8578_v45, %v2715_v56  ;;  %5168 = vpow2.f32 %v2538_v12  ;;  %v8626_v56 = vmul.f32 1.442695, %v2364_v24  ;;  %12687 = vst [vmem:[#allocation99_spill] sm:$0xff] %v8628_v16  ;;  %v8645_v24 = vmul.f32 1.442695, %v2372_v37 }
 0x280   :  { %12682 = vst [vmem:[#allocation37_spill] sm:$0xff] %v8611_v19  ;;  %v8618_v9 = vpop.eup %5150  ;;  %v2727_v23 = vadd.f32 %v8602_v41, %v2726_v34  ;;  %5170 = vpow2.f32 %v2542_v51  ;;  %v8635_v34 = vmul.f32 1.442695, %v2368_v31 }
 0x281   :  { %12685 = vst [vmem:[#allocation257_spill] sm:$0xff] %v8618_v9  ;;  %v5153_v50 = vpop.eup %5152  ;;  %v2717_v12 = vadd.f32 %v8581_v42, %v2716_v55  ;;  %5172 = vpow2.f32 %v2546_v44  ;;  %12686 = vst [vmem:[#allocation98_spill] sm:$0xff] %v8626_v56  ;;  %v8643_v44 = vmul.f32 1.442695, %v2370_v25  ;;  %v8655_v55 = vmul.f32 1.442695, %v2378_v61 }
 0x282   :  { %v8630_v10 = vpop.eup %5154  ;;  %v2841_v38 = vmul.f32 %v5153_v50, %v8544_v52  ;;  %v2728_v51 = vadd.f32 %v8611_v19, %v2727_v23  ;;  %5174 = vpow2.f32 %v8546_v20  ;;  %12689 = vst [vmem:[#allocation207_spill] sm:$0xff] %v8635_v34  ;;  %12692 = vst [vmem:[#allocation158_spill] sm:$0xff] %v8645_v24  ;;  %v8650_v20 = vmul.f32 1.442695, %v2376_v28  ;;  %v12714_v25 = vld [vmem:[#allocation51_spill] sm:$0xff]  ;;  %v12722_v56 = vld [vmem:[#allocation221_spill] sm:$0xff] }
 0x283   :  { %12688 = vst [vmem:[#allocation206_spill] sm:$0xff] %v8630_v10  ;;  %v8637_v47 = vpop.eup %5156  ;;  %v8640_v40 = vadd.f32 %v8268_v32, %v2717_v12  ;;  %5176 = vpow2.f32 %v8551_v39  ;;  %12691 = vst [vmem:[#allocation120_spill] sm:$0xff] %v8643_v44  ;;  %v12718_v44 = vld [vmem:[#allocation107_spill] sm:$0xff]  ;;  %v12733_v42 = vld [vmem:[#allocation61_spill] sm:$0xff] }
 0x284   :  { %12690 = vst [vmem:[#allocation119_spill] sm:$0xff] %v8637_v47  ;;  %v8647_v17 = vpop.eup %5158  ;;  %v2857_v52 = vsub.f32 2.0, %v2841_v38  ;;  %v2729_v23 = vadd.f32 %v8618_v9, %v2728_v51  ;;  %5178 = vpow2.f32 %v2562_v48  ;;  %12694 = vst [vmem:[#allocation178_spill] sm:$0xff] %v8650_v20  ;;  %v12715_v20 = vld [vmem:[#allocation55_spill] sm:$0xff] }
 0x285   :  { %12693 = vst [vmem:[#allocation170_spill] sm:$0xff] %v8647_v17  ;;  %v8652_v31 = vpop.eup %5160  ;;  %5180 = vrcp.f32 %v8640_v40  ;;  %12696 = vst [vmem:[#allocation31_spill] sm:$0xff] %v8655_v55  ;;  %v12730_v19 = vld [vmem:[#allocation19_spill] sm:$0xff] }
 0x286   :  { %12695 = vst [vmem:[#allocation88_spill] sm:$0xff] %v8652_v31  ;;  %v8661_v59 = vpop.eup %5162  ;;  %v2873_v38 = vmul.f32 %v5153_v50, %v2857_v52  ;;  %v2730_v51 = vadd.f32 %v8630_v10, %v2729_v23  ;;  %v8666_v48 = vadd.f32 %v8652_v31, %v8647_v17  ;;  %5182 = vpow2.f32 %v2566_v18  ;;  %v12727_v10 = vld [vmem:[#allocation18_spill] sm:$0xff] }
 0x287   :  { %12699 = vst [vmem:[#allocation89_spill] sm:$0xff] %v8661_v59  ;;  %v8668_v28 = vpop.eup %5164  ;;  %5184 = vpow2.f32 %v2570_v43  ;;  %v12726_v59 = vld [vmem:[#allocation227_spill] sm:$0xff] }
 0x288   :  { %12700 = vst [vmem:[#allocation92_spill] sm:$0xff] %v8666_v48  ;;  %12701 = vst [vmem:[#allocation252_spill] sm:$0xff] %v8668_v28  ;;  %v5167_v50 = vpop.eup %5166  ;;  %v2889_v52 = vmul.f32 %v8472_v21, %v2873_v38  ;;  %v2891_v23 = vmul.f32 %v8476_v11, %v2873_v38  ;;  %v2893_v31 = vmul.f32 %v8478_v13, %v2873_v38  ;;  %v12712_v13 = vld [vmem:[#allocation49_spill] sm:$0xff] }
 0x289   :  { %v8680_v18 = vmul.f32 %v8482_v53, %v2873_v38  ;;  %v8682_v43 = vpop.eup %5168  ;;  %v8685_v55 = vmul.f32 %v8490_v63, %v2873_v38  ;;  %v8688_v39 = vmul.f32 %v8497_v27, %v2873_v38  ;;  %v8691_v37 = vmul.f32 %v8503_v46, %v2873_v38  ;;  %v12713_v53 = vld [vmem:[#allocation53_spill] sm:$0xff]  ;;  %v12717_v27 = vld [vmem:[#allocation103_spill] sm:$0xff] }
 0x28a   :  { %12706 = vst [vmem:[#allocation253_spill] sm:$0xff] %v8682_v43  ;;  %v8694_v21 = vmul.f32 %v8430_v60, %v2873_v38  ;;  %v8696_v11 = vpop.eup %5170  ;;  %v3017_v17 = vmul.f32 %v2889_v52, %v12712_v13  ;;  %v3019_v12 = vmul.f32 %v2889_v52, %v12713_v53  ;;  %v3081_v61 = vmul.f32 %v2891_v23, %v12714_v25  ;;  %v12720_v38 = vld [vmem:[#allocation113_spill] sm:$0xff] }
 0x28b   :  { %12705 = vst [vmem:[#allocation196_spill] sm:$0xff] %v8680_v18  ;;  %12707 = vst [vmem:[#allocation201_spill] sm:$0xff] %v8685_v55  ;;  %v3083_v63 = vmul.f32 %v2891_v23, %v12715_v20  ;;  %v8702_v54 = vpop.eup %5172  ;;  %v3209_v24 = vmul.f32 %v2893_v31, %v12717_v27  ;;  %v3211_v46 = vmul.f32 %v2893_v31, %v12718_v44 }
 0x28c   :  { %12708 = vst [vmem:[#allocation215_spill] sm:$0xff] %v8688_v39  ;;  %12709 = vst [vmem:[#allocation93_spill] sm:$0xff] %v8691_v37  ;;  %v3337_v60 = vmul.f32 %v8680_v18, %v12719_v1  ;;  %v3339_v34 = vmul.f32 %v8680_v18, %v12720_v38  ;;  %v3145_v16 = vadd.f32 %v3081_v61, %v3017_v17  ;;  %v12732_v18 = vld [vmem:[#allocation57_spill] sm:$0xff] }
 0x28d   :  { %12710 = vst [vmem:[#allocation34_spill] sm:$0xff] %v8694_v21  ;;  %12711 = vst [vmem:[#allocation35_spill] sm:$0xff] %v8696_v11  ;;  %v8710_v11 = vpop.eup %5174  ;;  %v3147_v15 = vadd.f32 %v3083_v63, %v3019_v12  ;;  %v3465_v43 = vmul.f32 %v8685_v55, %v12722_v56  ;;  %v3593_v5 = vmul.f32 %v8688_v39, %v12725_v14 }
 0x28e   :  { %12716 = vst [vmem:[#allocation32_spill] sm:$0xff] %v8702_v54  ;;  %12721 = vst [vmem:[#allocation214_spill] sm:$0xff] %v8710_v11  ;;  %v3467_v54 = vmul.f32 %v8685_v55, %v12723_v62  ;;  %v8716_v28 = vpop.eup %5176  ;;  %v3595_v48 = vmul.f32 %v8688_v39, %v12726_v59  ;;  %v3721_v9 = vmul.f32 %v8691_v37, %v12727_v10  ;;  %v12728_v11 = vld [vmem:[#allocation250_spill] sm:$0xff] }
 0x28f   :  { %12724 = vst [vmem:[#allocation259_spill] sm:$0xff] %v8716_v28  ;;  %v3723_v17 = vmul.f32 %v8691_v37, %v12728_v11  ;;  %v8726_v12 = vpop.eup %5178  ;;  %v3273_v61 = vadd.f32 %v3209_v24, %v3145_v16  ;;  %v3275_v63 = vadd.f32 %v3211_v46, %v3147_v15  ;;  %v3849_v41 = vmul.f32 %v8694_v21, %v12730_v19  ;;  %v12731_v28 = vld [vmem:[#allocation251_spill] sm:$0xff] }
 0x290   :  { %12729 = vst [vmem:[#allocation97_spill] sm:$0xff] %v8726_v12  ;;  %v3851_v29 = vmul.f32 %v8694_v21, %v12731_v28  ;;  %v5181_v6 = vpop.eup %5180  ;;  %v2843_v55 = vmul.f32 %v5167_v50, %v8589_v22  ;;  %v2731_v39 = vadd.f32 %v8637_v47, %v2730_v51  ;;  %v3021_v32 = vmul.f32 %v2889_v52, %v12732_v18  ;;  %v12735_v24 = vld [vmem:[#allocation59_spill] sm:$0xff]  ;;  %v12738_v47 = vld [vmem:[#allocation121_spill] sm:$0xff] }
 0x291   :  { %v3023_v45 = vmul.f32 %v2889_v52, %v12733_v42  ;;  %v8736_v37 = vpop.eup %5182  ;;  %v3401_v12 = vadd.f32 %v3337_v60, %v3273_v61  ;;  %v3403_v16 = vadd.f32 %v3339_v34, %v3275_v63  ;;  %v2840_v15 = vmul.f32 %v5181_v6, %v8640_v40  ;;  %v12737_v22 = vld [vmem:[#allocation63_spill] sm:$0xff]  ;;  %v12739_v34 = vld [vmem:[#allocation85_spill] sm:$0xff] }
 0x292   :  { %12734 = vst [vmem:[#allocation25_spill] sm:$0xff] %v8736_v37  ;;  %v3085_v46 = vmul.f32 %v2891_v23, %v12735_v24  ;;  %v8740_v3 = vpop.eup %5184  ;;  %v2859_v21 = vsub.f32 2.0, %v2843_v55  ;;  %v8743_v8 = vadd.f32 %v8306_v30, %v2731_v39  ;;  %v3087_v51 = vmul.f32 %v2891_v23, %v12737_v22 }
 0x293   :  { %12736 = vst [vmem:[#allocation28_spill] sm:$0xff] %v8740_v3  ;;  %v3213_v18 = vmul.f32 %v2893_v31, %v12738_v47  ;;  %v3529_v26 = vadd.f32 %v3465_v43, %v3401_v12  ;;  %v3531_v52 = vadd.f32 %v3467_v54, %v3403_v16  ;;  %v2856_v42 = vsub.f32 2.0, %v2840_v15 }
 0x294   :  { %v3149_v37 = vadd.f32 %v3085_v46, %v3021_v32  ;;  %v2875_v60 = vmul.f32 %v5167_v50, %v2859_v21  ;;  %5186 = vrcp.f32 %v8743_v8  ;;  %v8748_v40 = vadd.f32 %v3087_v51, %v3023_v45 }
 0x295   :  { %v8751_v61 = vmul.f32 %v2893_v31, %v12739_v34  ;;  %v3657_v55 = vadd.f32 %v3593_v5, %v3529_v26  ;;  %v3659_v63 = vadd.f32 %v3595_v48, %v3531_v52  ;;  %v2872_v39 = vmul.f32 %v5181_v6, %v2856_v42 }
 0x296   :  { %v8753_v3 = vadd.f32 %v3213_v18, %v3149_v37  ;;  %v8756_v23 = vmul.f32 %v8506_v0, %v2875_v60  ;;  %v8759_v54 = vmul.f32 %v8508_v2, %v2875_v60  ;;  %v8762_v32 = vmul.f32 %v8513_v7, %v2875_v60 }
 0x297   :  { %v8765_v45 = vmul.f32 %v8521_v4, %v2875_v60  ;;  %v3785_v50 = vadd.f32 %v3721_v9, %v3657_v55  ;;  %v3787_v31 = vadd.f32 %v3723_v17, %v3659_v63  ;;  %v8768_v26 = vmul.f32 %v8528_v35, %v2875_v60 }
 0x298   :  { %v8771_v6 = vmul.f32 %v8535_v33, %v2875_v60  ;;  %v8774_v0 = vmul.f32 %v8538_v49, %v2875_v60  ;;  %v8777_v42 = vmul.f32 %v8432_v57, %v2875_v60  ;;  %v3025_v7 = vmul.f32 %v8756_v23, %v12712_v13  ;;  %v12768_v13 = vld [vmem:[#allocation226_spill] sm:$0xff] }
 0x299   :  { %v3027_v2 = vmul.f32 %v8756_v23, %v12713_v53  ;;  %v3913_v9 = vadd.f32 %v3849_v41, %v3785_v50  ;;  %v3915_v4 = vadd.f32 %v3851_v29, %v3787_v31  ;;  %v3089_v35 = vmul.f32 %v8759_v54, %v12714_v25  ;;  %v12745_v50 = vld [vmem:[#allocation256_spill] sm:$0xff] }
 0x29a   :  { %12740 = vst [vmem:[#allocation81_spill] sm:$0xff] %v8771_v6  ;;  %12741 = vst [vmem:[#allocation82_spill] sm:$0xff] %v8774_v0  ;;  %v3091_v33 = vmul.f32 %v8759_v54, %v12715_v20  ;;  %v3217_v49 = vmul.f32 %v8762_v32, %v12717_v27  ;;  %v3219_v57 = vmul.f32 %v8762_v32, %v12718_v44  ;;  %v12767_v44 = vld [vmem:[#allocation222_spill] sm:$0xff] }
 0x29b   :  { %12742 = vst [vmem:[#allocation193_spill] sm:$0xff] %v8777_v42  ;;  %v3345_v5 = vmul.f32 %v8765_v45, %v12719_v1  ;;  %v3347_v37 = vmul.f32 %v8765_v45, %v12720_v38  ;;  %v5000_v41 = vpack.c.bf16 %v3915_v4, %v3913_v9  ;;  %v3153_v29 = vadd.f32 %v3089_v35, %v3025_v7  ;;  %v12747_v9 = vld [vmem:[#allocation27_spill] sm:$0xff]  ;;  %v12749_v35 = vld [vmem:[#allocation78_spill] sm:$0xff]  ;;  %v12766_v38 = vld [vmem:[#allocation224_spill] sm:$0xff] }
 0x29c   :  { %v3155_v48 = vadd.f32 %v3091_v33, %v3027_v2  ;;  %v3473_v18 = vmul.f32 %v8768_v26, %v12722_v56  ;;  %v3475_v43 = vmul.f32 %v8768_v26, %v12723_v62  ;;  %v3601_v21 = vmul.f32 %v8771_v6, %v12725_v14  ;;  %v12765_v62 = vld [vmem:[#allocation220_spill] sm:$0xff] }
 0x29d   :  { %v3603_v17 = vmul.f32 %v8771_v6, %v12726_v59  ;;  %v3729_v12 = vmul.f32 %v8774_v0, %v12727_v10  ;;  %5001 = vmatprep.subr.bf16.mxu0 %v5000_v41  ;;  %v3281_v16 = vadd.f32 %v3217_v49, %v3153_v29  ;;  %v3731_v46 = vmul.f32 %v8774_v0, %v12728_v11  ;;  %v12751_v49 = vld [vmem:[#allocation80_spill] sm:$0xff]  ;;  %v12753_v41 = vld [vmem:[#allocation191_spill] sm:$0xff]  ;;  %v12762_v11 = vld [vmem:[#allocation106_spill] sm:$0xff] }
 0x29e   :  { %v3283_v15 = vadd.f32 %v3219_v57, %v3155_v48  ;;  %v3857_v51 = vmul.f32 %v8777_v42, %v12730_v19  ;;  %v5187_v52 = vpop.eup %5186  ;;  %v3859_v60 = vmul.f32 %v8777_v42, %v12731_v28  ;;  %v8812_v55 = vmul.f32 %v8541_v58, %v2872_v39  ;;  %v12755_v29 = vld [vmem:[#allocation171_spill] sm:$0xff]  ;;  %v12757_v48 = vld [vmem:[#allocation46_spill] sm:$0xff] }
 0x29f   :  { %v8815_v63 = vmul.f32 %v8548_v36, %v2872_v39  ;;  %v8818_v31 = vmul.f32 %v12745_v50, %v2872_v39  ;;  %v3409_v7 = vadd.f32 %v3345_v5, %v3281_v16  ;;  %v8821_v4 = vmul.f32 %v12747_v9, %v2872_v39  ;;  %v12758_v16 = vld [vmem:[#allocation52_spill] sm:$0xff]  ;;  %v12759_v9 = vld [vmem:[#allocation50_spill] sm:$0xff] }
 0x2a0   :  { %12743 = vst [vmem:[#allocation194_spill] sm:$0xff] %v8812_v55  ;;  %v3411_v2 = vadd.f32 %v3347_v37, %v3283_v15  ;;  %v8824_v33 = vmul.f32 %v12749_v35, %v2872_v39  ;;  %v8827_v57 = vmul.f32 %v12751_v49, %v2872_v39  ;;  %v8830_v58 = vmul.f32 %v12753_v41, %v2872_v39  ;;  %v12760_v28 = vld [vmem:[#allocation54_spill] sm:$0xff] }
 0x2a1   :  { %12744 = vst [vmem:[#allocation218_spill] sm:$0xff] %v8815_v63  ;;  %12746 = vst [vmem:[#allocation263_spill] sm:$0xff] %v8818_v31  ;;  %v8833_v36 = vmul.f32 %v12755_v29, %v2872_v39  ;;  %v3016_v50 = vmul.f32 %v8812_v55, %v12757_v48  ;;  %v3537_v5 = vadd.f32 %v3473_v18, %v3409_v7  ;;  %v12761_v19 = vld [vmem:[#allocation102_spill] sm:$0xff]  ;;  %v12763_v29 = vld [vmem:[#allocation104_spill] sm:$0xff] }
 0x2a2   :  { %12748 = vst [vmem:[#allocation219_spill] sm:$0xff] %v8821_v4  ;;  %12750 = vst [vmem:[#allocation264_spill] sm:$0xff] %v8824_v33  ;;  %v3539_v37 = vadd.f32 %v3475_v43, %v3411_v2  ;;  %v3018_v15 = vmul.f32 %v8812_v55, %v12758_v16  ;;  %v3080_v35 = vmul.f32 %v8815_v63, %v12759_v9  ;;  %v12764_v2 = vld [vmem:[#allocation108_spill] sm:$0xff]  ;;  %v12782_v0 = vld [vmem:[#allocation146_spill] sm:$0xff] }
 0x2a3   :  { %12752 = vst [vmem:[#allocation96_spill] sm:$0xff] %v8827_v57  ;;  %12754 = vst [vmem:[#allocation8_spill] sm:$0xff] %v8830_v58  ;;  %v3082_v49 = vmul.f32 %v8815_v63, %v12760_v28  ;;  %v3208_v41 = vmul.f32 %v8818_v31, %v12761_v19  ;;  %v3210_v39 = vmul.f32 %v8818_v31, %v12762_v11  ;;  %v12772_v63 = vld [vmem:[#allocation181_spill] sm:$0xff] }
 0x2a4   :  { %12756 = vst [vmem:[#allocation9_spill] sm:$0xff] %v8833_v36  ;;  %v3336_v10 = vmul.f32 %v8821_v4, %v12763_v29  ;;  %v3665_v18 = vadd.f32 %v3601_v21, %v3537_v5  ;;  %v3667_v43 = vadd.f32 %v3603_v17, %v3539_v37  ;;  %v3144_v7 = vadd.f32 %v3080_v35, %v3016_v50  ;;  %v12769_v50 = vld [vmem:[#allocation84_spill] sm:$0xff]  ;;  %v12771_v35 = vld [vmem:[#allocation87_spill] sm:$0xff] }
 0x2a5   :  { %v3338_v59 = vmul.f32 %v8821_v4, %v12764_v2  ;;  %v3146_v14 = vadd.f32 %v3082_v49, %v3018_v15  ;;  %v3464_v56 = vmul.f32 %v8824_v33, %v12765_v62  ;;  %v3466_v1 = vmul.f32 %v8824_v33, %v12766_v38  ;;  %v12770_v37 = vld [vmem:[#allocation176_spill] sm:$0xff] }
 0x2a6   :  { %v3592_v27 = vmul.f32 %v8827_v57, %v12767_v44  ;;  %v3793_v20 = vadd.f32 %v3729_v12, %v3665_v18  ;;  %v3795_v25 = vadd.f32 %v3731_v46, %v3667_v43  ;;  %v3272_v53 = vadd.f32 %v3208_v41, %v3144_v7  ;;  %v12774_v18 = vld [vmem:[#allocation196_spill] sm:$0xff] }
 0x2a7   :  { %v3594_v21 = vmul.f32 %v8827_v57, %v12768_v13  ;;  %v3274_v17 = vadd.f32 %v3210_v39, %v3146_v14  ;;  %v3720_v5 = vmul.f32 %v8830_v58, %v12769_v50  ;;  %v3722_v15 = vmul.f32 %v8830_v58, %v12770_v37  ;;  %v12773_v39 = vld [vmem:[#allocation127_spill] sm:$0xff]  ;;  %v12775_v57 = vld [vmem:[#allocation86_spill] sm:$0xff] }
 0x2a8   :  { %v3848_v49 = vmul.f32 %v8833_v36, %v12771_v35  ;;  %v3921_v33 = vadd.f32 %v3857_v51, %v3793_v20  ;;  %v3923_v4 = vadd.f32 %v3859_v60, %v3795_v25  ;;  %v3400_v31 = vadd.f32 %v3336_v10, %v3272_v53  ;;  %v12776_v20 = vld [vmem:[#allocation229_spill] sm:$0xff] }
 0x2a9   :  { %v3850_v12 = vmul.f32 %v8833_v36, %v12772_v63  ;;  %v3402_v46 = vadd.f32 %v3338_v59, %v3274_v17  ;;  %v2842_v41 = vmul.f32 %v5187_v52, %v8743_v8  ;;  %v3279_v14 = vadd.f32 %v8751_v61, %v8748_v40  ;;  %v12777_v25 = vld [vmem:[#allocation201_spill] sm:$0xff]  ;;  %v12779_v17 = vld [vmem:[#allocation231_spill] sm:$0xff] }
 0x2aa   :  { %v3341_v43 = vmul.f32 %v12774_v18, %v12773_v39  ;;  %v5008_v7 = vpack.c.bf16 %v3923_v4, %v3921_v33  ;;  %v3528_v58 = vadd.f32 %v3464_v56, %v3400_v31  ;;  %v3343_v55 = vmul.f32 %v12774_v18, %v12775_v57  ;;  %v12778_v60 = vld [vmem:[#allocation233_spill] sm:$0xff]  ;;  %v12780_v36 = vld [vmem:[#allocation215_spill] sm:$0xff] }
 0x2ab   :  { %v3469_v10 = vmul.f32 %v12777_v25, %v12776_v20  ;;  %v3530_v53 = vadd.f32 %v3466_v1, %v3402_v46  ;;  %v2858_v51 = vsub.f32 2.0, %v2842_v41  ;;  %v3471_v8 = vmul.f32 %v12777_v25, %v12778_v60  ;;  %v12781_v56 = vld [vmem:[#allocation235_spill] sm:$0xff]  ;;  %v12783_v1 = vld [vmem:[#allocation93_spill] sm:$0xff] }
 0x2ac   :  { %v3405_v59 = vadd.f32 %v3341_v43, %v8753_v3  ;;  %5009 = vmatprep.subr.bf16.mxu1 %v5008_v7  ;;  %v3656_v40 = vadd.f32 %v3592_v27, %v3528_v58  ;;  %v3407_v61 = vadd.f32 %v3343_v55, %v3279_v14  ;;  %v3597_v4 = vmul.f32 %v12780_v36, %v12779_v17  ;;  %v12784_v43 = vld [vmem:[#allocation91_spill] sm:$0xff]  ;;  %v12785_v7 = vld [vmem:[#allocation162_spill] sm:$0xff]  ;;  %v12787_v14 = vld [vmem:[#allocation216_spill] sm:$0xff] }
 0x2ad   :  { %v3599_v31 = vmul.f32 %v12780_v36, %v12781_v56  ;;  %v3658_v33 = vadd.f32 %v3594_v21, %v3530_v53  ;;  %v2874_v18 = vmul.f32 %v5187_v52, %v2858_v51  ;;  %v3725_v46 = vmul.f32 %v12783_v1, %v12782_v0  ;;  %v12786_v27 = vld [vmem:[#allocation34_spill] sm:$0xff]  ;;  %v12789_v52 = vld [vmem:[#allocation36_spill] sm:$0xff]  ;;  %v12790_v53 = vld [vmem:[#allocation37_spill] sm:$0xff] }
 0x2ae   :  { %v3533_v42 = vadd.f32 %v3469_v10, %v3405_v59  ;;  %v3784_v41 = vadd.f32 %v3720_v5, %v3656_v40  ;;  %v3535_v3 = vadd.f32 %v3471_v8, %v3407_v61  ;;  %v3727_v25 = vmul.f32 %v12783_v1, %v12784_v43  ;;  %v12788_v17 = vld [vmem:[#allocation258_spill] sm:$0xff]  ;;  %v12791_v51 = vld [vmem:[#allocation257_spill] sm:$0xff]  ;;  %v12793_v61 = vld [vmem:[#allocation119_spill] sm:$0xff] }
 0x2af   :  { %v3853_v55 = vmul.f32 %v12786_v27, %v12785_v7  ;;  %v3786_v58 = vadd.f32 %v3722_v15, %v3658_v33  ;;  %v8890_v6 = vmul.f32 %v12787_v14, %v2874_v18  ;;  %v8893_v36 = vmul.f32 %v12788_v17, %v2874_v18  ;;  %v12792_v8 = vld [vmem:[#allocation206_spill] sm:$0xff] }
 0x2b0   :  { %v8896_v21 = vmul.f32 %v12789_v52, %v2874_v18  ;;  %v3912_v10 = vadd.f32 %v3848_v49, %v3784_v41  ;;  %v8899_v5 = vmul.f32 %v12790_v53, %v2874_v18  ;;  %v8902_v59 = vmul.f32 %v12791_v51, %v2874_v18 }
 0x2b1   :  { %v8905_v40 = vmul.f32 %v12792_v8, %v2874_v18  ;;  %v3914_v15 = vadd.f32 %v3850_v12, %v3786_v58  ;;  %v8908_v33 = vmul.f32 %v12793_v61, %v2874_v18  ;;  %v8911_v17 = vmul.f32 %v8306_v30, %v2874_v18 }
 0x2b2   :  { %v3024_v1 = vmul.f32 %v8890_v6, %v12757_v48  ;;  %v3026_v49 = vmul.f32 %v8890_v6, %v12758_v16  ;;  %v3088_v41 = vmul.f32 %v8893_v36, %v12759_v9  ;;  %v3090_v14 = vmul.f32 %v8893_v36, %v12760_v28  ;;  %v12796_v28 = vld [vmem:[#allocation61_spill] sm:$0xff]  ;;  %v12945_v48 = vld [vmem:[#allocation223_spill] sm:$0xff] }
 0x2b3   :  { %v3216_v12 = vmul.f32 %v8896_v21, %v12761_v19  ;;  %v5002_v58 = vpack.c.bf16 %v3914_v15, %v3912_v10  ;;  %v3218_v30 = vmul.f32 %v8896_v21, %v12762_v11  ;;  %v3344_v18 = vmul.f32 %v8899_v5, %v12763_v29 }
 0x2b4   :  { %v3346_v52 = vmul.f32 %v8899_v5, %v12764_v2  ;;  %v3152_v53 = vadd.f32 %v3088_v41, %v3024_v1  ;;  %v3154_v51 = vadd.f32 %v3090_v14, %v3026_v49  ;;  %v3472_v8 = vmul.f32 %v8902_v59, %v12765_v62 }
 0x2b5   :  { %v3474_v61 = vmul.f32 %v8902_v59, %v12766_v38  ;;  %5003 = vmatpush1.bf16.msra.mxu0 %v5002_v58  ;;  %v3600_v10 = vmul.f32 %v8905_v40, %v12767_v44  ;;  %v3602_v15 = vmul.f32 %v8905_v40, %v12768_v13  ;;  %v3728_v29 = vmul.f32 %v8908_v33, %v12769_v50  ;;  %v12794_v44 = vld [vmem:[#allocation190_spill] sm:$0xff]  ;;  %v12795_v13 = vld [vmem:[#allocation57_spill] sm:$0xff] }
 0x2b6   :  { %v3730_v1 = vmul.f32 %v8908_v33, %v12770_v37  ;;  %v3280_v49 = vadd.f32 %v3216_v12, %v3152_v53  ;;  %v3282_v41 = vadd.f32 %v3218_v30, %v3154_v51  ;;  %v3856_v14 = vmul.f32 %v8911_v17, %v12771_v35 }
 0x2b7   :  { %v3858_v58 = vmul.f32 %v8911_v17, %v12772_v63  ;;  %v3661_v38 = vadd.f32 %v3597_v4, %v3533_v42  ;;  %v3663_v62 = vadd.f32 %v3599_v31, %v3535_v3  ;;  %v3855_v2 = vmul.f32 %v12786_v27, %v12794_v44 }
 0x2b8   :  { %v3029_v11 = vmul.f32 %v8756_v23, %v12795_v13  ;;  %v3408_v50 = vadd.f32 %v3344_v18, %v3280_v49  ;;  %v3410_v19 = vadd.f32 %v3346_v52, %v3282_v41  ;;  %v3031_v12 = vmul.f32 %v8756_v23, %v12796_v28 }
 0x2b9   :  { %v3093_v30 = vmul.f32 %v8759_v54, %v12735_v24  ;;  %v3789_v53 = vadd.f32 %v3725_v46, %v3661_v38  ;;  %v3791_v51 = vadd.f32 %v3727_v25, %v3663_v62  ;;  %v3095_v42 = vmul.f32 %v8759_v54, %v12737_v22 }
 0x2ba   :  { %v3221_v4 = vmul.f32 %v8762_v32, %v12738_v47  ;;  %v3536_v31 = vadd.f32 %v3472_v8, %v3408_v50  ;;  %v3538_v3 = vadd.f32 %v3474_v61, %v3410_v19  ;;  %v3223_v18 = vmul.f32 %v8762_v32, %v12739_v34  ;;  %v12798_v8 = vld [vmem:[#allocation81_spill] sm:$0xff] }
 0x2bb   :  { %v3157_v27 = vadd.f32 %v3093_v30, %v3029_v11  ;;  %v3917_v52 = vadd.f32 %v3853_v55, %v3789_v53  ;;  %v3919_v49 = vadd.f32 %v3855_v2, %v3791_v51  ;;  %v3159_v23 = vadd.f32 %v3095_v42, %v3031_v12  ;;  %v12797_v55 = vld [vmem:[#allocation231_spill] sm:$0xff] }
 0x2bc   :  { %v3349_v41 = vmul.f32 %v8765_v45, %v12773_v39  ;;  %v3664_v38 = vadd.f32 %v3600_v10, %v3536_v31  ;;  %v3666_v62 = vadd.f32 %v3602_v15, %v3538_v3  ;;  %v3351_v54 = vmul.f32 %v8765_v45, %v12775_v57  ;;  %v12799_v45 = vld [vmem:[#allocation82_spill] sm:$0xff] }
 0x2bd   :  { %v3285_v46 = vadd.f32 %v3221_v4, %v3157_v27  ;;  %v5004_v25 = vpack.c.bf16 %v3919_v49, %v3917_v52  ;;  %v3287_v63 = vadd.f32 %v3223_v18, %v3159_v23  ;;  %v3477_v19 = vmul.f32 %v8768_v26, %v12776_v20  ;;  %v12802_v31 = vld [vmem:[#allocation194_spill] sm:$0xff]  ;;  %v12803_v27 = vld [vmem:[#allocation60_spill] sm:$0xff] }
 0x2be   :  { %v3479_v11 = vmul.f32 %v8768_v26, %v12778_v60  ;;  %v3792_v32 = vadd.f32 %v3728_v29, %v3664_v38  ;;  %v3794_v2 = vadd.f32 %v3730_v1, %v3666_v62  ;;  %v3605_v61 = vmul.f32 %v12798_v8, %v12797_v55  ;;  %v12800_v29 = vld [vmem:[#allocation193_spill] sm:$0xff]  ;;  %v12804_v23 = vld [vmem:[#allocation58_spill] sm:$0xff] }
 0x2bf   :  { %v3413_v50 = vadd.f32 %v3349_v41, %v3285_v46  ;;  %5005 = vmatprep.subr.bf16.mxu0 %v5004_v25  ;;  %v3415_v10 = vadd.f32 %v3351_v54, %v3287_v63  ;;  %v3607_v15 = vmul.f32 %v12798_v8, %v12781_v56  ;;  %v3733_v12 = vmul.f32 %v12799_v45, %v12782_v0  ;;  %v12801_v63 = vld [vmem:[#allocation56_spill] sm:$0xff]  ;;  %v12805_v41 = vld [vmem:[#allocation218_spill] sm:$0xff]  ;;  %v12808_v54 = vld [vmem:[#allocation263_spill] sm:$0xff] }
 0x2c0   :  { %v3735_v30 = vmul.f32 %v12799_v45, %v12784_v43  ;;  %v3920_v53 = vadd.f32 %v3856_v14, %v3792_v32  ;;  %v3922_v51 = vadd.f32 %v3858_v58, %v3794_v2  ;;  %v3861_v1 = vmul.f32 %v12800_v29, %v12785_v7  ;;  %v12806_v58 = vld [vmem:[#allocation62_spill] sm:$0xff]  ;;  %v12811_v2 = vld [vmem:[#allocation219_spill] sm:$0xff]  ;;  %v12812_v45 = vld [vmem:[#allocation77_spill] sm:$0xff] }
 0x2c1   :  { %v3541_v26 = vadd.f32 %v3477_v19, %v3413_v50  ;;  %v3543_v42 = vadd.f32 %v3479_v11, %v3415_v10  ;;  %v3863_v4 = vmul.f32 %v12800_v29, %v12794_v44  ;;  %v3020_v3 = vmul.f32 %v12802_v31, %v12801_v63  ;;  %v12807_v46 = vld [vmem:[#allocation118_spill] sm:$0xff]  ;;  %v12809_v19 = vld [vmem:[#allocation76_spill] sm:$0xff] }
 0x2c2   :  { %v3022_v18 = vmul.f32 %v12802_v31, %v12803_v27  ;;  %v5010_v52 = vpack.c.bf16 %v3922_v51, %v3920_v53  ;;  %v3084_v14 = vmul.f32 %v12805_v41, %v12804_v23  ;;  %v3086_v38 = vmul.f32 %v12805_v41, %v12806_v58  ;;  %v12810_v32 = vld [vmem:[#allocation122_spill] sm:$0xff]  ;;  %v12814_v29 = vld [vmem:[#allocation264_spill] sm:$0xff] }
 0x2c3   :  { %v3669_v49 = vadd.f32 %v3605_v61, %v3541_v26  ;;  %v3671_v62 = vadd.f32 %v3607_v15, %v3543_v42  ;;  %v3212_v25 = vmul.f32 %v12808_v54, %v12807_v46  ;;  %v3214_v11 = vmul.f32 %v12808_v54, %v12809_v19  ;;  %v12813_v26 = vld [vmem:[#allocation228_spill] sm:$0xff]  ;;  %v12816_v41 = vld [vmem:[#allocation230_spill] sm:$0xff] }
 0x2c4   :  { %v3340_v50 = vmul.f32 %v12811_v2, %v12810_v32  ;;  %5011 = vmatpush1.bf16.msra.mxu1 %v5010_v52  ;;  %v3148_v10 = vadd.f32 %v3084_v14, %v3020_v3  ;;  %v3150_v61 = vadd.f32 %v3086_v38, %v3022_v18  ;;  %v3342_v53 = vmul.f32 %v12811_v2, %v12812_v45  ;;  %v12815_v42 = vld [vmem:[#allocation232_spill] sm:$0xff]  ;;  %v12818_v52 = vld [vmem:[#allocation234_spill] sm:$0xff]  ;;  %v12823_v2 = vld [vmem:[#allocation9_spill] sm:$0xff] }
 0x2c5   :  { %v3797_v8 = vadd.f32 %v3733_v12, %v3669_v49  ;;  %v3799_v51 = vadd.f32 %v3735_v30, %v3671_v62  ;;  %v3468_v15 = vmul.f32 %v12814_v29, %v12813_v26  ;;  %v3470_v31 = vmul.f32 %v12814_v29, %v12815_v42  ;;  %v12817_v44 = vld [vmem:[#allocation96_spill] sm:$0xff]  ;;  %v12821_v30 = vld [vmem:[#allocation147_spill] sm:$0xff]  ;;  %v12822_v62 = vld [vmem:[#allocation237_spill] sm:$0xff] }
 0x2c6   :  { %v3596_v54 = vmul.f32 %v12817_v44, %v12816_v41  ;;  %v3276_v43 = vadd.f32 %v3212_v25, %v3148_v10  ;;  %v3278_v0 = vadd.f32 %v3214_v11, %v3150_v61  ;;  %v3598_v12 = vmul.f32 %v12817_v44, %v12818_v52  ;;  %v12819_v18 = vld [vmem:[#allocation236_spill] sm:$0xff]  ;;  %v12824_v60 = vld [vmem:[#allocation26_spill] sm:$0xff] }
 0x2c7   :  { %v3925_v7 = vadd.f32 %v3861_v1, %v3797_v8  ;;  %v3927_v3 = vadd.f32 %v3863_v4, %v3799_v51  ;;  %v12820_v49 = vld [vmem:[#allocation8_spill] sm:$0xff]  ;;  %v3852_v56 = vmul.f32 %v12823_v2, %v12822_v62  ;;  %v3854_v1 = vmul.f32 %v12823_v2, %v12824_v60 }
 0x2c8   :  { %v3724_v14 = vmul.f32 %v12820_v49, %v12819_v18  ;;  %v3726_v38 = vmul.f32 %v12820_v49, %v12821_v30  ;;  %v3404_v29 = vadd.f32 %v3340_v50, %v3276_v43  ;;  %v3406_v55 = vadd.f32 %v3342_v53, %v3278_v0 }
 0x2c9   :  { %v3028_v25 = vmul.f32 %v8890_v6, %v12801_v63  ;;  %v5012_v11 = vpack.c.bf16 %v3927_v3, %v3925_v7  ;;  %v3030_v44 = vmul.f32 %v8890_v6, %v12803_v27  ;;  %v3092_v4 = vmul.f32 %v8893_v36, %v12804_v23  ;;  %v12889_v63 = vld [vmem:[#allocation73_spill] sm:$0xff] }
 0x2ca   :  { %v3094_v8 = vmul.f32 %v8893_v36, %v12806_v58  ;;  %v3532_v10 = vadd.f32 %v3468_v15, %v3404_v29  ;;  %v3534_v61 = vadd.f32 %v3470_v31, %v3406_v55  ;;  %v3220_v0 = vmul.f32 %v8896_v21, %v12807_v46 }
 0x2cb   :  { %v3222_v43 = vmul.f32 %v8896_v21, %v12809_v19  ;;  %5013 = vmatprep.subr.bf16.mxu1 %v5012_v11  ;;  %v3156_v50 = vadd.f32 %v3092_v4, %v3028_v25  ;;  %v3348_v6 = vmul.f32 %v8899_v5, %v12810_v32  ;;  %v3350_v53 = vmul.f32 %v8899_v5, %v12812_v45  ;;  %v12881_v19 = vld [vmem:[#allocation183_spill] sm:$0xff] }
 0x2cc   :  { %v3158_v7 = vadd.f32 %v3094_v8, %v3030_v44  ;;  %v3660_v51 = vadd.f32 %v3596_v54, %v3532_v10  ;;  %v3662_v3 = vadd.f32 %v3598_v12, %v3534_v61  ;;  %v3476_v36 = vmul.f32 %v8902_v59, %v12813_v26  ;;  %v12825_v8 = vld [vmem:[#allocation92_spill] sm:$0xff] }
 0x2cd   :  { %v3478_v55 = vmul.f32 %v8902_v59, %v12815_v42  ;;  %v3284_v15 = vadd.f32 %v3220_v0, %v3156_v50  ;;  %v3604_v21 = vmul.f32 %v8905_v40, %v12816_v41  ;;  %v3606_v49 = vmul.f32 %v8905_v40, %v12818_v52  ;;  %v12826_v40 = vld [vmem:[#allocation89_spill] sm:$0xff]  ;;  %v12828_v0 = vld [vmem:[#allocation164_spill] sm:$0xff]  ;;  %v12870_v52 = vld [vmem:[#allocation203_spill] sm:$0xff] }
 0x2ce   :  { %v3286_v31 = vadd.f32 %v3222_v43, %v3158_v7  ;;  %v3788_v2 = vadd.f32 %v3724_v14, %v3660_v51  ;;  %v3790_v29 = vadd.f32 %v3726_v38, %v3662_v3  ;;  %v3732_v5 = vmul.f32 %v8908_v33, %v12819_v18  ;;  %v12827_v38 = vld [vmem:[#allocation192_spill] sm:$0xff]  ;;  %v12830_v43 = vld [vmem:[#allocation259_spill] sm:$0xff]  ;;  %v12832_v51 = vld [vmem:[#allocation217_spill] sm:$0xff] }
 0x2cf   :  { %v3734_v54 = vmul.f32 %v8908_v33, %v12821_v30  ;;  %v3412_v12 = vadd.f32 %v3348_v6, %v3284_v15  ;;  %v3860_v59 = vmul.f32 %v8911_v17, %v12822_v62  ;;  %v3862_v11 = vmul.f32 %v8911_v17, %v12824_v60  ;;  %v12829_v33 = vld [vmem:[#allocation214_spill] sm:$0xff]  ;;  %v12831_v6 = vld [vmem:[#allocation252_spill] sm:$0xff]  ;;  %v12833_v17 = vld [vmem:[#allocation175_spill] sm:$0xff] }
 0x2d0   :  { %v3414_v25 = vadd.f32 %v3350_v53, %v3286_v31  ;;  %v3916_v44 = vadd.f32 %v3852_v56, %v3788_v2  ;;  %v3918_v4 = vadd.f32 %v3854_v1, %v3790_v29  ;;  %v2748_v14 = vadd.f32 %v12826_v40, %v12825_v8  ;;  %v12834_v56 = vld [vmem:[#allocation246_spill] sm:$0xff]  ;;  %v12835_v31 = vld [vmem:[#allocation97_spill] sm:$0xff]  ;;  %v12836_v29 = vld [vmem:[#allocation95_spill] sm:$0xff] }
 0x2d1   :  { %5188 = vpow2.f32 %v12827_v38  ;;  %v3540_v10 = vadd.f32 %v3476_v36, %v3412_v12  ;;  %v2761_v50 = vadd.f32 %v12830_v43, %v12829_v33  ;;  %v2403_v1 = vsub.f32 %v12834_v56, %v12833_v17  ;;  %v12837_v36 = vld [vmem:[#allocation253_spill] sm:$0xff]  ;;  %v9059_v12 = vld [vmem:[%s10877_s2] sm:$0xff]  ;;  %v12850_v60 = vld [vmem:[#allocation179_spill] sm:$0xff] }
 0x2d2   :  { %v3542_v61 = vadd.f32 %v3478_v55, %v3414_v25  ;;  %5190 = vpow2.f32 %v12828_v0  ;;  %v5006_v7 = vpack.c.bf16 %v3918_v4, %v3916_v44  ;;  %v2749_v53 = vadd.f32 %v12831_v6, %v2748_v14  ;;  %12838 = vst [vmem:[#allocation260_spill] sm:$0xff] %v9059_v12  ;;  %v12839_v25 = vld [vmem:[#allocation98_spill] sm:$0xff]  ;;  %v12840_v44 = vld [vmem:[#allocation117_spill] sm:$0xff]  ;;  %v12841_v4 = vld [vmem:[#allocation72_spill] sm:$0xff] }
 0x2d3   :  { %5192 = vpow2.f32 %v12832_v51  ;;  %v3668_v3 = vadd.f32 %v3604_v21, %v3540_v10  ;;  %v2762_v2 = vadd.f32 %v12835_v31, %v2761_v50  ;;  %v12842_v8 = vsub.f32 %v12840_v44, %v12841_v4  ;;  %v12843_v21 = vld [vmem:[#allocation160_spill] sm:$0xff]  ;;  %v12845_v50 = vld [vmem:[#allocation99_spill] sm:$0xff]  ;;  %v12848_v56 = vld [vmem:[#allocation129_spill] sm:$0xff] }
 0x2d4   :  { %v3670_v15 = vadd.f32 %v3606_v49, %v3542_v61  ;;  %5194 = vpow2.f32 %v12836_v29  ;;  %5007 = vmatpush1.bf16.msra.mxu0 %v5006_v7  ;;  %v2750_v55 = vadd.f32 %v12837_v36, %v2749_v53  ;;  %v2405_v49 = vsub.f32 %v12843_v21, %v12833_v17  ;;  %v12844_v61 = vld [vmem:[#allocation25_spill] sm:$0xff]  ;;  %v12846_v7 = vld [vmem:[#allocation35_spill] sm:$0xff] }
 0x2d5   :  { %5196 = vpow2.f32 %v12839_v25  ;;  %v2560_v14 = vmul.f32 1.442695, %v12842_v8  ;;  %v3796_v38 = vadd.f32 %v3732_v5, %v3668_v3  ;;  %v2763_v0 = vadd.f32 %v12844_v61, %v2762_v2  ;;  %v12847_v51 = vld [vmem:[#allocation207_spill] sm:$0xff]  ;;  %v12852_v5 = vld [vmem:[#allocation28_spill] sm:$0xff] }
 0x2d6   :  { %v3798_v10 = vadd.f32 %v3734_v54, %v3670_v15  ;;  %5198 = vpow2.f32 %v12845_v50  ;;  %v2751_v53 = vadd.f32 %v12846_v7, %v2750_v55  ;;  %v12849_v29 = vsub.f32 %v12848_v56, %v12841_v4  ;;  %v12853_v3 = vld [vmem:[#allocation120_spill] sm:$0xff]  ;;  %v12855_v55 = vld [vmem:[#allocation158_spill] sm:$0xff]  ;;  %v12868_v30 = vld [vmem:[#allocation31_spill] sm:$0xff] }
 0x2d7   :  { %5200 = vpow2.f32 %v12847_v51  ;;  %v12851_v44 = vsub.f32 %v12850_v60, %v12841_v4  ;;  %v3924_v62 = vadd.f32 %v3860_v59, %v3796_v38  ;;  %v2764_v54 = vadd.f32 %v12852_v5, %v2763_v0  ;;  %4904 = vmatmul.mubr.msk.f32.vlgmr.msra.gmra.mrb[96].mxu0 %vm60_vm0, %v9059_v12  ;;  %v12854_v15 = vld [vmem:[#allocation32_spill] sm:$0xff]  ;;  %v9093_v38 = vld [vmem:[%s10877_s2 + $0x8] sm:$0xff]  ;;  %v12862_v0 = vld [vmem:[#allocation178_spill] sm:$0xff] }
 0x2d8   :  { %v2564_v25 = vmul.f32 1.442695, %v12849_v29  ;;  %v3926_v21 = vadd.f32 %v3862_v11, %v3798_v10  ;;  %5202 = vpow2.f32 %v12853_v3  ;;  %v2752_v2 = vadd.f32 %v12854_v15, %v2751_v53  ;;  %v12856_v50 = vld [vmem:[#allocation240_spill] sm:$0xff]  ;;  %12861 = vst [vmem:[#allocation38_spill] sm:$0xff] %v9093_v38  ;;  %v12863_v53 = vld [vmem:[#allocation199_spill] sm:$0xff] }
 0x2d9   :  { %v2568_v8 = vmul.f32 1.442695, %v12851_v44  ;;  %5204 = vpow2.f32 %v12855_v55  ;;  %v12857_v51 = vsub.f32 %v12856_v50, %v12841_v4  ;;  %v12858_v29 = vld [vmem:[#allocation12_spill] sm:$0xff]  ;;  %v12860_v11 = vmov 0.0   ;;  %v12865_v55 = vld [vmem:[#allocation182_spill] sm:$0xff]  ;;  %v12869_v18 = vld [vmem:[#allocation255_spill] sm:$0xff] }
 0x2da   :  { %v12859_v60 = vsub.f32 %v12858_v29, %v12841_v4  ;;  %4078 = vmatprep.mubr.f32.mxu0 %v12860_v11  ;;  %v5014_v10 = vpack.c.bf16 %v3926_v21, %v3924_v62  ;;  %5206 = vpow2.f32 %v12862_v0  ;;  %v12864_v44 = vsub.f32 %v12863_v53, %v12833_v17  ;;  %v12867_v29 = vld [vmem:[#allocation33_spill] sm:$0xff]  ;;  %v12871_v21 = vld [vmem:[#allocation100_spill] sm:$0xff] }
 0x2db   :  { %v2572_v56 = vmul.f32 1.442695, %v12857_v51  ;;  %v12866_v50 = vsub.f32 %v12865_v55, %v12833_v17  ;;  %v9102_v4 = vpop.eup %5188  ;;  %5208 = vpow2.f32 %v12868_v30  ;;  %v2409_v62 = vsub.f32 %v12870_v52, %v12869_v18  ;;  %4905 = vmatmul.mubr.msk.f32.gmra.mrb[98].mxu0 %vm60_vm0, %v9093_v38  ;;  %v12873_v30 = vld [vmem:[#allocation208_spill] sm:$0xff]  ;;  %v12875_v52 = vld [vmem:[#allocation209_spill] sm:$0xff] }
 0x2dc   :  { %v2576_v59 = vmul.f32 1.442695, %v12859_v60  ;;  %v2586_v3 = vmul.f32 1.442695, %v12864_v44  ;;  %v9105_v60 = vadd.f32 %v12867_v29, %v2752_v2  ;;  %v2411_v0 = vsub.f32 %v12871_v21, %v12869_v18  ;;  %v9112_v41 = vpop.eup %5190  ;;  %5015 = vmatpush1.bf16.msra.mxu1 %v5014_v10  ;;  %v12872_v2 = vld [vmem:[#allocation101_spill] sm:$0xff]  ;;  %v12876_v10 = vld [vmem:[#allocation247_spill] sm:$0xff]  ;;  %4084 = vmatprep.mubr.f32.mxu0 %v12860_v11 }
 0x2dd   :  { %v2590_v51 = vmul.f32 1.442695, %v12866_v50  ;;  %v2765_v53 = vadd.f32 %v9102_v4, %v2764_v54  ;;  %5210 = vpow2.f32 %v2560_v14  ;;  %v2413_v44 = vsub.f32 %v12872_v2, %v12869_v18  ;;  %v9121_v50 = vpop.eup %5192  ;;  %v12877_v14 = vld [vmem:[#allocation21_spill] sm:$0xff] }
 0x2de   :  { %v2415_v55 = vsub.f32 %v12873_v30, %v12869_v18  ;;  %12874 = vst [vmem:[#allocation39_spill] sm:$0xff] %v9121_v50  ;;  %5212 = vrcp.f32 %v9105_v60  ;;  %v2417_v21 = vsub.f32 %v12875_v52, %v12869_v18  ;;  %v2419_v54 = vsub.f32 %v12876_v10, %v12869_v18  ;;  %v9131_v26 = vpop.eup %5194  ;;  %v12879_v30 = vld [vmem:[#allocation200_spill] sm:$0xff]  ;;  %v12884_v10 = vld [vmem:[#allocation202_spill] sm:$0xff] }
 0x2df   :  { %v2421_v42 = vsub.f32 %v12877_v14, %v12869_v18  ;;  %12878 = vst [vmem:[#allocation211_spill] sm:$0xff] %v9131_v26  ;;  %v2766_v2 = vadd.f32 %v9112_v41, %v2765_v53  ;;  %5214 = vpow2.f32 %v2564_v25  ;;  %v12880_v45 = vsub.f32 %v12879_v30, %v12833_v17  ;;  %v9140_v58 = vpop.eup %5196  ;;  %4908 = vmatmul.mubr.msk.f32.vlgmr.msra.gmra.mrb[96].mxu1 %vm60_vm0, %v9059_v12 }
 0x2e0   :  { %v12882_v52 = vsub.f32 %v12881_v19, %v12833_v17  ;;  %12883 = vst [vmem:[#allocation142_spill] sm:$0xff] %v9140_v58  ;;  %v2740_v18 = vadd.f32 %v9131_v26, %v9121_v50  ;;  %5216 = vpow2.f32 %v2568_v8  ;;  %v12885_v25 = vsub.f32 %v12884_v10, %v12833_v17  ;;  %v9149_v30 = vpop.eup %5198  ;;  %4175 = vmatprep.mubr.f32.mxu1 %v12860_v11  ;;  %v12890_v17 = vld [vmem:[#allocation167_spill] sm:$0xff] }
 0x2e1   :  { %v2594_v32 = vmul.f32 1.442695, %v12880_v45  ;;  %v2606_v14 = vmul.f32 1.442695, %v2403_v1  ;;  %12886 = vst [vmem:[#allocation212_spill] sm:$0xff] %v9149_v30  ;;  %v12887_v45 = vld [vmem:[#allocation94_spill] sm:$0xff]  ;;  %5218 = vpow2.f32 %v2572_v56  ;;  %v9155_v12 = vpop.eup %5200  ;;  %v2392_v10 = vsub.f32 %v12890_v17, %v12889_v63 }
 0x2e2   :  { %v2598_v46 = vmul.f32 1.442695, %v12882_v52  ;;  %v2602_v53 = vmul.f32 1.442695, %v12885_v25  ;;  %v9152_v23 = vadd.f32 %v12887_v45, %v2766_v2  ;;  %v2610_v19 = vmul.f32 1.442695, %v2405_v49  ;;  %v9160_v1 = vpop.eup %5202 }
 0x2e3   :  { %v2618_v52 = vmul.f32 1.442695, %v2409_v62  ;;  %12888 = vst [vmem:[#allocation243_spill] sm:$0xff] %v9155_v12  ;;  %v2741_v27 = vadd.f32 %v9140_v58, %v2740_v18  ;;  %5220 = vpow2.f32 %v2576_v59  ;;  %v2622_v8 = vmul.f32 1.442695, %v2411_v0  ;;  %12891 = vst [vmem:[#allocation136_spill] sm:$0xff] %v9160_v1  ;;  %v9169_v35 = vpop.eup %5204  ;;  %4909 = vmatmul.mubr.msk.f32.gmra.mrb[98].mxu1 %vm60_vm0, %v9093_v38 }
 0x2e4   :  { %5222 = vrcp.f32 %v9152_v23  ;;  %v12892_v2 = vld [vmem:[#allocation180_spill] sm:$0xff]  ;;  %12895 = vst [vmem:[#allocation244_spill] sm:$0xff] %v9169_v35  ;;  %v12896_v0 = vld [vmem:[#allocation185_spill] sm:$0xff]  ;;  %v9178_v37 = vpop.eup %5206  ;;  %v9180_v9 = vmul.f32 1.442695, %v2415_v55  ;;  %4181 = vmatprep.mubr.f32.mxu1 %v12860_v11  ;;  %v12950_v58 = vld [vmem:[#allocation19_spill] sm:$0xff] }
 0x2e5   :  { %v2394_v56 = vsub.f32 %v12892_v2, %v12889_v63  ;;  %v12893_v25 = vld [vmem:[#allocation184_spill] sm:$0xff]  ;;  %v2742_v59 = vadd.f32 %v9149_v30, %v2741_v27  ;;  %5224 = vpow2.f32 %v2586_v3  ;;  %v2400_v18 = vsub.f32 %v12896_v0, %v12889_v63  ;;  %12898 = vst [vmem:[#allocation137_spill] sm:$0xff] %v9178_v37  ;;  %v9185_v16 = vpop.eup %5208 }
 0x2e6   :  { %v2396_v49 = vsub.f32 %v12893_v25, %v12889_v63  ;;  %v12894_v62 = vld [vmem:[#allocation168_spill] sm:$0xff]  ;;  %5226 = vpow2.f32 %v2590_v51  ;;  %v2626_v25 = vmul.f32 1.442695, %v2413_v44  ;;  %12899 = vst [vmem:[#allocation245_spill] sm:$0xff] %v9180_v9  ;;  %12901 = vst [vmem:[#allocation248_spill] sm:$0xff] %v9185_v16  ;;  %v2754_v51 = vadd.f32 %v9185_v16, %v9178_v37  ;;  %v12939_v9 = vld [vmem:[#allocation105_spill] sm:$0xff] }
 0x2e7   :  { %v2398_v20 = vsub.f32 %v12894_v62, %v12889_v63  ;;  %v2743_v3 = vadd.f32 %v9155_v12, %v2742_v59  ;;  %5228 = vpow2.f32 %v2594_v32  ;;  %v9188_v0 = vmul.f32 1.442695, %v2417_v21  ;;  %v9192_v2 = vpop.eup %5210  ;;  %v12935_v32 = vld [vmem:[#allocation55_spill] sm:$0xff]  ;;  %v12943_v16 = vld [vmem:[#allocation225_spill] sm:$0xff]  ;;  %v12947_v12 = vld [vmem:[#allocation18_spill] sm:$0xff] }
 0x2e8   :  { %v9190_v38 = vmul.f32 1.442695, %v2419_v54  ;;  %12904 = vst [vmem:[#allocation140_spill] sm:$0xff] %v9192_v2  ;;  %5230 = vpow2.f32 %v2598_v46  ;;  %v9196_v44 = vmul.f32 1.442695, %v2421_v42  ;;  %v5213_v62 = vpop.eup %5212  ;;  %v2755_v17 = vadd.f32 %v9192_v2, %v2754_v51  ;;  %v12925_v54 = vld [vmem:[#allocation170_spill] sm:$0xff] }
 0x2e9   :  { %12902 = vst [vmem:[#allocation249_spill] sm:$0xff] %v9188_v0  ;;  %v9198_v55 = vmul.f32 1.442695, %v2392_v10  ;;  %v2744_v27 = vadd.f32 %v9160_v1, %v2743_v3  ;;  %5232 = vpow2.f32 %v2602_v53  ;;  %v9201_v59 = vmul.f32 1.442695, %v2394_v56  ;;  %v12938_v0 = vld [vmem:[#allocation107_spill] sm:$0xff] }
 0x2ea   :  { %12903 = vst [vmem:[#allocation138_spill] sm:$0xff] %v9190_v38  ;;  %12905 = vst [vmem:[#allocation141_spill] sm:$0xff] %v9196_v44  ;;  %v9205_v38 = vpop.eup %5214  ;;  %v2845_v63 = vmul.f32 %v5213_v62, %v9105_v60  ;;  %5234 = vpow2.f32 %v2606_v14 }
 0x2eb   :  { %12906 = vst [vmem:[#allocation10_spill] sm:$0xff] %v9198_v55  ;;  %12907 = vst [vmem:[#allocation11_spill] sm:$0xff] %v9201_v59  ;;  %v9211_v10 = vpop.eup %5216  ;;  %v2745_v3 = vadd.f32 %v9169_v35, %v2744_v27  ;;  %5236 = vpow2.f32 %v2610_v19  ;;  %v2756_v51 = vadd.f32 %v9205_v38, %v2755_v17  ;;  %v12917_v55 = vld [vmem:[#allocation17_spill] sm:$0xff]  ;;  %v12946_v35 = vld [vmem:[#allocation227_spill] sm:$0xff] }
 0x2ec   :  { %12910 = vst [vmem:[#allocation66_spill] sm:$0xff] %v9205_v38  ;;  %12912 = vst [vmem:[#allocation44_spill] sm:$0xff] %v9211_v10  ;;  %v9218_v21 = vpop.eup %5218  ;;  %v2861_v60 = vsub.f32 2.0, %v2845_v63  ;;  %5238 = vpow2.f32 %v2618_v52  ;;  %v9233_v52 = vmul.f32 1.442695, %v2396_v49  ;;  %v12942_v38 = vld [vmem:[#allocation221_spill] sm:$0xff] }
 0x2ed   :  { %12915 = vst [vmem:[#allocation47_spill] sm:$0xff] %v9218_v21  ;;  %v9223_v46 = vpop.eup %5220  ;;  %v9226_v27 = vadd.f32 %v12917_v55, %v2745_v3  ;;  %5240 = vpow2.f32 %v2622_v8  ;;  %v2757_v17 = vadd.f32 %v9211_v10, %v2756_v51  ;;  %v9239_v8 = vmul.f32 1.442695, %v2398_v20 }
 0x2ee   :  { %v5223_v53 = vpop.eup %5222  ;;  %v2877_v63 = vmul.f32 %v5213_v62, %v2861_v60  ;;  %5242 = vpow2.f32 %v2626_v25  ;;  %12920 = vst [vmem:[#allocation79_spill] sm:$0xff] %v9233_v52  ;;  %v9241_v3 = vmul.f32 1.442695, %v2400_v18  ;;  %v12926_v62 = vld [vmem:[#allocation88_spill] sm:$0xff] }
 0x2ef   :  { %v9235_v42 = vpop.eup %5224  ;;  %v2847_v14 = vmul.f32 %v5223_v53, %v9152_v23  ;;  %5244 = vrcp.f32 %v9226_v27  ;;  %12922 = vst [vmem:[#allocation173_spill] sm:$0xff] %v9239_v8  ;;  %v12934_v8 = vld [vmem:[#allocation51_spill] sm:$0xff] }
 0x2f0   :  { %12921 = vst [vmem:[#allocation139_spill] sm:$0xff] %v9235_v42  ;;  %12923 = vst [vmem:[#allocation45_spill] sm:$0xff] %v9241_v3  ;;  %v9243_v56 = vpop.eup %5226  ;;  %v2921_v59 = vmul.f32 %v12925_v54, %v2877_v63  ;;  %v2923_v60 = vmul.f32 %v12926_v62, %v2877_v63  ;;  %v2925_v25 = vmul.f32 %v12826_v40, %v2877_v63  ;;  %v12932_v40 = vld [vmem:[#allocation49_spill] sm:$0xff] }
 0x2f1   :  { %12924 = vst [vmem:[#allocation48_spill] sm:$0xff] %v9243_v56  ;;  %v9249_v49 = vmul.f32 %v12831_v6, %v2877_v63  ;;  %v9251_v51 = vpop.eup %5228  ;;  %v9254_v23 = vmul.f32 %v12837_v36, %v2877_v63  ;;  %v9257_v20 = vmul.f32 %v12846_v7, %v2877_v63  ;;  %v9260_v18 = vmul.f32 %v12854_v15, %v2877_v63  ;;  %v12933_v6 = vld [vmem:[#allocation53_spill] sm:$0xff]  ;;  %v12937_v7 = vld [vmem:[#allocation103_spill] sm:$0xff] }
 0x2f2   :  { %12928 = vst [vmem:[#allocation143_spill] sm:$0xff] %v9251_v51  ;;  %v9263_v54 = vmul.f32 %v12867_v29, %v2877_v63  ;;  %v9265_v62 = vpop.eup %5230  ;;  %v3033_v19 = vmul.f32 %v2921_v59, %v12932_v40  ;;  %v3035_v3 = vmul.f32 %v2921_v59, %v12933_v6  ;;  %v3097_v52 = vmul.f32 %v2923_v60, %v12934_v8  ;;  %v12940_v63 = vld [vmem:[#allocation113_spill] sm:$0xff] }
 0x2f3   :  { %12927 = vst [vmem:[#allocation83_spill] sm:$0xff] %v9249_v49  ;;  %12929 = vst [vmem:[#allocation197_spill] sm:$0xff] %v9254_v23  ;;  %v3099_v36 = vmul.f32 %v2923_v60, %v12935_v32  ;;  %v9271_v44 = vpop.eup %5232  ;;  %v3225_v51 = vmul.f32 %v2925_v25, %v12937_v7  ;;  %v3227_v15 = vmul.f32 %v2925_v25, %v12938_v0  ;;  %v2863_v57 = vsub.f32 2.0, %v2847_v14 }
 0x2f4   :  { %12930 = vst [vmem:[#allocation40_spill] sm:$0xff] %v9257_v20  ;;  %12931 = vst [vmem:[#allocation42_spill] sm:$0xff] %v9265_v62  ;;  %v3353_v29 = vmul.f32 %v9249_v49, %v12939_v9  ;;  %v3355_v62 = vmul.f32 %v9249_v49, %v12940_v63  ;;  %v9279_v56 = vpop.eup %5234  ;;  %v3161_v42 = vadd.f32 %v3097_v52, %v3033_v19 }
 0x2f5   :  { %12936 = vst [vmem:[#allocation114_spill] sm:$0xff] %v9271_v44  ;;  %12941 = vst [vmem:[#allocation125_spill] sm:$0xff] %v9279_v56  ;;  %v3163_v10 = vadd.f32 %v3099_v36, %v3035_v3  ;;  %v3481_v2 = vmul.f32 %v9254_v23, %v12942_v38  ;;  %v3483_v44 = vmul.f32 %v9254_v23, %v12943_v16  ;;  %v9285_v37 = vpop.eup %5236  ;;  %v12948_v56 = vld [vmem:[#allocation250_spill] sm:$0xff] }
 0x2f6   :  { %12944 = vst [vmem:[#allocation149_spill] sm:$0xff] %v9285_v37  ;;  %v3609_v55 = vmul.f32 %v9257_v20, %v12945_v48  ;;  %v3611_v1 = vmul.f32 %v9257_v20, %v12946_v35  ;;  %v3737_v30 = vmul.f32 %v9260_v18, %v12947_v12  ;;  %v3739_v19 = vmul.f32 %v9260_v18, %v12948_v56  ;;  %v9295_v52 = vpop.eup %5238  ;;  %v12951_v37 = vld [vmem:[#allocation251_spill] sm:$0xff] }
 0x2f7   :  { %12949 = vst [vmem:[#allocation123_spill] sm:$0xff] %v9295_v52  ;;  %v3289_v3 = vadd.f32 %v3225_v51, %v3161_v42  ;;  %v3291_v36 = vadd.f32 %v3227_v15, %v3163_v10  ;;  %v3865_v23 = vmul.f32 %v9263_v54, %v12950_v58  ;;  %v3867_v26 = vmul.f32 %v9263_v54, %v12951_v37  ;;  %v9301_v50 = vpop.eup %5240  ;;  %v9311_v42 = vld [vmem:[%s10877_s2 + $0x10] sm:$0xff] }
 0x2f8   :  { %12952 = vst [vmem:[#allocation67_spill] sm:$0xff] %v9301_v50  ;;  %v2758_v20 = vadd.f32 %v9218_v21, %v2757_v17  ;;  %v3037_v49 = vmul.f32 %v2921_v59, %v12795_v13  ;;  %v9306_v39 = vmul.f32 %v2921_v59, %v12796_v28  ;;  %12953 = vst [vmem:[#allocation41_spill] sm:$0xff] %v9311_v42  ;;  %v9313_v10 = vpop.eup %5242  ;;  %4906 = vmatmul.mubr.msk.f32.gmra.mrb[100].mxu0 %vm60_vm0, %v9311_v42 }
 0x2f9   :  { %12954 = vst [vmem:[#allocation43_spill] sm:$0xff] %v9313_v10  ;;  %v3417_v51 = vadd.f32 %v3353_v29, %v3289_v3  ;;  %v3419_v15 = vadd.f32 %v3355_v62, %v3291_v36  ;;  %v3101_v52 = vmul.f32 %v2923_v60, %v12735_v24  ;;  %v3103_v14 = vmul.f32 %v2923_v60, %v12737_v22  ;;  %v5245_v17 = vpop.eup %5244  ;;  %v9327_v62 = vld [vmem:[%s10877_s2 + $0x18] sm:$0xff] }
 0x2fa   :  { %v2879_v50 = vmul.f32 %v5223_v53, %v2863_v57  ;;  %v2759_v59 = vadd.f32 %v9223_v46, %v2758_v20  ;;  %v3229_v21 = vmul.f32 %v2925_v25, %v12738_v47  ;;  %v3231_v28 = vmul.f32 %v2925_v25, %v12739_v34  ;;  %4910 = vmatmul.mubr.msk.f32.gmra.mrb[100].mxu1 %vm60_vm0, %v9311_v42 }
 0x2fb   :  { %12955 = vst [vmem:[#allocation115_spill] sm:$0xff] %v9327_v62  ;;  %v3545_v60 = vadd.f32 %v3481_v2, %v3417_v51  ;;  %v3547_v29 = vadd.f32 %v3483_v44, %v3419_v15  ;;  %v2844_v3 = vmul.f32 %v5245_v17, %v9226_v27  ;;  %v3165_v36 = vadd.f32 %v3101_v52, %v3037_v49 }
 0x2fc   :  { %4090 = vmatprep.mubr.f32.mxu0 %v12860_v11  ;;  %v9332_v57 = vmul.f32 %v12829_v33, %v2879_v50  ;;  %v9335_v53 = vmul.f32 %v12830_v43, %v2879_v50  ;;  %v9338_v25 = vmul.f32 %v12835_v31, %v2879_v50  ;;  %v9341_v20 = vmul.f32 %v12844_v61, %v2879_v50 }
 0x2fd   :  { %4187 = vmatprep.mubr.f32.mxu1 %v12860_v11  ;;  %v3673_v2 = vadd.f32 %v3609_v55, %v3545_v60  ;;  %v3675_v44 = vadd.f32 %v3611_v1, %v3547_v29  ;;  %v9345_v27 = vmul.f32 %v12852_v5, %v2879_v50  ;;  %v9348_v49 = vmul.f32 %v9102_v4, %v2879_v50 }
 0x2fe   :  { %12956 = vst [vmem:[#allocation126_spill] sm:$0xff] %v9341_v20  ;;  %4907 = vmatmul.mubr.msk.f32.gmra.mrb[102].mxu0 %vm60_vm0, %v9327_v62  ;;  %v9353_v33 = vmul.f32 %v9112_v41, %v2879_v50  ;;  %v9356_v43 = vmul.f32 %v12887_v45, %v2879_v50  ;;  %v3041_v31 = vmul.f32 %v9332_v57, %v12932_v40 }
 0x2ff   :  { %12957 = vst [vmem:[#allocation165_spill] sm:$0xff] %v9345_v27  ;;  %12958 = vst [vmem:[#allocation124_spill] sm:$0xff] %v9348_v49  ;;  %v3043_v61 = vmul.f32 %v9332_v57, %v12933_v6  ;;  %4911 = vmatmul.mubr.msk.f32.gmra.mrb[102].mxu1 %vm60_vm0, %v9327_v62  ;;  %v3801_v5 = vadd.f32 %v3737_v30, %v3673_v2  ;;  %v3803_v4 = vadd.f32 %v3739_v19, %v3675_v44  ;;  %v12990_v6 = vld [vmem:[#allocation224_spill] sm:$0xff]  ;;  %v12991_v62 = vld [vmem:[#allocation222_spill] sm:$0xff] }
 0x300   :  { %12959 = vst [vmem:[#allocation150_spill] sm:$0xff] %v9353_v33  ;;  %12960 = vst [vmem:[#allocation130_spill] sm:$0xff] %v9356_v43  ;;  %v3105_v1 = vmul.f32 %v9335_v53, %v12934_v8  ;;  %v3107_v41 = vmul.f32 %v9335_v53, %v12935_v32  ;;  %4267 = vmatprep.mubr.f32.mxu0 %v12860_v11  ;;  %v3233_v50 = vmul.f32 %v9338_v25, %v12937_v7  ;;  %v12989_v32 = vld [vmem:[#allocation220_spill] sm:$0xff] }
 0x301   :  { %v3235_v45 = vmul.f32 %v9338_v25, %v12938_v0  ;;  %v3361_v55 = vmul.f32 %v9341_v20, %v12939_v9  ;;  %v3363_v30 = vmul.f32 %v9341_v20, %v12940_v63  ;;  %4365 = vmatprep.mubr.f32.mxu1 %v12860_v11  ;;  %v3929_v19 = vadd.f32 %v3865_v23, %v3801_v5  ;;  %v12992_v11 = vld [vmem:[#allocation226_spill] sm:$0xff] }
 0x302   :  { %v3931_v52 = vadd.f32 %v3867_v26, %v3803_v4  ;;  %v3169_v51 = vadd.f32 %v3105_v1, %v3041_v31  ;;  %v3171_v15 = vadd.f32 %v3107_v41, %v3043_v61  ;;  %v3489_v60 = vmul.f32 %v9345_v27, %v12942_v38  ;;  %v12961_v41 = vld [vmem:[#allocation90_spill] sm:$0xff]  ;;  %v12988_v38 = vld [vmem:[#allocation108_spill] sm:$0xff] }
 0x303   :  { %v3491_v29 = vmul.f32 %v9345_v27, %v12943_v16  ;;  %v3617_v2 = vmul.f32 %v9348_v49, %v12945_v48  ;;  %v3619_v44 = vmul.f32 %v9348_v49, %v12946_v35  ;;  %v3745_v26 = vmul.f32 %v9353_v33, %v12947_v12  ;;  %v13001_v49 = vld [vmem:[#allocation40_spill] sm:$0xff] }
 0x304   :  { %v5016_v9 = vpack.c.bf16 %v3931_v52, %v3929_v19  ;;  %v3297_v63 = vadd.f32 %v3233_v50, %v3169_v51  ;;  %v3299_v0 = vadd.f32 %v3235_v45, %v3171_v15  ;;  %v3747_v23 = vmul.f32 %v9353_v33, %v12948_v56  ;;  %v12962_v51 = vld [vmem:[#allocation127_spill] sm:$0xff]  ;;  %v12964_v56 = vld [vmem:[#allocation86_spill] sm:$0xff] }
 0x305   :  { %v3873_v31 = vmul.f32 %v9356_v43, %v12950_v58  ;;  %v3875_v61 = vmul.f32 %v9356_v43, %v12951_v37  ;;  %v2860_v5 = vsub.f32 2.0, %v2844_v3  ;;  %v2760_v19 = vadd.f32 %v12961_v41, %v2759_v59  ;;  %v12963_v15 = vld [vmem:[#allocation83_spill] sm:$0xff]  ;;  %v12969_v59 = vld [vmem:[#allocation142_spill] sm:$0xff] }
 0x306   :  { %5017 = vmatprep.subr.bf16.mxu0 %v5016_v9  ;;  %v3425_v4 = vadd.f32 %v3361_v55, %v3297_v63  ;;  %v3427_v1 = vadd.f32 %v3363_v30, %v3299_v0  ;;  %v3167_v50 = vadd.f32 %v3103_v14, %v9306_v39  ;;  %v3293_v52 = vadd.f32 %v3229_v21, %v3165_v36  ;;  %v12965_v3 = vld [vmem:[#allocation39_spill] sm:$0xff]  ;;  %v12971_v21 = vld [vmem:[#allocation212_spill] sm:$0xff] }
 0x307   :  { %v2876_v45 = vmul.f32 %v5245_v17, %v2860_v5  ;;  %v3357_v12 = vmul.f32 %v12963_v15, %v12962_v51  ;;  %v3359_v35 = vmul.f32 %v12963_v15, %v12964_v56  ;;  %5246 = vrcp.f32 %v2760_v19  ;;  %v12967_v0 = vld [vmem:[#allocation211_spill] sm:$0xff] }
 0x308   :  { %v3553_v58 = vadd.f32 %v3489_v60, %v3425_v4  ;;  %v3555_v48 = vadd.f32 %v3491_v29, %v3427_v1  ;;  %v3295_v37 = vadd.f32 %v3231_v28, %v3167_v50  ;;  %v12973_v55 = vld [vmem:[#allocation243_spill] sm:$0xff]  ;;  %v12975_v60 = vld [vmem:[#allocation136_spill] sm:$0xff]  ;;  %v12979_v4 = vld [vmem:[#allocation17_spill] sm:$0xff] }
 0x309   :  { %v9401_v9 = vmul.f32 %v12965_v3, %v2876_v45  ;;  %v9404_v63 = vmul.f32 %v12967_v0, %v2876_v45  ;;  %v9407_v39 = vmul.f32 %v12969_v59, %v2876_v45  ;;  %v9410_v14 = vmul.f32 %v12971_v21, %v2876_v45  ;;  %v12977_v28 = vld [vmem:[#allocation244_spill] sm:$0xff]  ;;  %v12981_v50 = vld [vmem:[#allocation46_spill] sm:$0xff]  ;;  %v13002_v56 = vld [vmem:[#allocation235_spill] sm:$0xff] }
 0x30a   :  { %v3681_v17 = vadd.f32 %v3617_v2, %v3553_v58  ;;  %v3683_v36 = vadd.f32 %v3619_v44, %v3555_v48  ;;  %v9413_v30 = vmul.f32 %v12973_v55, %v2876_v45  ;;  %v9416_v29 = vmul.f32 %v12975_v60, %v2876_v45  ;;  %v12982_v3 = vld [vmem:[#allocation52_spill] sm:$0xff]  ;;  %v12983_v2 = vld [vmem:[#allocation50_spill] sm:$0xff] }
 0x30b   :  { %12966 = vst [vmem:[#allocation131_spill] sm:$0xff] %v9401_v9  ;;  %12968 = vst [vmem:[#allocation132_spill] sm:$0xff] %v9404_v63  ;;  %v9419_v5 = vmul.f32 %v12977_v28, %v2876_v45  ;;  %v9422_v1 = vmul.f32 %v12979_v4, %v2876_v45  ;;  %v3032_v15 = vmul.f32 %v9401_v9, %v12981_v50  ;;  %v12984_v59 = vld [vmem:[#allocation54_spill] sm:$0xff]  ;;  %v12987_v4 = vld [vmem:[#allocation104_spill] sm:$0xff] }
 0x30c   :  { %12970 = vst [vmem:[#allocation144_spill] sm:$0xff] %v9407_v39  ;;  %12972 = vst [vmem:[#allocation174_spill] sm:$0xff] %v9410_v14  ;;  %v3034_v0 = vmul.f32 %v9401_v9, %v12982_v3  ;;  %v3809_v58 = vadd.f32 %v3745_v26, %v3681_v17  ;;  %v3811_v48 = vadd.f32 %v3747_v23, %v3683_v36  ;;  %v12985_v55 = vld [vmem:[#allocation102_spill] sm:$0xff] }
 0x30d   :  { %12974 = vst [vmem:[#allocation133_spill] sm:$0xff] %v9413_v30  ;;  %12976 = vst [vmem:[#allocation134_spill] sm:$0xff] %v9416_v29  ;;  %v3096_v44 = vmul.f32 %v9404_v63, %v12983_v2  ;;  %v3098_v21 = vmul.f32 %v9404_v63, %v12984_v59  ;;  %v3224_v60 = vmul.f32 %v9407_v39, %v12985_v55  ;;  %v12986_v28 = vld [vmem:[#allocation106_spill] sm:$0xff] }
 0x30e   :  { %12978 = vst [vmem:[#allocation135_spill] sm:$0xff] %v9419_v5  ;;  %12980 = vst [vmem:[#allocation145_spill] sm:$0xff] %v9422_v1  ;;  %v3226_v45 = vmul.f32 %v9407_v39, %v12986_v28  ;;  %v3352_v16 = vmul.f32 %v9410_v14, %v12987_v4  ;;  %v3354_v7 = vmul.f32 %v9410_v14, %v12988_v38  ;;  %v12993_v14 = vld [vmem:[#allocation84_spill] sm:$0xff] }
 0x30f   :  { %v3937_v26 = vadd.f32 %v3873_v31, %v3809_v58  ;;  %v3939_v23 = vadd.f32 %v3875_v61, %v3811_v48  ;;  %v3160_v17 = vadd.f32 %v3096_v44, %v3032_v15  ;;  %v3162_v36 = vadd.f32 %v3098_v21, %v3034_v0  ;;  %v12994_v61 = vld [vmem:[#allocation176_spill] sm:$0xff]  ;;  %v12995_v0 = vld [vmem:[#allocation87_spill] sm:$0xff]  ;;  %v12996_v48 = vld [vmem:[#allocation181_spill] sm:$0xff] }
 0x310   :  { %v3480_v8 = vmul.f32 %v9413_v30, %v12989_v32  ;;  %v3482_v40 = vmul.f32 %v9413_v30, %v12990_v6  ;;  %v3608_v42 = vmul.f32 %v9416_v29, %v12991_v62  ;;  %v3610_v10 = vmul.f32 %v9416_v29, %v12992_v11 }
 0x311   :  { %v5024_v39 = vpack.c.bf16 %v3939_v23, %v3937_v26  ;;  %v3288_v63 = vadd.f32 %v3224_v60, %v3160_v17  ;;  %v3290_v9 = vadd.f32 %v3226_v45, %v3162_v36  ;;  %v3736_v31 = vmul.f32 %v9419_v5, %v12993_v14  ;;  %v5247_v30 = vpop.eup %5246  ;;  %v12997_v60 = vld [vmem:[#allocation229_spill] sm:$0xff] }
 0x312   :  { %v3738_v15 = vmul.f32 %v9419_v5, %v12994_v61  ;;  %v3864_v58 = vmul.f32 %v9422_v1, %v12995_v0  ;;  %v3866_v44 = vmul.f32 %v9422_v1, %v12996_v48  ;;  %v3421_v21 = vadd.f32 %v3357_v12, %v3293_v52  ;;  %v12998_v45 = vld [vmem:[#allocation197_spill] sm:$0xff]  ;;  %v13000_v5 = vld [vmem:[#allocation231_spill] sm:$0xff] }
 0x313   :  { %5025 = vmatprep.subr.bf16.mxu1 %v5024_v39  ;;  %v3416_v43 = vadd.f32 %v3352_v16, %v3288_v63  ;;  %v3418_v29 = vadd.f32 %v3354_v7, %v3290_v9  ;;  %v3423_v26 = vadd.f32 %v3359_v35, %v3295_v37  ;;  %v3485_v23 = vmul.f32 %v12998_v45, %v12997_v60  ;;  %v12999_v36 = vld [vmem:[#allocation233_spill] sm:$0xff]  ;;  %v13003_v39 = vld [vmem:[#allocation146_spill] sm:$0xff]  ;;  %v13004_v7 = vld [vmem:[#allocation91_spill] sm:$0xff] }
 0x314   :  { %v2846_v17 = vmul.f32 %v5247_v30, %v2760_v19  ;;  %v3487_v33 = vmul.f32 %v12998_v45, %v12999_v36  ;;  %v3613_v27 = vmul.f32 %v13001_v49, %v13000_v5  ;;  %v3615_v20 = vmul.f32 %v13001_v49, %v13002_v56  ;;  %v13005_v9 = vld [vmem:[#allocation162_spill] sm:$0xff] }
 0x315   :  { %v3544_v1 = vadd.f32 %v3480_v8, %v3416_v43  ;;  %v3546_v12 = vadd.f32 %v3482_v40, %v3418_v29  ;;  %v3549_v52 = vadd.f32 %v3485_v23, %v3421_v21  ;;  %v3741_v16 = vmul.f32 %v9260_v18, %v13003_v39  ;;  %v13006_v60 = vld [vmem:[#allocation190_spill] sm:$0xff]  ;;  %v13007_v29 = vld [vmem:[#allocation61_spill] sm:$0xff] }
 0x316   :  { %v2862_v37 = vsub.f32 2.0, %v2846_v17  ;;  %v3551_v35 = vadd.f32 %v3487_v33, %v3423_v26  ;;  %v3743_v19 = vmul.f32 %v9260_v18, %v13004_v7  ;;  %v3869_v63 = vmul.f32 %v9263_v54, %v13005_v9 }
 0x317   :  { %v3672_v45 = vadd.f32 %v3608_v42, %v3544_v1  ;;  %v3674_v36 = vadd.f32 %v3610_v10, %v3546_v12  ;;  %v3677_v5 = vadd.f32 %v3613_v27, %v3549_v52  ;;  %v3871_v49 = vmul.f32 %v9263_v54, %v13006_v60  ;;  %v13008_v42 = vld [vmem:[#allocation137_spill] sm:$0xff]  ;;  %v13009_v27 = vld [vmem:[#allocation248_spill] sm:$0xff] }
 0x318   :  { %v2878_v8 = vmul.f32 %v5247_v30, %v2862_v37  ;;  %v3679_v40 = vadd.f32 %v3615_v20, %v3551_v35  ;;  %v3045_v43 = vmul.f32 %v9332_v57, %v12795_v13  ;;  %v3047_v33 = vmul.f32 %v9332_v57, %v13007_v29  ;;  %v13010_v54 = vld [vmem:[#allocation140_spill] sm:$0xff]  ;;  %v13011_v30 = vld [vmem:[#allocation66_spill] sm:$0xff] }
 0x319   :  { %v3800_v21 = vadd.f32 %v3736_v31, %v3672_v45  ;;  %v3802_v26 = vadd.f32 %v3738_v15, %v3674_v36  ;;  %v3805_v18 = vadd.f32 %v3741_v16, %v3677_v5  ;;  %v3109_v23 = vmul.f32 %v9335_v53, %v12735_v24  ;;  %v13012_v31 = vld [vmem:[#allocation44_spill] sm:$0xff]  ;;  %v13013_v5 = vld [vmem:[#allocation47_spill] sm:$0xff] }
 0x31a   :  { %v9479_v10 = vmul.f32 %v13008_v42, %v2878_v8  ;;  %v9482_v1 = vmul.f32 %v13009_v27, %v2878_v8  ;;  %v9485_v20 = vmul.f32 %v13010_v54, %v2878_v8  ;;  %v9488_v17 = vmul.f32 %v13011_v30, %v2878_v8 }
 0x31b   :  { %v3928_v12 = vadd.f32 %v3864_v58, %v3800_v21  ;;  %v3930_v57 = vadd.f32 %v3866_v44, %v3802_v26  ;;  %v9491_v15 = vmul.f32 %v13012_v31, %v2878_v8  ;;  %v9494_v36 = vmul.f32 %v13013_v5, %v2878_v8 }
 0x31c   :  { %v9497_v52 = vmul.f32 %v9223_v46, %v2878_v8  ;;  %v9500_v16 = vmul.f32 %v12961_v41, %v2878_v8  ;;  %v3040_v37 = vmul.f32 %v9479_v10, %v12981_v50  ;;  %v3042_v35 = vmul.f32 %v9479_v10, %v12982_v3 }
 0x31d   :  { %v5018_v58 = vpack.c.bf16 %v3930_v57, %v3928_v12  ;;  %v3104_v44 = vmul.f32 %v9482_v1, %v12983_v2  ;;  %v3106_v45 = vmul.f32 %v9482_v1, %v12984_v59  ;;  %v3232_v46 = vmul.f32 %v9485_v20, %v12985_v55 }
 0x31e   :  { %v3234_v41 = vmul.f32 %v9485_v20, %v12986_v28  ;;  %v3360_v8 = vmul.f32 %v9488_v17, %v12987_v4  ;;  %v3362_v21 = vmul.f32 %v9488_v17, %v12988_v38  ;;  %v3488_v26 = vmul.f32 %v9491_v15, %v12989_v32 }
 0x31f   :  { %5019 = vmatpush1.bf16.msra.mxu0 %v5018_v58  ;;  %v3168_v42 = vadd.f32 %v3104_v44, %v3040_v37  ;;  %v3170_v27 = vadd.f32 %v3106_v45, %v3042_v35  ;;  %v3490_v54 = vmul.f32 %v9491_v15, %v12990_v6  ;;  %v3616_v30 = vmul.f32 %v9494_v36, %v12991_v62 }
 0x320   :  { %v3618_v12 = vmul.f32 %v9494_v36, %v12992_v11  ;;  %v3744_v57 = vmul.f32 %v9497_v52, %v12993_v14  ;;  %v3746_v31 = vmul.f32 %v9497_v52, %v12994_v61  ;;  %v3872_v5 = vmul.f32 %v9500_v16, %v12995_v0 }
 0x321   :  { %v3296_v37 = vadd.f32 %v3232_v46, %v3168_v42  ;;  %v3298_v35 = vadd.f32 %v3234_v41, %v3170_v27  ;;  %v3874_v58 = vmul.f32 %v9500_v16, %v12996_v48  ;;  %v3807_v44 = vadd.f32 %v3743_v19, %v3679_v40  ;;  %v13014_v42 = vld [vmem:[#allocation126_spill] sm:$0xff] }
 0x322   :  { %v3933_v45 = vadd.f32 %v3869_v63, %v3805_v18  ;;  %v3111_v62 = vmul.f32 %v9335_v53, %v12737_v22  ;;  %v3173_v11 = vadd.f32 %v3109_v23, %v3045_v43  ;;  %v3237_v14 = vmul.f32 %v9338_v25, %v12738_v47  ;;  %v13015_v19 = vld [vmem:[#allocation86_spill] sm:$0xff]  ;;  %v13016_v18 = vld [vmem:[#allocation229_spill] sm:$0xff] }
 0x323   :  { %v3424_v6 = vadd.f32 %v3360_v8, %v3296_v37  ;;  %v3426_v32 = vadd.f32 %v3362_v21, %v3298_v35  ;;  %v3935_v61 = vadd.f32 %v3871_v49, %v3807_v44  ;;  %v3239_v0 = vmul.f32 %v9338_v25, %v12739_v34  ;;  %v13017_v23 = vld [vmem:[#allocation165_spill] sm:$0xff]  ;;  %v13019_v25 = vld [vmem:[#allocation231_spill] sm:$0xff] }
 0x324   :  { %v3175_v46 = vadd.f32 %v3111_v62, %v3047_v33  ;;  %v3301_v41 = vadd.f32 %v3237_v14, %v3173_v11  ;;  %v3365_v27 = vmul.f32 %v13014_v42, %v12962_v51  ;;  %v3367_v63 = vmul.f32 %v13014_v42, %v13015_v19  ;;  %v13018_v49 = vld [vmem:[#allocation233_spill] sm:$0xff]  ;;  %v13020_v62 = vld [vmem:[#allocation124_spill] sm:$0xff] }
 0x325   :  { %v3552_v40 = vadd.f32 %v3488_v26, %v3424_v6  ;;  %v3554_v53 = vadd.f32 %v3490_v54, %v3426_v32  ;;  %v5020_v43 = vpack.c.bf16 %v3935_v61, %v3933_v45  ;;  %v3493_v48 = vmul.f32 %v13017_v23, %v13016_v18  ;;  %v13021_v32 = vld [vmem:[#allocation150_spill] sm:$0xff] }
 0x326   :  { %v3303_v8 = vadd.f32 %v3239_v0, %v3175_v46  ;;  %v3429_v21 = vadd.f32 %v3365_v27, %v3301_v41  ;;  %v3495_v37 = vmul.f32 %v13017_v23, %v13018_v49  ;;  %v3621_v11 = vmul.f32 %v13020_v62, %v13019_v25  ;;  %v13022_v54 = vld [vmem:[#allocation130_spill] sm:$0xff]  ;;  %v13024_v41 = vld [vmem:[#allocation131_spill] sm:$0xff] }
 0x327   :  { %v3680_v14 = vadd.f32 %v3616_v30, %v3552_v40  ;;  %v3682_v33 = vadd.f32 %v3618_v12, %v3554_v53  ;;  %5021 = vmatprep.subr.bf16.mxu0 %v5020_v43  ;;  %v3623_v35 = vmul.f32 %v13020_v62, %v13002_v56  ;;  %v3749_v6 = vmul.f32 %v13021_v32, %v13003_v39  ;;  %v13023_v12 = vld [vmem:[#allocation56_spill] sm:$0xff]  ;;  %v13028_v62 = vld [vmem:[#allocation62_spill] sm:$0xff]  ;;  %v13034_v39 = vld [vmem:[#allocation77_spill] sm:$0xff] }
 0x328   :  { %v3431_v61 = vadd.f32 %v3367_v63, %v3303_v8  ;;  %v3557_v26 = vadd.f32 %v3493_v48, %v3429_v21  ;;  %v3751_v0 = vmul.f32 %v13021_v32, %v13004_v7  ;;  %v3877_v44 = vmul.f32 %v13022_v54, %v13005_v9  ;;  %v13025_v53 = vld [vmem:[#allocation60_spill] sm:$0xff]  ;;  %v13026_v48 = vld [vmem:[#allocation58_spill] sm:$0xff]  ;;  %v13036_v56 = vld [vmem:[#allocation133_spill] sm:$0xff] }
 0x329   :  { %v3808_v45 = vadd.f32 %v3744_v57, %v3680_v14  ;;  %v3810_v46 = vadd.f32 %v3746_v31, %v3682_v33  ;;  %v3879_v30 = vmul.f32 %v13022_v54, %v13006_v60  ;;  %v3036_v42 = vmul.f32 %v13024_v41, %v13023_v12  ;;  %v13027_v43 = vld [vmem:[#allocation132_spill] sm:$0xff]  ;;  %v13029_v31 = vld [vmem:[#allocation118_spill] sm:$0xff] }
 0x32a   :  { %v3559_v27 = vadd.f32 %v3495_v37, %v3431_v61  ;;  %v3685_v40 = vadd.f32 %v3621_v11, %v3557_v26  ;;  %v3038_v63 = vmul.f32 %v13024_v41, %v13025_v53  ;;  %v3100_v23 = vmul.f32 %v13027_v43, %v13026_v48  ;;  %v13030_v14 = vld [vmem:[#allocation144_spill] sm:$0xff]  ;;  %v13032_v26 = vld [vmem:[#allocation122_spill] sm:$0xff] }
 0x32b   :  { %v3936_v8 = vadd.f32 %v3872_v5, %v3808_v45  ;;  %v3938_v21 = vadd.f32 %v3874_v58, %v3810_v46  ;;  %v3102_v57 = vmul.f32 %v13027_v43, %v13028_v62  ;;  %v3228_v33 = vmul.f32 %v13030_v14, %v13029_v31  ;;  %v13031_v9 = vld [vmem:[#allocation76_spill] sm:$0xff]  ;;  %v13033_v41 = vld [vmem:[#allocation174_spill] sm:$0xff] }
 0x32c   :  { %v3687_v32 = vadd.f32 %v3623_v35, %v3559_v27  ;;  %v3813_v54 = vadd.f32 %v3749_v6, %v3685_v40  ;;  %v3164_v60 = vadd.f32 %v3100_v23, %v3036_v42  ;;  %v3230_v37 = vmul.f32 %v13030_v14, %v13031_v9  ;;  %v13035_v43 = vld [vmem:[#allocation228_spill] sm:$0xff]  ;;  %v13038_v27 = vld [vmem:[#allocation230_spill] sm:$0xff] }
 0x32d   :  { %v5026_v11 = vpack.c.bf16 %v3938_v21, %v3936_v8  ;;  %v3166_v61 = vadd.f32 %v3102_v57, %v3038_v63  ;;  %v3356_v7 = vmul.f32 %v13033_v41, %v13032_v26  ;;  %v3358_v5 = vmul.f32 %v13033_v41, %v13034_v39  ;;  %v13037_v6 = vld [vmem:[#allocation232_spill] sm:$0xff]  ;;  %v13039_v40 = vld [vmem:[#allocation134_spill] sm:$0xff] }
 0x32e   :  { %v3815_v58 = vadd.f32 %v3751_v0, %v3687_v32  ;;  %v3941_v45 = vadd.f32 %v3877_v44, %v3813_v54  ;;  %v3292_v46 = vadd.f32 %v3228_v33, %v3164_v60  ;;  %v3484_v25 = vmul.f32 %v13036_v56, %v13035_v43  ;;  %v13040_v23 = vld [vmem:[#allocation234_spill] sm:$0xff]  ;;  %v13041_v14 = vld [vmem:[#allocation236_spill] sm:$0xff]  ;;  %v13042_v0 = vld [vmem:[#allocation135_spill] sm:$0xff] }
 0x32f   :  { %5027 = vmatpush1.bf16.msra.mxu1 %v5026_v11  ;;  %v3294_v35 = vadd.f32 %v3230_v37, %v3166_v61  ;;  %v3486_v42 = vmul.f32 %v13036_v56, %v13037_v6  ;;  %v3612_v63 = vmul.f32 %v13039_v40, %v13038_v27  ;;  %v3614_v8 = vmul.f32 %v13039_v40, %v13040_v23  ;;  %v13043_v60 = vld [vmem:[#allocation147_spill] sm:$0xff]  ;;  %v13044_v54 = vld [vmem:[#allocation237_spill] sm:$0xff]  ;;  %v13046_v61 = vld [vmem:[#allocation26_spill] sm:$0xff] }
 0x330   :  { %v3943_v21 = vadd.f32 %v3879_v30, %v3815_v58  ;;  %v3420_v57 = vadd.f32 %v3356_v7, %v3292_v46  ;;  %v3740_v44 = vmul.f32 %v13042_v0, %v13041_v14  ;;  %v3742_v33 = vmul.f32 %v13042_v0, %v13043_v60  ;;  %v13045_v37 = vld [vmem:[#allocation145_spill] sm:$0xff] }
 0x331   :  { %v3422_v32 = vadd.f32 %v3358_v5, %v3294_v35  ;;  %v3868_v11 = vmul.f32 %v13045_v37, %v13044_v54  ;;  %v3870_v56 = vmul.f32 %v13045_v37, %v13046_v61  ;;  %v3044_v41 = vmul.f32 %v9479_v10, %v13023_v12 }
 0x332   :  { %v5028_v49 = vpack.c.bf16 %v3943_v21, %v3941_v45  ;;  %v3548_v40 = vadd.f32 %v3484_v25, %v3420_v57  ;;  %v3046_v7 = vmul.f32 %v9479_v10, %v13025_v53  ;;  %v3108_v30 = vmul.f32 %v9482_v1, %v13026_v48  ;;  %v13107_v53 = vld [vmem:[#allocation41_spill] sm:$0xff] }
 0x333   :  { %v3550_v58 = vadd.f32 %v3486_v42, %v3422_v32  ;;  %v3110_v5 = vmul.f32 %v9482_v1, %v13028_v62  ;;  %v3236_v46 = vmul.f32 %v9485_v20, %v13029_v31  ;;  %v3238_v35 = vmul.f32 %v9485_v20, %v13031_v9  ;;  %v13098_v9 = vld [vmem:[#allocation195_spill] sm:$0xff] }
 0x334   :  { %5029 = vmatprep.subr.bf16.mxu1 %v5028_v49  ;;  %v3676_v0 = vadd.f32 %v3612_v63, %v3548_v40  ;;  %v3172_v45 = vadd.f32 %v3108_v30, %v3044_v41  ;;  %v3364_v25 = vmul.f32 %v9488_v17, %v13032_v26  ;;  %v3366_v10 = vmul.f32 %v9488_v17, %v13034_v39  ;;  %v13090_v39 = vld [vmem:[#allocation205_spill] sm:$0xff] }
 0x335   :  { %v3678_v21 = vadd.f32 %v3614_v8, %v3550_v58  ;;  %v3174_v42 = vadd.f32 %v3110_v5, %v3046_v7  ;;  %v3492_v1 = vmul.f32 %v9491_v15, %v13035_v43  ;;  %v3494_v57 = vmul.f32 %v9491_v15, %v13037_v6  ;;  %v13047_v5 = vld [vmem:[#allocation139_spill] sm:$0xff] }
 0x336   :  { %v3804_v32 = vadd.f32 %v3740_v44, %v3676_v0  ;;  %v3300_v37 = vadd.f32 %v3236_v46, %v3172_v45  ;;  %v3620_v20 = vmul.f32 %v9494_v36, %v13038_v27  ;;  %v3622_v49 = vmul.f32 %v9494_v36, %v13040_v23  ;;  %v13048_v36 = vld [vmem:[#allocation48_spill] sm:$0xff]  ;;  %v13049_v46 = vld [vmem:[#allocation245_spill] sm:$0xff]  ;;  %v13051_v45 = vld [vmem:[#allocation123_spill] sm:$0xff] }
 0x337   :  { %v3806_v63 = vadd.f32 %v3742_v33, %v3678_v21  ;;  %v3302_v41 = vadd.f32 %v3238_v35, %v3174_v42  ;;  %v3748_v17 = vmul.f32 %v9497_v52, %v13041_v14  ;;  %v3750_v8 = vmul.f32 %v9497_v52, %v13043_v60  ;;  %v13050_v0 = vld [vmem:[#allocation249_spill] sm:$0xff]  ;;  %v13052_v52 = vld [vmem:[#allocation67_spill] sm:$0xff]  ;;  %v13062_v14 = vld [vmem:[#allocation42_spill] sm:$0xff] }
 0x338   :  { %v3932_v40 = vadd.f32 %v3868_v11, %v3804_v32  ;;  %v3428_v7 = vadd.f32 %v3364_v25, %v3300_v37  ;;  %v3876_v15 = vmul.f32 %v9500_v16, %v13044_v54  ;;  %v3878_v44 = vmul.f32 %v9500_v16, %v13046_v61  ;;  %v13053_v25 = vld [vmem:[#allocation241_spill] sm:$0xff]  ;;  %v13056_v16 = vld [vmem:[#allocation143_spill] sm:$0xff] }
 0x339   :  { %v3934_v30 = vadd.f32 %v3870_v56, %v3806_v63  ;;  %v3430_v58 = vadd.f32 %v3366_v10, %v3302_v41  ;;  %v2775_v33 = vadd.f32 %v13048_v36, %v13047_v5  ;;  %5248 = vpow2.f32 %v13049_v46  ;;  %v13054_v21 = vld [vmem:[#allocation73_spill] sm:$0xff]  ;;  %v13057_v10 = vld [vmem:[#allocation138_spill] sm:$0xff]  ;;  %v13059_v46 = vld [vmem:[#allocation43_spill] sm:$0xff] }
 0x33a   :  { %v3556_v35 = vadd.f32 %v3492_v1, %v3428_v7  ;;  %5250 = vpow2.f32 %v13050_v0  ;;  %v2789_v11 = vadd.f32 %v13052_v52, %v13051_v45  ;;  %v13055_v42 = vsub.f32 %v13053_v25, %v13054_v21  ;;  %v13058_v41 = vld [vmem:[#allocation141_spill] sm:$0xff]  ;;  %v13060_v7 = vld [vmem:[#allocation15_spill] sm:$0xff] }
 0x33b   :  { %v5022_v37 = vpack.c.bf16 %v3934_v30, %v3932_v40  ;;  %v3558_v54 = vadd.f32 %v3494_v57, %v3430_v58  ;;  %v2776_v56 = vadd.f32 %v13056_v16, %v2775_v33  ;;  %5252 = vpow2.f32 %v13057_v10  ;;  %v13064_v57 = vld [vmem:[#allocation169_spill] sm:$0xff]  ;;  %v13065_v40 = vld [vmem:[#allocation156_spill] sm:$0xff] }
 0x33c   :  { %v2604_v32 = vmul.f32 1.442695, %v13055_v42  ;;  %v3684_v63 = vadd.f32 %v3620_v20, %v3556_v35  ;;  %5254 = vpow2.f32 %v13058_v41  ;;  %v2790_v1 = vadd.f32 %v13059_v46, %v2789_v11  ;;  %v13063_v42 = vld [vmem:[#allocation10_spill] sm:$0xff]  ;;  %v13067_v20 = vld [vmem:[#allocation11_spill] sm:$0xff]  ;;  %v13070_v41 = vld [vmem:[#allocation213_spill] sm:$0xff] }
 0x33d   :  { %v13061_v0 = vsub.f32 %v13060_v7, %v13054_v21  ;;  %5023 = vmatpush1.bf16.msra.mxu0 %v5022_v37  ;;  %v3686_v60 = vadd.f32 %v3622_v49, %v3558_v54  ;;  %v2777_v25 = vadd.f32 %v13062_v14, %v2776_v56  ;;  %5256 = vpow2.f32 %v13063_v42  ;;  %v13068_v35 = vld [vmem:[#allocation186_spill] sm:$0xff]  ;;  %v13071_v21 = vld [vmem:[#allocation267_spill] sm:$0xff] }
 0x33e   :  { %v13066_v30 = vsub.f32 %v13064_v57, %v13065_v40  ;;  %v3812_v33 = vadd.f32 %v3748_v17, %v3684_v63  ;;  %5258 = vpow2.f32 %v13067_v20  ;;  %v13069_v11 = vsub.f32 %v13068_v35, %v13065_v40  ;;  %v13072_v54 = vld [vmem:[#allocation114_spill] sm:$0xff]  ;;  %v13073_v56 = vld [vmem:[#allocation79_spill] sm:$0xff]  ;;  %v13076_v17 = vld [vmem:[#allocation173_spill] sm:$0xff] }
 0x33f   :  { %v2608_v61 = vmul.f32 1.442695, %v13061_v0  ;;  %v2425_v7 = vsub.f32 %v13071_v21, %v13070_v41  ;;  %v3814_v37 = vadd.f32 %v3750_v8, %v3686_v60  ;;  %v2778_v49 = vadd.f32 %v13072_v54, %v2777_v25  ;;  %v13074_v0 = vld [vmem:[#allocation268_spill] sm:$0xff]  ;;  %v13077_v63 = vld [vmem:[#allocation23_spill] sm:$0xff]  ;;  %v13078_v35 = vld [vmem:[#allocation74_spill] sm:$0xff] }
 0x340   :  { %v2616_v58 = vmul.f32 1.442695, %v13066_v30  ;;  %v2620_v10 = vmul.f32 1.442695, %v13069_v11  ;;  %5260 = vpow2.f32 %v13073_v56  ;;  %v2427_v42 = vsub.f32 %v13074_v0, %v13070_v41  ;;  %v13075_v30 = vld [vmem:[#allocation260_spill] sm:$0xff]  ;;  %v13079_v8 = vld [vmem:[#allocation125_spill] sm:$0xff] }
 0x341   :  { %v3940_v57 = vadd.f32 %v3876_v15, %v3812_v33  ;;  %4912 = vmatmul.mubr.msk.f32.vlgmr.msra.gmra.mrb[104].mxu0 %vm60_vm0, %v13075_v30  ;;  %5262 = vpow2.f32 %v13076_v17  ;;  %v2429_v20 = vsub.f32 %v13077_v63, %v13070_v41  ;;  %v2431_v11 = vsub.f32 %v13078_v35, %v13070_v41  ;;  %v13080_v21 = vld [vmem:[#allocation45_spill] sm:$0xff]  ;;  %v13082_v15 = vld [vmem:[#allocation75_spill] sm:$0xff]  ;;  %v13085_v63 = vld [vmem:[#allocation188_spill] sm:$0xff] }
 0x342   :  { %v3942_v60 = vadd.f32 %v3878_v44, %v3814_v37  ;;  %v2779_v25 = vadd.f32 %v13079_v8, %v2778_v49  ;;  %5264 = vpow2.f32 %v13080_v21  ;;  %v13081_v56 = vmov 0.0   ;;  %v13083_v0 = vld [vmem:[#allocation187_spill] sm:$0xff]  ;;  %v13086_v35 = vld [vmem:[#allocation189_spill] sm:$0xff] }
 0x343   :  { %4273 = vmatprep.mubr.f32.mxu0 %v13081_v56  ;;  %v2433_v33 = vsub.f32 %v13082_v15, %v13070_v41  ;;  %5266 = vpow2.f32 %v2604_v32  ;;  %v13084_v17 = vsub.f32 %v13083_v0, %v13065_v40  ;;  %v2435_v27 = vsub.f32 %v13085_v63, %v13070_v41  ;;  %v9674_v37 = vpop.eup %5248  ;;  %v13087_v21 = vld [vmem:[#allocation149_spill] sm:$0xff]  ;;  %v13088_v15 = vld [vmem:[#allocation204_spill] sm:$0xff] }
 0x344   :  { %v2437_v44 = vsub.f32 %v13086_v35, %v13070_v41  ;;  %v5030_v49 = vpack.c.bf16 %v3942_v60, %v3940_v57  ;;  %v2780_v6 = vadd.f32 %v13087_v21, %v2779_v25  ;;  %5268 = vpow2.f32 %v2608_v61  ;;  %v9677_v43 = vpop.eup %5250  ;;  %v13092_v41 = vld [vmem:[#allocation38_spill] sm:$0xff]  ;;  %v13096_v35 = vld [vmem:[#allocation68_spill] sm:$0xff] }
 0x345   :  { %v2624_v23 = vmul.f32 1.442695, %v13084_v17  ;;  %v2791_v32 = vadd.f32 %v9674_v37, %v2790_v1  ;;  %5270 = vpow2.f32 %v2616_v58  ;;  %v13089_v0 = vsub.f32 %v13088_v15, %v13065_v40  ;;  %4913 = vmatmul.mubr.msk.f32.gmra.mrb[106].mxu0 %vm60_vm0, %v13092_v41  ;;  %v9688_v57 = vpop.eup %5252  ;;  %v13093_v61 = vld [vmem:[#allocation30_spill] sm:$0xff] }
 0x346   :  { %v13091_v63 = vsub.f32 %v13090_v39, %v13065_v40  ;;  %5031 = vmatpush1.bf16.msra.mxu1 %v5030_v49  ;;  %v9691_v60 = vadd.f32 %v13093_v61, %v2780_v6  ;;  %5272 = vpow2.f32 %v2620_v10  ;;  %v13094_v1 = vld [vmem:[#allocation242_spill] sm:$0xff]  ;;  %v13097_v15 = vsub.f32 %v13096_v35, %v13065_v40  ;;  %4279 = vmatprep.mubr.f32.mxu0 %v13081_v56  ;;  %v9700_v39 = vpop.eup %5254  ;;  %v13099_v6 = vld [vmem:[#allocation64_spill] sm:$0xff] }
 0x347   :  { %v2628_v17 = vmul.f32 1.442695, %v13089_v0  ;;  %v13095_v58 = vsub.f32 %v13094_v1, %v13065_v40  ;;  %5274 = vpow2.f32 %v2624_v23  ;;  %v2650_v49 = vmul.f32 1.442695, %v2425_v7  ;;  %v9705_v10 = vpop.eup %5256  ;;  %v13101_v1 = vld [vmem:[#allocation65_spill] sm:$0xff]  ;;  %v13102_v40 = vld [vmem:[#allocation163_spill] sm:$0xff] }
 0x348   :  { %v2632_v26 = vmul.f32 1.442695, %v13091_v63  ;;  %v2640_v0 = vmul.f32 1.442695, %v13097_v15  ;;  %v2792_v63 = vadd.f32 %v9677_v43, %v2791_v32  ;;  %v2441_v31 = vsub.f32 %v13099_v6, %v13098_v9  ;;  %13100 = vst [vmem:[#allocation198_spill] sm:$0xff] %v9705_v10  ;;  %v13103_v15 = vld [vmem:[#allocation148_spill] sm:$0xff]  ;;  %v9714_v48 = vpop.eup %5258 }
 0x349   :  { %v2636_v25 = vmul.f32 1.442695, %v13095_v58  ;;  %5276 = vrcp.f32 %v9691_v60  ;;  %v2443_v58 = vsub.f32 %v13101_v1, %v13098_v9  ;;  %v2445_v35 = vsub.f32 %v13102_v40, %v13098_v9  ;;  %13104 = vst [vmem:[#allocation109_spill] sm:$0xff] %v9714_v48  ;;  %4916 = vmatmul.mubr.msk.f32.vlgmr.msra.gmra.mrb[104].mxu1 %vm60_vm0, %v13075_v30  ;;  %v13105_v7 = vld [vmem:[#allocation177_spill] sm:$0xff]  ;;  %v13106_v6 = vld [vmem:[#allocation14_spill] sm:$0xff]  ;;  %4914 = vmatmul.mubr.msk.f32.gmra.mrb[108].mxu0 %vm60_vm0, %v13107_v53 }
 0x34a   :  { %v2447_v62 = vsub.f32 %v13103_v15, %v13098_v9  ;;  %v2793_v23 = vadd.f32 %v9688_v57, %v2792_v63  ;;  %5278 = vpow2.f32 %v2628_v17  ;;  %v2449_v32 = vsub.f32 %v13105_v7, %v13098_v9  ;;  %v9725_v40 = vpop.eup %5260  ;;  %4371 = vmatprep.mubr.f32.mxu1 %v13081_v56  ;;  %4285 = vmatprep.mubr.f32.mxu0 %v13081_v56 }
 0x34b   :  { %v2451_v1 = vsub.f32 %v13106_v6, %v13098_v9  ;;  %13108 = vst [vmem:[#allocation110_spill] sm:$0xff] %v9725_v40  ;;  %v2768_v15 = vadd.f32 %v9714_v48, %v9705_v10  ;;  %5280 = vpow2.f32 %v2632_v26  ;;  %v2654_v63 = vmul.f32 1.442695, %v2427_v42  ;;  %v9733_v7 = vpop.eup %5262  ;;  %v13113_v42 = vld [vmem:[#allocation210_spill] sm:$0xff] }
 0x34c   :  { %13110 = vst [vmem:[#allocation116_spill] sm:$0xff] %v9733_v7  ;;  %v2794_v6 = vadd.f32 %v9700_v39, %v2793_v23  ;;  %5282 = vpow2.f32 %v2636_v25  ;;  %v2658_v12 = vmul.f32 1.442695, %v2429_v20  ;;  %v9736_v18 = vpop.eup %5264  ;;  %v2662_v26 = vmul.f32 1.442695, %v2431_v11  ;;  %v13114_v25 = vld [vmem:[#allocation115_spill] sm:$0xff] }
 0x34d   :  { %13111 = vst [vmem:[#allocation128_spill] sm:$0xff] %v9736_v18  ;;  %v2769_v38 = vadd.f32 %v9725_v40, %v2768_v15  ;;  %5284 = vpow2.f32 %v2640_v0  ;;  %v2666_v4 = vmul.f32 1.442695, %v2433_v33  ;;  %v9739_v28 = vpop.eup %5266  ;;  %4917 = vmatmul.mubr.msk.f32.gmra.mrb[106].mxu1 %vm60_vm0, %v13092_v41  ;;  %v2670_v17 = vmul.f32 1.442695, %v2435_v27  ;;  %4915 = vmatmul.mubr.msk.f32.gmra.mrb[110].mxu0 %vm60_vm0, %v13114_v25  ;;  %v13157_v11 = vld [vmem:[#allocation105_spill] sm:$0xff] }
 0x34e   :  { %13112 = vst [vmem:[#allocation166_spill] sm:$0xff] %v9739_v28  ;;  %v9742_v55 = vadd.f32 %v13113_v42, %v2794_v6  ;;  %5286 = vpow2.f32 %v2650_v49  ;;  %v2674_v23 = vmul.f32 1.442695, %v2437_v44  ;;  %v9748_v20 = vpop.eup %5268  ;;  %4377 = vmatprep.mubr.f32.mxu1 %v13081_v56  ;;  %4463 = vmatprep.mubr.f32.mxu0 %v13081_v56  ;;  %v2690_v9 = vmul.f32 1.442695, %v2445_v35  ;;  %v13153_v44 = vld [vmem:[#allocation55_spill] sm:$0xff] }
 0x34f   :  { %13115 = vst [vmem:[#allocation239_spill] sm:$0xff] %v9748_v20  ;;  %v2770_v0 = vadd.f32 %v9733_v7, %v2769_v38  ;;  %5288 = vpow2.f32 %v2654_v63  ;;  %v9757_v27 = vpop.eup %5270  ;;  %v2682_v63 = vmul.f32 1.442695, %v2441_v31  ;;  %v13168_v7 = vld [vmem:[#allocation19_spill] sm:$0xff] }
 0x350   :  { %13119 = vst [vmem:[#allocation151_spill] sm:$0xff] %v9757_v27  ;;  %5290 = vrcp.f32 %v9742_v55  ;;  %v9766_v59 = vpop.eup %5272 }
 0x351   :  { %13123 = vst [vmem:[#allocation111_spill] sm:$0xff] %v9766_v59  ;;  %v2771_v15 = vadd.f32 %v9736_v18, %v2770_v0  ;;  %5292 = vpow2.f32 %v2658_v12  ;;  %v9773_v3 = vpop.eup %5274  ;;  %v2782_v6 = vadd.f32 %v9766_v59, %v9757_v27  ;;  %4918 = vmatmul.mubr.msk.f32.gmra.mrb[108].mxu1 %vm60_vm0, %v13107_v53  ;;  %v2686_v12 = vmul.f32 1.442695, %v2443_v58  ;;  %v13163_v27 = vld [vmem:[#allocation223_spill] sm:$0xff] }
 0x352   :  { %13126 = vst [vmem:[#allocation112_spill] sm:$0xff] %v9773_v3  ;;  %5294 = vpow2.f32 %v2662_v26  ;;  %4383 = vmatprep.mubr.f32.mxu1 %v13081_v56  ;;  %v9785_v26 = vmul.f32 1.442695, %v2447_v62 }
 0x353   :  { %v5277_v30 = vpop.eup %5276  ;;  %v2772_v0 = vadd.f32 %v9739_v28, %v2771_v15  ;;  %5296 = vpow2.f32 %v2666_v4  ;;  %v2783_v33 = vadd.f32 %v9773_v3, %v2782_v6  ;;  %v9790_v15 = vmul.f32 1.442695, %v2449_v32  ;;  %v13161_v3 = vld [vmem:[#allocation225_spill] sm:$0xff]  ;;  %v13165_v28 = vld [vmem:[#allocation18_spill] sm:$0xff] }
 0x354   :  { %v9781_v41 = vpop.eup %5278  ;;  %v2849_v2 = vmul.f32 %v5277_v30, %v9691_v60  ;;  %5298 = vpow2.f32 %v2670_v17  ;;  %13128 = vst [vmem:[#allocation256_spill] sm:$0xff] %v9785_v26  ;;  %v9792_v4 = vmul.f32 1.442695, %v2451_v1 }
 0x355   :  { %13127 = vst [vmem:[#allocation85_spill] sm:$0xff] %v9781_v41  ;;  %v9787_v31 = vpop.eup %5280  ;;  %v2773_v53 = vadd.f32 %v9748_v20, %v2772_v0  ;;  %5300 = vpow2.f32 %v2674_v23  ;;  %13130 = vst [vmem:[#allocation78_spill] sm:$0xff] %v9790_v15  ;;  %v2784_v49 = vadd.f32 %v9781_v41, %v2783_v33  ;;  %4919 = vmatmul.mubr.msk.f32.gmra.mrb[110].mxu1 %vm60_vm0, %v13114_v25  ;;  %v13135_v0 = vld [vmem:[#allocation172_spill] sm:$0xff] }
 0x356   :  { %13129 = vst [vmem:[#allocation27_spill] sm:$0xff] %v9787_v31  ;;  %13131 = vst [vmem:[#allocation80_spill] sm:$0xff] %v9792_v4  ;;  %v9794_v58 = vpop.eup %5282  ;;  %v2865_v35 = vsub.f32 2.0, %v2849_v2  ;;  %5302 = vpow2.f32 %v2682_v63  ;;  %4561 = vmatprep.mubr.f32.mxu1 %v13081_v56 }
 0x357   :  { %13132 = vst [vmem:[#allocation191_spill] sm:$0xff] %v9794_v58  ;;  %v9801_v6 = vpop.eup %5284  ;;  %v9804_v23 = vadd.f32 %v13135_v0, %v2773_v53  ;;  %5304 = vpow2.f32 %v2686_v12  ;;  %v2785_v38 = vadd.f32 %v9787_v31, %v2784_v49  ;;  %v13152_v12 = vld [vmem:[#allocation51_spill] sm:$0xff]  ;;  %v13160_v31 = vld [vmem:[#allocation221_spill] sm:$0xff] }
 0x358   :  { %v9811_v63 = vpop.eup %5286  ;;  %v2881_v25 = vmul.f32 %v5277_v30, %v2865_v35  ;;  %5306 = vpow2.f32 %v2690_v9  ;;  %v13164_v0 = vld [vmem:[#allocation227_spill] sm:$0xff] }
 0x359   :  { %13138 = vst [vmem:[#allocation171_spill] sm:$0xff] %v9811_v63  ;;  %v9816_v53 = vpop.eup %5288  ;;  %5308 = vrcp.f32 %v9804_v23  ;;  %v2786_v10 = vadd.f32 %v9794_v58, %v2785_v38 }
 0x35a   :  { %13140 = vst [vmem:[#allocation196_spill] sm:$0xff] %v9816_v53  ;;  %v5291_v30 = vpop.eup %5290  ;;  %v2953_v49 = vmul.f32 %v13047_v5, %v2881_v25  ;;  %v2955_v9 = vmul.f32 %v13048_v36, %v2881_v25  ;;  %v2957_v35 = vmul.f32 %v13056_v16, %v2881_v25  ;;  %v9829_v60 = vmul.f32 %v13062_v14, %v2881_v25  ;;  %v13150_v16 = vld [vmem:[#allocation49_spill] sm:$0xff] }
 0x35b   :  { %v9831_v17 = vpop.eup %5292  ;;  %v9834_v56 = vmul.f32 %v13072_v54, %v2881_v25  ;;  %v9837_v32 = vmul.f32 %v13079_v8, %v2881_v25  ;;  %v9840_v1 = vmul.f32 %v13087_v21, %v2881_v25  ;;  %v9843_v5 = vmul.f32 %v13093_v61, %v2881_v25  ;;  %v13151_v14 = vld [vmem:[#allocation53_spill] sm:$0xff]  ;;  %v13155_v8 = vld [vmem:[#allocation103_spill] sm:$0xff] }
 0x35c   :  { %13144 = vst [vmem:[#allocation201_spill] sm:$0xff] %v9831_v17  ;;  %v9845_v36 = vpop.eup %5294  ;;  %v3049_v33 = vmul.f32 %v2953_v49, %v13150_v16  ;;  %v3051_v2 = vmul.f32 %v2953_v49, %v13151_v14  ;;  %v3113_v62 = vmul.f32 %v2955_v9, %v13152_v12  ;;  %v3115_v54 = vmul.f32 %v2955_v9, %v13153_v44  ;;  %v13156_v17 = vld [vmem:[#allocation107_spill] sm:$0xff]  ;;  %v13158_v25 = vld [vmem:[#allocation113_spill] sm:$0xff] }
 0x35d   :  { %13145 = vst [vmem:[#allocation215_spill] sm:$0xff] %v9834_v56  ;;  %13146 = vst [vmem:[#allocation93_spill] sm:$0xff] %v9837_v32  ;;  %v9851_v4 = vpop.eup %5296  ;;  %v3241_v15 = vmul.f32 %v2957_v35, %v13155_v8  ;;  %v3243_v21 = vmul.f32 %v2957_v35, %v13156_v17  ;;  %v3369_v61 = vmul.f32 %v9829_v60, %v13157_v11 }
 0x35e   :  { %13147 = vst [vmem:[#allocation34_spill] sm:$0xff] %v9840_v1  ;;  %13148 = vst [vmem:[#allocation216_spill] sm:$0xff] %v9843_v5  ;;  %v9859_v26 = vpop.eup %5298  ;;  %v3177_v53 = vadd.f32 %v3113_v62, %v3049_v33  ;;  %v3179_v63 = vadd.f32 %v3115_v54, %v3051_v2  ;;  %v3497_v41 = vmul.f32 %v9834_v56, %v13160_v31 }
 0x35f   :  { %13149 = vst [vmem:[#allocation258_spill] sm:$0xff] %v9845_v36  ;;  %13154 = vst [vmem:[#allocation36_spill] sm:$0xff] %v9851_v4  ;;  %v3371_v36 = vmul.f32 %v9829_v60, %v13158_v25  ;;  %v3499_v4 = vmul.f32 %v9834_v56, %v13161_v3  ;;  %v9865_v59 = vpop.eup %5300  ;;  %v3625_v50 = vmul.f32 %v9837_v32, %v13163_v27 }
 0x360   :  { %13159 = vst [vmem:[#allocation37_spill] sm:$0xff] %v9859_v26  ;;  %13162 = vst [vmem:[#allocation257_spill] sm:$0xff] %v9865_v59  ;;  %v3627_v20 = vmul.f32 %v9837_v32, %v13164_v0  ;;  %v3753_v18 = vmul.f32 %v9840_v1, %v13165_v28  ;;  %v13166_v26 = vld [vmem:[#allocation250_spill] sm:$0xff]  ;;  %v9875_v2 = vpop.eup %5302  ;;  %v3305_v33 = vadd.f32 %v3241_v15, %v3177_v53  ;;  %v13169_v59 = vld [vmem:[#allocation251_spill] sm:$0xff] }
 0x361   :  { %v3755_v62 = vmul.f32 %v9840_v1, %v13166_v26  ;;  %13167 = vst [vmem:[#allocation206_spill] sm:$0xff] %v9875_v2  ;;  %v3307_v54 = vadd.f32 %v3243_v21, %v3179_v63  ;;  %v3881_v56 = vmul.f32 %v9843_v5, %v13168_v7  ;;  %v3883_v40 = vmul.f32 %v9843_v5, %v13169_v59  ;;  %v9881_v48 = vpop.eup %5304 }
 0x362   :  { %13170 = vst [vmem:[#allocation119_spill] sm:$0xff] %v9881_v48  ;;  %v2851_v32 = vmul.f32 %v5291_v30, %v9742_v55  ;;  %v3053_v19 = vmul.f32 %v2953_v49, %v12795_v13  ;;  %v3055_v1 = vmul.f32 %v2953_v49, %v13007_v29  ;;  %v9887_v26 = vpop.eup %5306  ;;  %v3433_v15 = vadd.f32 %v3369_v61, %v3305_v33  ;;  %v13172_v61 = vld [vmem:[#allocation254_spill] sm:$0xff] }
 0x363   :  { %13171 = vst [vmem:[#allocation81_spill] sm:$0xff] %v9887_v26  ;;  %v3435_v63 = vadd.f32 %v3371_v36, %v3307_v54  ;;  %v3117_v53 = vmul.f32 %v2955_v9, %v12735_v24  ;;  %v3119_v21 = vmul.f32 %v2955_v9, %v12737_v22  ;;  %v5309_v2 = vpop.eup %5308  ;;  %v2787_v48 = vadd.f32 %v9801_v6, %v2786_v10 }
 0x364   :  { %v2867_v5 = vsub.f32 2.0, %v2851_v32  ;;  %v3245_v55 = vmul.f32 %v2957_v35, %v12738_v47  ;;  %v3247_v38 = vmul.f32 %v2957_v35, %v12739_v34  ;;  %v3561_v58 = vadd.f32 %v3497_v41, %v3433_v15 }
 0x365   :  { %v3563_v13 = vadd.f32 %v3499_v4, %v3435_v63  ;;  %v2848_v49 = vmul.f32 %v5309_v2, %v9804_v23  ;;  %v3181_v29 = vadd.f32 %v3117_v53, %v3053_v19  ;;  %v9896_v36 = vadd.f32 %v13172_v61, %v2787_v48  ;;  %v13176_v53 = vld [vmem:[#allocation250_spill] sm:$0xff] }
 0x366   :  { %v2883_v26 = vmul.f32 %v5291_v30, %v2867_v5  ;;  %v3183_v33 = vadd.f32 %v3119_v21, %v3055_v1  ;;  %v3373_v9 = vmul.f32 %v9829_v60, %v12962_v51  ;;  %v3689_v32 = vadd.f32 %v3625_v50, %v3561_v58 }
 0x367   :  { %v3691_v54 = vadd.f32 %v3627_v20, %v3563_v13  ;;  %v2864_v10 = vsub.f32 2.0, %v2848_v49  ;;  %v3309_v22 = vadd.f32 %v3245_v55, %v3181_v29  ;;  %5310 = vrcp.f32 %v9896_v36 }
 0x368   :  { %v9901_v47 = vmul.f32 %v13051_v45, %v2883_v26  ;;  %v9904_v41 = vmul.f32 %v13052_v52, %v2883_v26  ;;  %v9907_v19 = vmul.f32 %v13059_v46, %v2883_v26  ;;  %v9910_v48 = vmul.f32 %v9674_v37, %v2883_v26 }
 0x369   :  { %v3817_v4 = vadd.f32 %v3753_v18, %v3689_v32  ;;  %v3819_v23 = vadd.f32 %v3755_v62, %v3691_v54  ;;  %v9913_v1 = vmul.f32 %v9677_v43, %v2883_v26  ;;  %v9916_v13 = vmul.f32 %v9688_v57, %v2883_v26 }
 0x36a   :  { %v9919_v50 = vmul.f32 %v9700_v39, %v2883_v26  ;;  %v9922_v29 = vmul.f32 %v13113_v42, %v2883_v26  ;;  %v3057_v45 = vmul.f32 %v9901_v47, %v13150_v16  ;;  %v3059_v52 = vmul.f32 %v9901_v47, %v13151_v14 }
 0x36b   :  { %13173 = vst [vmem:[#allocation82_spill] sm:$0xff] %v9916_v13  ;;  %v3945_v18 = vadd.f32 %v3881_v56, %v3817_v4  ;;  %v3947_v46 = vadd.f32 %v3883_v40, %v3819_v23  ;;  %v3121_v43 = vmul.f32 %v9904_v41, %v13152_v12  ;;  %v3123_v37 = vmul.f32 %v9904_v41, %v13153_v44 }
 0x36c   :  { %13174 = vst [vmem:[#allocation193_spill] sm:$0xff] %v9919_v50  ;;  %13175 = vst [vmem:[#allocation194_spill] sm:$0xff] %v9922_v29  ;;  %v3249_v57 = vmul.f32 %v9907_v19, %v13155_v8  ;;  %v3251_v39 = vmul.f32 %v9907_v19, %v13156_v17  ;;  %v3377_v42 = vmul.f32 %v9910_v48, %v13157_v11  ;;  %v13205_v17 = vld [vmem:[#allocation226_spill] sm:$0xff] }
 0x36d   :  { %v3379_v20 = vmul.f32 %v9910_v48, %v13158_v25  ;;  %v5032_v56 = vpack.c.bf16 %v3947_v46, %v3945_v18  ;;  %v3185_v40 = vadd.f32 %v3121_v43, %v3057_v45  ;;  %v3187_v26 = vadd.f32 %v3123_v37, %v3059_v52  ;;  %v13177_v45 = vld [vmem:[#allocation86_spill] sm:$0xff]  ;;  %v13180_v37 = vld [vmem:[#allocation109_spill] sm:$0xff] }
 0x36e   :  { %v3505_v58 = vmul.f32 %v9913_v1, %v13160_v31  ;;  %v3507_v30 = vmul.f32 %v9913_v1, %v13161_v3  ;;  %v3633_v35 = vmul.f32 %v9916_v13, %v13163_v27  ;;  %v3635_v5 = vmul.f32 %v9916_v13, %v13164_v0  ;;  %v13178_v46 = vld [vmem:[#allocation198_spill] sm:$0xff]  ;;  %v13202_v0 = vld [vmem:[#allocation220_spill] sm:$0xff] }
 0x36f   :  { %v3761_v62 = vmul.f32 %v9919_v50, %v13165_v28  ;;  %5033 = vmatprep.subr.bf16.mxu0 %v5032_v56  ;;  %v3313_v15 = vadd.f32 %v3249_v57, %v3185_v40  ;;  %v3315_v63 = vadd.f32 %v3251_v39, %v3187_v26  ;;  %v3763_v21 = vmul.f32 %v9919_v50, %v13176_v53  ;;  %v13182_v39 = vld [vmem:[#allocation110_spill] sm:$0xff]  ;;  %v13184_v40 = vld [vmem:[#allocation116_spill] sm:$0xff] }
 0x370   :  { %v3889_v55 = vmul.f32 %v9922_v29, %v13168_v7  ;;  %v3891_v49 = vmul.f32 %v9922_v29, %v13169_v59  ;;  %v2880_v32 = vmul.f32 %v5309_v2, %v2864_v10  ;;  %v3311_v54 = vadd.f32 %v3247_v38, %v3183_v33  ;;  %v13186_v33 = vld [vmem:[#allocation128_spill] sm:$0xff]  ;;  %v13199_v59 = vld [vmem:[#allocation106_spill] sm:$0xff] }
 0x371   :  { %v3441_v4 = vadd.f32 %v3377_v42, %v3313_v15  ;;  %v3443_v23 = vadd.f32 %v3379_v20, %v3315_v63  ;;  %v3375_v52 = vmul.f32 %v9829_v60, %v13177_v45  ;;  %v3437_v18 = vadd.f32 %v3373_v9, %v3309_v22  ;;  %v13188_v20 = vld [vmem:[#allocation166_spill] sm:$0xff]  ;;  %v13190_v22 = vld [vmem:[#allocation239_spill] sm:$0xff]  ;;  %v13192_v26 = vld [vmem:[#allocation172_spill] sm:$0xff] }
 0x372   :  { %v9960_v43 = vmul.f32 %v13178_v46, %v2880_v32  ;;  %v9963_v57 = vmul.f32 %v13180_v37, %v2880_v32  ;;  %v9966_v56 = vmul.f32 %v13182_v39, %v2880_v32  ;;  %v9969_v2 = vmul.f32 %v13184_v40, %v2880_v32  ;;  %v13194_v63 = vld [vmem:[#allocation46_spill] sm:$0xff]  ;;  %v13195_v37 = vld [vmem:[#allocation52_spill] sm:$0xff] }
 0x373   :  { %v3569_v10 = vadd.f32 %v3505_v58, %v3441_v4  ;;  %v3571_v38 = vadd.f32 %v3507_v30, %v3443_v23  ;;  %v9972_v42 = vmul.f32 %v13186_v33, %v2880_v32  ;;  %v9975_v60 = vmul.f32 %v13188_v20, %v2880_v32  ;;  %v13196_v4 = vld [vmem:[#allocation50_spill] sm:$0xff]  ;;  %v13201_v53 = vld [vmem:[#allocation108_spill] sm:$0xff] }
 0x374   :  { %13179 = vst [vmem:[#allocation218_spill] sm:$0xff] %v9960_v43  ;;  %13181 = vst [vmem:[#allocation263_spill] sm:$0xff] %v9963_v57  ;;  %v9978_v9 = vmul.f32 %v13190_v22, %v2880_v32  ;;  %v9981_v15 = vmul.f32 %v13192_v26, %v2880_v32  ;;  %v3048_v46 = vmul.f32 %v9960_v43, %v13194_v63  ;;  %v13197_v40 = vld [vmem:[#allocation54_spill] sm:$0xff]  ;;  %v13200_v26 = vld [vmem:[#allocation104_spill] sm:$0xff] }
 0x375   :  { %13183 = vst [vmem:[#allocation219_spill] sm:$0xff] %v9966_v56  ;;  %13185 = vst [vmem:[#allocation264_spill] sm:$0xff] %v9969_v2  ;;  %v3050_v39 = vmul.f32 %v9960_v43, %v13195_v37  ;;  %v3697_v58 = vadd.f32 %v3633_v35, %v3569_v10  ;;  %v3699_v30 = vadd.f32 %v3635_v5, %v3571_v38  ;;  %v13198_v20 = vld [vmem:[#allocation102_spill] sm:$0xff]  ;;  %v13203_v3 = vld [vmem:[#allocation224_spill] sm:$0xff] }
 0x376   :  { %13187 = vst [vmem:[#allocation96_spill] sm:$0xff] %v9972_v42  ;;  %13189 = vst [vmem:[#allocation8_spill] sm:$0xff] %v9975_v60  ;;  %v3112_v23 = vmul.f32 %v9963_v57, %v13196_v4  ;;  %v3114_v33 = vmul.f32 %v9963_v57, %v13197_v40  ;;  %v3240_v22 = vmul.f32 %v9966_v56, %v13198_v20  ;;  %v13204_v25 = vld [vmem:[#allocation222_spill] sm:$0xff] }
 0x377   :  { %13191 = vst [vmem:[#allocation9_spill] sm:$0xff] %v9978_v9  ;;  %13193 = vst [vmem:[#allocation92_spill] sm:$0xff] %v9981_v15  ;;  %v3242_v32 = vmul.f32 %v9966_v56, %v13199_v59  ;;  %v3368_v7 = vmul.f32 %v9969_v2, %v13200_v26  ;;  %v3370_v28 = vmul.f32 %v9969_v2, %v13201_v53 }
 0x378   :  { %v3825_v35 = vadd.f32 %v3761_v62, %v3697_v58  ;;  %v3827_v5 = vadd.f32 %v3763_v21, %v3699_v30  ;;  %v3176_v10 = vadd.f32 %v3112_v23, %v3048_v46  ;;  %v3178_v38 = vadd.f32 %v3114_v33, %v3050_v39  ;;  %v5311_v62 = vpop.eup %5310  ;;  %v13206_v21 = vld [vmem:[#allocation84_spill] sm:$0xff]  ;;  %v13208_v30 = vld [vmem:[#allocation87_spill] sm:$0xff]  ;;  %v13209_v33 = vld [vmem:[#allocation181_spill] sm:$0xff] }
 0x379   :  { %v3496_v27 = vmul.f32 %v9972_v42, %v13202_v0  ;;  %v3498_v31 = vmul.f32 %v9972_v42, %v13203_v3  ;;  %v3624_v11 = vmul.f32 %v9975_v60, %v13204_v25  ;;  %v3626_v8 = vmul.f32 %v9975_v60, %v13205_v17  ;;  %v13207_v39 = vld [vmem:[#allocation176_spill] sm:$0xff] }
 0x37a   :  { %v3953_v44 = vadd.f32 %v3889_v55, %v3825_v35  ;;  %v3955_v12 = vadd.f32 %v3891_v49, %v3827_v5  ;;  %v3304_v14 = vadd.f32 %v3240_v22, %v3176_v10  ;;  %v3306_v16 = vadd.f32 %v3242_v32, %v3178_v38  ;;  %v13210_v22 = vld [vmem:[#allocation229_spill] sm:$0xff]  ;;  %v13211_v32 = vld [vmem:[#allocation215_spill] sm:$0xff] }
 0x37b   :  { %v3752_v46 = vmul.f32 %v9978_v9, %v13206_v21  ;;  %v3754_v58 = vmul.f32 %v9978_v9, %v13207_v39  ;;  %v3880_v23 = vmul.f32 %v9981_v15, %v13208_v30  ;;  %v3882_v42 = vmul.f32 %v9981_v15, %v13209_v33  ;;  %v13212_v5 = vld [vmem:[#allocation233_spill] sm:$0xff]  ;;  %v13213_v38 = vld [vmem:[#allocation231_spill] sm:$0xff] }
 0x37c   :  { %v5040_v2 = vpack.c.bf16 %v3955_v12, %v3953_v44  ;;  %v3432_v56 = vadd.f32 %v3368_v7, %v3304_v14  ;;  %v3434_v60 = vadd.f32 %v3370_v28, %v3306_v16  ;;  %v2850_v55 = vmul.f32 %v5311_v62, %v9896_v36  ;;  %v13214_v9 = vld [vmem:[#allocation93_spill] sm:$0xff]  ;;  %v13215_v15 = vld [vmem:[#allocation235_spill] sm:$0xff]  ;;  %v13216_v12 = vld [vmem:[#allocation146_spill] sm:$0xff] }
 0x37d   :  { %v3439_v49 = vadd.f32 %v3375_v52, %v3311_v54  ;;  %v3501_v35 = vmul.f32 %v13211_v32, %v13210_v22  ;;  %v3503_v10 = vmul.f32 %v13211_v32, %v13212_v5  ;;  %v3629_v57 = vmul.f32 %v13214_v9, %v13213_v38  ;;  %v13217_v16 = vld [vmem:[#allocation34_spill] sm:$0xff]  ;;  %v13218_v36 = vld [vmem:[#allocation91_spill] sm:$0xff]  ;;  %v13220_v38 = vld [vmem:[#allocation216_spill] sm:$0xff] }
 0x37e   :  { %5041 = vmatprep.subr.bf16.mxu1 %v5040_v2  ;;  %v3560_v43 = vadd.f32 %v3496_v27, %v3432_v56  ;;  %v3562_v29 = vadd.f32 %v3498_v31, %v3434_v60  ;;  %v2866_v50 = vsub.f32 2.0, %v2850_v55  ;;  %v3631_v7 = vmul.f32 %v13214_v9, %v13215_v15  ;;  %v13219_v5 = vld [vmem:[#allocation162_spill] sm:$0xff]  ;;  %v13222_v9 = vld [vmem:[#allocation57_spill] sm:$0xff] }
 0x37f   :  { %v3565_v28 = vadd.f32 %v3501_v35, %v3437_v18  ;;  %v3567_v44 = vadd.f32 %v3503_v10, %v3439_v49  ;;  %v3757_v14 = vmul.f32 %v13217_v16, %v13216_v12  ;;  %v3759_v54 = vmul.f32 %v13217_v16, %v13218_v36  ;;  %v13221_v56 = vld [vmem:[#allocation190_spill] sm:$0xff]  ;;  %v13223_v35 = vld [vmem:[#allocation151_spill] sm:$0xff] }
 0x380   :  { %v3688_v52 = vadd.f32 %v3624_v11, %v3560_v43  ;;  %v3690_v32 = vadd.f32 %v3626_v8, %v3562_v29  ;;  %v2882_v13 = vmul.f32 %v5311_v62, %v2866_v50  ;;  %v3885_v2 = vmul.f32 %v13220_v38, %v13219_v5  ;;  %v13224_v16 = vld [vmem:[#allocation111_spill] sm:$0xff]  ;;  %v13225_v8 = vld [vmem:[#allocation112_spill] sm:$0xff]  ;;  %v13226_v29 = vld [vmem:[#allocation85_spill] sm:$0xff] }
 0x381   :  { %v3693_v27 = vadd.f32 %v3629_v57, %v3565_v28  ;;  %v3695_v31 = vadd.f32 %v3631_v7, %v3567_v44  ;;  %v3887_v60 = vmul.f32 %v13220_v38, %v13221_v56  ;;  %v3061_v18 = vmul.f32 %v9901_v47, %v13222_v9  ;;  %v13227_v57 = vld [vmem:[#allocation27_spill] sm:$0xff] }
 0x382   :  { %v3816_v55 = vadd.f32 %v3752_v46, %v3688_v52  ;;  %v3818_v49 = vadd.f32 %v3754_v58, %v3690_v32  ;;  %v10035_v10 = vmul.f32 %v13223_v35, %v2882_v13  ;;  %v10038_v11 = vmul.f32 %v13224_v16, %v2882_v13  ;;  %v13228_v38 = vld [vmem:[#allocation191_spill] sm:$0xff] }
 0x383   :  { %v10041_v50 = vmul.f32 %v13225_v8, %v2882_v13  ;;  %v10044_v43 = vmul.f32 %v13226_v29, %v2882_v13  ;;  %v10047_v62 = vmul.f32 %v13227_v57, %v2882_v13  ;;  %v10050_v7 = vmul.f32 %v13228_v38, %v2882_v13 }
 0x384   :  { %v3944_v46 = vadd.f32 %v3880_v23, %v3816_v55  ;;  %v3946_v58 = vadd.f32 %v3882_v42, %v3818_v49  ;;  %v10053_v28 = vmul.f32 %v9801_v6, %v2882_v13  ;;  %v10056_v44 = vmul.f32 %v13172_v61, %v2882_v13 }
 0x385   :  { %v3056_v52 = vmul.f32 %v10035_v10, %v13194_v63  ;;  %v3058_v32 = vmul.f32 %v10035_v10, %v13195_v37  ;;  %v3120_v35 = vmul.f32 %v10038_v11, %v13196_v4  ;;  %v3122_v16 = vmul.f32 %v10038_v11, %v13197_v40  ;;  %v13258_v37 = vld [vmem:[#allocation237_spill] sm:$0xff] }
 0x386   :  { %v5034_v23 = vpack.c.bf16 %v3946_v58, %v3944_v46  ;;  %v3248_v6 = vmul.f32 %v10041_v50, %v13198_v20  ;;  %v3250_v61 = vmul.f32 %v10041_v50, %v13199_v59  ;;  %v3376_v13 = vmul.f32 %v10044_v43, %v13200_v26  ;;  %v13245_v26 = vld [vmem:[#allocation76_spill] sm:$0xff]  ;;  %v13353_v63 = vld [vmem:[#allocation225_spill] sm:$0xff] }
 0x387   :  { %v3184_v42 = vadd.f32 %v3120_v35, %v3056_v52  ;;  %v3186_v55 = vadd.f32 %v3122_v16, %v3058_v32  ;;  %v3378_v49 = vmul.f32 %v10044_v43, %v13201_v53  ;;  %v3504_v8 = vmul.f32 %v10047_v62, %v13202_v0  ;;  %v13249_v59 = vld [vmem:[#allocation228_spill] sm:$0xff] }
 0x388   :  { %5035 = vmatpush1.bf16.msra.mxu0 %v5034_v23  ;;  %v3506_v29 = vmul.f32 %v10047_v62, %v13203_v3  ;;  %v3632_v57 = vmul.f32 %v10050_v7, %v13204_v25  ;;  %v3634_v38 = vmul.f32 %v10050_v7, %v13205_v17  ;;  %v3760_v46 = vmul.f32 %v10053_v28, %v13206_v21  ;;  %v13229_v25 = vld [vmem:[#allocation61_spill] sm:$0xff]  ;;  %v13250_v20 = vld [vmem:[#allocation96_spill] sm:$0xff] }
 0x389   :  { %v3312_v58 = vadd.f32 %v3248_v6, %v3184_v42  ;;  %v3314_v52 = vadd.f32 %v3250_v61, %v3186_v55  ;;  %v3762_v32 = vmul.f32 %v10053_v28, %v13207_v39  ;;  %v3888_v35 = vmul.f32 %v10056_v44, %v13208_v30  ;;  %v13230_v61 = vld [vmem:[#allocation63_spill] sm:$0xff]  ;;  %v13231_v21 = vld [vmem:[#allocation121_spill] sm:$0xff] }
 0x38a   :  { %v3890_v16 = vmul.f32 %v10056_v44, %v13209_v33  ;;  %v3821_v23 = vadd.f32 %v3757_v14, %v3693_v27  ;;  %v3823_v3 = vadd.f32 %v3759_v54, %v3695_v31  ;;  %v3063_v0 = vmul.f32 %v9901_v47, %v13229_v25 }
 0x38b   :  { %v3440_v17 = vadd.f32 %v3376_v13, %v3312_v58  ;;  %v3442_v53 = vadd.f32 %v3378_v49, %v3314_v52  ;;  %v3125_v6 = vmul.f32 %v9904_v41, %v12735_v24  ;;  %v3127_v42 = vmul.f32 %v9904_v41, %v13230_v61 }
 0x38c   :  { %v3949_v55 = vadd.f32 %v3885_v2, %v3821_v23  ;;  %v3951_v39 = vadd.f32 %v3887_v60, %v3823_v3  ;;  %v3253_v30 = vmul.f32 %v9907_v19, %v13231_v21  ;;  %v3255_v14 = vmul.f32 %v9907_v19, %v12739_v34  ;;  %v13232_v19 = vld [vmem:[#allocation233_spill] sm:$0xff] }
 0x38d   :  { %v3568_v54 = vadd.f32 %v3504_v8, %v3440_v17  ;;  %v3570_v27 = vadd.f32 %v3506_v29, %v3442_v53  ;;  %v3189_v31 = vadd.f32 %v3125_v6, %v3061_v18  ;;  %v3191_v47 = vadd.f32 %v3127_v42, %v3063_v0  ;;  %v13233_v53 = vld [vmem:[#allocation231_spill] sm:$0xff]  ;;  %v13234_v0 = vld [vmem:[#allocation82_spill] sm:$0xff]  ;;  %v13235_v8 = vld [vmem:[#allocation193_spill] sm:$0xff] }
 0x38e   :  { %v5036_v13 = vpack.c.bf16 %v3951_v39, %v3949_v55  ;;  %v3381_v49 = vmul.f32 %v9910_v48, %v12962_v51  ;;  %v3383_v58 = vmul.f32 %v9910_v48, %v13177_v45  ;;  %v3509_v3 = vmul.f32 %v9913_v1, %v13210_v22  ;;  %v13237_v55 = vld [vmem:[#allocation56_spill] sm:$0xff] }
 0x38f   :  { %v3696_v41 = vadd.f32 %v3632_v57, %v3568_v54  ;;  %v3698_v2 = vadd.f32 %v3634_v38, %v3570_v27  ;;  %v3317_v60 = vadd.f32 %v3253_v30, %v3189_v31  ;;  %v3319_v52 = vadd.f32 %v3255_v14, %v3191_v47  ;;  %v13236_v38 = vld [vmem:[#allocation194_spill] sm:$0xff] }
 0x390   :  { %5037 = vmatprep.subr.bf16.mxu0 %v5036_v13  ;;  %v3511_v17 = vmul.f32 %v9913_v1, %v13232_v19  ;;  %v3637_v39 = vmul.f32 %v13234_v0, %v13233_v53  ;;  %v3639_v18 = vmul.f32 %v13234_v0, %v13215_v15  ;;  %v3765_v48 = vmul.f32 %v13235_v8, %v13216_v12  ;;  %v13238_v14 = vld [vmem:[#allocation218_spill] sm:$0xff]  ;;  %v13244_v0 = vld [vmem:[#allocation219_spill] sm:$0xff] }
 0x391   :  { %v3824_v29 = vadd.f32 %v3760_v46, %v3696_v41  ;;  %v3826_v23 = vadd.f32 %v3762_v32, %v3698_v2  ;;  %v3445_v6 = vadd.f32 %v3381_v49, %v3317_v60  ;;  %v3447_v57 = vadd.f32 %v3383_v58, %v3319_v52  ;;  %v13239_v46 = vld [vmem:[#allocation60_spill] sm:$0xff]  ;;  %v13240_v49 = vld [vmem:[#allocation58_spill] sm:$0xff]  ;;  %v13241_v58 = vld [vmem:[#allocation263_spill] sm:$0xff] }
 0x392   :  { %v3767_v30 = vmul.f32 %v13235_v8, %v13218_v36  ;;  %v3893_v42 = vmul.f32 %v13236_v38, %v13219_v5  ;;  %v3895_v1 = vmul.f32 %v13236_v38, %v13221_v56  ;;  %v3052_v54 = vmul.f32 %v13238_v14, %v13237_v55  ;;  %v13242_v2 = vld [vmem:[#allocation62_spill] sm:$0xff]  ;;  %v13360_v12 = vld [vmem:[#allocation251_spill] sm:$0xff] }
 0x393   :  { %v3952_v27 = vadd.f32 %v3888_v35, %v3824_v29  ;;  %v3954_v31 = vadd.f32 %v3890_v16, %v3826_v23  ;;  %v3573_v47 = vadd.f32 %v3509_v3, %v3445_v6  ;;  %v3575_v13 = vadd.f32 %v3511_v17, %v3447_v57  ;;  %v13243_v52 = vld [vmem:[#allocation118_spill] sm:$0xff]  ;;  %v13247_v29 = vld [vmem:[#allocation264_spill] sm:$0xff]  ;;  %v13248_v6 = vld [vmem:[#allocation77_spill] sm:$0xff] }
 0x394   :  { %v3054_v32 = vmul.f32 %v13238_v14, %v13239_v46  ;;  %v3116_v41 = vmul.f32 %v13241_v58, %v13240_v49  ;;  %v3118_v60 = vmul.f32 %v13241_v58, %v13242_v2  ;;  %v3244_v8 = vmul.f32 %v13244_v0, %v13243_v52  ;;  %v13246_v17 = vld [vmem:[#allocation122_spill] sm:$0xff] }
 0x395   :  { %v5042_v38 = vpack.c.bf16 %v3954_v31, %v3952_v27  ;;  %v3701_v56 = vadd.f32 %v3637_v39, %v3573_v47  ;;  %v3703_v33 = vadd.f32 %v3639_v18, %v3575_v13  ;;  %v3246_v35 = vmul.f32 %v13244_v0, %v13245_v26  ;;  %v13251_v27 = vld [vmem:[#allocation232_spill] sm:$0xff]  ;;  %v13252_v47 = vld [vmem:[#allocation230_spill] sm:$0xff] }
 0x396   :  { %v3180_v16 = vadd.f32 %v3116_v41, %v3052_v54  ;;  %v3182_v3 = vadd.f32 %v3118_v60, %v3054_v32  ;;  %v3372_v23 = vmul.f32 %v13247_v29, %v13246_v17  ;;  %v3374_v57 = vmul.f32 %v13247_v29, %v13248_v6  ;;  %v13253_v54 = vld [vmem:[#allocation8_spill] sm:$0xff]  ;;  %v13254_v32 = vld [vmem:[#allocation234_spill] sm:$0xff] }
 0x397   :  { %5043 = vmatpush1.bf16.msra.mxu1 %v5042_v38  ;;  %v3829_v14 = vadd.f32 %v3765_v48, %v3701_v56  ;;  %v3831_v58 = vadd.f32 %v3767_v30, %v3703_v33  ;;  %v3500_v40 = vmul.f32 %v13250_v20, %v13249_v59  ;;  %v3502_v39 = vmul.f32 %v13250_v20, %v13251_v27  ;;  %v13255_v29 = vld [vmem:[#allocation236_spill] sm:$0xff]  ;;  %v13256_v38 = vld [vmem:[#allocation9_spill] sm:$0xff]  ;;  %v13257_v33 = vld [vmem:[#allocation147_spill] sm:$0xff] }
 0x398   :  { %v3308_v18 = vadd.f32 %v3244_v8, %v3180_v16  ;;  %v3310_v31 = vadd.f32 %v3246_v35, %v3182_v3  ;;  %v3628_v13 = vmul.f32 %v13253_v54, %v13252_v47  ;;  %v3630_v41 = vmul.f32 %v13253_v54, %v13254_v32  ;;  %v13259_v20 = vld [vmem:[#allocation92_spill] sm:$0xff]  ;;  %v13260_v35 = vld [vmem:[#allocation26_spill] sm:$0xff] }
 0x399   :  { %v3957_v60 = vadd.f32 %v3893_v42, %v3829_v14  ;;  %v3959_v0 = vadd.f32 %v3895_v1, %v3831_v58  ;;  %v3756_v56 = vmul.f32 %v13256_v38, %v13255_v29  ;;  %v3758_v48 = vmul.f32 %v13256_v38, %v13257_v33 }
 0x39a   :  { %v3436_v30 = vadd.f32 %v3372_v23, %v3308_v18  ;;  %v3438_v4 = vadd.f32 %v3374_v57, %v3310_v31  ;;  %v3884_v8 = vmul.f32 %v13259_v20, %v13258_v37  ;;  %v3886_v16 = vmul.f32 %v13259_v20, %v13260_v35 }
 0x39b   :  { %v5044_v3 = vpack.c.bf16 %v3959_v0, %v3957_v60  ;;  %v3060_v54 = vmul.f32 %v10035_v10, %v13237_v55  ;;  %v3062_v42 = vmul.f32 %v10035_v10, %v13239_v46  ;;  %v3124_v1 = vmul.f32 %v10038_v11, %v13240_v49 }
 0x39c   :  { %v3564_v14 = vadd.f32 %v3500_v40, %v3436_v30  ;;  %v3566_v58 = vadd.f32 %v3502_v39, %v3438_v4  ;;  %v3126_v23 = vmul.f32 %v10038_v11, %v13242_v2  ;;  %v3252_v57 = vmul.f32 %v10041_v50, %v13243_v52 }
 0x39d   :  { %5045 = vmatprep.subr.bf16.mxu1 %v5044_v3  ;;  %v3188_v18 = vadd.f32 %v3124_v1, %v3060_v54  ;;  %v3254_v31 = vmul.f32 %v10041_v50, %v13245_v26  ;;  %v3380_v60 = vmul.f32 %v10044_v43, %v13246_v17  ;;  %v3382_v10 = vmul.f32 %v10044_v43, %v13248_v6  ;;  %v13331_v17 = vld [vmem:[#allocation22_spill] sm:$0xff] }
 0x39e   :  { %v3692_v0 = vadd.f32 %v3628_v13, %v3564_v14  ;;  %v3694_v40 = vadd.f32 %v3630_v41, %v3566_v58  ;;  %v3190_v4 = vadd.f32 %v3126_v23, %v3062_v42  ;;  %v3508_v11 = vmul.f32 %v10047_v62, %v13249_v59 }
 0x39f   :  { %v3316_v39 = vadd.f32 %v3252_v57, %v3188_v18  ;;  %v3510_v38 = vmul.f32 %v10047_v62, %v13251_v27  ;;  %v3636_v30 = vmul.f32 %v10050_v7, %v13252_v47  ;;  %v3638_v50 = vmul.f32 %v10050_v7, %v13254_v32  ;;  %v13261_v7 = vld [vmem:[#allocation171_spill] sm:$0xff]  ;;  %v13263_v57 = vld [vmem:[#allocation256_spill] sm:$0xff]  ;;  %v13264_v18 = vld [vmem:[#allocation206_spill] sm:$0xff] }
 0x3a0   :  { %v3820_v20 = vadd.f32 %v3756_v56, %v3692_v0  ;;  %v3822_v3 = vadd.f32 %v3758_v48, %v3694_v40  ;;  %v3318_v54 = vadd.f32 %v3254_v31, %v3190_v4  ;;  %v3764_v43 = vmul.f32 %v10053_v28, %v13255_v29  ;;  %v13262_v56 = vld [vmem:[#allocation196_spill] sm:$0xff]  ;;  %v13265_v31 = vld [vmem:[#allocation119_spill] sm:$0xff]  ;;  %v13266_v0 = vld [vmem:[#allocation261_spill] sm:$0xff] }
 0x3a1   :  { %v3444_v13 = vadd.f32 %v3380_v60, %v3316_v39  ;;  %v3766_v41 = vmul.f32 %v10053_v28, %v13257_v33  ;;  %v3892_v42 = vmul.f32 %v10056_v44, %v13258_v37  ;;  %v3894_v62 = vmul.f32 %v10056_v44, %v13260_v35  ;;  %v13267_v28 = vld [vmem:[#allocation157_spill] sm:$0xff] }
 0x3a2   :  { %v3948_v1 = vadd.f32 %v3884_v8, %v3820_v20  ;;  %v3950_v14 = vadd.f32 %v3886_v16, %v3822_v3  ;;  %v3446_v58 = vadd.f32 %v3382_v10, %v3318_v54  ;;  %v2803_v48 = vadd.f32 %v13262_v56, %v13261_v7  ;;  %v13269_v33 = vld [vmem:[#allocation201_spill] sm:$0xff]  ;;  %v13270_v8 = vld [vmem:[#allocation262_spill] sm:$0xff]  ;;  %v13274_v54 = vld [vmem:[#allocation195_spill] sm:$0xff] }
 0x3a3   :  { %v3572_v23 = vadd.f32 %v3508_v11, %v3444_v13  ;;  %5312 = vpow2.f32 %v13263_v57  ;;  %v2817_v60 = vadd.f32 %v13265_v31, %v13264_v18  ;;  %v13268_v40 = vsub.f32 %v13266_v0, %v13267_v28  ;;  %v13272_v3 = vld [vmem:[#allocation78_spill] sm:$0xff]  ;;  %v13273_v11 = vld [vmem:[#allocation29_spill] sm:$0xff] }
 0x3a4   :  { %v5038_v39 = vpack.c.bf16 %v3950_v14, %v3948_v1  ;;  %v3574_v37 = vadd.f32 %v3510_v38, %v3446_v58  ;;  %v2804_v44 = vadd.f32 %v13269_v33, %v2803_v48  ;;  %v13271_v16 = vsub.f32 %v13270_v8, %v13267_v28  ;;  %v13276_v35 = vld [vmem:[#allocation81_spill] sm:$0xff]  ;;  %v13278_v38 = vld [vmem:[#allocation80_spill] sm:$0xff] }
 0x3a5   :  { %v2648_v4 = vmul.f32 1.442695, %v13268_v40  ;;  %v3700_v20 = vadd.f32 %v3636_v30, %v3572_v23  ;;  %5314 = vpow2.f32 %v13272_v3  ;;  %v13275_v13 = vsub.f32 %v13273_v11, %v13274_v54  ;;  %v13277_v40 = vld [vmem:[#allocation258_spill] sm:$0xff]  ;;  %v13279_v14 = vld [vmem:[#allocation69_spill] sm:$0xff]  ;;  %v13281_v30 = vld [vmem:[#allocation152_spill] sm:$0xff] }
 0x3a6   :  { %v2652_v10 = vmul.f32 1.442695, %v13271_v16  ;;  %v2818_v29 = vadd.f32 %v13276_v35, %v2817_v60  ;;  %5039 = vmatpush1.bf16.msra.mxu0 %v5038_v39  ;;  %v3702_v0 = vadd.f32 %v3638_v50, %v3574_v37  ;;  %v2805_v1 = vadd.f32 %v13277_v40, %v2804_v44  ;;  %v13283_v11 = vld [vmem:[#allocation36_spill] sm:$0xff]  ;;  %v13284_v60 = vld [vmem:[#allocation153_spill] sm:$0xff] }
 0x3a7   :  { %v2706_v57 = vmul.f32 1.442695, %v13275_v13  ;;  %5316 = vpow2.f32 %v13278_v38  ;;  %v13280_v58 = vsub.f32 %v13279_v14, %v13267_v28  ;;  %v3828_v8 = vadd.f32 %v3764_v43, %v3700_v20  ;;  %v48_v39 = vld [vmem:[%s10878_s3] sm:$0xff]  ;;  %v50_v20 = vld [vmem:[%s10878_s3 + $0x10] sm:$0xff] }
 0x3a8   :  { %5318 = vpow2.f32 %v2648_v4  ;;  %v13282_v23 = vsub.f32 %v13281_v30, %v13267_v28  ;;  %v3830_v3 = vadd.f32 %v3766_v41, %v3702_v0  ;;  %v2806_v54 = vadd.f32 %v13283_v11, %v2805_v1  ;;  %v10219_v43 = vld [vmem:[%s10877_s2] sm:$0xff]  ;;  %v13287_v41 = vld [vmem:[#allocation13_spill] sm:$0xff]  ;;  %v13291_v1 = vld [vmem:[#allocation238_spill] sm:$0xff] }
 0x3a9   :  { %v2656_v48 = vmul.f32 1.442695, %v13280_v58  ;;  %5320 = vpow2.f32 %v2652_v10  ;;  %v13285_v37 = vsub.f32 %v13284_v60, %v13267_v28  ;;  %v3956_v44 = vadd.f32 %v3892_v42, %v3828_v8  ;;  %13286 = vst [vmem:[#allocation89_spill] sm:$0xff] %v10219_v43  ;;  %4920 = vmatmul.mubr.msk.f32.vlgmr.msra.gmra.mrb[112].mxu0 %vm60_vm0, %v10219_v43  ;;  %v13289_v0 = vld [vmem:[#allocation37_spill] sm:$0xff]  ;;  %v13294_v30 = vld [vmem:[#allocation266_spill] sm:$0xff] }
 0x3aa   :  { %v2660_v16 = vmul.f32 1.442695, %v13282_v23  ;;  %5322 = vpow2.f32 %v2706_v57  ;;  %v13288_v4 = vsub.f32 %v13287_v41, %v13267_v28  ;;  %v3958_v13 = vadd.f32 %v3894_v62, %v3830_v3  ;;  %v13290_v57 = vld [vmem:[#allocation265_spill] sm:$0xff]  ;;  %v13297_v41 = vld [vmem:[#allocation70_spill] sm:$0xff] }
 0x3ab   :  { %v2664_v50 = vmul.f32 1.442695, %v13285_v37  ;;  %v2807_v42 = vadd.f32 %v13289_v0, %v2806_v54  ;;  %5324 = vpow2.f32 %v2656_v48  ;;  %v13292_v38 = vsub.f32 %v13290_v57, %v13291_v1  ;;  %v13296_v62 = vld [vmem:[#allocation257_spill] sm:$0xff] }
 0x3ac   :  { %v2668_v10 = vmul.f32 1.442695, %v13288_v4  ;;  %v13293_v58 = vmov 0.0   ;;  %v5416_v8 = vmov 0   ;;  %5326 = vpow2.f32 %v2660_v16  ;;  %v49_v48 = vld [vmem:[%s10878_s3 + $0x8] sm:$0xff] }
 0x3ad   :  { %v2680_v14 = vmul.f32 1.442695, %v13292_v38  ;;  %4469 = vmatprep.mubr.f32.mxu0 %v13293_v58  ;;  %5070 = vset.pattern.permute.xlu0 %v5416_v8  ;;  %v13295_v23 = vsub.f32 %v13294_v30, %v13291_v1  ;;  %v5046_v37 = vpack.c.bf16 %v3958_v13, %v3956_v44  ;;  %v2808_v3 = vadd.f32 %v13296_v62, %v2807_v42  ;;  %v10241_v54 = vpop.eup %5312  ;;  %v13300_v44 = vld [vmem:[#allocation161_spill] sm:$0xff]  ;;  %v13301_v13 = vld [vmem:[#allocation16_spill] sm:$0xff] }
 0x3ae   :  { %3978 = vperm.xlu0 %5070, %v48_v39   ;;  %5071 = vset.pattern.permute.xlu1 %v5416_v8  ;;  %5328 = vpow2.f32 %v2664_v50  ;;  %v13298_v16 = vsub.f32 %v13297_v41, %v13291_v1  ;;  %v10249_v39 = vld [vmem:[%s10877_s2 + $0x8] sm:$0xff]  ;;  %v51_v50 = vld [vmem:[%s10878_s3 + $0x18] sm:$0xff]  ;;  %v13302_v42 = vsub.f32 %v13301_v13, %v13267_v28  ;;  %v13332_v26 = vsub.f32 %v13331_v17, %v13291_v1 }
 0x3af   :  { %v2684_v60 = vmul.f32 1.442695, %v13295_v23  ;;  %3988 = vperm.xlu1 %5071, %v50_v20   ;;  %5330 = vpow2.f32 %v2668_v10  ;;  %13299 = vst [vmem:[#allocation192_spill] sm:$0xff] %v10249_v39  ;;  %4921 = vmatmul.mubr.msk.f32.gmra.mrb[114].mxu0 %vm60_vm0, %v10249_v39  ;;  %v2809_v20 = vadd.f32 %v13300_v44, %v2808_v3  ;;  %v2819_v10 = vadd.f32 %v10241_v54, %v2818_v29  ;;  %v10262_v38 = vpop.eup %5314  ;;  %v13303_v8 = vld [vmem:[#allocation71_spill] sm:$0xff]  ;;  %v13305_v3 = vld [vmem:[#allocation20_spill] sm:$0xff] }
 0x3b0   :  { %v2688_v4 = vmul.f32 1.442695, %v13298_v16  ;;  %5047 = vmatpush1.bf16.msra.mxu1 %v5046_v37  ;;  %v2672_v57 = vmul.f32 1.442695, %v13302_v42  ;;  %5332 = vpow2.f32 %v2680_v14  ;;  %4475 = vmatprep.mubr.f32.mxu0 %v13293_v58  ;;  %v13304_v30 = vsub.f32 %v13303_v8, %v13291_v1  ;;  %v10283_v42 = vld [vmem:[%s10877_s2 + $0x10] sm:$0xff] }
 0x3b1   :  { %5334 = vpow2.f32 %v2684_v60  ;;  %v10267_v37 = vpop.eup %5316  ;;  %v13306_v29 = vsub.f32 %v13305_v3, %v13267_v28  ;;  %v2820_v16 = vadd.f32 %v10262_v38, %v2819_v10  ;;  %v13308_v60 = vld [vmem:[#allocation154_spill] sm:$0xff]  ;;  %13310 = vst [vmem:[#allocation214_spill] sm:$0xff] %v10283_v42  ;;  %v10299_v3 = vpop.f32.mrb[96].mxu0  ;;  %v2708_v52 = vmul.f32 1.442695, %v13332_v26 }
 0x3b2   :  { %v2692_v23 = vmul.f32 1.442695, %v13304_v30  ;;  %3983 = vperm.xlu0 %5070, %v49_v48   ;;  %5336 = vrcp.f32 %v2809_v20  ;;  %v10273_v14 = vpop.eup %5318  ;;  %v13309_v13 = vsub.f32 %v13308_v60, %v13291_v1  ;;  %13313 = vst [vmem:[#allocation217_spill] sm:$0xff] %v10299_v3  ;;  %v13318_v60 = vld [vmem:[#allocation24_spill] sm:$0xff] }
 0x3b3   :  { %v2676_v41 = vmul.f32 1.442695, %v13306_v29  ;;  %3993 = vperm.xlu1 %5071, %v51_v50   ;;  %13307 = vst [vmem:[#allocation164_spill] sm:$0xff] %v10273_v14  ;;  %4924 = vmatmul.mubr.msk.f32.vlgmr.msra.gmra.mrb[112].mxu1 %vm60_vm0, %v10219_v43  ;;  %5338 = vpow2.f32 %v2688_v4  ;;  %v10287_v28 = vpop.eup %5320  ;;  %v2821_v50 = vadd.f32 %v10267_v37, %v2820_v16  ;;  %v10309_v16 = vld [vmem:[%s10877_s2 + $0x18] sm:$0xff]  ;;  %s5417_s2 = smov [#allocation5]  }
 0x3b4   :  { %v2696_v48 = vmul.f32 1.442695, %v13309_v13  ;;  %4922 = vmatmul.mubr.msk.f32.gmra.mrb[116].mxu0 %vm60_vm0, %v10283_v42  ;;  %13311 = vst [vmem:[#allocation259_spill] sm:$0xff] %v10287_v28  ;;  %5340 = vpow2.f32 %v2672_v57  ;;  %4567 = vmatprep.mubr.f32.mxu1 %v13293_v58  ;;  %v10292_v4 = vpop.eup %5322  ;;  %v2796_v10 = vadd.f32 %v10287_v28, %v10273_v14  ;;  %13315 = vst [vmem:[#allocation246_spill] sm:$0xff] %v10309_v16  ;;  %v13323_v43 = vld [vmem:[#allocation155_spill] sm:$0xff]  ;;  %v13357_v14 = vld [vmem:[#allocation250_spill] sm:$0xff] }
 0x3b5   :  { %4481 = vmatprep.mubr.f32.mxu0 %v13293_v58  ;;  %5342 = vpow2.f32 %v2692_v23  ;;  %v10296_v8 = vpop.eup %5324  ;;  %v2822_v30 = vadd.f32 %v10292_v4, %v2821_v50  ;;  %v10313_v23 = vpop.f32.mrb[97].mxu0  ;;  %s4796_s23 = sshll.u32 %s5417_s2, 4  ;;  %s4797_s23 = int_to_ptr.vmem [resolvable:$true] %s4796_s23 }
 0x3b6   :  { %13312 = vst [vmem:[#allocation252_spill] sm:$0xff] %v10296_v8  ;;  %5344 = vpow2.f32 %v2676_v41  ;;  %v10301_v29 = vpop.eup %5326  ;;  %v2797_v57 = vadd.f32 %v10296_v8, %v2796_v10  ;;  %13316 = vst [vmem:[#allocation97_spill] sm:$0xff] %v10313_v23  ;;  %v10327_v3 = vpop.f32.mrb[98].mxu0  ;;  %v13356_v8 = vld [vmem:[#allocation18_spill] sm:$0xff]  ;;  %s5386_s24 = scalar_lea.vmem %s4797_s23, 8192  ;;  %p5391_p9 = scmp.lt.s32.totalorder %s4797_s23, %s4797_s23 }
 0x3b7   :  { %13314 = vst [vmem:[#allocation175_spill] sm:$0xff] %v10301_v29  ;;  %5346 = vpow2.f32 %v2696_v48  ;;  %4925 = vmatmul.mubr.msk.f32.gmra.mrb[114].mxu1 %vm60_vm0, %v10249_v39  ;;  %v10318_v13 = vadd.f32 %v13318_v60, %v2822_v30  ;;  %13321 = vst [vmem:[#allocation117_spill] sm:$0xff] %v10327_v3  ;;  %v13324_v30 = vsub.f32 %v13323_v43, %v13291_v1  ;;  %v10337_v47 = vpop.f32.mrb[99].mxu0  ;;  %v13327_v43 = vld [vmem:[#allocation159_spill] sm:$0xff]  ;;  %p5387_p8 = scmp.ne.s32.totalorder %s4797_s23, %s5386_s24  ;;  %p5392_p10 = scmp.lt.s32.totalorder %s5386_s24, %s5386_s24 }
 0x3b8   :  { %4923 = vmatmul.mubr.msk.f32.gmra.mrb[118].mxu0 %vm60_vm0, %v10309_v16  ;;  %v10315_v41 = vpop.eup %5328  ;;  %4573 = vmatprep.mubr.f32.mxu1 %v13293_v58  ;;  %v2798_v50 = vadd.f32 %v10301_v29, %v2797_v57  ;;  %13325 = vst [vmem:[#allocation160_spill] sm:$0xff] %v10337_v47 }
 0x3b9   :  { %13317 = vst [vmem:[#allocation95_spill] sm:$0xff] %v10315_v41  ;;  %4659 = vmatprep.mubr.f32.mxu0 %v13293_v58  ;;  %v10322_v48 = vpop.eup %5330  ;;  %v2700_v32 = vmul.f32 1.442695, %v13324_v30  ;;  %5348 = vrcp.f32 %v10318_v13  ;;  %v13328_v30 = vsub.f32 %v13327_v43, %v13291_v1  ;;  %p5393_p11 = por %p5392_p10, %p5391_p9 }
 0x3ba   :  { %13319 = vst [vmem:[#allocation253_spill] sm:$0xff] %v10322_v48  ;;  %v10325_v10 = vpop.eup %5332  ;;  %v2799_v23 = vadd.f32 %v10315_v41, %v2798_v50  ;;  %v13355_v41 = vld [vmem:[#allocation227_spill] sm:$0xff] }
 0x3bb   :  { %13320 = vst [vmem:[#allocation98_spill] sm:$0xff] %v10325_v10  ;;  %v10329_v39 = vpop.eup %5334  ;;  %4926 = vmatmul.mubr.msk.f32.gmra.mrb[116].mxu1 %vm60_vm0, %v10283_v42  ;;  %v2704_v6 = vmul.f32 1.442695, %v13328_v30  ;;  %v10349_v42 = vpop.f32.mrb[96].mxu1  ;;  %5350 = vpow2.f32 %v2700_v32  ;;  %p5394_p12 = pnand %p5393_p11, %p5387_p8 }
 0x3bc   :  { %13322 = vst [vmem:[#allocation72_spill] sm:$0xff] %v10329_v39  ;;  %v5337_v27 = vpop.eup %5336  ;;  %v2810_v57 = vadd.f32 %v10329_v39, %v10325_v10  ;;  %4579 = vmatprep.mubr.f32.mxu1 %v13293_v58  ;;  %v2800_v50 = vadd.f32 %v10322_v48, %v2799_v23  ;;  %13329 = vst [vmem:[#allocation99_spill] sm:$0xff] %v10349_v42  ;;  %v10357_v49 = vpop.f32.mrb[97].mxu1 }
 0x3bd   :  { %v10342_v3 = vpop.eup %5338  ;;  %v2853_v59 = vmul.f32 %v5337_v27, %v2809_v20  ;;  %13333 = vst [vmem:[#allocation207_spill] sm:$0xff] %v10357_v49  ;;  %5352 = vpow2.f32 %v2704_v6 }
 0x3be   :  { %13326 = vst [vmem:[#allocation25_spill] sm:$0xff] %v10342_v3  ;;  %v10351_v47 = vpop.eup %5340  ;;  %v2811_v2 = vadd.f32 %v10342_v3, %v2810_v57  ;;  %5354 = vpow2.f32 %v2708_v52 }
 0x3bf   :  { %13330 = vst [vmem:[#allocation35_spill] sm:$0xff] %v10351_v47  ;;  %v10359_v20 = vpop.eup %5342  ;;  %v2869_v46 = vsub.f32 2.0, %v2853_v59  ;;  %v2801_v23 = vadd.f32 %v10351_v47, %v2800_v50  ;;  %4927 = vmatmul.mubr.msk.f32.gmra.mrb[118].mxu1 %vm60_vm0, %v10309_v16  ;;  %v10373_v59 = vpop.f32.mrb[98].mxu1  ;;  %v13348_v16 = vld [vmem:[#allocation103_spill] sm:$0xff] }
 0x3c0   :  { %13334 = vst [vmem:[#allocation129_spill] sm:$0xff] %v10359_v20  ;;  %v10364_v43 = vpop.eup %5344  ;;  %v2812_v30 = vadd.f32 %v10359_v20, %v2811_v2  ;;  %4757 = vmatprep.mubr.f32.mxu1 %v13293_v58  ;;  %13338 = vst [vmem:[#allocation32_spill] sm:$0xff] %v10373_v59  ;;  %v10376_v57 = vpop.f32.mrb[99].mxu1  ;;  %v13347_v59 = vld [vmem:[#allocation55_spill] sm:$0xff]  ;;  %v13351_v20 = vld [vmem:[#allocation113_spill] sm:$0xff] }
 0x3c1   :  { %13335 = vst [vmem:[#allocation179_spill] sm:$0xff] %v10364_v43  ;;  %v10368_v26 = vpop.eup %5346  ;;  %v2885_v17 = vmul.f32 %v5337_v27, %v2869_v46  ;;  %v10371_v1 = vadd.f32 %v10364_v43, %v2801_v23  ;;  %13339 = vst [vmem:[#allocation158_spill] sm:$0xff] %v10376_v57  ;;  %v13344_v23 = vld [vmem:[#allocation49_spill] sm:$0xff]  ;;  %v13346_v57 = vld [vmem:[#allocation51_spill] sm:$0xff] }
 0x3c2   :  { %13336 = vst [vmem:[#allocation28_spill] sm:$0xff] %v10368_v26  ;;  %v2813_v32 = vadd.f32 %v10368_v26, %v2812_v30  ;;  %v13345_v30 = vld [vmem:[#allocation53_spill] sm:$0xff]  ;;  %v13349_v58 = vld [vmem:[#allocation107_spill] sm:$0xff] }
 0x3c3   :  { %13337 = vst [vmem:[#allocation120_spill] sm:$0xff] %v10371_v1  ;;  %v2985_v50 = vmul.f32 %v13261_v7, %v2885_v17  ;;  %v2987_v2 = vmul.f32 %v13262_v56, %v2885_v17  ;;  %v2989_v49 = vmul.f32 %v13269_v33, %v2885_v17  ;;  %v2991_v42 = vmul.f32 %v13277_v40, %v2885_v17  ;;  %v5349_v3 = vpop.eup %5348  ;;  %v13354_v47 = vld [vmem:[#allocation223_spill] sm:$0xff] }
 0x3c4   :  { %v10383_v46 = vmul.f32 %v13283_v11, %v2885_v17  ;;  %v10386_v6 = vmul.f32 %v13289_v0, %v2885_v17  ;;  %v10389_v52 = vmul.f32 %v13296_v62, %v2885_v17  ;;  %v10392_v27 = vmul.f32 %v13300_v44, %v2885_v17  ;;  %v13350_v0 = vld [vmem:[#allocation105_spill] sm:$0xff] }
 0x3c5   :  { %v3065_v7 = vmul.f32 %v2985_v50, %v13344_v23  ;;  %v3067_v56 = vmul.f32 %v2985_v50, %v13345_v30  ;;  %v3129_v33 = vmul.f32 %v2987_v2, %v13346_v57  ;;  %v3131_v40 = vmul.f32 %v2987_v2, %v13347_v59  ;;  %v13352_v17 = vld [vmem:[#allocation221_spill] sm:$0xff] }
 0x3c6   :  { %13340 = vst [vmem:[#allocation240_spill] sm:$0xff] %v10383_v46  ;;  %13341 = vst [vmem:[#allocation12_spill] sm:$0xff] %v10386_v6  ;;  %v3257_v11 = vmul.f32 %v2989_v49, %v13348_v16  ;;  %v3259_v55 = vmul.f32 %v2989_v49, %v13349_v58  ;;  %v3385_v26 = vmul.f32 %v2991_v42, %v13350_v0  ;;  %5356 = vrcp.f32 %v10371_v1 }
 0x3c7   :  { %13342 = vst [vmem:[#allocation178_spill] sm:$0xff] %v10389_v52  ;;  %13343 = vst [vmem:[#allocation199_spill] sm:$0xff] %v10392_v27  ;;  %v3387_v62 = vmul.f32 %v2991_v42, %v13351_v20  ;;  %v3193_v39 = vadd.f32 %v3129_v33, %v3065_v7  ;;  %v3195_v44 = vadd.f32 %v3131_v40, %v3067_v56  ;;  %v10414_v7 = vpop.eup %5350  ;;  %v13359_v40 = vld [vmem:[#allocation19_spill] sm:$0xff] }
 0x3c8   :  { %v3513_v10 = vmul.f32 %v10383_v46, %v13352_v17  ;;  %v3515_v43 = vmul.f32 %v10383_v46, %v13353_v63  ;;  %v3641_v48 = vmul.f32 %v10386_v6, %v13354_v47  ;;  %v3643_v29 = vmul.f32 %v10386_v6, %v13355_v41  ;;  %13358 = vst [vmem:[#allocation182_spill] sm:$0xff] %v10414_v7  ;;  %v10424_v46 = vpop.eup %5352 }
 0x3c9   :  { %v3769_v28 = vmul.f32 %v10389_v52, %v13356_v8  ;;  %v3771_v5 = vmul.f32 %v10389_v52, %v13357_v14  ;;  %v3321_v56 = vadd.f32 %v3257_v11, %v3193_v39  ;;  %v3323_v33 = vadd.f32 %v3259_v55, %v3195_v44  ;;  %v10428_v11 = vpop.eup %5354 }
 0x3ca   :  { %v3897_v36 = vmul.f32 %v10392_v27, %v13359_v40  ;;  %v3899_v15 = vmul.f32 %v10392_v27, %v13360_v12  ;;  %v2855_v53 = vmul.f32 %v5349_v3, %v10318_v13  ;;  %v2814_v6 = vadd.f32 %v10414_v7, %v2813_v32 }
 0x3cb   :  { %v3069_v19 = vmul.f32 %v2985_v50, %v13222_v9  ;;  %v3449_v52 = vadd.f32 %v3385_v26, %v3321_v56  ;;  %v3451_v22 = vadd.f32 %v3387_v62, %v3323_v33  ;;  %v3071_v55 = vmul.f32 %v2985_v50, %v13229_v25 }
 0x3cc   :  { %v3133_v39 = vmul.f32 %v2987_v2, %v12735_v24  ;;  %v2871_v44 = vsub.f32 2.0, %v2855_v53  ;;  %v2815_v27 = vadd.f32 %v10424_v46, %v2814_v6  ;;  %v3135_v13 = vmul.f32 %v2987_v2, %v13230_v61 }
 0x3cd   :  { %v3261_v1 = vmul.f32 %v2989_v49, %v13231_v21  ;;  %v3577_v32 = vadd.f32 %v3513_v10, %v3449_v52  ;;  %v3579_v7 = vadd.f32 %v3515_v43, %v3451_v22  ;;  %v3263_v12 = vmul.f32 %v2989_v49, %v12739_v34  ;;  %v10483_v52 = vpop.f32.mrb[100].mxu1 }
 0x3ce   :  { %v3197_v9 = vadd.f32 %v3133_v39, %v3069_v19  ;;  %v2887_v26 = vmul.f32 %v5349_v3, %v2871_v44  ;;  %v10435_v62 = vadd.f32 %v10428_v11, %v2815_v27  ;;  %v3199_v50 = vadd.f32 %v3135_v13, %v3071_v55  ;;  %13366 = vst [vmem:[#allocation101_spill] sm:$0xff] %v10483_v52  ;;  %v13369_v55 = vld [vmem:[#allocation251_spill] sm:$0xff]  ;;  %v13370_v39 = vld [vmem:[#allocation120_spill] sm:$0xff] }
 0x3cf   :  { %v3389_v56 = vmul.f32 %v2991_v42, %v12962_v51  ;;  %v3705_v33 = vadd.f32 %v3641_v48, %v3577_v32  ;;  %v3707_v53 = vadd.f32 %v3643_v29, %v3579_v7  ;;  %v3391_v6 = vmul.f32 %v2991_v42, %v13177_v45  ;;  %v13420_v45 = vld [vmem:[#allocation59_spill] sm:$0xff] }
 0x3d0   :  { %v3325_v24 = vadd.f32 %v3261_v1, %v3197_v9  ;;  %v10440_v2 = vmul.f32 %v13264_v18, %v2887_v26  ;;  %v10443_v22 = vmul.f32 %v13265_v31, %v2887_v26  ;;  %v10446_v19 = vmul.f32 %v13276_v35, %v2887_v26 }
 0x3d1   :  { %v10449_v49 = vmul.f32 %v10241_v54, %v2887_v26  ;;  %v3833_v3 = vadd.f32 %v3769_v28, %v3705_v33  ;;  %v3835_v10 = vadd.f32 %v3771_v5, %v3707_v53  ;;  %v10452_v48 = vmul.f32 %v10262_v38, %v2887_v26  ;;  %v5357_v28 = vpop.eup %5356  ;;  %v13372_v33 = vld [vmem:[#allocation229_spill] sm:$0xff]  ;;  %v13373_v53 = vld [vmem:[#allocation240_spill] sm:$0xff] }
 0x3d2   :  { %v10455_v9 = vmul.f32 %v10267_v37, %v2887_v26  ;;  %v10458_v18 = vmul.f32 %v10292_v4, %v2887_v26  ;;  %v10461_v31 = vmul.f32 %v13318_v60, %v2887_v26  ;;  %v3073_v35 = vmul.f32 %v10440_v2, %v13344_v23 }
 0x3d3   :  { %13361 = vst [vmem:[#allocation33_spill] sm:$0xff] %v10452_v48  ;;  %v3075_v54 = vmul.f32 %v10440_v2, %v13345_v30  ;;  %v3961_v42 = vadd.f32 %v3897_v36, %v3833_v3  ;;  %v3963_v5 = vadd.f32 %v3899_v15, %v3835_v10  ;;  %v3137_v38 = vmul.f32 %v10443_v22, %v13346_v57  ;;  %v10479_v15 = vpop.f32.mrb[100].mxu0  ;;  %v10495_v30 = vpop.f32.mrb[101].mxu1 }
 0x3d4   :  { %13362 = vst [vmem:[#allocation31_spill] sm:$0xff] %v10455_v9  ;;  %13363 = vst [vmem:[#allocation255_spill] sm:$0xff] %v10458_v18  ;;  %v3139_v37 = vmul.f32 %v10443_v22, %v13347_v59  ;;  %v3265_v4 = vmul.f32 %v10446_v19, %v13348_v16  ;;  %v3267_v29 = vmul.f32 %v10446_v19, %v13349_v58  ;;  %v10485_v16 = vpop.f32.mrb[101].mxu0  ;;  %5358 = vrcp.f32 %v10435_v62 }
 0x3d5   :  { %13364 = vst [vmem:[#allocation203_spill] sm:$0xff] %v10461_v31  ;;  %v3393_v60 = vmul.f32 %v10449_v49, %v13350_v0  ;;  %v3395_v36 = vmul.f32 %v10449_v49, %v13351_v20  ;;  %13365 = vst [vmem:[#allocation100_spill] sm:$0xff] %v10479_v15  ;;  %v5048_v43 = vpack.c.bf16 %v3963_v5, %v3961_v42  ;;  %v13377_v5 = vld [vmem:[#allocation231_spill] sm:$0xff]  ;;  %v13411_v15 = vld [vmem:[#allocation224_spill] sm:$0xff] }
 0x3d6   :  { %v3201_v1 = vadd.f32 %v3137_v38, %v3073_v35  ;;  %v3203_v57 = vadd.f32 %v3139_v37, %v3075_v54  ;;  %v3521_v59 = vmul.f32 %v10452_v48, %v13352_v17  ;;  %13367 = vst [vmem:[#allocation208_spill] sm:$0xff] %v10485_v16  ;;  %v3523_v58 = vmul.f32 %v10452_v48, %v13353_v63  ;;  %v13376_v54 = vld [vmem:[#allocation233_spill] sm:$0xff]  ;;  %v13378_v38 = vld [vmem:[#allocation12_spill] sm:$0xff] }
 0x3d7   :  { %v3649_v27 = vmul.f32 %v10455_v9, %v13354_v47  ;;  %v3651_v20 = vmul.f32 %v10455_v9, %v13355_v41  ;;  %v3777_v23 = vmul.f32 %v10458_v18, %v13356_v8  ;;  %13368 = vst [vmem:[#allocation209_spill] sm:$0xff] %v10495_v30  ;;  %5049 = vmatprep.subr.bf16.mxu0 %v5048_v43  ;;  %v10505_v8 = vpop.f32.mrb[102].mxu0  ;;  %v13381_v43 = vld [vmem:[#allocation146_spill] sm:$0xff]  ;;  %v13409_v30 = vld [vmem:[#allocation108_spill] sm:$0xff] }
 0x3d8   :  { %v3329_v0 = vadd.f32 %v3265_v4, %v3201_v1  ;;  %v3331_v17 = vadd.f32 %v3267_v29, %v3203_v57  ;;  %v3779_v7 = vmul.f32 %v10458_v18, %v13357_v14  ;;  %v3905_v63 = vmul.f32 %v10461_v31, %v13359_v40  ;;  %13371 = vst [vmem:[#allocation247_spill] sm:$0xff] %v10505_v8  ;;  %v10509_v14 = vpop.f32.mrb[102].mxu1  ;;  %v10511_v10 = vpop.f32.mrb[103].mxu0  ;;  %v13382_v1 = vld [vmem:[#allocation178_spill] sm:$0xff]  ;;  %v13410_v16 = vld [vmem:[#allocation220_spill] sm:$0xff] }
 0x3d9   :  { %v3907_v47 = vmul.f32 %v10461_v31, %v13369_v55  ;;  %v2852_v44 = vmul.f32 %v5357_v28, %v13370_v39  ;;  %v3327_v41 = vadd.f32 %v3263_v12, %v3199_v50  ;;  %v3453_v26 = vadd.f32 %v3389_v56, %v3325_v24  ;;  %13374 = vst [vmem:[#allocation21_spill] sm:$0xff] %v10509_v14  ;;  %v10517_v50 = vpop.f32.mrb[103].mxu1  ;;  %v13380_v56 = vld [vmem:[#allocation235_spill] sm:$0xff]  ;;  %v13408_v14 = vld [vmem:[#allocation104_spill] sm:$0xff] }
 0x3da   :  { %v3457_v13 = vadd.f32 %v3393_v60, %v3329_v0  ;;  %v3459_v32 = vadd.f32 %v3395_v36, %v3331_v17  ;;  %v3517_v3 = vmul.f32 %v13373_v53, %v13372_v33  ;;  %13375 = vst [vmem:[#allocation200_spill] sm:$0xff] %v10511_v10  ;;  %v3519_v42 = vmul.f32 %v13373_v53, %v13376_v54  ;;  %v13418_v54 = vld [vmem:[#allocation190_spill] sm:$0xff] }
 0x3db   :  { %v2868_v40 = vsub.f32 2.0, %v2852_v44  ;;  %v3455_v35 = vadd.f32 %v3391_v6, %v3327_v41  ;;  %v3645_v12 = vmul.f32 %v13378_v38, %v13377_v5  ;;  %13379 = vst [vmem:[#allocation183_spill] sm:$0xff] %v10517_v50  ;;  %v3647_v29 = vmul.f32 %v13378_v38, %v13380_v56  ;;  %v13383_v6 = vld [vmem:[#allocation91_spill] sm:$0xff]  ;;  %v13384_v44 = vld [vmem:[#allocation162_spill] sm:$0xff]  ;;  %v13396_v38 = vld [vmem:[#allocation253_spill] sm:$0xff] }
 0x3dc   :  { %v3585_v37 = vadd.f32 %v3521_v59, %v3457_v13  ;;  %v3587_v4 = vadd.f32 %v3523_v58, %v3459_v32  ;;  %v3581_v24 = vadd.f32 %v3517_v3, %v3453_v26  ;;  %v3773_v57 = vmul.f32 %v13382_v1, %v13381_v43  ;;  %v13385_v41 = vld [vmem:[#allocation199_spill] sm:$0xff]  ;;  %v13386_v59 = vld [vmem:[#allocation164_spill] sm:$0xff] }
 0x3dd   :  { %v2884_v60 = vmul.f32 %v5357_v28, %v2868_v40  ;;  %v3583_v36 = vadd.f32 %v3519_v42, %v3455_v35  ;;  %v3775_v0 = vmul.f32 %v13382_v1, %v13383_v6  ;;  %v3901_v53 = vmul.f32 %v13385_v41, %v13384_v44  ;;  %v13388_v13 = vld [vmem:[#allocation259_spill] sm:$0xff]  ;;  %v13390_v28 = vld [vmem:[#allocation252_spill] sm:$0xff]  ;;  %v13413_v44 = vld [vmem:[#allocation226_spill] sm:$0xff] }
 0x3de   :  { %v3713_v17 = vadd.f32 %v3649_v27, %v3585_v37  ;;  %v3715_v55 = vadd.f32 %v3651_v20, %v3587_v4  ;;  %v3709_v39 = vadd.f32 %v3645_v12, %v3581_v24  ;;  %v13392_v3 = vld [vmem:[#allocation175_spill] sm:$0xff]  ;;  %v5359_v50 = vpop.eup %5358  ;;  %v13414_v6 = vld [vmem:[#allocation84_spill] sm:$0xff]  ;;  %v3079_v48 = vmul.f32 %v10440_v2, %v13229_v25 }
 0x3df   :  { %v10528_v58 = vmul.f32 %v13386_v59, %v2884_v60  ;;  %v10531_v32 = vmul.f32 %v13388_v13, %v2884_v60  ;;  %v10534_v26 = vmul.f32 %v13390_v28, %v2884_v60  ;;  %v10537_v40 = vmul.f32 %v13392_v3, %v2884_v60  ;;  %v13394_v27 = vld [vmem:[#allocation95_spill] sm:$0xff]  ;;  %v13402_v59 = vld [vmem:[#allocation46_spill] sm:$0xff]  ;;  %v13403_v28 = vld [vmem:[#allocation52_spill] sm:$0xff] }
 0x3e0   :  { %v3841_v35 = vadd.f32 %v3777_v23, %v3713_v17  ;;  %v3843_v42 = vadd.f32 %v3779_v7, %v3715_v55  ;;  %v10540_v20 = vmul.f32 %v13394_v27, %v2884_v60  ;;  %v10543_v12 = vmul.f32 %v13396_v38, %v2884_v60  ;;  %v13398_v37 = vld [vmem:[#allocation35_spill] sm:$0xff]  ;;  %v13404_v17 = vld [vmem:[#allocation50_spill] sm:$0xff] }
 0x3e1   :  { %13387 = vst [vmem:[#allocation202_spill] sm:$0xff] %v10528_v58  ;;  %13389 = vst [vmem:[#allocation94_spill] sm:$0xff] %v10531_v32  ;;  %v10546_v4 = vmul.f32 %v13398_v37, %v2884_v60  ;;  %v13400_v24 = vld [vmem:[#allocation179_spill] sm:$0xff]  ;;  %v3064_v13 = vmul.f32 %v10528_v58, %v13402_v59  ;;  %v3066_v3 = vmul.f32 %v10528_v58, %v13403_v28  ;;  %v13405_v27 = vld [vmem:[#allocation54_spill] sm:$0xff] }
 0x3e2   :  { %13391 = vst [vmem:[#allocation167_spill] sm:$0xff] %v10534_v26  ;;  %13393 = vst [vmem:[#allocation180_spill] sm:$0xff] %v10537_v40  ;;  %v10549_v1 = vmul.f32 %v13400_v24, %v2884_v60  ;;  %v3969_v23 = vadd.f32 %v3905_v63, %v3841_v35  ;;  %v3971_v7 = vadd.f32 %v3907_v47, %v3843_v42  ;;  %v13406_v37 = vld [vmem:[#allocation102_spill] sm:$0xff] }
 0x3e3   :  { %13395 = vst [vmem:[#allocation184_spill] sm:$0xff] %v10540_v20  ;;  %13397 = vst [vmem:[#allocation168_spill] sm:$0xff] %v10543_v12  ;;  %v3128_v55 = vmul.f32 %v10531_v32, %v13404_v17  ;;  %v3130_v38 = vmul.f32 %v10531_v32, %v13405_v27  ;;  %v3256_v10 = vmul.f32 %v10534_v26, %v13406_v37  ;;  %v13407_v60 = vld [vmem:[#allocation106_spill] sm:$0xff] }
 0x3e4   :  { %13399 = vst [vmem:[#allocation185_spill] sm:$0xff] %v10546_v4  ;;  %13401 = vst [vmem:[#allocation170_spill] sm:$0xff] %v10549_v1  ;;  %v3258_v24 = vmul.f32 %v10534_v26, %v13407_v60  ;;  %v3384_v8 = vmul.f32 %v10537_v40, %v13408_v14  ;;  %v3386_v63 = vmul.f32 %v10537_v40, %v13409_v30  ;;  %v13412_v58 = vld [vmem:[#allocation222_spill] sm:$0xff] }
 0x3e5   :  { %v5056_v47 = vpack.c.bf16 %v3971_v7, %v3969_v23  ;;  %v3192_v35 = vadd.f32 %v3128_v55, %v3064_v13  ;;  %v3194_v42 = vadd.f32 %v3130_v38, %v3066_v3  ;;  %v3512_v52 = vmul.f32 %v10540_v20, %v13410_v16  ;;  %v13415_v13 = vld [vmem:[#allocation176_spill] sm:$0xff]  ;;  %v13416_v7 = vld [vmem:[#allocation87_spill] sm:$0xff]  ;;  %v13417_v38 = vld [vmem:[#allocation181_spill] sm:$0xff] }
 0x3e6   :  { %v3514_v32 = vmul.f32 %v10540_v20, %v13411_v15  ;;  %v3640_v31 = vmul.f32 %v10543_v12, %v13412_v58  ;;  %v3642_v26 = vmul.f32 %v10543_v12, %v13413_v44  ;;  %v3768_v18 = vmul.f32 %v10546_v4, %v13414_v6 }
 0x3e7   :  { %5057 = vmatprep.subr.bf16.mxu1 %v5056_v47  ;;  %v3320_v40 = vadd.f32 %v3256_v10, %v3192_v35  ;;  %v3322_v23 = vadd.f32 %v3258_v24, %v3194_v42  ;;  %v3770_v3 = vmul.f32 %v10546_v4, %v13415_v13  ;;  %v3896_v55 = vmul.f32 %v10549_v1, %v13416_v7  ;;  %v13419_v10 = vld [vmem:[#allocation57_spill] sm:$0xff] }
 0x3e8   :  { %v3898_v20 = vmul.f32 %v10549_v1, %v13417_v38  ;;  %v2854_v43 = vmul.f32 %v5359_v50, %v10435_v62  ;;  %v3711_v56 = vadd.f32 %v3647_v29, %v3583_v36  ;;  %v3837_v9 = vadd.f32 %v3773_v57, %v3709_v39  ;;  %v13423_v39 = vld [vmem:[#allocation25_spill] sm:$0xff] }
 0x3e9   :  { %v3448_v12 = vadd.f32 %v3384_v8, %v3320_v40  ;;  %v3450_v5 = vadd.f32 %v3386_v63, %v3322_v23  ;;  %v3903_v47 = vmul.f32 %v13385_v41, %v13418_v54  ;;  %v3077_v24 = vmul.f32 %v10440_v2, %v13419_v10  ;;  %v13421_v2 = vld [vmem:[#allocation98_spill] sm:$0xff] }
 0x3ea   :  { %v2870_v35 = vsub.f32 2.0, %v2854_v43  ;;  %v3839_v42 = vadd.f32 %v3775_v0, %v3711_v56  ;;  %v3965_v4 = vadd.f32 %v3901_v53, %v3837_v9  ;;  %v3141_v62 = vmul.f32 %v10443_v22, %v13420_v45  ;;  %v13425_v53 = vld [vmem:[#allocation28_spill] sm:$0xff] }
 0x3eb   :  { %v3576_v33 = vadd.f32 %v3512_v52, %v3448_v12  ;;  %v3578_v1 = vadd.f32 %v3514_v32, %v3450_v5  ;;  %v3143_v8 = vmul.f32 %v10443_v22, %v13230_v61  ;;  %v3269_v57 = vmul.f32 %v10446_v19, %v13231_v21  ;;  %v13422_v5 = vld [vmem:[#allocation72_spill] sm:$0xff]  ;;  %v13424_v22 = vld [vmem:[#allocation129_spill] sm:$0xff] }
 0x3ec   :  { %v2886_v29 = vmul.f32 %v5359_v50, %v2870_v35  ;;  %v3967_v36 = vadd.f32 %v3903_v47, %v3839_v42  ;;  %v3271_v56 = vmul.f32 %v10446_v19, %v12739_v34  ;;  %v3205_v0 = vadd.f32 %v3141_v62, %v3077_v24  ;;  %v13426_v19 = vld [vmem:[#allocation182_spill] sm:$0xff]  ;;  %v13428_v62 = vld [vmem:[#allocation229_spill] sm:$0xff] }
 0x3ed   :  { %v3704_v9 = vadd.f32 %v3640_v31, %v3576_v33  ;;  %v3706_v43 = vadd.f32 %v3642_v26, %v3578_v1  ;;  %v3207_v25 = vadd.f32 %v3143_v8, %v3079_v48  ;;  %v13427_v35 = vld [vmem:[#allocation86_spill] sm:$0xff] }
 0x3ee   :  { %v10599_v52 = vmul.f32 %v13421_v2, %v2886_v29  ;;  %v10602_v45 = vmul.f32 %v13422_v5, %v2886_v29  ;;  %v10605_v61 = vmul.f32 %v13423_v39, %v2886_v29  ;;  %v10608_v50 = vmul.f32 %v13424_v22, %v2886_v29  ;;  %v13435_v2 = vld [vmem:[#allocation255_spill] sm:$0xff]  ;;  %v13437_v22 = vld [vmem:[#allocation162_spill] sm:$0xff] }
 0x3ef   :  { %v3832_v21 = vadd.f32 %v3768_v18, %v3704_v9  ;;  %v3834_v41 = vadd.f32 %v3770_v3, %v3706_v43  ;;  %v10611_v34 = vmul.f32 %v13425_v53, %v2886_v29  ;;  %v10614_v31 = vmul.f32 %v13426_v19, %v2886_v29  ;;  %v13431_v9 = vld [vmem:[#allocation231_spill] sm:$0xff] }
 0x3f0   :  { %v10617_v48 = vmul.f32 %v10424_v46, %v2886_v29  ;;  %v10620_v33 = vmul.f32 %v10428_v11, %v2886_v29  ;;  %v3072_v32 = vmul.f32 %v10599_v52, %v13402_v59  ;;  %v3074_v26 = vmul.f32 %v10599_v52, %v13403_v28  ;;  %v13430_v29 = vld [vmem:[#allocation233_spill] sm:$0xff]  ;;  %v13436_v5 = vld [vmem:[#allocation91_spill] sm:$0xff] }
 0x3f1   :  { %v3960_v18 = vadd.f32 %v3896_v55, %v3832_v21  ;;  %v3962_v40 = vadd.f32 %v3898_v20, %v3834_v41  ;;  %v3136_v12 = vmul.f32 %v10602_v45, %v13404_v17  ;;  %v3138_v1 = vmul.f32 %v10602_v45, %v13405_v27  ;;  %v13438_v21 = vld [vmem:[#allocation203_spill] sm:$0xff] }
 0x3f2   :  { %v3264_v46 = vmul.f32 %v10605_v61, %v13406_v37  ;;  %v3266_v11 = vmul.f32 %v10605_v61, %v13407_v60  ;;  %v3392_v59 = vmul.f32 %v10608_v50, %v13408_v14  ;;  %v3394_v28 = vmul.f32 %v10608_v50, %v13409_v30 }
 0x3f3   :  { %v5050_v63 = vpack.c.bf16 %v3962_v40, %v3960_v18  ;;  %v3200_v20 = vadd.f32 %v3136_v12, %v3072_v32  ;;  %v3202_v23 = vadd.f32 %v3138_v1, %v3074_v26  ;;  %v3520_v17 = vmul.f32 %v10611_v34, %v13410_v16  ;;  %v13439_v40 = vld [vmem:[#allocation56_spill] sm:$0xff]  ;;  %v13440_v12 = vld [vmem:[#allocation202_spill] sm:$0xff] }
 0x3f4   :  { %v3522_v27 = vmul.f32 %v10611_v34, %v13411_v15  ;;  %v3648_v37 = vmul.f32 %v10614_v31, %v13412_v58  ;;  %v3650_v60 = vmul.f32 %v10614_v31, %v13413_v44  ;;  %v3776_v14 = vmul.f32 %v10617_v48, %v13414_v6 }
 0x3f5   :  { %5051 = vmatpush1.bf16.msra.mxu0 %v5050_v63  ;;  %v3328_v30 = vadd.f32 %v3264_v46, %v3200_v20  ;;  %v3330_v3 = vadd.f32 %v3266_v11, %v3202_v23  ;;  %v3778_v55 = vmul.f32 %v10617_v48, %v13415_v13  ;;  %v3904_v16 = vmul.f32 %v10620_v33, %v13416_v7  ;;  %v13429_v13 = vld [vmem:[#allocation33_spill] sm:$0xff]  ;;  %v13441_v46 = vld [vmem:[#allocation60_spill] sm:$0xff]  ;;  %v13444_v20 = vld [vmem:[#allocation62_spill] sm:$0xff] }
 0x3f6   :  { %v3906_v15 = vmul.f32 %v10620_v33, %v13417_v38  ;;  %v5052_v47 = vpack.c.bf16 %v3967_v36, %v3965_v4  ;;  %v3333_v58 = vadd.f32 %v3269_v57, %v3205_v0  ;;  %v3335_v10 = vadd.f32 %v3271_v56, %v3207_v25  ;;  %v13432_v38 = vld [vmem:[#allocation31_spill] sm:$0xff]  ;;  %v13434_v25 = vld [vmem:[#allocation146_spill] sm:$0xff] }
 0x3f7   :  { %v3456_v24 = vadd.f32 %v3392_v59, %v3328_v30  ;;  %v3458_v44 = vadd.f32 %v3394_v28, %v3330_v3  ;;  %v3397_v6 = vmul.f32 %v10449_v49, %v12962_v51  ;;  %v3399_v42 = vmul.f32 %v10449_v49, %v13427_v35  ;;  %v13433_v36 = vld [vmem:[#allocation235_spill] sm:$0xff]  ;;  %v13442_v59 = vld [vmem:[#allocation58_spill] sm:$0xff] }
 0x3f8   :  { %5053 = vmatprep.subr.bf16.mxu0 %v5052_v47  ;;  %v3525_v8 = vmul.f32 %v13429_v13, %v13428_v62  ;;  %v3527_v7 = vmul.f32 %v13429_v13, %v13430_v29  ;;  %v3653_v4 = vmul.f32 %v13432_v38, %v13431_v9  ;;  %v3655_v57 = vmul.f32 %v13432_v38, %v13433_v36  ;;  %v13443_v28 = vld [vmem:[#allocation94_spill] sm:$0xff]  ;;  %v13446_v47 = vld [vmem:[#allocation167_spill] sm:$0xff]  ;;  %v13449_v29 = vld [vmem:[#allocation180_spill] sm:$0xff] }
 0x3f9   :  { %v3584_v56 = vadd.f32 %v3520_v17, %v3456_v24  ;;  %v3586_v43 = vadd.f32 %v3522_v27, %v3458_v44  ;;  %v3461_v0 = vadd.f32 %v3397_v6, %v3333_v58  ;;  %v3463_v51 = vadd.f32 %v3399_v42, %v3335_v10  ;;  %v13445_v3 = vld [vmem:[#allocation118_spill] sm:$0xff]  ;;  %v13447_v10 = vld [vmem:[#allocation76_spill] sm:$0xff] }
 0x3fa   :  { %v3781_v49 = vmul.f32 %v13435_v2, %v13434_v25  ;;  %v3783_v39 = vmul.f32 %v13435_v2, %v13436_v5  ;;  %v3909_v41 = vmul.f32 %v13438_v21, %v13437_v22  ;;  %v3911_v53 = vmul.f32 %v13438_v21, %v13418_v54  ;;  %v13451_v36 = vld [vmem:[#allocation228_spill] sm:$0xff]  ;;  %v13456_v5 = vld [vmem:[#allocation234_spill] sm:$0xff]  ;;  %v13458_v21 = vld [vmem:[#allocation185_spill] sm:$0xff] }
 0x3fb   :  { %v3712_v19 = vadd.f32 %v3648_v37, %v3584_v56  ;;  %v3714_v32 = vadd.f32 %v3650_v60, %v3586_v43  ;;  %v3589_v26 = vadd.f32 %v3525_v8, %v3461_v0  ;;  %v3591_v18 = vadd.f32 %v3527_v7, %v3463_v51  ;;  %v13448_v8 = vld [vmem:[#allocation122_spill] sm:$0xff]  ;;  %v13455_v25 = vld [vmem:[#allocation168_spill] sm:$0xff] }
 0x3fc   :  { %v3068_v1 = vmul.f32 %v13440_v12, %v13439_v40  ;;  %v3070_v11 = vmul.f32 %v13440_v12, %v13441_v46  ;;  %v3132_v63 = vmul.f32 %v13443_v28, %v13442_v59  ;;  %v3134_v23 = vmul.f32 %v13443_v28, %v13444_v20  ;;  %v13454_v51 = vld [vmem:[#allocation230_spill] sm:$0xff]  ;;  %v13457_v22 = vld [vmem:[#allocation236_spill] sm:$0xff] }
 0x3fd   :  { %v3840_v17 = vadd.f32 %v3776_v14, %v3712_v19  ;;  %v3842_v27 = vadd.f32 %v3778_v55, %v3714_v32  ;;  %v3717_v30 = vadd.f32 %v3653_v4, %v3589_v26  ;;  %v3719_v54 = vadd.f32 %v3655_v57, %v3591_v18  ;;  %v13450_v55 = vld [vmem:[#allocation77_spill] sm:$0xff]  ;;  %v13452_v57 = vld [vmem:[#allocation184_spill] sm:$0xff]  ;;  %v13461_v12 = vld [vmem:[#allocation170_spill] sm:$0xff] }
 0x3fe   :  { %v3196_v37 = vadd.f32 %v3132_v63, %v3068_v1  ;;  %v3198_v60 = vadd.f32 %v3134_v23, %v3070_v11  ;;  %v3260_v58 = vmul.f32 %v13446_v47, %v13445_v3  ;;  %v3262_v24 = vmul.f32 %v13446_v47, %v13447_v10  ;;  %v13460_v18 = vld [vmem:[#allocation237_spill] sm:$0xff]  ;;  %v13462_v11 = vld [vmem:[#allocation26_spill] sm:$0xff] }
 0x3ff   :  { %v3968_v44 = vadd.f32 %v3904_v16, %v3840_v17  ;;  %v3970_v6 = vadd.f32 %v3906_v15, %v3842_v27  ;;  %v3845_v35 = vadd.f32 %v3781_v49, %v3717_v30  ;;  %v3847_v42 = vadd.f32 %v3783_v39, %v3719_v54  ;;  %v13453_v16 = vld [vmem:[#allocation232_spill] sm:$0xff] }
 0x400   :  { %v3324_v62 = vadd.f32 %v3260_v58, %v3196_v37  ;;  %v3326_v13 = vadd.f32 %v3262_v24, %v3198_v60  ;;  %v3388_v14 = vmul.f32 %v13449_v29, %v13448_v8  ;;  %v3390_v7 = vmul.f32 %v13449_v29, %v13450_v55 }
 0x401   :  { %v5058_v9 = vpack.c.bf16 %v3970_v6, %v3968_v44  ;;  %v3973_v38 = vadd.f32 %v3909_v41, %v3845_v35  ;;  %v3975_v4 = vadd.f32 %v3911_v53, %v3847_v42  ;;  %v3516_v56 = vmul.f32 %v13452_v57, %v13451_v36  ;;  %v13459_v53 = vld [vmem:[#allocation147_spill] sm:$0xff] }
 0x402   :  { %v3452_v43 = vadd.f32 %v3388_v14, %v3324_v62  ;;  %v3454_v0 = vadd.f32 %v3390_v7, %v3326_v13  ;;  %v3518_v15 = vmul.f32 %v13452_v57, %v13453_v16  ;;  %v3644_v2 = vmul.f32 %v13455_v25, %v13454_v51 }
 0x403   :  { %5059 = vmatpush1.bf16.msra.mxu1 %v5058_v9  ;;  %v5060_v49 = vpack.c.bf16 %v3975_v4, %v3973_v38  ;;  %v3646_v39 = vmul.f32 %v13455_v25, %v13456_v5  ;;  %v3772_v41 = vmul.f32 %v13458_v21, %v13457_v22  ;;  %v3774_v19 = vmul.f32 %v13458_v21, %v13459_v53  ;;  %v13463_v38 = vld [vmem:[#allocation89_spill] sm:$0xff] }
 0x404   :  { %v3580_v32 = vadd.f32 %v3516_v56, %v3452_v43  ;;  %v3582_v26 = vadd.f32 %v3518_v15, %v3454_v0  ;;  %v3900_v1 = vmul.f32 %v13461_v12, %v13460_v18  ;;  %v3902_v28 = vmul.f32 %v13461_v12, %v13462_v11  ;;  %v13465_v56 = vld [vmem:[#allocation192_spill] sm:$0xff]  ;;  %v13469_v12 = vld [vmem:[#allocation99_spill] sm:$0xff] }
 0x405   :  { %5061 = vmatprep.subr.bf16.mxu1 %v5060_v49  ;;  %v3076_v63 = vmul.f32 %v10599_v52, %v13439_v40  ;;  %v3078_v23 = vmul.f32 %v10599_v52, %v13441_v46  ;;  %v3140_v17 = vmul.f32 %v10602_v45, %v13442_v59  ;;  %v3142_v27 = vmul.f32 %v10602_v45, %v13444_v20 }
 0x406   :  { %v3708_v30 = vadd.f32 %v3644_v2, %v3580_v32  ;;  %v3710_v54 = vadd.f32 %v3646_v39, %v3582_v26  ;;  %v3268_v37 = vmul.f32 %v10605_v61, %v13445_v3  ;;  %v3270_v60 = vmul.f32 %v10605_v61, %v13447_v10  ;;  %v13468_v26 = vld [vmem:[#allocation217_spill] sm:$0xff] }
 0x407   :  { %v3204_v47 = vadd.f32 %v3140_v17, %v3076_v63  ;;  %v3206_v58 = vadd.f32 %v3142_v27, %v3078_v23  ;;  %v3396_v40 = vmul.f32 %v10608_v50, %v13448_v8  ;;  %v3398_v52 = vmul.f32 %v10608_v50, %v13450_v55  ;;  %v13471_v63 = vld [vmem:[#allocation207_spill] sm:$0xff] }
 0x408   :  { %v3836_v46 = vadd.f32 %v3772_v41, %v3708_v30  ;;  %v3838_v59 = vadd.f32 %v3774_v19, %v3710_v54  ;;  %v3524_v45 = vmul.f32 %v10611_v34, %v13451_v36  ;;  %v3526_v20 = vmul.f32 %v10611_v34, %v13453_v16  ;;  %v13467_v16 = vld [vmem:[#allocation246_spill] sm:$0xff]  ;;  %v13472_v30 = vld [vmem:[#allocation100_spill] sm:$0xff] }
 0x409   :  { %v3332_v3 = vadd.f32 %v3268_v37, %v3204_v47  ;;  %v3334_v24 = vadd.f32 %v3270_v60, %v3206_v58  ;;  %v3652_v61 = vmul.f32 %v10614_v31, %v13454_v51  ;;  %v3654_v10 = vmul.f32 %v10614_v31, %v13456_v5  ;;  %v13473_v37 = vld [vmem:[#allocation101_spill] sm:$0xff]  ;;  %v13474_v47 = vld [vmem:[#allocation208_spill] sm:$0xff] }
 0x40a   :  { %v3964_v44 = vadd.f32 %v3900_v1, %v3836_v46  ;;  %v3966_v6 = vadd.f32 %v3902_v28, %v3838_v59  ;;  %v3780_v50 = vmul.f32 %v10617_v48, %v13457_v22  ;;  %v3782_v35 = vmul.f32 %v10617_v48, %v13459_v53 }
 0x40b   :  { %v3460_v42 = vadd.f32 %v3396_v40, %v3332_v3  ;;  %v3462_v62 = vadd.f32 %v3398_v52, %v3334_v24  ;;  %v3908_v34 = vmul.f32 %v10620_v33, %v13460_v18  ;;  %v3910_v13 = vmul.f32 %v10620_v33, %v13462_v11  ;;  %v13466_v33 = vld [vmem:[#allocation214_spill] sm:$0xff]  ;;  %v13470_v11 = vld [vmem:[#allocation97_spill] sm:$0xff] }
 0x40c   :  { %v5054_v8 = vpack.c.bf16 %v3966_v6, %v3964_v44  ;;  %v13464_v48 = vmov 0.0   ;;  %v13475_v40 = vld [vmem:[#allocation209_spill] sm:$0xff] }
 0x40d   :  { %v3588_v29 = vadd.f32 %v3524_v45, %v3460_v42  ;;  %v3590_v14 = vadd.f32 %v3526_v20, %v3462_v62  ;;  %v13477_v42 = vld [vmem:[#allocation32_spill] sm:$0xff] }
 0x40e   :  { %5055 = vmatpush1.bf16.msra.mxu0 %v5054_v8  ;;  %v13479_v8 = vld [vmem:[#allocation158_spill] sm:$0xff] }
 0x40f   :  { %v3716_v31 = vadd.f32 %v3652_v61, %v3588_v29  ;;  %v3718_v55 = vadd.f32 %v3654_v10, %v3590_v14 }
 0x411   :  { %v3844_v7 = vadd.f32 %v3780_v50, %v3716_v31  ;;  %v3846_v9 = vadd.f32 %v3782_v35, %v3718_v55  ;;  %4928 = vmatmul.mubr.msk.f32.vlgmr.msra.gmra.mrb[120].mxu0 %vm60_vm0, %v13463_v38  ;;  %v13476_v50 = vld [vmem:[#allocation117_spill] sm:$0xff]  ;;  %v13480_v31 = vld [vmem:[#allocation247_spill] sm:$0xff] }
 0x412   :  { %4665 = vmatprep.mubr.f32.mxu0 %v13464_v48 }
 0x413   :  { %v3972_v4 = vadd.f32 %v3908_v34, %v3844_v7  ;;  %v3974_v36 = vadd.f32 %v3910_v13, %v3846_v9  ;;  %v13478_v34 = vld [vmem:[#allocation160_spill] sm:$0xff]  ;;  %v13481_v7 = vld [vmem:[#allocation21_spill] sm:$0xff] }
 0x414   :  { %v4269_v43 = vpop.f32.mrb[104].mxu0 }
 0x415   :  { %v5062_v57 = vpack.c.bf16 %v3974_v36, %v3972_v4  ;;  %4929 = vmatmul.mubr.msk.f32.gmra.mrb[122].mxu0 %vm60_vm0, %v13465_v56  ;;  %v4271_v0 = vpop.f32.mrb[105].mxu0  ;;  %v13483_v4 = vld [vmem:[#allocation183_spill] sm:$0xff] }
 0x416   :  { %4671 = vmatprep.mubr.f32.mxu0 %v13464_v48 }
 0x417   :  { %5063 = vmatpush1.bf16.msra.mxu1 %v5062_v57 }
 0x418   :  { %v10755_v15 = vpop.f32.mrb[106].mxu0 }
 0x419   :  { %4930 = vmatmul.mubr.msk.f32.gmra.mrb[124].mxu0 %vm60_vm0, %v13466_v33  ;;  %v10757_v51 = vpop.f32.mrb[107].mxu0 }
 0x41a   :  { %4932 = vmatmul.mubr.msk.f32.vlgmr.msra.gmra.mrb[120].mxu1 %vm60_vm0, %v13463_v38  ;;  %4677 = vmatprep.mubr.f32.mxu0 %v13464_v48  ;;  %v13482_v38 = vld [vmem:[#allocation200_spill] sm:$0xff] }
 0x41b   :  { %4763 = vmatprep.mubr.f32.mxu1 %v13464_v48 }
 0x41c   :  { %v4367_v25 = vpop.f32.mrb[104].mxu1  ;;  %v4281_v2 = vpop.f32.mrb[108].mxu0 }
 0x41d   :  { %4931 = vmatmul.mubr.msk.f32.gmra.mrb[126].mxu0 %vm60_vm0, %v13467_v16  ;;  %v4369_v49 = vpop.f32.mrb[105].mxu1  ;;  %v4283_v5 = vpop.f32.mrb[109].mxu0 }
 0x41e   :  { %4933 = vmatmul.mubr.msk.f32.gmra.mrb[122].mxu1 %vm60_vm0, %v13465_v56 }
 0x41f   :  { %4769 = vmatprep.mubr.f32.mxu1 %v13464_v48 }
 0x420   :  { %v4373_v39 = vpop.f32.mrb[106].mxu1  ;;  %v10764_v22 = vpop.f32.mrb[110].mxu0 }
 0x421   :  { %v4375_v21 = vpop.f32.mrb[107].mxu1  ;;  %v10766_v41 = vpop.f32.mrb[111].mxu0 }
 0x422   :  { %4934 = vmatmul.mubr.msk.f32.gmra.mrb[124].mxu1 %vm60_vm0, %v13466_v33 }
 0x423   :  { %4775 = vmatprep.mubr.f32.mxu1 %v13464_v48 }
 0x424   :  { %v4379_v53 = vpop.f32.mrb[108].mxu1 }
 0x425   :  { %v4381_v19 = vpop.f32.mrb[109].mxu1 }
 0x426   :  { %4935 = vmatmul.mubr.msk.f32.gmra.mrb[126].mxu1 %vm60_vm0, %v13467_v16 }
 0x428   :  { %v4385_v27 = vpop.f32.mrb[110].mxu1 }
 0x429   :  { %v4387_v46 = vpop.f32.mrb[111].mxu1 }
 0x42d   :  { %v10768_v32 = vpop.permute.xlu0 %3978 }
 0x42e   :  { %v4075_v18 = vadd.f32 %v13468_v26, %v10768_v32  ;;  %v4172_v1 = vadd.f32 %v13469_v12, %v10768_v32  ;;  %v4077_v28 = vadd.f32 %v13470_v11, %v10768_v32  ;;  %v4174_v23 = vadd.f32 %v13471_v63, %v10768_v32  ;;  %v10778_v17 = vpop.permute.xlu1 %3988 }
 0x42f   :  { %v4087_v54 = vadd.f32 %v13472_v30, %v10778_v17  ;;  %v4184_v60 = vadd.f32 %v13473_v37, %v10778_v17  ;;  %v4089_v58 = vadd.f32 %v13474_v47, %v10778_v17  ;;  %v4186_v52 = vadd.f32 %v13475_v40, %v10778_v17 }
 0x430   :  { %4097 = vst [vmem:[#allocation5] sm:$0xff] %v4075_v18  ;;  %4195 = vst [vmem:[#allocation5 + $0x40] sm:$0xff] %v4172_v1  ;;  %v4270_v59 = vadd.f32 %v4269_v43, %v10768_v32  ;;  %v4368_v45 = vadd.f32 %v4367_v25, %v10768_v32  ;;  %v4272_v20 = vadd.f32 %v4271_v0, %v10768_v32 }
 0x431   :  { %4098 = vst [vmem:[#allocation5 + $0x8] sm:$0xff] %v4077_v28  ;;  %4196 = vst [vmem:[#allocation5 + $0x48] sm:$0xff] %v4174_v23  ;;  %v4370_v3 = vadd.f32 %v4369_v49, %v10768_v32  ;;  %v10792_v24 = vpop.permute.xlu0 %3983  ;;  %v4282_v61 = vadd.f32 %v4281_v2, %v10778_v17  ;;  %v4380_v10 = vadd.f32 %v4379_v53, %v10778_v17 }
 0x432   :  { %4101 = vst [vmem:[#allocation5 + $0x20] sm:$0xff] %v4087_v54  ;;  %4199 = vst [vmem:[#allocation5 + $0x60] sm:$0xff] %v4184_v60  ;;  %v4284_v44 = vadd.f32 %v4283_v5, %v10778_v17  ;;  %v4382_v6 = vadd.f32 %v4381_v19, %v10778_v17  ;;  %v4081_v35 = vadd.f32 %v13476_v50, %v10792_v24  ;;  %v10806_v14 = vpop.permute.xlu1 %3993 }
 0x433   :  { %4102 = vst [vmem:[#allocation5 + $0x28] sm:$0xff] %v4089_v58  ;;  %4200 = vst [vmem:[#allocation5 + $0x68] sm:$0xff] %v4186_v52  ;;  %v4178_v62 = vadd.f32 %v13477_v42, %v10792_v24  ;;  %v4083_v13 = vadd.f32 %v13478_v34, %v10792_v24  ;;  %v4180_v29 = vadd.f32 %v13479_v8, %v10792_v24 }
 0x434   :  { %4293 = vst [vmem:[#allocation5 + $0x80] sm:$0xff] %v4270_v59  ;;  %4391 = vst [vmem:[#allocation5 + $0xc0] sm:$0xff] %v4368_v45  ;;  %v4093_v55 = vadd.f32 %v13480_v31, %v10806_v14  ;;  %v4190_v9 = vadd.f32 %v13481_v7, %v10806_v14  ;;  %v4095_v48 = vadd.f32 %v13482_v38, %v10806_v14 }
 0x435   :  { %4294 = vst [vmem:[#allocation5 + $0x88] sm:$0xff] %v4272_v20  ;;  %4392 = vst [vmem:[#allocation5 + $0xc8] sm:$0xff] %v4370_v3  ;;  %v4192_v36 = vadd.f32 %v13483_v4, %v10806_v14  ;;  %v4276_v57 = vadd.f32 %v10755_v15, %v10792_v24  ;;  %v4374_v56 = vadd.f32 %v4373_v39, %v10792_v24 }
 0x436   :  { %4297 = vst [vmem:[#allocation5 + $0xa0] sm:$0xff] %v4282_v61  ;;  %4395 = vst [vmem:[#allocation5 + $0xe0] sm:$0xff] %v4380_v10  ;;  %v4278_v33 = vadd.f32 %v10757_v51, %v10792_v24  ;;  %v4376_v43 = vadd.f32 %v4375_v21, %v10792_v24  ;;  %v4288_v0 = vadd.f32 %v10764_v22, %v10806_v14 }
 0x437   :  { %4298 = vst [vmem:[#allocation5 + $0xa8] sm:$0xff] %v4284_v44  ;;  %4396 = vst [vmem:[#allocation5 + $0xe8] sm:$0xff] %v4382_v6  ;;  %v4386_v16 = vadd.f32 %v4385_v27, %v10806_v14  ;;  %v4290_v25 = vadd.f32 %v10766_v41, %v10806_v14  ;;  %v4388_v15 = vadd.f32 %v4387_v46, %v10806_v14 }
 0x438   :  { %4099 = vst [vmem:[#allocation5 + $0x10] sm:$0xff] %v4081_v35  ;;  %4197 = vst [vmem:[#allocation5 + $0x50] sm:$0xff] %v4178_v62 }
 0x439   :  { %4100 = vst [vmem:[#allocation5 + $0x18] sm:$0xff] %v4083_v13  ;;  %4198 = vst [vmem:[#allocation5 + $0x58] sm:$0xff] %v4180_v29 }
 0x43a   :  { %4103 = vst [vmem:[#allocation5 + $0x30] sm:$0xff] %v4093_v55  ;;  %4201 = vst [vmem:[#allocation5 + $0x70] sm:$0xff] %v4190_v9 }
 0x43b   :  { %4104 = vst [vmem:[#allocation5 + $0x38] sm:$0xff] %v4095_v48  ;;  %4202 = vst [vmem:[#allocation5 + $0x78] sm:$0xff] %v4192_v36 }
 0x43c   :  { %4295 = vst [vmem:[#allocation5 + $0x90] sm:$0xff] %v4276_v57  ;;  %4393 = vst [vmem:[#allocation5 + $0xd0] sm:$0xff] %v4374_v56 }
 0x43d   :  { %4296 = vst [vmem:[#allocation5 + $0x98] sm:$0xff] %v4278_v33  ;;  %4394 = vst [vmem:[#allocation5 + $0xd8] sm:$0xff] %v4376_v43 }
 0x43e   :  { %4299 = vst [vmem:[#allocation5 + $0xb0] sm:$0xff] %v4288_v0  ;;  %4397 = vst [vmem:[#allocation5 + $0xf0] sm:$0xff] %v4386_v16 }
 0x43f   :  { %4300 = vst [vmem:[#allocation5 + $0xb8] sm:$0xff] %v4290_v25  ;;  %4398 = vst [vmem:[#allocation5 + $0xf8] sm:$0xff] %v4388_v15 }
 0x47c   :  { %v4465_v51 = vpop.f32.mrb[112].mxu0 }
 0x47d   :  { %v4466_v2 = vadd.f32 %v4465_v51, %v10768_v32  ;;  %v4467_v49 = vpop.f32.mrb[113].mxu0 }
 0x47e   :  { %v4468_v5 = vadd.f32 %v4467_v49, %v10768_v32 }
 0x47f   :  { %4489 = vst [vmem:[#allocation5 + $0x100] sm:$0xff] %v4466_v2 }
 0x480   :  { %4490 = vst [vmem:[#allocation5 + $0x108] sm:$0xff] %v4468_v5 }
 0x482   :  { %v4471_v39 = vpop.f32.mrb[114].mxu0 }
 0x483   :  { %v4472_v22 = vadd.f32 %v4471_v39, %v10792_v24  ;;  %v4473_v21 = vpop.f32.mrb[115].mxu0 }
 0x484   :  { %v4474_v41 = vadd.f32 %v4473_v21, %v10792_v24 }
 0x485   :  { %4491 = vst [vmem:[#allocation5 + $0x110] sm:$0xff] %v4472_v22 }
 0x486   :  { %v4563_v53 = vpop.f32.mrb[112].mxu1  ;;  %4492 = vst [vmem:[#allocation5 + $0x118] sm:$0xff] %v4474_v41 }
 0x487   :  { %v4477_v19 = vpop.f32.mrb[116].mxu0  ;;  %v4564_v26 = vadd.f32 %v4563_v53, %v10768_v32  ;;  %v4565_v18 = vpop.f32.mrb[113].mxu1 }
 0x488   :  { %v4478_v12 = vadd.f32 %v4477_v19, %v10778_v17  ;;  %v4479_v1 = vpop.f32.mrb[117].mxu0  ;;  %v4566_v11 = vadd.f32 %v4565_v18, %v10768_v32 }
 0x489   :  { %v4480_v28 = vadd.f32 %v4479_v1, %v10778_v17  ;;  %4587 = vst [vmem:[#allocation5 + $0x140] sm:$0xff] %v4564_v26 }
 0x48a   :  { %4493 = vst [vmem:[#allocation5 + $0x120] sm:$0xff] %v4478_v12  ;;  %4588 = vst [vmem:[#allocation5 + $0x148] sm:$0xff] %v4566_v11  ;;  %v4569_v63 = vpop.f32.mrb[114].mxu1 }
 0x48b   :  { %4494 = vst [vmem:[#allocation5 + $0x128] sm:$0xff] %v4480_v28  ;;  %v4483_v23 = vpop.f32.mrb[118].mxu0  ;;  %v4570_v27 = vadd.f32 %v4569_v63, %v10792_v24  ;;  %v4571_v30 = vpop.f32.mrb[115].mxu1 }
 0x48c   :  { %v4484_v54 = vadd.f32 %v4483_v23, %v10806_v14  ;;  %v4485_v37 = vpop.f32.mrb[119].mxu0  ;;  %v4572_v60 = vadd.f32 %v4571_v30, %v10792_v24 }
 0x48d   :  { %v4486_v47 = vadd.f32 %v4485_v37, %v10806_v14  ;;  %4589 = vst [vmem:[#allocation5 + $0x150] sm:$0xff] %v4570_v27 }
 0x48e   :  { %4495 = vst [vmem:[#allocation5 + $0x130] sm:$0xff] %v4484_v54  ;;  %4590 = vst [vmem:[#allocation5 + $0x158] sm:$0xff] %v4572_v60  ;;  %v4575_v58 = vpop.f32.mrb[116].mxu1 }
 0x48f   :  { %4496 = vst [vmem:[#allocation5 + $0x138] sm:$0xff] %v4486_v47  ;;  %v4576_v40 = vadd.f32 %v4575_v58, %v10778_v17  ;;  %v4577_v52 = vpop.f32.mrb[117].mxu1 }
 0x490   :  { %v4578_v46 = vadd.f32 %v4577_v52, %v10778_v17 }
 0x491   :  { %4591 = vst [vmem:[#allocation5 + $0x160] sm:$0xff] %v4576_v40 }
 0x492   :  { %4592 = vst [vmem:[#allocation5 + $0x168] sm:$0xff] %v4578_v46  ;;  %v4581_v59 = vpop.f32.mrb[118].mxu1 }
 0x493   :  { %v4582_v45 = vadd.f32 %v4581_v59, %v10806_v14  ;;  %v4583_v20 = vpop.f32.mrb[119].mxu1 }
 0x494   :  { %v4584_v3 = vadd.f32 %v4583_v20, %v10806_v14 }
 0x495   :  { %4593 = vst [vmem:[#allocation5 + $0x170] sm:$0xff] %v4582_v45 }
 0x496   :  { %4594 = vst [vmem:[#allocation5 + $0x178] sm:$0xff] %v4584_v3 }
 0x4e4   :  { %v4661_v61 = vpop.f32.mrb[120].mxu0 }
 0x4e5   :  { %v4662_v10 = vadd.f32 %v4661_v61, %v10768_v32  ;;  %v4663_v44 = vpop.f32.mrb[121].mxu0 }
 0x4e6   :  { %v4664_v6 = vadd.f32 %v4663_v44, %v10768_v32 }
 0x4e7   :  { %4685 = vst [vmem:[#allocation5 + $0x180] sm:$0xff] %v4662_v10 }
 0x4e8   :  { %4686 = vst [vmem:[#allocation5 + $0x188] sm:$0xff] %v4664_v6  ;;  %v4667_v50 = vpop.f32.mrb[122].mxu0 }
 0x4e9   :  { %v4668_v35 = vadd.f32 %v4667_v50, %v10792_v24  ;;  %v4669_v42 = vpop.f32.mrb[123].mxu0 }
 0x4ea   :  { %v4670_v62 = vadd.f32 %v4669_v42, %v10792_v24 }
 0x4eb   :  { %4687 = vst [vmem:[#allocation5 + $0x190] sm:$0xff] %v4668_v35 }
 0x4ec   :  { %4688 = vst [vmem:[#allocation5 + $0x198] sm:$0xff] %v4670_v62  ;;  %v4673_v34 = vpop.f32.mrb[124].mxu0 }
 0x4ed   :  { %v4759_v13 = vpop.f32.mrb[120].mxu1  ;;  %v4674_v8 = vadd.f32 %v4673_v34, %v10778_v17  ;;  %v4675_v29 = vpop.f32.mrb[125].mxu0 }
 0x4ee   :  { %v4760_v31 = vadd.f32 %v4759_v13, %v10768_v32  ;;  %v4761_v55 = vpop.f32.mrb[121].mxu1  ;;  %v4676_v7 = vadd.f32 %v4675_v29, %v10778_v17 }
 0x4ef   :  { %v4762_v9 = vadd.f32 %v4761_v55, %v10768_v32  ;;  %4689 = vst [vmem:[#allocation5 + $0x1a0] sm:$0xff] %v4674_v8 }
 0x4f0   :  { %4783 = vst [vmem:[#allocation5 + $0x1c0] sm:$0xff] %v4760_v31  ;;  %4690 = vst [vmem:[#allocation5 + $0x1a8] sm:$0xff] %v4676_v7  ;;  %v4679_v38 = vpop.f32.mrb[126].mxu0 }
 0x4f1   :  { %4784 = vst [vmem:[#allocation5 + $0x1c8] sm:$0xff] %v4762_v9  ;;  %v4765_v48 = vpop.f32.mrb[122].mxu1  ;;  %v4680_v4 = vadd.f32 %v4679_v38, %v10806_v14  ;;  %v4681_v36 = vpop.f32.mrb[127].mxu0 }
 0x4f2   :  { %v4766_v57 = vadd.f32 %v4765_v48, %v10792_v24  ;;  %v4767_v56 = vpop.f32.mrb[123].mxu1  ;;  %v4682_v33 = vadd.f32 %v4681_v36, %v10806_v14 }
 0x4f3   :  { %v4768_v43 = vadd.f32 %v4767_v56, %v10792_v24  ;;  %4691 = vst [vmem:[#allocation5 + $0x1b0] sm:$0xff] %v4680_v4 }
 0x4f4   :  { %4785 = vst [vmem:[#allocation5 + $0x1d0] sm:$0xff] %v4766_v57  ;;  %4692 = vst [vmem:[#allocation5 + $0x1b8] sm:$0xff] %v4682_v33 }
 0x4f5   :  { %4786 = vst [vmem:[#allocation5 + $0x1d8] sm:$0xff] %v4768_v43  ;;  %v4771_v32 = vpop.f32.mrb[124].mxu1 }
 0x4f6   :  { %v4772_v0 = vadd.f32 %v4771_v32, %v10778_v17  ;;  %v4773_v16 = vpop.f32.mrb[125].mxu1 }
 0x4f7   :  { %v4774_v25 = vadd.f32 %v4773_v16, %v10778_v17 }
 0x4f8   :  { %4787 = vst [vmem:[#allocation5 + $0x1e0] sm:$0xff] %v4772_v0 }
 0x4f9   :  { %4788 = vst [vmem:[#allocation5 + $0x1e8] sm:$0xff] %v4774_v25  ;;  %v4777_v15 = vpop.f32.mrb[126].mxu1 }
 0x4fa   :  { %v4778_v51 = vadd.f32 %v4777_v15, %v10806_v14  ;;  %v4779_v2 = vpop.f32.mrb[127].mxu1 }
 0x4fb   :  { %v4780_v24 = vadd.f32 %v4779_v2, %v10806_v14 }
 0x4fc   :  { %4789 = vst [vmem:[#allocation5 + $0x1f0] sm:$0xff] %v4778_v51 }
 0x4fd   :  { %4790 = vst [vmem:[#allocation5 + $0x1f8] sm:$0xff] %v4780_v24 }
 0x4fe   :  { %5397 = shalt.err (!%p5394_p12)
}
 0x4ff   :  { %s5398_s28 = scalar_lea.hbm %s10879_s4, 8192 }
 0x500   :  { %p5399_p13 = scmp.ne.s32.totalorder %s10879_s4, %s5398_s28  ;;  %p5402_p0 = scmp.lt.u32.totalorder %s5398_s28, %s10879_s4 }
 0x502   :  { %p5404_p1 = pnand %p5402_p0, %p5399_p13 }
 0x504   :  { %5407 = shalt.err (!%p5404_p1)
}
 0x505   :  { %4802 = dma.vmem_to_hbm [thread:$0]  %s4797_s23, 8192, %s10879_s4, [#allocation4], %s5413_s25, %s5413_s25, %s5414_s26  }
 0x506   :  { %5410 = dma.done.wait [#allocation4], 8192  }
 0x507   :  { %5411 = vsyncadd [#allocation4], 4294959104 }
 0x508   :  { %4806 = vsyncpa [#allocation3], 1 }
 0x509   :  { %4807 = vsyncpa [#allocation4], 1 }

</bundles_post_ra>
